<compile_context>
chip_gen: v7x
topology: tpu7x:2x2x1
jax: 0.10.0
libtpu: 0.0.40
codegen_flags: <defaults>
</compile_context>

<pallas_src>
import math
import functools

import jax
import jax.numpy as jnp
from jax import lax
from jax.experimental import pallas as pl
from jax.experimental.pallas import tpu as pltpu


LN_EPS = 1e-5
OUT_PAD = 128     # logits lane-padded 5 -> 128 (lane-dense stores)
VEC_ROWS = 16     # packed constant-vector slab rows (8 bias/LN + 5 Wp + pad)
_MAX_TB = 1024    # batch-tile cap (~0.5-2 MiB blocks; fits default VMEM budget)


def _layernorm(h, gamma, beta):
    """Two-pass LayerNorm (biased variance, eps inside rsqrt) in f32."""
    mu = jnp.mean(h, axis=-1, keepdims=True)
    d = h - mu
    var = jnp.mean(d * d, axis=-1, keepdims=True)
    return d * lax.rsqrt(var + LN_EPS) * gamma + beta


def policy_net_kernel(
    state_ref, phase_ref,
    w1_ref, w2_ref, w3_ref, w4_ref,
    vec_ref, b4_ref,
    out_ref,
    *, inv_temperature, n_phase,
):
    bf16 = jnp.bfloat16
    f32 = jnp.float32

    # Packed (VEC_ROWS, H) f32 slab: b1, g1, be1, b2, g2, be2, b3, bp, Wp[0:5].
    b1 = vec_ref[0:1, :]
    g1 = vec_ref[1:2, :]
    be1 = vec_ref[2:3, :]
    b2 = vec_ref[3:4, :]
    g2 = vec_ref[4:5, :]
    be2 = vec_ref[5:6, :]
    b3 = vec_ref[6:7, :]
    bp = vec_ref[7:8, :]

    # fc1 (f32 state cast to bf16 in-kernel, f32 acc) -> norm1 -> relu
    h = jnp.dot(state_ref[...].astype(bf16), w1_ref[...],
                preferred_element_type=f32) + b1
    h = jnp.maximum(_layernorm(h, g1, be1), 0.0)
    # dropout1: identity (eval mode)

    # phase_embed + relu, added (inject_phase_direct=True).
    # K = n_phase (5) is far too small for the MXU: use VPU broadcast-FMAs.
    ph = phase_ref[...]                         # (TB, n_phase) f32
    pp = bp                                     # (1, H) -> broadcasts to (TB, H)
    for k in range(n_phase):
        pp = pp + ph[:, k:k + 1] * vec_ref[8 + k:9 + k, :]
    h = h + jnp.maximum(pp, 0.0)

    # fc2 -> norm2 -> relu   (dropout2: identity in eval mode)
    h = jnp.dot(h.astype(bf16), w2_ref[...], preferred_element_type=f32) + b2
    h = jnp.maximum(_layernorm(h, g2, be2), 0.0)

    # noisy_fc3 (eval: mu weights) -> relu
    h = jnp.dot(h.astype(bf16), w3_ref[...], preferred_element_type=f32) + b3
    h = jnp.maximum(h, 0.0)

    # noisy_fc4 (eval: mu weights, lane-padded) -> temperature scaling
    logits = jnp.dot(h.astype(bf16), w4_ref[...],
                     preferred_element_type=f32) + b4_ref[...]
    out_ref[...] = (logits * inv_temperature).astype(out_ref.dtype)


def prepare_params(params):
    """One-time, out-of-hot-path conversion to kernel-ready layout/dtypes."""
    bf16 = jnp.bfloat16
    f32 = jnp.float32
    IN, H = params["w1"].shape
    P_in = params["wp"].shape[0]
    OUT = params["w4"].shape[1]
    assert OUT <= OUT_PAD and P_in <= VEC_ROWS - 8

    w1 = params["w1"].astype(bf16)
    w2 = params["w2"].astype(bf16)
    w3 = params["w3"].astype(bf16)
    w4 = jnp.zeros((H, OUT_PAD), bf16).at[:, :OUT].set(params["w4"].astype(bf16))
    b4 = jnp.zeros((1, OUT_PAD), f32).at[:, :OUT].set(params["b4"].astype(f32))

    vecs = jnp.zeros((VEC_ROWS, H), f32)
    vecs = vecs.at[0:1].set(params["b1"])
    vecs = vecs.at[1:2].set(params["g1"])
    vecs = vecs.at[2:3].set(params["be1"])
    vecs = vecs.at[3:4].set(params["b2"])
    vecs = vecs.at[4:5].set(params["g2"])
    vecs = vecs.at[5:6].set(params["be2"])
    vecs = vecs.at[6:7].set(params["b3"])
    vecs = vecs.at[7:8].set(params["bp"])
    vecs = vecs.at[8:8 + P_in].set(params["wp"])

    return dict(w1=w1, w2=w2, w3=w3, w4=w4, vecs=vecs, b4=b4,
                out_size=OUT, phase_in=P_in)


def _num_parallel_cores():
    """Cores a 'parallel' grid axis can shard over (heuristic, robust)."""
    try:
        kind = jax.devices()[0].device_kind.lower().replace(" ", "")
    except Exception:
        return 1
    if "lite" in kind or "v5e" in kind or "v6e" in kind or "v2" in kind or "v3" in kind:
        return 1          # single TensorCore per device (v2/v3/v5e/v6e)
    if "v4" in kind or "v5p" in kind or "7" in kind:
        return 2          # megacore (v4/v5p) / dual-TensorCore (v7x)
    return 1


def _choose_tb(B, block_b=None):
    """Generation-aware batch tile: grid=1 on single-TC chips when B fits,
    even >=2-way parallel split on dual-core chips, ~1K-row cap otherwise."""
    if block_b is not None:
        TB = max(1, min(block_b, B))
    else:
        n = _num_parallel_cores()
        if n > 1 and B > 8:
            pieces = n
            while -(-B // pieces) > _MAX_TB:
                pieces += n
            TB = -(-B // pieces)
        else:
            TB = min(B, _MAX_TB)
    if TB >= B:
        return B                              # single block: no alignment needed
    return max(8, ((TB + 7) // 8) * 8)        # multi-block: sublane-aligned


def policy_net_forward(state, phase, prepped, temperature=1.0, block_b=None):
    """state: (B, IN) f32, phase: (B, 5) f32. Returns logits (B, OUT) f32."""
    B, IN = state.shape
    H = prepped["w1"].shape[1]
    OUT = prepped["out_size"]
    P_in = prepped["phase_in"]
    assert phase.shape == (B, P_in)

    TB = _choose_tb(B, block_b)
    num_blocks = pl.cdiv(B, TB)               # ragged last block handled by Pallas

    kernel = functools.partial(policy_net_kernel,
                               inv_temperature=float(1.0 / temperature),
                               n_phase=P_in)

    in_specs = [
        pl.BlockSpec((TB, IN), lambda i: (i, 0)),         # state (f32, batch-tiled)
        pl.BlockSpec((TB, P_in), lambda i: (i, 0)),       # phase (f32, batch-tiled)
        pl.BlockSpec((IN, H), lambda i: (0, 0)),          # w1   (VMEM-resident)
        pl.BlockSpec((H, H), lambda i: (0, 0)),           # w2
        pl.BlockSpec((H, H), lambda i: (0, 0)),           # w3
        pl.BlockSpec((H, OUT_PAD), lambda i: (0, 0)),     # w4 (lane-padded)
        pl.BlockSpec((VEC_ROWS, H), lambda i: (0, 0)),    # packed bias/LN/Wp slab
        pl.BlockSpec((1, OUT_PAD), lambda i: (0, 0)),     # b4 (lane-padded)
    ]
    out_specs = pl.BlockSpec((TB, OUT_PAD), lambda i: (i, 0))

    out = pl.pallas_call(
        kernel,
        out_shape=jax.ShapeDtypeStruct((B, OUT_PAD), jnp.bfloat16),
        grid_spec=pltpu.PrefetchScalarGridSpec(
            num_scalar_prefetch=0,
            grid=(num_blocks,),
            in_specs=in_specs,
            out_specs=out_specs,
        ),
        compiler_params=pltpu.CompilerParams(
            dimension_semantics=("parallel",),
            vmem_limit_bytes=32 * 1024 * 1024),
    )(state, phase,
      prepped["w1"], prepped["w2"], prepped["w3"], prepped["w4"],
      prepped["vecs"], prepped["b4"])

    return out[:, :OUT].astype(jnp.float32)


def init_params(key, input_size=512, hidden_size=256, output_size=5):
    """Deterministic synthetic parameters mirroring PolicyNet.__init__ shapes.

    Linear weights stored as (in, out); biases / LN params as (1, dim).
    """
    ks = jax.random.split(key, 8)

    def uniform(k, shape, bound):
        return jax.random.uniform(k, shape, jnp.float32, -bound, bound)

    # fc1: xavier_uniform weight, zero bias (matches _init_weights)
    xav = math.sqrt(6.0 / (input_size + hidden_size))
    w1 = uniform(ks[0], (input_size, hidden_size), xav)
    b1 = jnp.zeros((1, hidden_size), jnp.float32)
    g1 = jnp.ones((1, hidden_size), jnp.float32)
    be1 = jnp.zeros((1, hidden_size), jnp.float32)

    # phase_embed: nn.Linear(5, hidden) default init
    wp = uniform(ks[1], (5, hidden_size), 1.0 / math.sqrt(5))
    bp = uniform(ks[2], (1, hidden_size), 1.0 / math.sqrt(5))

    # fc2: nn.Linear(hidden, hidden) default init
    bnd2 = 1.0 / math.sqrt(hidden_size)
    w2 = uniform(ks[3], (hidden_size, hidden_size), bnd2)
    b2 = uniform(ks[4], (1, hidden_size), bnd2)
    g2 = jnp.ones((1, hidden_size), jnp.float32)
    be2 = jnp.zeros((1, hidden_size), jnp.float32)

    # noisy_fc3 (eval-mode: mu only)
    w3 = uniform(ks[5], (hidden_size, hidden_size), bnd2)
    b3 = uniform(ks[6], (1, hidden_size), bnd2)

    # noisy_fc4 (eval-mode: mu only)
    w4 = uniform(ks[7], (hidden_size, output_size), bnd2)
    b4 = uniform(jax.random.fold_in(key, 99), (1, output_size), bnd2)

    return dict(w1=w1, b1=b1, g1=g1, be1=be1, wp=wp, bp=bp,
                w2=w2, b2=b2, g2=g2, be2=be2, w3=w3, b3=b3, w4=w4, b4=b4)


def _reference_forward(state, phase, p, temperature=1.0):
    """Pure-JAX reference mirroring the kernel's bf16-matmul / f32-LN scheme."""
    bf16 = jnp.bfloat16

    def mdot(a, w):
        return jnp.dot(a.astype(bf16), w.astype(bf16),
                       preferred_element_type=jnp.float32)

    def ln(h, g, b):
        mu = jnp.mean(h, -1, keepdims=True)
        var = jnp.mean((h - mu) ** 2, -1, keepdims=True)
        return (h - mu) / jnp.sqrt(var + LN_EPS) * g + b

    h = jax.nn.relu(ln(mdot(state, p["w1"]) + p["b1"], p["g1"], p["be1"]))
    h = h + jax.nn.relu(jnp.dot(phase, p["wp"]) + p["bp"])     # f32 phase path
    h = jax.nn.relu(ln(mdot(h, p["w2"]) + p["b2"], p["g2"], p["be2"]))
    h = jax.nn.relu(mdot(h, p["w3"]) + p["b3"])
    return (mdot(h, p["w4"]) + p["b4"]) / temperature


if __name__ == "__main__":
    INPUT, HIDDEN, OUT = 512, 256, 5
    BATCH = 256

    key = jax.random.PRNGKey(0)
    k_state, k_phase, k_params = jax.random.split(key, 3)

    state = jax.random.normal(k_state, (BATCH, INPUT), jnp.float32)
    phase = jax.random.normal(k_phase, (BATCH, 5), jnp.float32)
    params = init_params(k_params, INPUT, HIDDEN, OUT)
    prepped = prepare_params(params)

    # Auto, generation-aware tiling (grid=1 on v5e/v6e; 2-way parallel on v4/v5p/v7x).
    logits = jax.block_until_ready(
        policy_net_forward(state, phase, prepped, temperature=1.0))
    # Forced multi-block path with a ragged last block (96,96,64).
    logits_tiled = jax.block_until_ready(
        policy_net_forward(state, phase, prepped, temperature=1.0, block_b=96))

    ref = _reference_forward(state, phase, params, temperature=1.0)
    assert logits.shape == (BATCH, OUT)
    err0 = float(jnp.max(jnp.abs(logits - ref)))
    err1 = float(jnp.max(jnp.abs(logits_tiled - ref)))
    assert jnp.allclose(logits, ref, atol=3e-2, rtol=3e-2), (
        "auto-tile mismatch vs reference; max abs diff = %g" % err0)
    assert jnp.allclose(logits_tiled, ref, atol=3e-2, rtol=3e-2), (
        "ragged-tile mismatch vs reference; max abs diff = %g" % err1)

    print("KERNEL_OK")
</pallas_src>

<mosaic_0001>
module attributes {stable_mosaic.version = 11 : i64} {
  func.func @policy_net_kernel(%arg0: i32, %arg1: memref<256x512xf32, #tpu.memory_space<vmem>>, %arg2: memref<256x5xf32, #tpu.memory_space<vmem>>, %arg3: memref<512x256xbf16, #tpu.memory_space<vmem>>, %arg4: memref<256x256xbf16, #tpu.memory_space<vmem>>, %arg5: memref<256x256xbf16, #tpu.memory_space<vmem>>, %arg6: memref<256x128xbf16, #tpu.memory_space<vmem>>, %arg7: memref<16x256xf32, #tpu.memory_space<vmem>>, %arg8: memref<1x128xf32, #tpu.memory_space<vmem>>, %arg9: memref<256x128xbf16, #tpu.memory_space<vmem>>) attributes {dimension_semantics = [#tpu.dimension_semantics<parallel>], iteration_bounds = array<i64: 1>, scalar_prefetch = 0 : i64, scratch_operands = 0 : i64, tpu.core_type = #tpu.core_type<tc>, window_params = [{transform_indices = @transform_0, window_bounds = array<i64: 256, 512>}, {transform_indices = @transform_1, window_bounds = array<i64: 256, 5>}, {pipeline_mode = #tpu.pipeline_mode<synchronous>, transform_indices = @transform_2, window_bounds = array<i64: 512, 256>}, {pipeline_mode = #tpu.pipeline_mode<synchronous>, transform_indices = @transform_3, window_bounds = array<i64: 256, 256>}, {pipeline_mode = #tpu.pipeline_mode<synchronous>, transform_indices = @transform_4, window_bounds = array<i64: 256, 256>}, {pipeline_mode = #tpu.pipeline_mode<synchronous>, transform_indices = @transform_5, window_bounds = array<i64: 256, 128>}, {pipeline_mode = #tpu.pipeline_mode<synchronous>, transform_indices = @transform_6, window_bounds = array<i64: 16, 256>}, {pipeline_mode = #tpu.pipeline_mode<synchronous>, transform_indices = @transform_7, window_bounds = array<i64: 1, 128>}, {transform_indices = @transform_8, window_bounds = array<i64: 256, 128>}]} {
    %c0 = arith.constant 0 : index
    %c0_0 = arith.constant 0 : index
    %0 = vector.load %arg7[%c0, %c0_0] : memref<16x256xf32, #tpu.memory_space<vmem>>, vector<1x256xf32>
    %c1 = arith.constant 1 : index
    %c0_1 = arith.constant 0 : index
    %1 = vector.load %arg7[%c1, %c0_1] : memref<16x256xf32, #tpu.memory_space<vmem>>, vector<1x256xf32>
    %c2 = arith.constant 2 : index
    %c0_2 = arith.constant 0 : index
    %2 = vector.load %arg7[%c2, %c0_2] : memref<16x256xf32, #tpu.memory_space<vmem>>, vector<1x256xf32>
    %c3 = arith.constant 3 : index
    %c0_3 = arith.constant 0 : index
    %3 = vector.load %arg7[%c3, %c0_3] : memref<16x256xf32, #tpu.memory_space<vmem>>, vector<1x256xf32>
    %c4 = arith.constant 4 : index
    %c0_4 = arith.constant 0 : index
    %4 = vector.load %arg7[%c4, %c0_4] : memref<16x256xf32, #tpu.memory_space<vmem>>, vector<1x256xf32>
    %c5 = arith.constant 5 : index
    %c0_5 = arith.constant 0 : index
    %5 = vector.load %arg7[%c5, %c0_5] : memref<16x256xf32, #tpu.memory_space<vmem>>, vector<1x256xf32>
    %c6 = arith.constant 6 : index
    %c0_6 = arith.constant 0 : index
    %6 = vector.load %arg7[%c6, %c0_6] : memref<16x256xf32, #tpu.memory_space<vmem>>, vector<1x256xf32>
    %c7 = arith.constant 7 : index
    %c0_7 = arith.constant 0 : index
    %7 = vector.load %arg7[%c7, %c0_7] : memref<16x256xf32, #tpu.memory_space<vmem>>, vector<1x256xf32>
    %c0_8 = arith.constant 0 : index
    %c0_9 = arith.constant 0 : index
    %8 = vector.load %arg1[%c0_8, %c0_9] : memref<256x512xf32, #tpu.memory_space<vmem>>, vector<256x512xf32>
    %9 = arith.truncf %8 : vector<256x512xf32> to vector<256x512xbf16>
    %c0_10 = arith.constant 0 : index
    %c0_11 = arith.constant 0 : index
    %10 = vector.load %arg3[%c0_10, %c0_11] : memref<512x256xbf16, #tpu.memory_space<vmem>>, vector<512x256xbf16>
    %cst = arith.constant dense<0.000000e+00> : vector<256x256xf32>
    %11 = tpu.matmul %9, %10, %cst {dimension_numbers = #tpu.dot_dimension_numbers<[1], [0], [0], [1], [0, 0, 1, 1], [], []>} : vector<256x512xbf16>, vector<512x256xbf16>, vector<256x256xf32> -> vector<256x256xf32>
    %12 = vector.broadcast %0 : vector<1x256xf32> to vector<256x256xf32>
    %13 = arith.addf %11, %12 : vector<256x256xf32>
    %cst_12 = arith.constant dense<0.000000e+00> : vector<256xf32>
    %14 = vector.multi_reduction <add>, %13, %cst_12 [1] : vector<256x256xf32> to vector<256xf32>
    %15 = vector.shape_cast %14 : vector<256xf32> to vector<256x1xf32>
    %cst_13 = arith.constant 2.560000e+02 : f32
    %16 = vector.broadcast %cst_13 : f32 to vector<256x1xf32>
    %17 = arith.divf %15, %16 : vector<256x1xf32>
    %18 = vector.broadcast %17 : vector<256x1xf32> to vector<256x256xf32>
    %19 = arith.subf %13, %18 : vector<256x256xf32>
    %20 = arith.mulf %19, %19 : vector<256x256xf32>
    %cst_14 = arith.constant dense<0.000000e+00> : vector<256xf32>
    %21 = vector.multi_reduction <add>, %20, %cst_14 [1] : vector<256x256xf32> to vector<256xf32>
    %22 = vector.shape_cast %21 : vector<256xf32> to vector<256x1xf32>
    %cst_15 = arith.constant 2.560000e+02 : f32
    %23 = vector.broadcast %cst_15 : f32 to vector<256x1xf32>
    %24 = arith.divf %22, %23 : vector<256x1xf32>
    %cst_16 = arith.constant 9.99999974E-6 : f32
    %25 = vector.broadcast %cst_16 : f32 to vector<256x1xf32>
    %26 = arith.addf %24, %25 : vector<256x1xf32>
    %27 = math.rsqrt %26 : vector<256x1xf32>
    %28 = vector.broadcast %27 : vector<256x1xf32> to vector<256x256xf32>
    %29 = arith.mulf %19, %28 : vector<256x256xf32>
    %30 = vector.broadcast %1 : vector<1x256xf32> to vector<256x256xf32>
    %31 = arith.mulf %29, %30 : vector<256x256xf32>
    %32 = vector.broadcast %2 : vector<1x256xf32> to vector<256x256xf32>
    %33 = arith.addf %31, %32 : vector<256x256xf32>
    %cst_17 = arith.constant 0.000000e+00 : f32
    %34 = vector.broadcast %cst_17 : f32 to vector<256x256xf32>
    %35 = arith.maximumf %33, %34 : vector<256x256xf32>
    %c0_18 = arith.constant 0 : index
    %c0_19 = arith.constant 0 : index
    %36 = vector.load %arg2[%c0_18, %c0_19] : memref<256x5xf32, #tpu.memory_space<vmem>>, vector<256x5xf32>
    %37 = vector.extract_strided_slice %36 {offsets = [0, 0], sizes = [256, 1], strides = [1, 1]} : vector<256x5xf32> to vector<256x1xf32>
    %c8 = arith.constant 8 : index
    %c0_20 = arith.constant 0 : index
    %38 = vector.load %arg7[%c8, %c0_20] : memref<16x256xf32, #tpu.memory_space<vmem>>, vector<1x256xf32>
    %39 = vector.broadcast %37 : vector<256x1xf32> to vector<256x256xf32>
    %40 = vector.broadcast %38 : vector<1x256xf32> to vector<256x256xf32>
    %41 = arith.mulf %39, %40 : vector<256x256xf32>
    %42 = vector.broadcast %7 : vector<1x256xf32> to vector<256x256xf32>
    %43 = arith.addf %42, %41 : vector<256x256xf32>
    %44 = vector.extract_strided_slice %36 {offsets = [0, 1], sizes = [256, 1], strides = [1, 1]} : vector<256x5xf32> to vector<256x1xf32>
    %c9 = arith.constant 9 : index
    %c0_21 = arith.constant 0 : index
    %45 = vector.load %arg7[%c9, %c0_21] : memref<16x256xf32, #tpu.memory_space<vmem>>, vector<1x256xf32>
    %46 = vector.broadcast %44 : vector<256x1xf32> to vector<256x256xf32>
    %47 = vector.broadcast %45 : vector<1x256xf32> to vector<256x256xf32>
    %48 = arith.mulf %46, %47 : vector<256x256xf32>
    %49 = arith.addf %43, %48 : vector<256x256xf32>
    %50 = vector.extract_strided_slice %36 {offsets = [0, 2], sizes = [256, 1], strides = [1, 1]} : vector<256x5xf32> to vector<256x1xf32>
    %c10 = arith.constant 10 : index
    %c0_22 = arith.constant 0 : index
    %51 = vector.load %arg7[%c10, %c0_22] : memref<16x256xf32, #tpu.memory_space<vmem>>, vector<1x256xf32>
    %52 = vector.broadcast %50 : vector<256x1xf32> to vector<256x256xf32>
    %53 = vector.broadcast %51 : vector<1x256xf32> to vector<256x256xf32>
    %54 = arith.mulf %52, %53 : vector<256x256xf32>
    %55 = arith.addf %49, %54 : vector<256x256xf32>
    %56 = vector.extract_strided_slice %36 {offsets = [0, 3], sizes = [256, 1], strides = [1, 1]} : vector<256x5xf32> to vector<256x1xf32>
    %c11 = arith.constant 11 : index
    %c0_23 = arith.constant 0 : index
    %57 = vector.load %arg7[%c11, %c0_23] : memref<16x256xf32, #tpu.memory_space<vmem>>, vector<1x256xf32>
    %58 = vector.broadcast %56 : vector<256x1xf32> to vector<256x256xf32>
    %59 = vector.broadcast %57 : vector<1x256xf32> to vector<256x256xf32>
    %60 = arith.mulf %58, %59 : vector<256x256xf32>
    %61 = arith.addf %55, %60 : vector<256x256xf32>
    %62 = vector.extract_strided_slice %36 {offsets = [0, 4], sizes = [256, 1], strides = [1, 1]} : vector<256x5xf32> to vector<256x1xf32>
    %c12 = arith.constant 12 : index
    %c0_24 = arith.constant 0 : index
    %63 = vector.load %arg7[%c12, %c0_24] : memref<16x256xf32, #tpu.memory_space<vmem>>, vector<1x256xf32>
    %64 = vector.broadcast %62 : vector<256x1xf32> to vector<256x256xf32>
    %65 = vector.broadcast %63 : vector<1x256xf32> to vector<256x256xf32>
    %66 = arith.mulf %64, %65 : vector<256x256xf32>
    %67 = arith.addf %61, %66 : vector<256x256xf32>
    %cst_25 = arith.constant 0.000000e+00 : f32
    %68 = vector.broadcast %cst_25 : f32 to vector<256x256xf32>
    %69 = arith.maximumf %67, %68 : vector<256x256xf32>
    %70 = arith.addf %35, %69 : vector<256x256xf32>
    %71 = arith.truncf %70 : vector<256x256xf32> to vector<256x256xbf16>
    %c0_26 = arith.constant 0 : index
    %c0_27 = arith.constant 0 : index
    %72 = vector.load %arg4[%c0_26, %c0_27] : memref<256x256xbf16, #tpu.memory_space<vmem>>, vector<256x256xbf16>
    %cst_28 = arith.constant dense<0.000000e+00> : vector<256x256xf32>
    %73 = tpu.matmul %71, %72, %cst_28 {dimension_numbers = #tpu.dot_dimension_numbers<[1], [0], [0], [1], [0, 0, 1, 1], [], []>} : vector<256x256xbf16>, vector<256x256xbf16>, vector<256x256xf32> -> vector<256x256xf32>
    %74 = vector.broadcast %3 : vector<1x256xf32> to vector<256x256xf32>
    %75 = arith.addf %73, %74 : vector<256x256xf32>
    %cst_29 = arith.constant dense<0.000000e+00> : vector<256xf32>
    %76 = vector.multi_reduction <add>, %75, %cst_29 [1] : vector<256x256xf32> to vector<256xf32>
    %77 = vector.shape_cast %76 : vector<256xf32> to vector<256x1xf32>
    %cst_30 = arith.constant 2.560000e+02 : f32
    %78 = vector.broadcast %cst_30 : f32 to vector<256x1xf32>
    %79 = arith.divf %77, %78 : vector<256x1xf32>
    %80 = vector.broadcast %79 : vector<256x1xf32> to vector<256x256xf32>
    %81 = arith.subf %75, %80 : vector<256x256xf32>
    %82 = arith.mulf %81, %81 : vector<256x256xf32>
    %cst_31 = arith.constant dense<0.000000e+00> : vector<256xf32>
    %83 = vector.multi_reduction <add>, %82, %cst_31 [1] : vector<256x256xf32> to vector<256xf32>
    %84 = vector.shape_cast %83 : vector<256xf32> to vector<256x1xf32>
    %cst_32 = arith.constant 2.560000e+02 : f32
    %85 = vector.broadcast %cst_32 : f32 to vector<256x1xf32>
    %86 = arith.divf %84, %85 : vector<256x1xf32>
    %cst_33 = arith.constant 9.99999974E-6 : f32
    %87 = vector.broadcast %cst_33 : f32 to vector<256x1xf32>
    %88 = arith.addf %86, %87 : vector<256x1xf32>
    %89 = math.rsqrt %88 : vector<256x1xf32>
    %90 = vector.broadcast %89 : vector<256x1xf32> to vector<256x256xf32>
    %91 = arith.mulf %81, %90 : vector<256x256xf32>
    %92 = vector.broadcast %4 : vector<1x256xf32> to vector<256x256xf32>
    %93 = arith.mulf %91, %92 : vector<256x256xf32>
    %94 = vector.broadcast %5 : vector<1x256xf32> to vector<256x256xf32>
    %95 = arith.addf %93, %94 : vector<256x256xf32>
    %cst_34 = arith.constant 0.000000e+00 : f32
    %96 = vector.broadcast %cst_34 : f32 to vector<256x256xf32>
    %97 = arith.maximumf %95, %96 : vector<256x256xf32>
    %98 = arith.truncf %97 : vector<256x256xf32> to vector<256x256xbf16>
    %c0_35 = arith.constant 0 : index
    %c0_36 = arith.constant 0 : index
    %99 = vector.load %arg5[%c0_35, %c0_36] : memref<256x256xbf16, #tpu.memory_space<vmem>>, vector<256x256xbf16>
    %cst_37 = arith.constant dense<0.000000e+00> : vector<256x256xf32>
    %100 = tpu.matmul %98, %99, %cst_37 {dimension_numbers = #tpu.dot_dimension_numbers<[1], [0], [0], [1], [0, 0, 1, 1], [], []>} : vector<256x256xbf16>, vector<256x256xbf16>, vector<256x256xf32> -> vector<256x256xf32>
    %101 = vector.broadcast %6 : vector<1x256xf32> to vector<256x256xf32>
    %102 = arith.addf %100, %101 : vector<256x256xf32>
    %cst_38 = arith.constant 0.000000e+00 : f32
    %103 = vector.broadcast %cst_38 : f32 to vector<256x256xf32>
    %104 = arith.maximumf %102, %103 : vector<256x256xf32>
    %105 = arith.truncf %104 : vector<256x256xf32> to vector<256x256xbf16>
    %c0_39 = arith.constant 0 : index
    %c0_40 = arith.constant 0 : index
    %106 = vector.load %arg6[%c0_39, %c0_40] : memref<256x128xbf16, #tpu.memory_space<vmem>>, vector<256x128xbf16>
    %cst_41 = arith.constant dense<0.000000e+00> : vector<256x128xf32>
    %107 = tpu.matmul %105, %106, %cst_41 {dimension_numbers = #tpu.dot_dimension_numbers<[1], [0], [0], [1], [0, 0, 1, 1], [], []>} : vector<256x256xbf16>, vector<256x128xbf16>, vector<256x128xf32> -> vector<256x128xf32>
    %c0_42 = arith.constant 0 : index
    %c0_43 = arith.constant 0 : index
    %108 = vector.load %arg8[%c0_42, %c0_43] : memref<1x128xf32, #tpu.memory_space<vmem>>, vector<1x128xf32>
    %109 = vector.broadcast %108 : vector<1x128xf32> to vector<256x128xf32>
    %110 = arith.addf %107, %109 : vector<256x128xf32>
    %cst_44 = arith.constant 1.000000e+00 : f32
    %111 = vector.broadcast %cst_44 : f32 to vector<256x128xf32>
    %112 = arith.mulf %110, %111 : vector<256x128xf32>
    %113 = arith.truncf %112 : vector<256x128xf32> to vector<256x128xbf16>
    %c0_45 = arith.constant 0 : index
    %c0_46 = arith.constant 0 : index
    %114 = vector.load %arg9[%c0_45, %c0_46] : memref<256x128xbf16, #tpu.memory_space<vmem>>, vector<256x128xbf16>
    tpu.vector_store %arg9[%c0_45, %c0_46], %113 {strides = array<i32>} : memref<256x128xbf16, #tpu.memory_space<vmem>>, vector<256x128xbf16>,
    return
  }
  func.func @transform_0(%arg0: i32) -> (i32, i32) {
    %c0_i32 = arith.constant 0 : i32
    %c0_i32_0 = arith.constant 0 : i32
    return %arg0, %c0_i32 : i32, i32
  }
  func.func @transform_1(%arg0: i32) -> (i32, i32) {
    %c0_i32 = arith.constant 0 : i32
    %c0_i32_0 = arith.constant 0 : i32
    return %arg0, %c0_i32 : i32, i32
  }
  func.func @transform_2(%arg0: i32) -> (i32, i32) {
    %c0_i32 = arith.constant 0 : i32
    %c0_i32_0 = arith.constant 0 : i32
    %c0_i32_1 = arith.constant 0 : i32
    return %c0_i32, %c0_i32_0 : i32, i32
  }
  func.func @transform_3(%arg0: i32) -> (i32, i32) {
    %c0_i32 = arith.constant 0 : i32
    %c0_i32_0 = arith.constant 0 : i32
    %c0_i32_1 = arith.constant 0 : i32
    return %c0_i32, %c0_i32_0 : i32, i32
  }
  func.func @transform_4(%arg0: i32) -> (i32, i32) {
    %c0_i32 = arith.constant 0 : i32
    %c0_i32_0 = arith.constant 0 : i32
    %c0_i32_1 = arith.constant 0 : i32
    return %c0_i32, %c0_i32_0 : i32, i32
  }
  func.func @transform_5(%arg0: i32) -> (i32, i32) {
    %c0_i32 = arith.constant 0 : i32
    %c0_i32_0 = arith.constant 0 : i32
    %c0_i32_1 = arith.constant 0 : i32
    return %c0_i32, %c0_i32_0 : i32, i32
  }
  func.func @transform_6(%arg0: i32) -> (i32, i32) {
    %c0_i32 = arith.constant 0 : i32
    %c0_i32_0 = arith.constant 0 : i32
    %c0_i32_1 = arith.constant 0 : i32
    return %c0_i32, %c0_i32_0 : i32, i32
  }
  func.func @transform_7(%arg0: i32) -> (i32, i32) {
    %c0_i32 = arith.constant 0 : i32
    %c0_i32_0 = arith.constant 0 : i32
    %c0_i32_1 = arith.constant 0 : i32
    return %c0_i32, %c0_i32_0 : i32, i32
  }
  func.func @transform_8(%arg0: i32) -> (i32, i32) {
    %c0_i32 = arith.constant 0 : i32
    %c0_i32_0 = arith.constant 0 : i32
    return %arg0, %c0_i32 : i32, i32
  }
}

</mosaic_0001>

<bundles_post_ra>
// kernel: tpu_custom_call.1
= control target key start
LH: loop header
LB: loop body
LE: loop exit
PB: predicated region body
PF: predicated region fallthrough
CT: control target
= control target key end

     0   :  { %13 = vsyncpa [#allocation3], 0  ;;  %s11062_s0 = inlined_call_operand.hbm [shape: f32[256,512], index: 0, kind: input, shape index: {}]   ;;  %s11063_s1 = inlined_call_operand.vmem [shape: f32[256,5], index: 1, kind: input, shape index: {}]   ;;  %s11064_s2 = inlined_call_operand.hbm [shape: bf16[512,256], index: 2, kind: input, shape index: {}]   ;;  %s11065_s3 = inlined_call_operand.vmem [shape: bf16[256,256], index: 3, kind: input, shape index: {}]   ;;  %s11066_s4 = inlined_call_operand.hbm [shape: bf16[256,256], index: 4, kind: input, shape index: {}]   ;;  %s11067_s5 = inlined_call_operand.hbm [shape: bf16[256,128], index: 5, kind: input, shape index: {}]   ;;  %s11068_s6 = inlined_call_operand.vmem [shape: f32[16,256], index: 6, kind: input, shape index: {}]   ;;  %s11069_s7 = inlined_call_operand.vmem [shape: f32[1,128], index: 7, kind: input, shape index: {}]   ;;  %s11070_s8 = inlined_call_operand.hbm [shape: bf16[256,128], index: 8, kind: output, shape index: {}]  }
   0x1   :  { %14 = vsyncpa [#allocation6], 0 }
   0x2   :  { %15 = vsyncpa [#allocation9], 0 }
   0x3   :  { %16 = vsyncpa [#allocation4], 0  ;;  %s6645_s27 = smov [#allocation5]   ;;  %s6527_s9 = scalar_lea.hbm %s11064_s2, 8192 }
   0x4   :  { %s36_s28 = sshll.u32 %s6645_s27, 4  ;;  %p6528_p0 = scmp.ne.s32.totalorder %s11064_s2, %s6527_s9  ;;  %s37_s28 = int_to_ptr.vmem [resolvable:$true] %s36_s28 }
   0x5   :  { %p6531_p1 = scmp.lt.u32.totalorder %s6527_s9, %s11064_s2 }
   0x7   :  { %p6533_p2 = pnand %p6531_p1, %p6528_p0 }
   0x9   :  { %6536 = shalt.err (!%p6533_p2)
}
   0xa   :  { %s6537_s14 = scalar_lea.vmem %s37_s28, 8192  ;;  %p6542_p4 = scmp.lt.s32.totalorder %s37_s28, %s37_s28 }
   0xb   :  { %p6538_p3 = scmp.ne.s32.totalorder %s37_s28, %s6537_s14  ;;  %p6543_p5 = scmp.lt.s32.totalorder %s6537_s14, %s6537_s14 }
   0xd   :  { %p6544_p6 = por %p6543_p5, %p6542_p4 }
   0xf   :  { %p6545_p7 = pnand %p6544_p6, %p6538_p3 }
  0x11   :  { %6548 = shalt.err (!%p6545_p7)
}
  0x12   :  { %s6646_s15 = smov 128   ;;  %s6647_s16 = smov 8  }
  0x13   :  { %42 = dma.hbm_to_vmem [thread:$0]  %s11064_s2, 8192, %s37_s28, [#allocation6], %s6646_s15, %s6646_s15, %s6647_s16  }
  0x14   :  { %s6648_s19 = smov [#allocation2]   ;;  %s6549_s23 = scalar_lea.hbm %s11062_s0, 16384 }
  0x15   :  { %s22_s20 = sshll.u32 %s6648_s19, 4  ;;  %p6550_p8 = scmp.ne.s32.totalorder %s11062_s0, %s6549_s23  ;;  %s23_s20 = int_to_ptr.vmem [resolvable:$true] %s22_s20 }
  0x16   :  { %p6553_p9 = scmp.lt.u32.totalorder %s6549_s23, %s11062_s0 }
  0x18   :  { %p6555_p10 = pnand %p6553_p9, %p6550_p8 }
  0x1a   :  { %6558 = shalt.err (!%p6555_p10)
}
  0x1b   :  { %s6559_s29 = scalar_lea.vmem %s23_s20, 16384  ;;  %p6564_p12 = scmp.lt.s32.totalorder %s23_s20, %s23_s20 }
  0x1c   :  { %p6560_p11 = scmp.ne.s32.totalorder %s23_s20, %s6559_s29  ;;  %p6565_p13 = scmp.lt.s32.totalorder %s6559_s29, %s6559_s29 }
  0x1e   :  { %p6566_p0 = por %p6565_p13, %p6564_p12 }
  0x20   :  { %p6567_p1 = pnand %p6566_p0, %p6560_p11 }
  0x22   :  { %6570 = shalt.err (!%p6567_p1)
}
  0x23   :  { %s6649_s2 = smov 512   ;;  %s6650_s28 = smov 32  }
  0x24   :  { %28 = dma.hbm_to_vmem [thread:$0]  %s11062_s0, 16384, %s23_s20, [#allocation3], %s6649_s2, %s6649_s2, %s6650_s28  }
  0x25   :  { %s6651_s10 = smov [#allocation7]   ;;  %s6652_s12 = smov [#allocation8]  }
  0x26   :  { %s50_s11 = sshll.u32 %s6651_s10, 4  ;;  %s62_s13 = sshll.u32 %s6652_s12, 4  ;;  %s51_s11 = int_to_ptr.vmem [resolvable:$true] %s50_s11  ;;  %s6733_s13 = int_to_ptr.vmem [resolvable:$true] %s62_s13 }
  0x27   :  { %s6571_s18 = scalar_lea.hbm %s11066_s4, 4096 }
  0x28   :  { %p6572_p2 = scmp.ne.s32.totalorder %s11066_s4, %s6571_s18  ;;  %p6575_p3 = scmp.lt.u32.totalorder %s6571_s18, %s11066_s4 }
  0x2a   :  { %p6577_p4 = pnand %p6575_p3, %p6572_p2 }
  0x2c   :  { %6580 = shalt.err (!%p6577_p4)
}
  0x2d   :  { %s6581_s0 = scalar_lea.vmem %s51_s11, 4096  ;;  %p6586_p6 = scmp.lt.s32.totalorder %s51_s11, %s51_s11 }
  0x2e   :  { %p6582_p5 = scmp.ne.s32.totalorder %s51_s11, %s6581_s0  ;;  %p6587_p7 = scmp.lt.s32.totalorder %s6581_s0, %s6581_s0 }
  0x30   :  { %p6588_p8 = por %p6587_p7, %p6586_p6 }
  0x32   :  { %p6589_p9 = pnand %p6588_p8, %p6582_p5 }
  0x34   :  { %6592 = shalt.err (!%p6589_p9)
}
  0x35   :  { %56 = dma.hbm_to_vmem [thread:$0]  %s11066_s4, 4096, %s51_s11, [#allocation6], %s6646_s15, %s6646_s15, %s6647_s16  }
  0x36   :  { %s6593_s27 = scalar_lea.hbm %s11067_s5, 2048 }
  0x37   :  { %p6594_p10 = scmp.ne.s32.totalorder %s11067_s5, %s6593_s27  ;;  %p6597_p11 = scmp.lt.u32.totalorder %s6593_s27, %s11067_s5 }
  0x39   :  { %p6599_p12 = pnand %p6597_p11, %p6594_p10 }
  0x3b   :  { %6602 = shalt.err (!%p6599_p12)
}
  0x3c   :  { %s6603_s9 = scalar_lea.vmem %s6733_s13, 2048  ;;  %p6608_p0 = scmp.lt.s32.totalorder %s6733_s13, %s6733_s13 }
  0x3d   :  { %p6604_p13 = scmp.ne.s32.totalorder %s6733_s13, %s6603_s9  ;;  %p6609_p1 = scmp.lt.s32.totalorder %s6603_s9, %s6603_s9 }
  0x3f   :  { %p6610_p2 = por %p6609_p1, %p6608_p0 }
  0x41   :  { %p6611_p3 = pnand %p6610_p2, %p6604_p13 }
  0x43   :  { %6614 = shalt.err (!%p6611_p3)
}
  0x44   :  { %s6653_s4 = smov 64   ;;  %s6654_s15 = smov 4  }
  0x45   :  { %68 = dma.hbm_to_vmem [thread:$0]  %s11067_s5, 2048, %s6733_s13, [#allocation9], %s6653_s4, %s6653_s4, %s6654_s15  }
  0x46   :  { %6637 = dma.done.wait [#allocation3], 16384  }
  0x47   :  { %6638 = vsyncadd [#allocation3], 4294950912 }
  0x48   :  { %6639 = dma.done.wait [#allocation6], 12288  }
  0x49   :  { %6640 = vsyncadd [#allocation6], 4294955008 }
  0x4a   :  { %6641 = dma.done.wait [#allocation9], 2048  }
  0x4b   :  { %6642 = vsyncadd [#allocation9], 4294965248  ;;  %v6162_v0 = vld [vmem:[#allocation5 + $0x4] ss:$8 sps:$4 sm:$0xff]   ;;  %v6164_v1 = vld [vmem:[#allocation5] ss:$8 sps:$4 sm:$0xff]  }
  0x4c   :  { %688 = vmatprep.subr.bf16.mxu0 %v6162_v0  ;;  %v6165_v2 = vld [vmem:[#allocation5 + $0x14] ss:$8 sps:$4 sm:$0xff]   ;;  %5930 = vmatprep.subr.bf16.mxu1 %v6162_v0  ;;  %v6167_v3 = vld [vmem:[#allocation5 + $0x10] ss:$8 sps:$4 sm:$0xff]   ;;  %v6168_v4 = vld [vmem:[#allocation5 + $0x24] ss:$8 sps:$4 sm:$0xff]  }
  0x4d   :  { %689 = vmatpush1.bf16.msra.mxu0 %v6164_v1  ;;  %5946 = vmatpush1.bf16.msra.mxu1 %v6164_v1  ;;  %v6170_v5 = vld [vmem:[#allocation5 + $0x20] ss:$8 sps:$4 sm:$0xff]   ;;  %v6171_v6 = vld [vmem:[#allocation5 + $0x34] ss:$8 sps:$4 sm:$0xff]   ;;  %v6173_v7 = vld [vmem:[#allocation5 + $0x30] ss:$8 sps:$4 sm:$0xff]  }
  0x4e   :  { %690 = vmatprep.subr.bf16.mxu0 %v6165_v2  ;;  %5931 = vmatprep.subr.bf16.mxu1 %v6165_v2  ;;  %v6174_v8 = vld [vmem:[#allocation5 + $0x44] ss:$8 sps:$4 sm:$0xff]   ;;  %v6176_v9 = vld [vmem:[#allocation5 + $0x40] ss:$8 sps:$4 sm:$0xff]   ;;  %v6177_v10 = vld [vmem:[#allocation5 + $0x54] ss:$8 sps:$4 sm:$0xff]  }
  0x4f   :  { %v6179_v11 = vld [vmem:[#allocation5 + $0x50] ss:$8 sps:$4 sm:$0xff]   ;;  %v6180_v12 = vld [vmem:[#allocation5 + $0x64] ss:$8 sps:$4 sm:$0xff]   ;;  %v6182_v16 = vld [vmem:[#allocation5 + $0x60] ss:$8 sps:$4 sm:$0xff]  }
  0x50   :  { %v102_v13 = vld [vmem:[#allocation2 + $0x8] sm:$0xff]  ;;  %v6183_v17 = vld [vmem:[#allocation5 + $0x74] ss:$8 sps:$4 sm:$0xff]   ;;  %v6185_v18 = vld [vmem:[#allocation5 + $0x70] ss:$8 sps:$4 sm:$0xff]   ;;  %v11075_v24 = vmov 1  }
  0x51   :  { %691 = vmatpush1.bf16.msra.mxu0 %v6167_v3  ;;  %5947 = vmatpush1.bf16.msra.mxu1 %v6167_v3  ;;  %v106_v14 = vld [vmem:[#allocation2 + $0x28] sm:$0xff]  ;;  %v6189_v21 = vld [vmem:[#allocation5 + $0x94] ss:$8 sps:$4 sm:$0xff]   ;;  %v6191_v22 = vld [vmem:[#allocation5 + $0x90] ss:$8 sps:$4 sm:$0xff]   ;;  %v11073_v29 = vmov 2  }
  0x52   :  { %692 = vmatprep.subr.bf16.mxu0 %v6168_v4  ;;  %5932 = vmatprep.subr.bf16.mxu1 %v6168_v4  ;;  %v230_v15 = vpack.c.bf16 %v106_v14, %v102_v13  ;;  %v6186_v19 = vld [vmem:[#allocation5 + $0x84] ss:$8 sps:$4 sm:$0xff]   ;;  %v6188_v20 = vld [vmem:[#allocation5 + $0x80] ss:$8 sps:$4 sm:$0xff]   ;;  %v6195_v26 = vld [vmem:[#allocation5 + $0xb4] ss:$8 sps:$4 sm:$0xff]  }
  0x53   :  { %v6192_v23 = vld [vmem:[#allocation5 + $0xa4] ss:$8 sps:$4 sm:$0xff]   ;;  %6106 = vset.pattern.permute.xlu1 %v11075_v24  ;;  %v6194_v25 = vld [vmem:[#allocation5 + $0xa0] ss:$8 sps:$4 sm:$0xff]   ;;  %v6197_v27 = vld [vmem:[#allocation5 + $0xb0] ss:$8 sps:$4 sm:$0xff]   ;;  %6109 = vset.pattern.permute.xlu0 %v11073_v29 }
  0x54   :  { %720 = vmatprep.mubr.bf16.mxu0 %v230_v15  ;;  %v6198_v28 = vld [vmem:[#allocation5 + $0xc4] ss:$8 sps:$4 sm:$0xff]   ;;  %v6200_v30 = vld [vmem:[#allocation5 + $0xc0] ss:$8 sps:$4 sm:$0xff]   ;;  %v6201_v31 = vld [vmem:[#allocation5 + $0xd4] ss:$8 sps:$4 sm:$0xff]  }
  0x55   :  { %693 = vmatpush1.bf16.msra.mxu0 %v6170_v5  ;;  %5948 = vmatpush1.bf16.msra.mxu1 %v6170_v5  ;;  %v6203_v32 = vld [vmem:[#allocation5 + $0xd0] ss:$8 sps:$4 sm:$0xff]   ;;  %v6204_v33 = vld [vmem:[#allocation5 + $0xe4] ss:$8 sps:$4 sm:$0xff]   ;;  %v6206_v34 = vld [vmem:[#allocation5 + $0xe0] ss:$8 sps:$4 sm:$0xff]  }
  0x56   :  { %694 = vmatprep.subr.bf16.mxu0 %v6171_v6  ;;  %5933 = vmatprep.subr.bf16.mxu1 %v6171_v6  ;;  %v6207_v35 = vld [vmem:[#allocation5 + $0xf4] ss:$8 sps:$4 sm:$0xff]   ;;  %v6209_v36 = vld [vmem:[#allocation5 + $0xf0] ss:$8 sps:$4 sm:$0xff]   ;;  %v101_v37 = vld [vmem:[#allocation2] sm:$0xff] }
  0x57   :  { %v105_v38 = vld [vmem:[#allocation2 + $0x20] sm:$0xff]  ;;  %v110_v40 = vld [vmem:[#allocation2 + $0x48] sm:$0xff]  ;;  %v6781_v46 = vld [vmem:[%s11063_s1 + $0x10] sm:$0xff] }
  0x58   :  { %v6212_v39 = vld [vmem:[#allocation5 + $0x104] ss:$8 sps:$4 sm:$0xff]   ;;  %v229_v43 = vpack.c.bf16 %v105_v38, %v101_v37  ;;  %v6210_v44 = vld [vmem:[#allocation5 + $0x100] ss:$8 sps:$4 sm:$0xff]   ;;  %v6215_v47 = vld [vmem:[#allocation5 + $0x114] ss:$8 sps:$4 sm:$0xff]   ;;  %2425 = vperm.xlu0 %6109, %v6781_v46  }
  0x59   :  { %695 = vmatpush1.bf16.msra.mxu0 %v6173_v7  ;;  %5949 = vmatpush1.bf16.msra.mxu1 %v6173_v7  ;;  %v114_v41 = vld [vmem:[#allocation2 + $0x68] sm:$0xff]  ;;  %v6775_v42 = vld [vmem:[%s11063_s1] sm:$0xff]  ;;  %v6213_v48 = vld [vmem:[#allocation5 + $0x110] ss:$8 sps:$4 sm:$0xff]  }
  0x5a   :  { %696 = vmatprep.subr.bf16.mxu0 %v6174_v8  ;;  %5934 = vmatprep.subr.bf16.mxu1 %v6174_v8  ;;  %v234_v45 = vpack.c.bf16 %v114_v41, %v110_v40  ;;  %v166_v49 = vld [vmem:[#allocation2 + $0x208] sm:$0xff]  ;;  %v6788_v51 = vld [vmem:[%s11063_s1 + $0x38] sm:$0xff]  ;;  %v165_v53 = vld [vmem:[#allocation2 + $0x200] sm:$0xff] }
  0x5b   :  { %2148 = vperm.xlu1 %6106, %v6775_v42   ;;  %v170_v50 = vld [vmem:[#allocation2 + $0x228] sm:$0xff]  ;;  %v169_v54 = vld [vmem:[#allocation2 + $0x220] sm:$0xff]  ;;  %v6221_v2 = vld [vmem:[#allocation5 + $0x134] ss:$8 sps:$4 sm:$0xff]  }
  0x5c   :  { %v262_v52 = vpack.c.bf16 %v170_v50, %v166_v49  ;;  %v109_v55 = vld [vmem:[#allocation2 + $0x40] sm:$0xff]  ;;  %v261_v58 = vpack.c.bf16 %v169_v54, %v165_v53  ;;  %v118_v59 = vld [vmem:[#allocation2 + $0x88] sm:$0xff]  ;;  %2445 = vperm.xlu0 %6109, %v6788_v51   ;;  %v6233_v41 = vld [vmem:[#allocation5 + $0x174] ss:$8 sps:$4 sm:$0xff]  }
  0x5d   :  { %697 = vmatpush1.bf16.msra.mxu0 %v6176_v9  ;;  %5950 = vmatpush1.bf16.msra.mxu1 %v6176_v9  ;;  %v113_v56 = vld [vmem:[#allocation2 + $0x60] sm:$0xff]  ;;  %v122_v60 = vld [vmem:[#allocation2 + $0xa8] sm:$0xff] }
  0x5e   :  { %698 = vmatprep.subr.bf16.mxu0 %v6177_v10  ;;  %5935 = vmatprep.subr.bf16.mxu1 %v6177_v10  ;;  %v6218_v57 = vld [vmem:[#allocation5 + $0x124] ss:$8 sps:$4 sm:$0xff]   ;;  %v233_v0 = vpack.c.bf16 %v113_v56, %v109_v55  ;;  %v6216_v1 = vld [vmem:[#allocation5 + $0x120] ss:$8 sps:$4 sm:$0xff]   ;;  %v238_v5 = vpack.c.bf16 %v122_v60, %v118_v59  ;;  %v6219_v10 = vld [vmem:[#allocation5 + $0x130] ss:$8 sps:$4 sm:$0xff]  }
  0x5f   :  { %6107 = vset.pattern.permute.xlu1 %v11073_v29  ;;  %v174_v61 = vld [vmem:[#allocation2 + $0x248] sm:$0xff]  ;;  %800 = vmatprep.mubr.bf16.mxu1 %v262_v52  ;;  %v173_v6 = vld [vmem:[#allocation2 + $0x240] sm:$0xff]  ;;  %v6239_v60 = vld [vmem:[#allocation5 + $0x194] ss:$8 sps:$4 sm:$0xff]  }
  0x60   :  { %2417 = vperm.xlu1 %6107, %v6775_v42   ;;  %v1802_v62 = vld [vmem:[%s11063_s1 + $0x8] sm:$0xff]  ;;  %v177_v7 = vld [vmem:[#allocation2 + $0x260] sm:$0xff] }
  0x61   :  { %699 = vmatpush1.bf16.msra.mxu0 %v6179_v11  ;;  %5951 = vmatpush1.bf16.msra.mxu1 %v6179_v11  ;;  %v178_v63 = vld [vmem:[#allocation2 + $0x268] sm:$0xff]  ;;  %v117_v11 = vld [vmem:[#allocation2 + $0x80] sm:$0xff] }
  0x62   :  { %700 = vmatprep.subr.bf16.mxu0 %v6180_v12  ;;  %5936 = vmatprep.subr.bf16.mxu1 %v6180_v12  ;;  %v6798_v3 = vld [vmem:[%s11063_s1 + $0x48] sm:$0xff]  ;;  %v266_v4 = vpack.c.bf16 %v178_v63, %v174_v61  ;;  %v265_v12 = vpack.c.bf16 %v177_v7, %v173_v6  ;;  %v121_v13 = vld [vmem:[#allocation2 + $0xa0] sm:$0xff]  ;;  %v6237_v63 = vld [vmem:[#allocation5 + $0x190] ss:$8 sps:$4 sm:$0xff]  }
  0x63   :  { %2453 = vperm.xlu0 %6109, %v6798_v3   ;;  %v182_v8 = vld [vmem:[#allocation2 + $0x288] sm:$0xff]  ;;  %v189_v49 = vld [vmem:[#allocation2 + $0x2c0] sm:$0xff] }
  0x64   :  { %2421 = vperm.xlu1 %6107, %v1802_v62   ;;  %v186_v9 = vld [vmem:[#allocation2 + $0x2a8] sm:$0xff]  ;;  %v193_v50 = vld [vmem:[#allocation2 + $0x2e0] sm:$0xff] }
  0x65   :  { %701 = vmatpush1.bf16.msra.mxu0 %v6182_v16  ;;  %5952 = vmatpush1.bf16.msra.mxu1 %v6182_v16  ;;  %v6224_v14 = vld [vmem:[#allocation5 + $0x144] ss:$8 sps:$4 sm:$0xff]   ;;  %v270_v16 = vpack.c.bf16 %v186_v9, %v182_v8  ;;  %v6228_v38 = vld [vmem:[#allocation5 + $0x160] ss:$8 sps:$4 sm:$0xff]  }
  0x66   :  { %702 = vmatprep.subr.bf16.mxu0 %v6183_v17  ;;  %5937 = vmatprep.subr.bf16.mxu1 %v6183_v17  ;;  %v126_v15 = vld [vmem:[#allocation2 + $0xc8] sm:$0xff] }
  0x67   :  { %v130_v17 = vld [vmem:[#allocation2 + $0xe8] sm:$0xff] }
  0x68   :  { %v6236_v52 = vld [vmem:[#allocation5 + $0x184] ss:$8 sps:$4 sm:$0xff]  }
  0x69   :  { %703 = vmatpush1.bf16.msra.mxu0 %v6185_v18  ;;  %5953 = vmatpush1.bf16.msra.mxu1 %v6185_v18  ;;  %v11077_v18 = vmov 3   ;;  %v198_v53 = vld [vmem:[#allocation2 + $0x308] sm:$0xff] }
  0x6a   :  { %704 = vmatprep.subr.bf16.mxu0 %v6186_v19  ;;  %5938 = vmatprep.subr.bf16.mxu1 %v6186_v19  ;;  %v1804_v19 = vld [vmem:[%s11063_s1 + $0x18] sm:$0xff]  ;;  %v202_v54 = vld [vmem:[#allocation2 + $0x328] sm:$0xff] }
  0x6b   :  { %6108 = vset.pattern.permute.xlu1 %v11077_v18  ;;  %6117 = vset.pattern.permute.xlu0 %v11077_v18  ;;  %v142_v55 = vld [vmem:[#allocation2 + $0x148] sm:$0xff]  ;;  %v278_v61 = vpack.c.bf16 %v202_v54, %v198_v53  ;;  %v6257_v54 = vld [vmem:[#allocation5 + $0x1f4] ss:$8 sps:$4 sm:$0xff]  }
  0x6c   :  { %2686 = vperm.xlu1 %6108, %v6775_v42   ;;  %2698 = vperm.xlu0 %6117, %v1804_v19   ;;  %v146_v56 = vld [vmem:[#allocation2 + $0x168] sm:$0xff] }
  0x6d   :  { %705 = vmatpush1.bf16.msra.mxu0 %v6188_v20  ;;  %5954 = vmatpush1.bf16.msra.mxu1 %v6188_v20  ;;  %v6222_v20 = vld [vmem:[#allocation5 + $0x140] ss:$8 sps:$4 sm:$0xff]  }
  0x6e   :  { %706 = vmatprep.subr.bf16.mxu0 %v6189_v21  ;;  %5939 = vmatprep.subr.bf16.mxu1 %v6189_v21  ;;  %v6810_v21 = vld [vmem:[%s11063_s1 + $0x50] sm:$0xff]  ;;  %v150_v6 = vld [vmem:[#allocation2 + $0x188] sm:$0xff] }
  0x6f   :  { %v154_v7 = vld [vmem:[#allocation2 + $0x1a8] sm:$0xff] }
  0x70   :  { %2690 = vperm.xlu1 %6108, %v1802_v62   ;;  %2726 = vperm.xlu0 %6117, %v6810_v21   ;;  %v250_v62 = vpack.c.bf16 %v146_v56, %v142_v55  ;;  %v206_v8 = vld [vmem:[#allocation2 + $0x348] sm:$0xff] }
  0x71   :  { %707 = vmatpush1.bf16.msra.mxu0 %v6191_v22  ;;  %5955 = vmatpush1.bf16.msra.mxu1 %v6191_v22  ;;  %v237_v22 = vpack.c.bf16 %v121_v13, %v117_v11  ;;  %v210_v9 = vld [vmem:[#allocation2 + $0x368] sm:$0xff]  ;;  %v1807_v11 = vld [vmem:[%s11063_s1 + $0x30] sm:$0xff] }
  0x72   :  { %708 = vmatprep.subr.bf16.mxu0 %v6192_v23  ;;  %5940 = vmatprep.subr.bf16.mxu1 %v6192_v23  ;;  %v6227_v23 = vld [vmem:[#allocation5 + $0x154] ss:$8 sps:$4 sm:$0xff]  }
  0x74   :  { %6110 = vset.pattern.permute.xlu1 %v11073_v29 }
  0x75   :  { %709 = vmatpush1.bf16.msra.mxu0 %v6194_v25  ;;  %5956 = vmatpush1.bf16.msra.mxu1 %v6194_v25  ;;  %v242_v25 = vpack.c.bf16 %v130_v17, %v126_v15  ;;  %v254_v15 = vpack.c.bf16 %v154_v7, %v150_v6  ;;  %v6243_v17 = vld [vmem:[#allocation5 + $0x1b0] ss:$8 sps:$4 sm:$0xff]  }
  0x76   :  { %710 = vmatprep.subr.bf16.mxu0 %v6195_v26  ;;  %5941 = vmatprep.subr.bf16.mxu1 %v6195_v26  ;;  %v6225_v26 = vld [vmem:[#allocation5 + $0x150] ss:$8 sps:$4 sm:$0xff]  }
  0x77   :  { %2429 = vperm.xlu1 %6110, %v1804_v19   ;;  %v149_v19 = vld [vmem:[#allocation2 + $0x180] sm:$0xff]  ;;  %v124_v6 = vld [vmem:[#allocation2 + $0xb8] sm:$0xff] }
  0x79   :  { %711 = vmatpush1.bf16.msra.mxu0 %v6197_v27  ;;  %5957 = vmatpush1.bf16.msra.mxu1 %v6197_v27  ;;  %v125_v27 = vld [vmem:[#allocation2 + $0xc0] sm:$0xff] }
  0x7a   :  { %712 = vmatprep.subr.bf16.mxu0 %v6198_v28  ;;  %5942 = vmatprep.subr.bf16.mxu1 %v6198_v28  ;;  %v181_v28 = vld [vmem:[#allocation2 + $0x280] sm:$0xff] }
  0x7b   :  { %6111 = vset.pattern.permute.xlu1 %v11077_v18 }
  0x7c   :  { %2694 = vperm.xlu1 %6111, %v6781_v46  }
  0x7d   :  { %713 = vmatpush1.bf16.msra.mxu0 %v6200_v30  ;;  %5958 = vmatpush1.bf16.msra.mxu1 %v6200_v30  ;;  %v185_v30 = vld [vmem:[#allocation2 + $0x2a0] sm:$0xff] }
  0x7e   :  { %714 = vmatprep.subr.bf16.mxu0 %v6201_v31  ;;  %5943 = vmatprep.subr.bf16.mxu1 %v6201_v31  ;;  %v129_v31 = vld [vmem:[#allocation2 + $0xe0] sm:$0xff]  ;;  %v269_v37 = vpack.c.bf16 %v185_v30, %v181_v28  ;;  %v214_v28 = vld [vmem:[#allocation2 + $0x388] sm:$0xff] }
  0x7f   :  { %v241_v40 = vpack.c.bf16 %v129_v31, %v125_v27  ;;  %v162_v27 = vld [vmem:[#allocation2 + $0x1e8] sm:$0xff] }
  0x80   :  { %6112 = vset.pattern.permute.xlu1 %v11073_v29  ;;  %v218_v30 = vld [vmem:[#allocation2 + $0x3a8] sm:$0xff] }
  0x81   :  { %715 = vmatpush1.bf16.msra.mxu0 %v6203_v32  ;;  %5959 = vmatpush1.bf16.msra.mxu1 %v6203_v32  ;;  %v190_v32 = vld [vmem:[#allocation2 + $0x2c8] sm:$0xff] }
  0x82   :  { %716 = vmatprep.subr.bf16.mxu0 %v6204_v33  ;;  %5944 = vmatprep.subr.bf16.mxu1 %v6204_v33  ;;  %v194_v33 = vld [vmem:[#allocation2 + $0x2e8] sm:$0xff] }
  0x83   :  { %v6246_v31 = vld [vmem:[#allocation5 + $0x1c0] ss:$8 sps:$4 sm:$0xff]  }
  0x85   :  { %717 = vmatpush1.bf16.msra.mxu0 %v6206_v34  ;;  %5960 = vmatpush1.bf16.msra.mxu1 %v6206_v34  ;;  %v6230_v34 = vld [vmem:[#allocation5 + $0x164] ss:$8 sps:$4 sm:$0xff]  }
  0x86   :  { %718 = vmatprep.subr.bf16.mxu0 %v6207_v35  ;;  %5945 = vmatprep.subr.bf16.mxu1 %v6207_v35  ;;  %v134_v35 = vld [vmem:[#allocation2 + $0x108] sm:$0xff] }
  0x89   :  { %719 = vmatpush1.bf16.msra.mxu0 %v6209_v36  ;;  %5961 = vmatpush1.bf16.msra.mxu1 %v6209_v36  ;;  %v138_v36 = vld [vmem:[#allocation2 + $0x128] sm:$0xff] }
  0x8a   :  { %881 = vmatprep.subr.bf16.mxu0 %v6212_v39  ;;  %v274_v39 = vpack.c.bf16 %v194_v33, %v190_v32 }
  0x8c   :  { %721 = vmatmul.mubr.bf16.vlgmr.msra.gmra.mrb[0].mxu0 %v229_v43  ;;  %801 = vmatmul.mubr.bf16.vlgmr.msra.gmra.mrb[0].mxu1 %v261_v58  ;;  %v11071_v43 = vmov 0   ;;  %v273_v58 = vpack.c.bf16 %v193_v50, %v189_v49  ;;  %v108_v49 = vld [vmem:[#allocation2 + $0x38] sm:$0xff]  ;;  %v6252_v50 = vld [vmem:[#allocation5 + $0x1e0] ss:$8 sps:$4 sm:$0xff]  }
  0x8d   :  { %882 = vmatpush1.bf16.msra.mxu0 %v6210_v44  ;;  %730 = vmatprep.mubr.bf16.mxu0 %v234_v45  ;;  %v246_v44 = vpack.c.bf16 %v138_v36, %v134_v35  ;;  %v6231_v45 = vld [vmem:[#allocation5 + $0x170] ss:$8 sps:$4 sm:$0xff]  }
  0x8e   :  { %883 = vmatprep.subr.bf16.mxu0 %v6215_v47  ;;  %810 = vmatprep.mubr.bf16.mxu1 %v266_v4  ;;  %v133_v47 = vld [vmem:[#allocation2 + $0x100] sm:$0xff]  ;;  %v6249_v36 = vld [vmem:[#allocation5 + $0x1d0] ss:$8 sps:$4 sm:$0xff]  }
  0x8f   :  { %6120 = vset.pattern.permute.xlu0 %v11071_v43  ;;  %v201_v4 = vld [vmem:[#allocation2 + $0x320] sm:$0xff] }
  0x90   :  { %1837 = vperm.xlu0 %6120, %v6775_v42   ;;  %v1805_v42 = vld [vmem:[%s11063_s1 + $0x20] sm:$0xff] }
  0x91   :  { %884 = vmatpush1.bf16.msra.mxu0 %v6213_v48  ;;  %v137_v48 = vld [vmem:[#allocation2 + $0x120] sm:$0xff]  ;;  %2433 = vperm.xlu1 %6112, %v1805_v42  }
  0x92   :  { %885 = vmatprep.subr.bf16.mxu0 %v6218_v57  ;;  %v6234_v57 = vld [vmem:[#allocation5 + $0x180] ss:$8 sps:$4 sm:$0xff]   ;;  %v245_v59 = vpack.c.bf16 %v137_v48, %v133_v47  ;;  %v104_v48 = vld [vmem:[#allocation2 + $0x18] sm:$0xff] }
  0x93   :  { %v226_v47 = vld [vmem:[#allocation2 + $0x3e8] sm:$0xff]  ;;  %v232_v56 = vpack.c.bf16 %v108_v49, %v104_v48  ;;  %v159_v48 = vld [vmem:[#allocation2 + $0x1d0] sm:$0xff] }
  0x94   :  { %731 = vmatmul.mubr.bf16.gmra.mrb[4].mxu0 %v233_v0  ;;  %811 = vmatmul.mubr.bf16.gmra.mrb[4].mxu1 %v265_v12  ;;  %v141_v0 = vld [vmem:[#allocation2 + $0x140] sm:$0xff]  ;;  %v163_v49 = vld [vmem:[#allocation2 + $0x1f0] sm:$0xff] }
  0x95   :  { %886 = vmatpush1.bf16.msra.mxu0 %v6216_v1  ;;  %740 = vmatprep.mubr.bf16.mxu0 %v238_v5  ;;  %v145_v1 = vld [vmem:[#allocation2 + $0x160] sm:$0xff] }
  0x96   :  { %887 = vmatprep.subr.bf16.mxu0 %v6221_v2  ;;  %820 = vmatprep.mubr.bf16.mxu1 %v270_v16  ;;  %v1806_v2 = vld [vmem:[%s11063_s1 + $0x28] sm:$0xff]  ;;  %v249_v13 = vpack.c.bf16 %v145_v1, %v141_v0  ;;  %v282_v16 = vpack.c.bf16 %v210_v9, %v206_v8  ;;  %v119_v8 = vld [vmem:[#allocation2 + $0x90] sm:$0xff] }
  0x97   :  { %1847 = vperm.xlu0 %6120, %v6781_v46   ;;  %v197_v46 = vld [vmem:[#allocation2 + $0x300] sm:$0xff]  ;;  %2437 = vperm.xlu1 %6112, %v1806_v2   ;;  %v123_v9 = vld [vmem:[#allocation2 + $0xb0] sm:$0xff] }
  0x98   :  { %v6242_v5 = vld [vmem:[#allocation5 + $0x1a4] ss:$8 sps:$4 sm:$0xff]   ;;  %v277_v12 = vpack.c.bf16 %v201_v4, %v197_v46  ;;  %v111_v46 = vld [vmem:[#allocation2 + $0x50] sm:$0xff] }
  0x99   :  { %888 = vmatpush1.bf16.msra.mxu0 %v6219_v10  ;;  %v6240_v10 = vld [vmem:[#allocation5 + $0x1a0] ss:$8 sps:$4 sm:$0xff]   ;;  %v115_v4 = vld [vmem:[#allocation2 + $0x70] sm:$0xff] }
  0x9a   :  { %889 = vmatprep.subr.bf16.mxu0 %v6224_v14  ;;  %v6245_v14 = vld [vmem:[#allocation5 + $0x1b4] ss:$8 sps:$4 sm:$0xff]   ;;  %v235_v7 = vpack.c.bf16 %v115_v4, %v111_v46 }
  0x9b   :  { %1862 = vperm.xlu0 %6120, %v1806_v2   ;;  %6113 = vset.pattern.permute.xlu1 %v11077_v18 }
  0x9c   :  { %741 = vmatmul.mubr.bf16.gmra.mrb[8].mxu0 %v237_v22  ;;  %821 = vmatmul.mubr.bf16.gmra.mrb[8].mxu1 %v269_v37  ;;  %v209_v22 = vld [vmem:[#allocation2 + $0x360] sm:$0xff] }
  0x9d   :  { %890 = vmatpush1.bf16.msra.mxu0 %v6222_v20  ;;  %750 = vmatprep.mubr.bf16.mxu0 %v242_v25  ;;  %v205_v20 = vld [vmem:[#allocation2 + $0x340] sm:$0xff] }
  0x9e   :  { %891 = vmatprep.subr.bf16.mxu0 %v6227_v23  ;;  %830 = vmatprep.mubr.bf16.mxu1 %v274_v39  ;;  %v153_v23 = vld [vmem:[#allocation2 + $0x1a0] sm:$0xff]  ;;  %v281_v32 = vpack.c.bf16 %v209_v22, %v205_v20  ;;  %v135_v22 = vld [vmem:[#allocation2 + $0x110] sm:$0xff] }
  0x9f   :  { %1867 = vperm.xlu0 %6120, %v1807_v11   ;;  %2702 = vperm.xlu1 %6113, %v1805_v42   ;;  %v6248_v25 = vld [vmem:[#allocation5 + $0x1c4] ss:$8 sps:$4 sm:$0xff]   ;;  %v253_v33 = vpack.c.bf16 %v153_v23, %v149_v19  ;;  %v140_v19 = vld [vmem:[#allocation2 + $0x138] sm:$0xff] }
  0xa0   :  { %v157_v37 = vld [vmem:[#allocation2 + $0x1c0] sm:$0xff] }
  0xa1   :  { %892 = vmatpush1.bf16.msra.mxu0 %v6225_v26  ;;  %v158_v26 = vld [vmem:[#allocation2 + $0x1c8] sm:$0xff]  ;;  %v161_v39 = vld [vmem:[#allocation2 + $0x1e0] sm:$0xff] }
  0xa2   :  { %893 = vmatprep.subr.bf16.mxu0 %v6230_v34  ;;  %v6251_v34 = vld [vmem:[#allocation5 + $0x1d4] ss:$8 sps:$4 sm:$0xff]   ;;  %v258_v35 = vpack.c.bf16 %v162_v27, %v158_v26  ;;  %v257_v53 = vpack.c.bf16 %v161_v39, %v157_v37  ;;  %v221_v42 = vld [vmem:[#allocation2 + $0x3c0] sm:$0xff] }
  0xa3   :  { %2706 = vperm.xlu1 %6113, %v1806_v2   ;;  %v1809_v2 = vld [vmem:[%s11063_s1 + $0x40] sm:$0xff]  ;;  %v148_v26 = vld [vmem:[#allocation2 + $0x178] sm:$0xff]  ;;  %v1815_v37 = vld [vmem:[%s11063_s1 + $0x70] sm:$0xff] }
  0xa4   :  { %751 = vmatmul.mubr.bf16.gmra.mrb[12].mxu0 %v241_v40  ;;  %831 = vmatmul.mubr.bf16.gmra.mrb[12].mxu1 %v273_v58  ;;  %v213_v40 = vld [vmem:[#allocation2 + $0x380] sm:$0xff]  ;;  %v6255_v58 = vld [vmem:[#allocation5 + $0x1f0] ss:$8 sps:$4 sm:$0xff]  }
  0xa5   :  { %894 = vmatpush1.bf16.msra.mxu0 %v6228_v38  ;;  %760 = vmatprep.mubr.bf16.mxu0 %v246_v44  ;;  %v286_v38 = vpack.c.bf16 %v218_v30, %v214_v28  ;;  %v6254_v44 = vld [vmem:[#allocation5 + $0x1e4] ss:$8 sps:$4 sm:$0xff]   ;;  %v155_v39 = vld [vmem:[#allocation2 + $0x1b0] sm:$0xff] }
  0xa6   :  { %895 = vmatprep.subr.bf16.mxu0 %v6233_v41  ;;  %840 = vmatprep.mubr.bf16.mxu1 %v278_v61  ;;  %v217_v41 = vld [vmem:[#allocation2 + $0x3a0] sm:$0xff]  ;;  %v112_v61 = vld [vmem:[#allocation2 + $0x58] sm:$0xff]  ;;  %v1814_v30 = vld [vmem:[%s11063_s1 + $0x68] sm:$0xff] }
  0xa7   :  { %6114 = vset.pattern.permute.xlu1 %v11073_v29  ;;  %v1813_v23 = vld [vmem:[%s11063_s1 + $0x60] sm:$0xff] }
  0xa8   :  { %2441 = vperm.xlu1 %6114, %v1807_v11  }
  0xa9   :  { %896 = vmatpush1.bf16.msra.mxu0 %v6231_v45  ;;  %v222_v45 = vld [vmem:[#allocation2 + $0x3c8] sm:$0xff] }
  0xaa   :  { %897 = vmatprep.subr.bf16.mxu0 %v6236_v52  ;;  %v285_v52 = vpack.c.bf16 %v217_v41, %v213_v40  ;;  %v290_v55 = vpack.c.bf16 %v226_v47, %v222_v45  ;;  %v160_v40 = vld [vmem:[#allocation2 + $0x1d8] sm:$0xff] }
  0xab   :  { %v164_v41 = vld [vmem:[#allocation2 + $0x1f8] sm:$0xff] }
  0xac   :  { %761 = vmatmul.mubr.bf16.gmra.mrb[16].mxu0 %v245_v59  ;;  %841 = vmatmul.mubr.bf16.gmra.mrb[16].mxu1 %v277_v12  ;;  %v103_v59 = vld [vmem:[#allocation2 + $0x10] sm:$0xff]  ;;  %v239_v12 = vpack.c.bf16 %v123_v9, %v119_v8  ;;  %v260_v47 = vpack.c.bf16 %v164_v41, %v160_v40  ;;  %v196_v8 = vld [vmem:[#allocation2 + $0x2f8] sm:$0xff] }
  0xad   :  { %898 = vmatpush1.bf16.msra.mxu0 %v6234_v57  ;;  %770 = vmatprep.mubr.bf16.mxu0 %v250_v62  ;;  %v225_v57 = vld [vmem:[#allocation2 + $0x3e0] sm:$0xff]  ;;  %v116_v62 = vld [vmem:[#allocation2 + $0x78] sm:$0xff] }
  0xae   :  { %899 = vmatprep.subr.bf16.mxu0 %v6239_v60  ;;  %850 = vmatprep.mubr.bf16.mxu1 %v282_v16  ;;  %v107_v60 = vld [vmem:[#allocation2 + $0x30] sm:$0xff]  ;;  %v236_v1 = vpack.c.bf16 %v116_v62, %v112_v61 }
  0xaf   :  { %6115 = vset.pattern.permute.xlu1 %v11077_v18  ;;  %v231_v0 = vpack.c.bf16 %v107_v60, %v103_v59  ;;  %v131_v16 = vld [vmem:[#allocation2 + $0xf0] sm:$0xff]  ;;  %v180_v59 = vld [vmem:[#allocation2 + $0x278] sm:$0xff] }
  0xb0   :  { %2710 = vperm.xlu1 %6115, %v1807_v11   ;;  %v132_v11 = vld [vmem:[#allocation2 + $0xf8] sm:$0xff]  ;;  %v175_v62 = vld [vmem:[#allocation2 + $0x250] sm:$0xff] }
  0xb1   :  { %900 = vmatpush1.bf16.msra.mxu0 %v6237_v63  ;;  %v289_v63 = vpack.c.bf16 %v225_v57, %v221_v42  ;;  %v171_v42 = vld [vmem:[#allocation2 + $0x230] sm:$0xff]  ;;  %v1818_v57 = vld [vmem:[%s11063_s1 + $0x88] sm:$0xff] }
  0xb2   :  { %901 = vmatprep.subr.bf16.mxu0 %v6242_v5  ;;  %v120_v5 = vld [vmem:[#allocation2 + $0x98] sm:$0xff] }
  0xb4   :  { %771 = vmatmul.mubr.bf16.gmra.mrb[20].mxu0 %v249_v13  ;;  %851 = vmatmul.mubr.bf16.gmra.mrb[20].mxu1 %v281_v32  ;;  %v147_v32 = vld [vmem:[#allocation2 + $0x170] sm:$0xff] }
  0xb5   :  { %902 = vmatpush1.bf16.msra.mxu0 %v6240_v10  ;;  %780 = vmatprep.mubr.bf16.mxu0 %v254_v15  ;;  %v128_v10 = vld [vmem:[#allocation2 + $0xd8] sm:$0xff]  ;;  %v127_v15 = vld [vmem:[#allocation2 + $0xd0] sm:$0xff] }
  0xb6   :  { %903 = vmatprep.subr.bf16.mxu0 %v6245_v14  ;;  %860 = vmatprep.mubr.bf16.mxu1 %v286_v38  ;;  %v244_v13 = vpack.c.bf16 %v132_v11, %v128_v10  ;;  %v1812_v14 = vld [vmem:[%s11063_s1 + $0x58] sm:$0xff]  ;;  %v151_v38 = vld [vmem:[#allocation2 + $0x190] sm:$0xff] }
  0xb7   :  { %2714 = vperm.xlu1 %6115, %v6788_v51   ;;  %v240_v51 = vpack.c.bf16 %v124_v6, %v120_v5  ;;  %v255_v45 = vpack.c.bf16 %v155_v39, %v151_v38  ;;  %v1820_v5 = vld [vmem:[%s11063_s1 + $0x98] sm:$0xff]  ;;  %v183_v6 = vld [vmem:[#allocation2 + $0x290] sm:$0xff] }
  0xb8   :  { %v191_v11 = vld [vmem:[#allocation2 + $0x2d0] sm:$0xff] }
  0xb9   :  { %904 = vmatpush1.bf16.msra.mxu0 %v6243_v17  ;;  %v136_v17 = vld [vmem:[#allocation2 + $0x118] sm:$0xff]  ;;  %v227_v38 = vld [vmem:[#allocation2 + $0x3f0] sm:$0xff] }
  0xba   :  { %905 = vmatprep.subr.bf16.mxu0 %v6248_v25  ;;  %v248_v20 = vpack.c.bf16 %v140_v19, %v136_v17  ;;  %v144_v25 = vld [vmem:[#allocation2 + $0x158] sm:$0xff]  ;;  %v199_v17 = vld [vmem:[#allocation2 + $0x310] sm:$0xff] }
  0xbb   :  { %6116 = vset.pattern.permute.xlu1 %v11073_v29  ;;  %v252_v28 = vpack.c.bf16 %v148_v26, %v144_v25  ;;  %v203_v19 = vld [vmem:[#allocation2 + $0x330] sm:$0xff]  ;;  %v216_v26 = vld [vmem:[#allocation2 + $0x398] sm:$0xff] }
  0xbc   :  { %781 = vmatmul.mubr.bf16.gmra.mrb[24].mxu0 %v253_v33  ;;  %861 = vmatmul.mubr.bf16.gmra.mrb[24].mxu1 %v285_v52  ;;  %v152_v33 = vld [vmem:[#allocation2 + $0x198] sm:$0xff]  ;;  %v211_v25 = vld [vmem:[#allocation2 + $0x370] sm:$0xff] }
  0xbd   :  { %906 = vmatpush1.bf16.msra.mxu0 %v6246_v31  ;;  %790 = vmatprep.mubr.bf16.mxu0 %v258_v35  ;;  %v143_v31 = vld [vmem:[#allocation2 + $0x150] sm:$0xff]  ;;  %v172_v52 = vld [vmem:[#allocation2 + $0x238] sm:$0xff] }
  0xbe   :  { %907 = vmatprep.subr.bf16.mxu0 %v6251_v34  ;;  %870 = vmatprep.mubr.bf16.mxu1 %v290_v55  ;;  %v156_v34 = vld [vmem:[#allocation2 + $0x1b8] sm:$0xff]  ;;  %v251_v35 = vpack.c.bf16 %v147_v32, %v143_v31  ;;  %v1817_v55 = vld [vmem:[%s11063_s1 + $0x80] sm:$0xff]  ;;  %v215_v31 = vld [vmem:[#allocation2 + $0x390] sm:$0xff] }
  0xbf   :  { %2449 = vperm.xlu1 %6116, %v1809_v2   ;;  %v219_v32 = vld [vmem:[#allocation2 + $0x3b0] sm:$0xff] }
  0xc1   :  { %908 = vmatpush1.bf16.msra.mxu0 %v6249_v36  ;;  %v256_v36 = vpack.c.bf16 %v156_v34, %v152_v33  ;;  %v224_v33 = vld [vmem:[#allocation2 + $0x3d8] sm:$0xff] }
  0xc2   :  { %909 = vmatprep.subr.bf16.mxu0 %v6254_v44  ;;  %v1816_v44 = vld [vmem:[%s11063_s1 + $0x78] sm:$0xff] }
  0xc3   :  { %6118 = vset.pattern.permute.xlu1 %v11077_v18  ;;  %v228_v34 = vld [vmem:[#allocation2 + $0x3f8] sm:$0xff] }
  0xc4   :  { %791 = vmatmul.mubr.bf16.gmra.mrb[28].mxu0 %v257_v53  ;;  %871 = vmatmul.mubr.bf16.gmra.mrb[28].mxu1 %v289_v63  ;;  %v259_v53 = vpack.c.bf16 %v163_v49, %v159_v48  ;;  %v179_v63 = vld [vmem:[#allocation2 + $0x270] sm:$0xff] }
  0xc5   :  { %910 = vmatpush1.bf16.msra.mxu0 %v6252_v50  ;;  %913 = vmatprep.mubr.bf16.mxu0 %v232_v56  ;;  %v168_v50 = vld [vmem:[#allocation2 + $0x218] sm:$0xff]  ;;  %v167_v56 = vld [vmem:[#allocation2 + $0x210] sm:$0xff]  ;;  %v267_v46 = vpack.c.bf16 %v179_v63, %v175_v62 }
  0xc6   :  { %911 = vmatprep.subr.bf16.mxu0 %v6257_v54  ;;  %2718 = vperm.xlu1 %6118, %v1809_v2   ;;  %v264_v54 = vpack.c.bf16 %v172_v52, %v168_v50  ;;  %v263_v60 = vpack.c.bf16 %v171_v42, %v167_v56  ;;  %v1819_v2 = vld [vmem:[%s11063_s1 + $0x90] sm:$0xff] }
  0xc9   :  { %912 = vmatpush1.bf16.msra.mxu0 %v6255_v58  ;;  %v176_v58 = vld [vmem:[#allocation2 + $0x258] sm:$0xff] }
  0xca   :  { %2722 = vperm.xlu1 %6118, %v6798_v3   ;;  %v243_v3 = vpack.c.bf16 %v131_v16, %v127_v15  ;;  %v268_v61 = vpack.c.bf16 %v180_v59, %v176_v58 }
  0xcc   :  { %914 = vmatmul.mubr.bf16.vlgmr.msra.gmra.mrb[0].mxu0 %v231_v0  ;;  %v184_v0 = vld [vmem:[#allocation2 + $0x298] sm:$0xff] }
  0xcd   :  { %923 = vmatprep.mubr.bf16.mxu0 %v236_v1  ;;  %v188_v1 = vld [vmem:[#allocation2 + $0x2b8] sm:$0xff] }
  0xce   :  { %6119 = vset.pattern.permute.xlu1 %v11073_v29  ;;  %v272_v4 = vpack.c.bf16 %v188_v1, %v184_v0 }
  0xcf   :  { %2457 = vperm.xlu1 %6119, %v6810_v21   ;;  %v139_v21 = vld [vmem:[#allocation2 + $0x130] sm:$0xff] }
  0xd0   :  { %v247_v27 = vpack.c.bf16 %v139_v21, %v135_v22  ;;  %v279_v22 = vpack.c.bf16 %v203_v19, %v199_v17 }
  0xd3   :  { %2461 = vperm.xlu1 %6119, %v1812_v14  }
  0xd4   :  { %924 = vmatmul.mubr.bf16.gmra.mrb[4].mxu0 %v235_v7  ;;  %v187_v7 = vld [vmem:[#allocation2 + $0x2b0] sm:$0xff] }
  0xd5   :  { %933 = vmatprep.mubr.bf16.mxu0 %v240_v51  ;;  %v192_v51 = vld [vmem:[#allocation2 + $0x2d8] sm:$0xff]  ;;  %v271_v9 = vpack.c.bf16 %v187_v7, %v183_v6  ;;  %v358_v6 = vlaneseq }
  0xd6   :  { %v276_v10 = vpack.c.bf16 %v196_v8, %v192_v51 }
  0xd7   :  { %6121 = vset.pattern.permute.xlu1 %v11077_v18  ;;  %v359_v7 = vshrl.u32 %v358_v6, 7 }
  0xd8   :  { %2730 = vperm.xlu1 %6121, %v1812_v14   ;;  %v204_v14 = vld [vmem:[#allocation2 + $0x338] sm:$0xff] }
  0xda   :  { %v6910_v59 = vpop.permute.xlu1 %2148 }
  0xdb   :  { %11371 = vst [vmem:[#allocation15_spill] sm:$0xff] %v6910_v59 }
  0xdc   :  { %934 = vmatmul.mubr.bf16.gmra.mrb[8].mxu0 %v239_v12  ;;  %6122 = vset.pattern.permute.xlu1 %v11073_v29  ;;  %v195_v12 = vld [vmem:[#allocation2 + $0x2f0] sm:$0xff] }
  0xdd   :  { %943 = vmatprep.mubr.bf16.mxu0 %v244_v13  ;;  %2465 = vperm.xlu1 %6122, %v1813_v23   ;;  %v200_v13 = vld [vmem:[#allocation2 + $0x318] sm:$0xff]  ;;  %v275_v15 = vpack.c.bf16 %v195_v12, %v191_v11  ;;  %v207_v23 = vld [vmem:[#allocation2 + $0x350] sm:$0xff]  ;;  %v86_v11 = vld [vmem:[%s11068_s6] ss:$8 sm:$0x3] }
  0xde   :  { %v280_v16 = vpack.c.bf16 %v204_v14, %v200_v13  ;;  %v6945_v13 = vsub.s32 0, %v359_v7 }
  0xdf   :  { %v6920_v0 = vpop.permute.xlu1 %2417 }
  0xe0   :  { %11372 = vst [vmem:[#allocation16_spill] sm:$0xff] %v6920_v0  ;;  %11375 = vst [vmem:[#allocation19_spill] sm:$0xff] %v6945_v13 }
  0xe1   :  { %2469 = vperm.xlu1 %6122, %v1814_v30  }
  0xe4   :  { %944 = vmatmul.mubr.bf16.gmra.mrb[12].mxu0 %v243_v3  ;;  %v208_v3 = vld [vmem:[#allocation2 + $0x358] sm:$0xff] }
  0xe5   :  { %953 = vmatprep.mubr.bf16.mxu0 %v248_v20  ;;  %6123 = vset.pattern.permute.xlu1 %v11077_v18  ;;  %v212_v20 = vld [vmem:[#allocation2 + $0x378] sm:$0xff] }
  0xe6   :  { %2738 = vperm.xlu1 %6123, %v1814_v30   ;;  %v284_v21 = vpack.c.bf16 %v212_v20, %v208_v3 }
  0xea   :  { %6124 = vset.pattern.permute.xlu1 %v11073_v29 }
  0xeb   :  { %2473 = vperm.xlu1 %6124, %v1815_v37  }
  0xec   :  { %954 = vmatmul.mubr.bf16.gmra.mrb[16].mxu0 %v247_v27  ;;  %v220_v27 = vld [vmem:[#allocation2 + $0x3b8] sm:$0xff] }
  0xed   :  { %963 = vmatprep.mubr.bf16.mxu0 %v252_v28  ;;  %v283_v28 = vpack.c.bf16 %v211_v25, %v207_v23  ;;  %v288_v30 = vpack.c.bf16 %v220_v27, %v216_v26 }
  0xef   :  { %2477 = vperm.xlu1 %6124, %v1816_v44  }
  0xf3   :  { %6125 = vset.pattern.permute.xlu1 %v11077_v18 }
  0xf4   :  { %964 = vmatmul.mubr.bf16.gmra.mrb[20].mxu0 %v251_v35  ;;  %2742 = vperm.xlu1 %6125, %v1815_v37   ;;  %v287_v35 = vpack.c.bf16 %v219_v32, %v215_v31  ;;  %v223_v37 = vld [vmem:[#allocation2 + $0x3d0] sm:$0xff] }
  0xf5   :  { %973 = vmatprep.mubr.bf16.mxu0 %v256_v36  ;;  %v292_v36 = vpack.c.bf16 %v228_v34, %v224_v33  ;;  %v291_v39 = vpack.c.bf16 %v227_v38, %v223_v37 }
  0xf8   :  { %6126 = vset.pattern.permute.xlu1 %v11073_v29 }
  0xf9   :  { %2481 = vperm.xlu1 %6126, %v1817_v55  }
  0xfc   :  { %974 = vmatmul.mubr.bf16.gmra.mrb[24].mxu0 %v255_v45 }
  0xfd   :  { %983 = vmatprep.mubr.bf16.mxu0 %v260_v47  ;;  %2485 = vperm.xlu1 %6126, %v1818_v57  }
 0x101   :  { %6127 = vset.pattern.permute.xlu1 %v11077_v18 }
 0x102   :  { %2750 = vperm.xlu1 %6127, %v1817_v55  }
 0x104   :  { %984 = vmatmul.mubr.bf16.gmra.mrb[28].mxu0 %v259_v53 }
 0x105   :  { %993 = vmatprep.mubr.bf16.mxu0 %v264_v54 }
 0x106   :  { %6128 = vset.pattern.permute.xlu1 %v11073_v29 }
 0x107   :  { %2489 = vperm.xlu1 %6128, %v1819_v2  }
 0x10b   :  { %2493 = vperm.xlu1 %6128, %v1820_v5  }
 0x10c   :  { %994 = vmatmul.mubr.bf16.gmra.mrb[32].mxu0 %v263_v60 }
 0x10d   :  { %1003 = vmatprep.mubr.bf16.mxu0 %v268_v61 }
 0x10f   :  { %6129 = vset.pattern.permute.xlu1 %v11077_v18 }
 0x110   :  { %2758 = vperm.xlu1 %6129, %v1819_v2  }
 0x114   :  { %1004 = vmatmul.mubr.bf16.gmra.mrb[36].mxu0 %v267_v46  ;;  %2762 = vperm.xlu1 %6129, %v1820_v5   ;;  %v6926_v46 = vpop.permute.xlu1 %2421 }
 0x115   :  { %1013 = vmatprep.mubr.bf16.mxu0 %v272_v4  ;;  %11373 = vst [vmem:[#allocation17_spill] sm:$0xff] %v6926_v46 }
 0x118   :  { %6132 = vset.pattern.permute.xlu1 %v11073_v29  ;;  %v6932_v51 = vpop.permute.xlu1 %2686 }
 0x119   :  { %11374 = vst [vmem:[#allocation18_spill] sm:$0xff] %v6932_v51 }
 0x11c   :  { %1014 = vmatmul.mubr.bf16.gmra.mrb[40].mxu0 %v271_v9  ;;  %v6947_v14 = vpop.permute.xlu1 %2690 }
 0x11d   :  { %1023 = vmatprep.mubr.bf16.mxu0 %v276_v10  ;;  %11376 = vst [vmem:[#allocation20_spill] sm:$0xff] %v6947_v14 }
 0x120   :  { %v6957_v19 = vpop.permute.xlu1 %2429 }
 0x121   :  { %11378 = vst [vmem:[#allocation22_spill] sm:$0xff] %v6957_v19 }
 0x124   :  { %1024 = vmatmul.mubr.bf16.gmra.mrb[44].mxu0 %v275_v15  ;;  %v6949_v15 = vsub.s32 1, %v359_v7  ;;  %v6981_v34 = vpop.permute.xlu1 %2694 }
 0x125   :  { %1033 = vmatprep.mubr.bf16.mxu0 %v280_v16  ;;  %v6952_v16 = vrot.slane %v86_v11, %v6945_v13  ;;  %11379 = vst [vmem:[#allocation23_spill] sm:$0xff] %v6981_v34 }
 0x126   :  { %11377 = vst [vmem:[#allocation21_spill] sm:$0xff] %v6949_v15  ;;  %v6955_v17 = vrot.slane %v86_v11, %v6949_v15 }
 0x12c   :  { %1034 = vmatmul.mubr.bf16.gmra.mrb[48].mxu0 %v279_v22 }
 0x12d   :  { %1043 = vmatprep.mubr.bf16.mxu0 %v284_v21 }
 0x134   :  { %1044 = vmatmul.mubr.bf16.gmra.mrb[52].mxu0 %v283_v28 }
 0x135   :  { %1053 = vmatprep.mubr.bf16.mxu0 %v288_v30 }
 0x13c   :  { %1054 = vmatmul.mubr.bf16.gmra.mrb[56].mxu0 %v287_v35 }
 0x13d   :  { %1063 = vmatprep.mubr.bf16.mxu0 %v292_v36 }
 0x144   :  { %1064 = vmatmul.mubr.bf16.gmra.mrb[60].mxu0 %v291_v39 }
 0x15f   :  { %v6878_v40 = vpop.f32.mrb[0].mxu1 }
 0x160   :  { %v6880_v41 = vpop.f32.mrb[1].mxu1 }
 0x161   :  { %v6882_v44 = vpop.f32.mrb[2].mxu1 }
 0x162   :  { %v6884_v45 = vpop.f32.mrb[3].mxu1 }
 0x167   :  { %v6886_v47 = vpop.f32.mrb[4].mxu1 }
 0x168   :  { %v6888_v48 = vpop.f32.mrb[5].mxu1 }
 0x169   :  { %v6890_v49 = vpop.f32.mrb[6].mxu1 }
 0x16a   :  { %v6892_v50 = vpop.f32.mrb[7].mxu1 }
 0x16f   :  { %v6894_v52 = vpop.f32.mrb[8].mxu1 }
 0x170   :  { %v6896_v53 = vpop.f32.mrb[9].mxu1 }
 0x171   :  { %v6898_v54 = vpop.f32.mrb[10].mxu1 }
 0x172   :  { %v6900_v55 = vpop.f32.mrb[11].mxu1 }
 0x177   :  { %v6902_v56 = vpop.f32.mrb[12].mxu1 }
 0x178   :  { %v6904_v42 = vpop.f32.mrb[13].mxu1 }
 0x179   :  { %v6906_v57 = vpop.f32.mrb[14].mxu1 }
 0x17a   :  { %v6908_v58 = vpop.f32.mrb[15].mxu1 }
 0x17f   :  { %v6912_v60 = vpop.f32.mrb[16].mxu1 }
 0x180   :  { %v6914_v61 = vpop.f32.mrb[17].mxu1 }
 0x181   :  { %v6916_v62 = vpop.f32.mrb[18].mxu1 }
 0x182   :  { %v6918_v63 = vpop.f32.mrb[19].mxu1 }
 0x187   :  { %v6922_v1 = vpop.f32.mrb[20].mxu1 }
 0x188   :  { %v6924_v2 = vpop.f32.mrb[21].mxu1 }
 0x189   :  { %v6928_v4 = vpop.f32.mrb[22].mxu1 }
 0x18a   :  { %v6930_v5 = vpop.f32.mrb[23].mxu1 }
 0x18f   :  { %v6934_v8 = vpop.f32.mrb[24].mxu1 }
 0x190   :  { %v6936_v9 = vpop.f32.mrb[25].mxu1 }
 0x191   :  { %v6938_v10 = vpop.f32.mrb[26].mxu1 }
 0x192   :  { %v6943_v12 = vpop.f32.mrb[27].mxu1 }
 0x197   :  { %v6959_v3 = vpop.f32.mrb[28].mxu1 }
 0x198   :  { %v6961_v22 = vpop.f32.mrb[29].mxu1 }
 0x199   :  { %v6966_v25 = vpop.f32.mrb[30].mxu1 }
 0x19a   :  { %v6971_v28 = vpop.f32.mrb[31].mxu1 }
 0x19f   :  { %v915_v20 = vpop.f32.mrb[0].mxu0 }
 0x1a0   :  { %v6964_v21 = vadd.f32 %v915_v20, %v6952_v16  ;;  %v917_v23 = vpop.f32.mrb[1].mxu0 }
 0x1a1   :  { %v6969_v26 = vadd.f32 %v917_v23, %v6955_v17  ;;  %v919_v27 = vpop.f32.mrb[2].mxu0 }
 0x1a2   :  { %v921_v30 = vpop.f32.mrb[3].mxu0  ;;  %v6974_v31 = vadd.f32 %v919_v27, %v6952_v16  ;;  %v6999_v27 = vpop.permute.xlu1 %2433 }
 0x1a3   :  { %v6977_v32 = vadd.f32 %v921_v30, %v6955_v17  ;;  %v1074_v33 = vadd.f32 %v6969_v26, %v6964_v21  ;;  %11380 = vst [vmem:[#allocation24_spill] sm:$0xff] %v6999_v27 }
 0x1a5   :  { %1075 = vadd.xlane.f32.xlu0 %v1074_v33  ;;  %v1077_v36 = vadd.f32 %v6977_v32, %v6974_v31 }
 0x1a6   :  { %v7012_v29 = vpop.permute.xlu1 %2437 }
 0x1a7   :  { %v925_v35 = vpop.f32.mrb[4].mxu0  ;;  %11381 = vst [vmem:[#allocation25_spill] sm:$0xff] %v7012_v29 }
 0x1a8   :  { %v6986_v37 = vadd.f32 %v925_v35, %v6952_v16  ;;  %v927_v38 = vpop.f32.mrb[5].mxu0 }
 0x1a9   :  { %v6989_v39 = vadd.f32 %v927_v38, %v6955_v17  ;;  %v929_v6 = vpop.f32.mrb[6].mxu0  ;;  %1078 = vadd.xlane.f32.xlu0 %v1077_v36 }
 0x1aa   :  { %v931_v7 = vpop.f32.mrb[7].mxu0  ;;  %v6992_v11 = vadd.f32 %v929_v6, %v6952_v16  ;;  %v7024_v18 = vpop.permute.xlu1 %2702 }
 0x1ab   :  { %v6995_v20 = vadd.f32 %v931_v7, %v6955_v17  ;;  %v1080_v23 = vadd.f32 %v6989_v39, %v6986_v37  ;;  %11382 = vst [vmem:[#allocation26_spill] sm:$0xff] %v7024_v18 }
 0x1ad   :  { %1081 = vadd.xlane.f32.xlu1 %v1080_v23  ;;  %v1083_v33 = vadd.f32 %v6995_v20, %v6992_v11 }
 0x1ae   :  { %v7039_v19 = vpop.permute.xlu1 %2706 }
 0x1af   :  { %v935_v30 = vpop.f32.mrb[8].mxu0  ;;  %11383 = vst [vmem:[#allocation27_spill] sm:$0xff] %v7039_v19 }
 0x1b0   :  { %v7004_v35 = vadd.f32 %v935_v30, %v6952_v16  ;;  %v937_v36 = vpop.f32.mrb[9].mxu0 }
 0x1b1   :  { %v7007_v38 = vadd.f32 %v937_v36, %v6955_v17  ;;  %v939_v6 = vpop.f32.mrb[10].mxu0  ;;  %1084 = vadd.xlane.f32.xlu1 %v1083_v33 }
 0x1b2   :  { %v7010_v7 = vadd.f32 %v939_v6, %v6952_v16  ;;  %v941_v43 = vpop.f32.mrb[11].mxu0 }
 0x1b3   :  { %v7015_v23 = vadd.f32 %v941_v43, %v6955_v17  ;;  %v1086_v24 = vadd.f32 %v7007_v38, %v7004_v35 }
 0x1b5   :  { %1087 = vadd.xlane.f32.xlu0 %v1086_v24  ;;  %v1089_v30 = vadd.f32 %v7015_v23, %v7010_v7 }
 0x1b7   :  { %v945_v36 = vpop.f32.mrb[12].mxu0  ;;  %1090 = vadd.xlane.f32.xlu1 %v1089_v30 }
 0x1b8   :  { %v7022_v33 = vadd.f32 %v945_v36, %v6952_v16  ;;  %v947_v6 = vpop.f32.mrb[13].mxu0 }
 0x1b9   :  { %v7027_v29 = vadd.f32 %v947_v6, %v6955_v17  ;;  %v949_v43 = vpop.f32.mrb[14].mxu0 }
 0x1ba   :  { %v7030_v27 = vadd.f32 %v949_v43, %v6952_v16  ;;  %v951_v34 = vpop.f32.mrb[15].mxu0 }
 0x1bb   :  { %v7033_v24 = vadd.f32 %v951_v34, %v6955_v17  ;;  %v1092_v30 = vadd.f32 %v7027_v29, %v7022_v33 }
 0x1bd   :  { %1093 = vadd.xlane.f32.xlu0 %v1092_v30  ;;  %v1095_v36 = vadd.f32 %v7033_v24, %v7030_v27  ;;  %v7050_v30 = vpop.permute.xlu1 %2441 }
 0x1be   :  { %11386 = vst [vmem:[#allocation30_spill] sm:$0xff] %v7050_v30 }
 0x1bf   :  { %v955_v18 = vpop.f32.mrb[16].mxu0  ;;  %1096 = vadd.xlane.f32.xlu1 %v1095_v36 }
 0x1c0   :  { %v7042_v6 = vadd.f32 %v955_v18, %v6952_v16  ;;  %v957_v43 = vpop.f32.mrb[17].mxu0 }
 0x1c1   :  { %v7045_v14 = vadd.f32 %v957_v43, %v6955_v17  ;;  %v959_v34 = vpop.f32.mrb[18].mxu0  ;;  %v7062_v59 = vpop.permute.xlu1 %2710 }
 0x1c2   :  { %v7048_v46 = vadd.f32 %v959_v34, %v6952_v16  ;;  %v961_v51 = vpop.f32.mrb[19].mxu0  ;;  %11389 = vst [vmem:[#allocation33_spill] sm:$0xff] %v7062_v59 }
 0x1c3   :  { %11384 = vst [vmem:[#allocation28_spill] sm:$0xff] %v7045_v14  ;;  %v7053_v0 = vadd.f32 %v961_v51, %v6955_v17  ;;  %v1098_v36 = vadd.f32 %v7045_v14, %v7042_v6 }
 0x1c4   :  { %11385 = vst [vmem:[#allocation29_spill] sm:$0xff] %v7048_v46 }
 0x1c5   :  { %11387 = vst [vmem:[#allocation31_spill] sm:$0xff] %v7053_v0  ;;  %1099 = vadd.xlane.f32.xlu0 %v1098_v36  ;;  %v1101_v18 = vadd.f32 %v7053_v0, %v7048_v46  ;;  %v7077_v0 = vpop.permute.xlu1 %2714 }
 0x1c6   :  { %11393 = vst [vmem:[#allocation37_spill] sm:$0xff] %v7077_v0 }
 0x1c7   :  { %v965_v19 = vpop.f32.mrb[20].mxu0  ;;  %1102 = vadd.xlane.f32.xlu1 %v1101_v18 }
 0x1c8   :  { %v7060_v43 = vadd.f32 %v965_v19, %v6952_v16  ;;  %v967_v34 = vpop.f32.mrb[21].mxu0 }
 0x1c9   :  { %v7065_v30 = vadd.f32 %v967_v34, %v6955_v17  ;;  %v969_v51 = vpop.f32.mrb[22].mxu0 }
 0x1ca   :  { %11388 = vst [vmem:[#allocation32_spill] sm:$0xff] %v7060_v43  ;;  %v7068_v15 = vadd.f32 %v969_v51, %v6952_v16  ;;  %v971_v13 = vpop.f32.mrb[23].mxu0 }
 0x1cb   :  { %11390 = vst [vmem:[#allocation34_spill] sm:$0xff] %v7065_v30  ;;  %v7071_v36 = vadd.f32 %v971_v13, %v6955_v17  ;;  %v1104_v18 = vadd.f32 %v7065_v30, %v7060_v43 }
 0x1cc   :  { %11391 = vst [vmem:[#allocation35_spill] sm:$0xff] %v7068_v15 }
 0x1cd   :  { %11392 = vst [vmem:[#allocation36_spill] sm:$0xff] %v7071_v36  ;;  %1105 = vadd.xlane.f32.xlu0 %v1104_v18  ;;  %v1107_v19 = vadd.f32 %v7071_v36, %v7068_v15  ;;  %v7088_v18 = vpop.permute.xlu1 %2449 }
 0x1ce   :  { %11397 = vst [vmem:[#allocation41_spill] sm:$0xff] %v7088_v18 }
 0x1cf   :  { %v975_v59 = vpop.f32.mrb[24].mxu0  ;;  %1108 = vadd.xlane.f32.xlu1 %v1107_v19 }
 0x1d0   :  { %v7080_v34 = vadd.f32 %v975_v59, %v6952_v16  ;;  %v977_v51 = vpop.f32.mrb[25].mxu0 }
 0x1d1   :  { %v7083_v46 = vadd.f32 %v977_v51, %v6955_v17  ;;  %v979_v13 = vpop.f32.mrb[26].mxu0  ;;  %v7100_v15 = vpop.permute.xlu1 %2718 }
 0x1d2   :  { %11394 = vst [vmem:[#allocation38_spill] sm:$0xff] %v7080_v34  ;;  %v7086_v14 = vadd.f32 %v979_v13, %v6952_v16  ;;  %v981_v30 = vpop.f32.mrb[27].mxu0  ;;  %11400 = vst [vmem:[#allocation44_spill] sm:$0xff] %v7100_v15  ;;  %v805_v15 = vadd.f32 %v6880_v41, %v6955_v17 }
 0x1d3   :  { %11395 = vst [vmem:[#allocation39_spill] sm:$0xff] %v7083_v46  ;;  %v7091_v36 = vadd.f32 %v981_v30, %v6955_v17  ;;  %v1110_v19 = vadd.f32 %v7083_v46, %v7080_v34 }
 0x1d4   :  { %11396 = vst [vmem:[#allocation40_spill] sm:$0xff] %v7086_v14 }
 0x1d5   :  { %11398 = vst [vmem:[#allocation42_spill] sm:$0xff] %v7091_v36  ;;  %1111 = vadd.xlane.f32.xlu0 %v1110_v19  ;;  %v1113_v59 = vadd.f32 %v7091_v36, %v7086_v14  ;;  %v7119_v36 = vpop.permute.xlu1 %2722 }
 0x1d6   :  { %11403 = vst [vmem:[#allocation47_spill] sm:$0xff] %v7119_v36 }
 0x1d7   :  { %v985_v0 = vpop.f32.mrb[28].mxu0  ;;  %1114 = vadd.xlane.f32.xlu1 %v1113_v59 }
 0x1d8   :  { %v7098_v51 = vadd.f32 %v985_v0, %v6952_v16  ;;  %v987_v13 = vpop.f32.mrb[29].mxu0  ;;  %v803_v0 = vadd.f32 %v6878_v40, %v6952_v16  ;;  %v809_v40 = vadd.f32 %v6884_v45, %v6955_v17 }
 0x1d9   :  { %v7103_v18 = vadd.f32 %v987_v13, %v6955_v17  ;;  %v989_v30 = vpop.f32.mrb[30].mxu0 }
 0x1da   :  { %11399 = vst [vmem:[#allocation43_spill] sm:$0xff] %v7098_v51  ;;  %v7106_v43 = vadd.f32 %v989_v30, %v6952_v16  ;;  %v991_v46 = vpop.f32.mrb[31].mxu0 }
 0x1db   :  { %11401 = vst [vmem:[#allocation45_spill] sm:$0xff] %v7103_v18  ;;  %v7109_v19 = vadd.f32 %v991_v46, %v6955_v17  ;;  %v1116_v59 = vadd.f32 %v7103_v18, %v7098_v51  ;;  %v807_v46 = vadd.f32 %v6882_v44, %v6952_v16  ;;  %v813_v44 = vadd.f32 %v6886_v47, %v6952_v16 }
 0x1dc   :  { %v819_v47 = vadd.f32 %v6892_v50, %v6955_v17 }
 0x1dd   :  { %11402 = vst [vmem:[#allocation46_spill] sm:$0xff] %v7109_v19  ;;  %1117 = vadd.xlane.f32.xlu0 %v1116_v59  ;;  %v1119_v13 = vadd.f32 %v7109_v19, %v7106_v43 }
 0x1df   :  { %v995_v30 = vpop.f32.mrb[32].mxu0  ;;  %1120 = vadd.xlane.f32.xlu1 %v1119_v13 }
 0x1e0   :  { %v7123_v14 = vadd.f32 %v995_v30, %v803_v0  ;;  %v997_v18 = vpop.f32.mrb[33].mxu0  ;;  %v7137_v0 = vpop.permute.xlu1 %2457  ;;  %v815_v30 = vadd.f32 %v6888_v48, %v6955_v17 }
 0x1e1   :  { %v7127_v51 = vadd.f32 %v997_v18, %v805_v15  ;;  %v999_v41 = vpop.f32.mrb[34].mxu0  ;;  %11404 = vst [vmem:[#allocation48_spill] sm:$0xff] %v7137_v0 }
 0x1e2   :  { %v7129_v59 = vadd.f32 %v999_v41, %v807_v46  ;;  %v1001_v34 = vpop.f32.mrb[35].mxu0 }
 0x1e3   :  { %v7131_v19 = vadd.f32 %v1001_v34, %v809_v40  ;;  %v1122_v13 = vadd.f32 %v7127_v51, %v7123_v14  ;;  %v817_v34 = vadd.f32 %v6890_v49, %v6952_v16  ;;  %v823_v49 = vadd.f32 %v6894_v52, %v6952_v16 }
 0x1e4   :  { %v7151_v0 = vpop.permute.xlu1 %2461  ;;  %v829_v52 = vadd.f32 %v6900_v55, %v6955_v17 }
 0x1e5   :  { %1123 = vadd.xlane.f32.xlu0 %v1122_v13  ;;  %v1125_v45 = vadd.f32 %v7131_v19, %v7129_v59  ;;  %11405 = vst [vmem:[#allocation49_spill] sm:$0xff] %v7151_v0 }
 0x1e7   :  { %v1005_v15 = vpop.f32.mrb[36].mxu0  ;;  %1126 = vadd.xlane.f32.xlu1 %v1125_v45 }
 0x1e8   :  { %v7145_v18 = vadd.f32 %v1005_v15, %v813_v44  ;;  %v1007_v46 = vpop.f32.mrb[37].mxu0  ;;  %v825_v44 = vadd.f32 %v6896_v53, %v6955_v17 }
 0x1e9   :  { %v7149_v40 = vadd.f32 %v1007_v46, %v815_v30  ;;  %v1009_v41 = vpop.f32.mrb[38].mxu0  ;;  %v7165_v30 = vpop.permute.xlu1 %2730 }
 0x1ea   :  { %v7153_v48 = vadd.f32 %v1009_v41, %v817_v34  ;;  %v1011_v13 = vpop.f32.mrb[39].mxu0  ;;  %11406 = vst [vmem:[#allocation50_spill] sm:$0xff] %v7165_v30  ;;  %v827_v34 = vadd.f32 %v6898_v54, %v6952_v16  ;;  %v833_v54 = vadd.f32 %v6902_v56, %v6952_v16 }
 0x1eb   :  { %v7155_v36 = vadd.f32 %v1011_v13, %v819_v47  ;;  %v1128_v45 = vadd.f32 %v7149_v40, %v7145_v18 }
 0x1ed   :  { %1129 = vadd.xlane.f32.xlu0 %v1128_v45  ;;  %v1131_v50 = vadd.f32 %v7155_v36, %v7153_v48  ;;  %v7181_v30 = vpop.permute.xlu1 %2465 }
 0x1ee   :  { %11407 = vst [vmem:[#allocation51_spill] sm:$0xff] %v7181_v30 }
 0x1ef   :  { %v1015_v15 = vpop.f32.mrb[40].mxu0  ;;  %1132 = vadd.xlane.f32.xlu1 %v1131_v50 }
 0x1f0   :  { %v7169_v46 = vadd.f32 %v1015_v15, %v823_v49  ;;  %v1017_v47 = vpop.f32.mrb[41].mxu0  ;;  %v835_v49 = vadd.f32 %v6904_v42, %v6955_v17  ;;  %v837_v15 = vadd.f32 %v6906_v57, %v6952_v16  ;;  %v843_v57 = vadd.f32 %v6912_v60, %v6952_v16 }
 0x1f1   :  { %v7173_v41 = vadd.f32 %v1017_v47, %v825_v44  ;;  %v1019_v53 = vpop.f32.mrb[42].mxu0 }
 0x1f2   :  { %v7175_v13 = vadd.f32 %v1019_v53, %v827_v34  ;;  %v1021_v45 = vpop.f32.mrb[43].mxu0 }
 0x1f3   :  { %v7177_v0 = vadd.f32 %v1021_v45, %v829_v52  ;;  %v1134_v50 = vadd.f32 %v7173_v41, %v7169_v46  ;;  %v839_v52 = vadd.f32 %v6908_v58, %v6955_v17  ;;  %v7197_v45 = vpop.permute.xlu1 %2469  ;;  %v845_v58 = vadd.f32 %v6914_v61, %v6955_v17 }
 0x1f4   :  { %11408 = vst [vmem:[#allocation52_spill] sm:$0xff] %v7197_v45 }
 0x1f5   :  { %1135 = vadd.xlane.f32.xlu0 %v1134_v50  ;;  %v1137_v55 = vadd.f32 %v7177_v0, %v7175_v13 }
 0x1f7   :  { %v1025_v44 = vpop.f32.mrb[44].mxu0  ;;  %1138 = vadd.xlane.f32.xlu1 %v1137_v55 }
 0x1f8   :  { %v7191_v34 = vadd.f32 %v1025_v44, %v833_v54  ;;  %v1027_v47 = vpop.f32.mrb[45].mxu0  ;;  %v847_v44 = vadd.f32 %v6916_v62, %v6952_v16 }
 0x1f9   :  { %v7195_v53 = vadd.f32 %v1027_v47, %v835_v49  ;;  %v1029_v56 = vpop.f32.mrb[46].mxu0  ;;  %v7211_v49 = vpop.permute.xlu1 %2738  ;;  %v849_v47 = vadd.f32 %v6918_v63, %v6955_v17  ;;  %v853_v63 = vadd.f32 %v6922_v1, %v6952_v16 }
 0x1fa   :  { %v7199_v42 = vadd.f32 %v1029_v56, %v837_v15  ;;  %v1031_v50 = vpop.f32.mrb[47].mxu0  ;;  %11409 = vst [vmem:[#allocation53_spill] sm:$0xff] %v7211_v49 }
 0x1fb   :  { %v7201_v30 = vadd.f32 %v1031_v50, %v839_v52  ;;  %v1140_v55 = vadd.f32 %v7195_v53, %v7191_v34  ;;  %v7217_v52 = vpop.permute.xlu0 %2425 }
 0x1fc   :  { %11410 = vst [vmem:[#allocation54_spill] sm:$0xff] %v7217_v52 }
 0x1fd   :  { %1141 = vadd.xlane.f32.xlu0 %v1140_v55  ;;  %v1143_v54 = vadd.f32 %v7201_v30, %v7199_v42 }
 0x1ff   :  { %v1035_v15 = vpop.f32.mrb[48].mxu0  ;;  %1144 = vadd.xlane.f32.xlu1 %v1143_v54  ;;  %v7229_v54 = vpop.permute.xlu1 %2473 }
 0x200   :  { %v7219_v60 = vadd.f32 %v1035_v15, %v843_v57  ;;  %v1037_v56 = vpop.f32.mrb[49].mxu0  ;;  %11411 = vst [vmem:[#allocation55_spill] sm:$0xff] %v7229_v54  ;;  %v855_v57 = vadd.f32 %v6924_v2, %v6955_v17 }
 0x201   :  { %v7221_v50 = vadd.f32 %v1037_v56, %v845_v58  ;;  %v1039_v61 = vpop.f32.mrb[50].mxu0 }
 0x202   :  { %v7223_v55 = vadd.f32 %v1039_v61, %v847_v44  ;;  %v1041_v45 = vpop.f32.mrb[51].mxu0  ;;  %v7237_v44 = vpop.permute.xlu0 %2445 }
 0x203   :  { %v7225_v49 = vadd.f32 %v1041_v45, %v849_v47  ;;  %v1146_v62 = vadd.f32 %v7221_v50, %v7219_v60  ;;  %11412 = vst [vmem:[#allocation56_spill] sm:$0xff] %v7237_v44  ;;  %v857_v45 = vadd.f32 %v6928_v4, %v6952_v16  ;;  %v859_v47 = vadd.f32 %v6930_v5, %v6955_v17  ;;  %v7247_v2 = vpop.permute.xlu1 %2477 }
 0x204   :  { %11413 = vst [vmem:[#allocation57_spill] sm:$0xff] %v7247_v2  ;;  %v863_v5 = vadd.f32 %v6934_v8, %v6952_v16 }
 0x205   :  { %1147 = vadd.xlane.f32.xlu0 %v1146_v62  ;;  %v1149_v58 = vadd.f32 %v7225_v49, %v7223_v55 }
 0x207   :  { %v1045_v15 = vpop.f32.mrb[52].mxu0  ;;  %1150 = vadd.xlane.f32.xlu1 %v1149_v58  ;;  %v7255_v58 = vpop.permute.xlu0 %2453 }
 0x208   :  { %v7243_v56 = vadd.f32 %v1045_v15, %v853_v63  ;;  %v1047_v1 = vpop.f32.mrb[53].mxu0  ;;  %11414 = vst [vmem:[#allocation58_spill] sm:$0xff] %v7255_v58  ;;  %v865_v63 = vadd.f32 %v6936_v9, %v6955_v17 }
 0x209   :  { %v7245_v61 = vadd.f32 %v1047_v1, %v855_v57  ;;  %v1049_v62 = vpop.f32.mrb[54].mxu0 }
 0x20a   :  { %v7249_v54 = vadd.f32 %v1049_v62, %v857_v45  ;;  %v1051_v52 = vpop.f32.mrb[55].mxu0  ;;  %v7263_v45 = vpop.permute.xlu1 %2742 }
 0x20b   :  { %v7251_v44 = vadd.f32 %v1051_v52, %v859_v47  ;;  %v1152_v4 = vadd.f32 %v7245_v61, %v7243_v56  ;;  %11415 = vst [vmem:[#allocation59_spill] sm:$0xff] %v7263_v45  ;;  %v867_v52 = vadd.f32 %v6938_v10, %v6952_v16  ;;  %v869_v47 = vadd.f32 %v6943_v12, %v6955_v17  ;;  %v7273_v9 = vpop.permute.xlu0 %2698 }
 0x20c   :  { %11417 = vst [vmem:[#allocation61_spill] sm:$0xff] %v7273_v9  ;;  %v873_v12 = vadd.f32 %v6959_v3, %v6952_v16 }
 0x20d   :  { %1153 = vadd.xlane.f32.xlu1 %v1152_v4  ;;  %v1155_v57 = vadd.f32 %v7251_v44, %v7249_v54 }
 0x20f   :  { %v1055_v15 = vpop.f32.mrb[56].mxu0  ;;  %1156 = vadd.xlane.f32.xlu0 %v1155_v57  ;;  %v7281_v57 = vpop.permute.xlu1 %2481 }
 0x210   :  { %v7269_v1 = vadd.f32 %v1055_v15, %v863_v5  ;;  %v1057_v8 = vpop.f32.mrb[57].mxu0  ;;  %11418 = vst [vmem:[#allocation62_spill] sm:$0xff] %v7281_v57  ;;  %v875_v5 = vadd.f32 %v6961_v22, %v6955_v17  ;;  %v879_v15 = vadd.f32 %v6971_v28, %v6955_v17 }
 0x211   :  { %v7271_v62 = vadd.f32 %v1057_v8, %v865_v63  ;;  %v1059_v4 = vpop.f32.mrb[58].mxu0 }
 0x212   :  { %v7275_v2 = vadd.f32 %v1059_v4, %v867_v52  ;;  %v1061_v58 = vpop.f32.mrb[59].mxu0  ;;  %v877_v52 = vadd.f32 %v6966_v25, %v6952_v16 }
 0x213   :  { %11416 = vst [vmem:[#allocation60_spill] sm:$0xff] %v7271_v62  ;;  %v7277_v45 = vadd.f32 %v1061_v58, %v869_v47  ;;  %v1158_v10 = vadd.f32 %v7271_v62, %v7269_v1  ;;  %v7293_v47 = vpop.permute.xlu0 %2726  ;;  %v7299_v22 = vpop.permute.xlu1 %2485 }
 0x215   :  { %1159 = vadd.xlane.f32.xlu1 %v1158_v10  ;;  %v1161_v63 = vadd.f32 %v7277_v45, %v7275_v2 }
 0x217   :  { %v1065_v58 = vpop.f32.mrb[60].mxu0  ;;  %1162 = vadd.xlane.f32.xlu0 %v1161_v63  ;;  %v7309_v25 = vpop.permute.xlu0 %1837 }
 0x218   :  { %v7295_v8 = vadd.f32 %v1065_v58, %v873_v12  ;;  %v1067_v3 = vpop.f32.mrb[61].mxu0  ;;  %v7311_v28 = vpop.permute.xlu1 %2750 }
 0x219   :  { %v7297_v4 = vadd.f32 %v1067_v3, %v875_v5  ;;  %v1069_v10 = vpop.f32.mrb[62].mxu0  ;;  %11419 = vst [vmem:[#allocation63_spill] sm:$0xff] %v7311_v28 }
 0x21a   :  { %v7301_v57 = vadd.f32 %v1069_v10, %v877_v52  ;;  %v1071_v9 = vpop.f32.mrb[63].mxu0 }
 0x21b   :  { %v7303_v62 = vadd.f32 %v1071_v9, %v879_v15  ;;  %v1164_v16 = vadd.f32 %v7297_v4, %v7295_v8  ;;  %v7313_v12 = vpop.permute.xlu0 %1847 }
 0x21c   :  { %v7315_v5 = vpop.permute.xlu1 %2489 }
 0x21d   :  { %1165 = vadd.xlane.f32.xlu0 %v1164_v16  ;;  %v1167_v17 = vadd.f32 %v7303_v62, %v7301_v57  ;;  %11420 = vst [vmem:[#allocation64_spill] sm:$0xff] %v7315_v5 }
 0x21f   :  { %1168 = vadd.xlane.f32.xlu1 %v1167_v17  ;;  %v7317_v63 = vpop.permute.xlu0 %1862 }
 0x220   :  { %11421 = vst [vmem:[#allocation65_spill] sm:$0xff] %v7317_v63  ;;  %v7319_v9 = vpop.permute.xlu1 %2493 }
 0x221   :  { %11422 = vst [vmem:[#allocation66_spill] sm:$0xff] %v7319_v9 }
 0x223   :  { %v7321_v52 = vpop.permute.xlu0 %1867 }
 0x224   :  { %11423 = vst [vmem:[#allocation67_spill] sm:$0xff] %v7321_v52  ;;  %v7323_v58 = vpop.permute.xlu1 %2758 }
 0x225   :  { %11424 = vst [vmem:[#allocation68_spill] sm:$0xff] %v7323_v58 }
 0x228   :  { %v7331_v17 = vpop.permute.xlu1 %2762 }
 0x229   :  { %11427 = vst [vmem:[#allocation71_spill] sm:$0xff] %v7331_v17 }
 0x232   :  { %v1076_v15 = vpop.xlane.xlu0 %1075 }
 0x233   :  { %v1171_v3 = vmul.f32 0.00390625, %v1076_v15 }
 0x235   :  { %v7326_v10 = vsub.f32 %v6964_v21, %v1171_v3  ;;  %v7329_v16 = vsub.f32 %v6969_v26, %v1171_v3 }
 0x236   :  { %v1079_v28 = vpop.xlane.xlu0 %1078 }
 0x237   :  { %11425 = vst [vmem:[#allocation69_spill] sm:$0xff] %v7326_v10  ;;  %11426 = vst [vmem:[#allocation70_spill] sm:$0xff] %v7329_v16  ;;  %v1172_v5 = vmul.f32 0.00390625, %v1079_v28  ;;  %v1267_v63 = vmul.f32 %v7326_v10, %v7326_v10  ;;  %v1268_v52 = vmul.f32 %v7329_v16, %v7329_v16 }
 0x239   :  { %v7338_v58 = vsub.f32 %v6974_v31, %v1172_v5  ;;  %v7341_v15 = vsub.f32 %v6977_v32, %v1172_v5  ;;  %v1331_v21 = vadd.f32 %v1268_v52, %v1267_v63 }
 0x23a   :  { %v1082_v9 = vpop.xlane.xlu1 %1081 }
 0x23b   :  { %v1269_v26 = vmul.f32 %v7338_v58, %v7338_v58  ;;  %v1270_v28 = vmul.f32 %v7341_v15, %v7341_v15  ;;  %v1173_v3 = vmul.f32 0.00390625, %v1082_v9  ;;  %1332 = vadd.xlane.f32.xlu0 %v1331_v21 }
 0x23d   :  { %v7348_v17 = vsub.f32 %v6986_v37, %v1173_v3  ;;  %v7351_v16 = vsub.f32 %v6989_v39, %v1173_v3  ;;  %v1334_v31 = vadd.f32 %v1270_v28, %v1269_v26 }
 0x23e   :  { %v1085_v10 = vpop.xlane.xlu1 %1084 }
 0x23f   :  { %v1174_v32 = vmul.f32 0.00390625, %v1085_v10  ;;  %1335 = vadd.xlane.f32.xlu1 %v1334_v31  ;;  %v1271_v5 = vmul.f32 %v7348_v17, %v7348_v17  ;;  %v1272_v63 = vmul.f32 %v7351_v16, %v7351_v16 }
 0x241   :  { %v7358_v52 = vsub.f32 %v6992_v11, %v1174_v32  ;;  %v7361_v9 = vsub.f32 %v6995_v20, %v1174_v32  ;;  %v1337_v37 = vadd.f32 %v1272_v63, %v1271_v5 }
 0x242   :  { %v1088_v21 = vpop.xlane.xlu0 %1087 }
 0x243   :  { %v1273_v39 = vmul.f32 %v7358_v52, %v7358_v52  ;;  %v1274_v10 = vmul.f32 %v7361_v9, %v7361_v9  ;;  %v1175_v26 = vmul.f32 0.00390625, %v1088_v21  ;;  %1338 = vadd.xlane.f32.xlu0 %v1337_v37 }
 0x244   :  { %v1091_v28 = vpop.xlane.xlu1 %1090 }
 0x245   :  { %v7368_v3 = vsub.f32 %v7004_v35, %v1175_v26  ;;  %v7371_v11 = vsub.f32 %v7007_v38, %v1175_v26  ;;  %v1176_v31 = vmul.f32 0.00390625, %v1091_v28  ;;  %v1340_v20 = vadd.f32 %v1274_v10, %v1273_v39 }
 0x247   :  { %v7374_v32 = vsub.f32 %v7010_v7, %v1176_v31  ;;  %v7377_v5 = vsub.f32 %v7015_v23, %v1176_v31  ;;  %1341 = vadd.xlane.f32.xlu1 %v1340_v20  ;;  %v1275_v63 = vmul.f32 %v7368_v3, %v7368_v3  ;;  %v1276_v37 = vmul.f32 %v7371_v11, %v7371_v11 }
 0x249   :  { %11428 = vst [vmem:[#allocation72_spill] sm:$0xff] %v7374_v32  ;;  %v1277_v35 = vmul.f32 %v7374_v32, %v7374_v32  ;;  %v1278_v38 = vmul.f32 %v7377_v5, %v7377_v5  ;;  %v1343_v21 = vadd.f32 %v1276_v37, %v1275_v63 }
 0x24a   :  { %v1094_v39 = vpop.xlane.xlu0 %1093 }
 0x24b   :  { %v1177_v7 = vmul.f32 0.00390625, %v1094_v39  ;;  %1344 = vadd.xlane.f32.xlu0 %v1343_v21  ;;  %v1346_v10 = vadd.f32 %v1278_v38, %v1277_v35 }
 0x24c   :  { %v1097_v23 = vpop.xlane.xlu1 %1096 }
 0x24d   :  { %v7388_v26 = vsub.f32 %v7022_v33, %v1177_v7  ;;  %v7391_v28 = vsub.f32 %v7027_v29, %v1177_v7  ;;  %v1178_v31 = vmul.f32 0.00390625, %v1097_v23  ;;  %1347 = vadd.xlane.f32.xlu1 %v1346_v10  ;;  %v11434_v7 = vld [vmem:[#allocation28_spill] sm:$0xff] }
 0x24f   :  { %11429 = vst [vmem:[#allocation73_spill] sm:$0xff] %v7388_v26  ;;  %11430 = vst [vmem:[#allocation74_spill] sm:$0xff] %v7391_v28  ;;  %v7394_v20 = vsub.f32 %v7030_v27, %v1178_v31  ;;  %v7397_v32 = vsub.f32 %v7033_v24, %v1178_v31  ;;  %v1279_v63 = vmul.f32 %v7388_v26, %v7388_v26 }
 0x250   :  { %v1280_v37 = vmul.f32 %v7391_v28, %v7391_v28 }
 0x251   :  { %11431 = vst [vmem:[#allocation75_spill] sm:$0xff] %v7394_v20  ;;  %11432 = vst [vmem:[#allocation76_spill] sm:$0xff] %v7397_v32  ;;  %v1281_v33 = vmul.f32 %v7394_v20, %v7394_v20  ;;  %v1282_v29 = vmul.f32 %v7397_v32, %v7397_v32 }
 0x252   :  { %v1349_v35 = vadd.f32 %v1280_v37, %v1279_v63  ;;  %v1100_v38 = vpop.xlane.xlu0 %1099  ;;  %v11436_v63 = vld [vmem:[#allocation29_spill] sm:$0xff] }
 0x253   :  { %v1179_v21 = vmul.f32 0.00390625, %v1100_v38  ;;  %v1352_v27 = vadd.f32 %v1282_v29, %v1281_v33 }
 0x254   :  { %1350 = vadd.xlane.f32.xlu0 %v1349_v35  ;;  %v1103_v39 = vpop.xlane.xlu1 %1102  ;;  %v11438_v35 = vld [vmem:[#allocation31_spill] sm:$0xff] }
 0x255   :  { %v7408_v24 = vsub.f32 %v7042_v6, %v1179_v21  ;;  %v7411_v10 = vsub.f32 %v11434_v7, %v1179_v21  ;;  %v1180_v23 = vmul.f32 0.00390625, %v1103_v39  ;;  %1353 = vadd.xlane.f32.xlu1 %v1352_v27 }
 0x257   :  { %11433 = vst [vmem:[#allocation77_spill] sm:$0xff] %v7408_v24  ;;  %11435 = vst [vmem:[#allocation28_spill] sm:$0xff] %v7411_v10  ;;  %v1283_v31 = vmul.f32 %v7408_v24, %v7408_v24  ;;  %v1284_v20 = vmul.f32 %v7411_v10, %v7411_v10  ;;  %v7418_v37 = vsub.f32 %v11436_v63, %v1180_v23  ;;  %v11440_v24 = vld [vmem:[#allocation32_spill] sm:$0xff]  ;;  %v11442_v63 = vld [vmem:[#allocation34_spill] sm:$0xff] }
 0x258   :  { %v7421_v33 = vsub.f32 %v11438_v35, %v1180_v23  ;;  %v11446_v35 = vld [vmem:[#allocation36_spill] sm:$0xff] }
 0x259   :  { %11437 = vst [vmem:[#allocation29_spill] sm:$0xff] %v7418_v37  ;;  %v1355_v29 = vadd.f32 %v1284_v20, %v1283_v31  ;;  %v1285_v6 = vmul.f32 %v7418_v37, %v7418_v37  ;;  %v11444_v20 = vld [vmem:[#allocation35_spill] sm:$0xff] }
 0x25a   :  { %11439 = vst [vmem:[#allocation31_spill] sm:$0xff] %v7421_v33  ;;  %v1286_v38 = vmul.f32 %v7421_v33, %v7421_v33  ;;  %v1106_v21 = vpop.xlane.xlu0 %1105 }
 0x25b   :  { %v1181_v27 = vmul.f32 0.00390625, %v1106_v21  ;;  %1356 = vadd.xlane.f32.xlu1 %v1355_v29 }
 0x25c   :  { %v1358_v39 = vadd.f32 %v1286_v38, %v1285_v6  ;;  %v1109_v7 = vpop.xlane.xlu1 %1108 }
 0x25d   :  { %v7428_v10 = vsub.f32 %v11440_v24, %v1181_v27  ;;  %v7431_v32 = vsub.f32 %v11442_v63, %v1181_v27  ;;  %v1182_v23 = vmul.f32 0.00390625, %v1109_v7  ;;  %v11448_v63 = vld [vmem:[#allocation38_spill] sm:$0xff] }
 0x25e   :  { %1359 = vadd.xlane.f32.xlu0 %v1358_v39 }
 0x25f   :  { %11441 = vst [vmem:[#allocation32_spill] sm:$0xff] %v7428_v10  ;;  %11443 = vst [vmem:[#allocation34_spill] sm:$0xff] %v7431_v32  ;;  %v7434_v31 = vsub.f32 %v11444_v20, %v1182_v23  ;;  %v7437_v37 = vsub.f32 %v11446_v35, %v1182_v23  ;;  %v1287_v21 = vmul.f32 %v7428_v10, %v7428_v10  ;;  %v11450_v20 = vld [vmem:[#allocation39_spill] sm:$0xff] }
 0x260   :  { %v1288_v29 = vmul.f32 %v7431_v32, %v7431_v32  ;;  %v11452_v32 = vld [vmem:[#allocation40_spill] sm:$0xff] }
 0x261   :  { %11445 = vst [vmem:[#allocation35_spill] sm:$0xff] %v7434_v31  ;;  %11447 = vst [vmem:[#allocation36_spill] sm:$0xff] %v7437_v37  ;;  %v1289_v24 = vmul.f32 %v7434_v31, %v7434_v31  ;;  %v1290_v38 = vmul.f32 %v7437_v37, %v7437_v37 }
 0x262   :  { %v1361_v6 = vadd.f32 %v1288_v29, %v1287_v21  ;;  %v1112_v27 = vpop.xlane.xlu0 %1111  ;;  %v11454_v29 = vld [vmem:[#allocation42_spill] sm:$0xff] }
 0x263   :  { %v1183_v39 = vmul.f32 0.00390625, %v1112_v27  ;;  %v1364_v33 = vadd.f32 %v1290_v38, %v1289_v24 }
 0x264   :  { %1362 = vadd.xlane.f32.xlu0 %v1361_v6  ;;  %v1115_v7 = vpop.xlane.xlu1 %1114 }
 0x265   :  { %v7448_v23 = vsub.f32 %v11448_v63, %v1183_v39  ;;  %v7451_v35 = vsub.f32 %v11450_v20, %v1183_v39  ;;  %v1184_v10 = vmul.f32 0.00390625, %v1115_v7  ;;  %v11456_v20 = vld [vmem:[#allocation43_spill] sm:$0xff] }
 0x267   :  { %11449 = vst [vmem:[#allocation38_spill] sm:$0xff] %v7448_v23  ;;  %11451 = vst [vmem:[#allocation39_spill] sm:$0xff] %v7451_v35  ;;  %v7454_v21 = vsub.f32 %v11452_v32, %v1184_v10  ;;  %v7457_v31 = vsub.f32 %v11454_v29, %v1184_v10  ;;  %v1291_v27 = vmul.f32 %v7448_v23, %v7448_v23  ;;  %v11458_v29 = vld [vmem:[#allocation45_spill] sm:$0xff] }
 0x268   :  { %1365 = vadd.xlane.f32.xlu0 %v1364_v33  ;;  %v1292_v6 = vmul.f32 %v7451_v35, %v7451_v35 }
 0x269   :  { %11453 = vst [vmem:[#allocation40_spill] sm:$0xff] %v7454_v21  ;;  %11455 = vst [vmem:[#allocation42_spill] sm:$0xff] %v7457_v31  ;;  %v1293_v63 = vmul.f32 %v7454_v21, %v7454_v21  ;;  %v1294_v39 = vmul.f32 %v7457_v31, %v7457_v31  ;;  %v11461_v21 = vld [vmem:[#allocation46_spill] sm:$0xff] }
 0x26a   :  { %v1367_v24 = vadd.f32 %v1292_v6, %v1291_v27  ;;  %v1118_v38 = vpop.xlane.xlu0 %1117 }
 0x26b   :  { %v1185_v32 = vmul.f32 0.00390625, %v1118_v38  ;;  %v1370_v7 = vadd.f32 %v1294_v39, %v1293_v63 }
 0x26c   :  { %1368 = vadd.xlane.f32.xlu0 %v1367_v24  ;;  %v1121_v10 = vpop.xlane.xlu1 %1120 }
 0x26d   :  { %v7468_v33 = vsub.f32 %v11456_v20, %v1185_v32  ;;  %v7471_v23 = vsub.f32 %v11458_v29, %v1185_v32  ;;  %v1186_v37 = vmul.f32 0.00390625, %v1121_v10  ;;  %1371 = vadd.xlane.f32.xlu1 %v1370_v7 }
 0x26f   :  { %11457 = vst [vmem:[#allocation43_spill] sm:$0xff] %v7468_v33  ;;  %11459 = vst [vmem:[#allocation45_spill] sm:$0xff] %v7471_v23  ;;  %v7474_v35 = vsub.f32 %v7106_v43, %v1186_v37  ;;  %v7477_v26 = vsub.f32 %v11461_v21, %v1186_v37  ;;  %v1295_v27 = vmul.f32 %v7468_v33, %v7468_v33 }
 0x270   :  { %v1296_v6 = vmul.f32 %v7471_v23, %v7471_v23 }
 0x271   :  { %11460 = vst [vmem:[#allocation78_spill] sm:$0xff] %v7474_v35  ;;  %11462 = vst [vmem:[#allocation46_spill] sm:$0xff] %v7477_v26  ;;  %v1297_v63 = vmul.f32 %v7474_v35, %v7474_v35  ;;  %v1298_v39 = vmul.f32 %v7477_v26, %v7477_v26  ;;  %v7839_v26 = vld [vmem:[%s11063_s1 + $0xc0] sm:$0xff] }
 0x272   :  { %v1373_v24 = vadd.f32 %v1296_v6, %v1295_v27  ;;  %v1124_v38 = vpop.xlane.xlu0 %1123 }
 0x273   :  { %v1187_v32 = vmul.f32 0.00390625, %v1124_v38  ;;  %v1376_v43 = vadd.f32 %v1298_v39, %v1297_v63 }
 0x274   :  { %1374 = vadd.xlane.f32.xlu0 %v1373_v24  ;;  %v1127_v7 = vpop.xlane.xlu1 %1126 }
 0x275   :  { %v7488_v37 = vsub.f32 %v7123_v14, %v1187_v32  ;;  %v7491_v21 = vsub.f32 %v7127_v51, %v1187_v32  ;;  %v1188_v10 = vmul.f32 0.00390625, %v1127_v7  ;;  %1377 = vadd.xlane.f32.xlu1 %v1376_v43 }
 0x277   :  { %11463 = vst [vmem:[#allocation79_spill] sm:$0xff] %v7488_v37  ;;  %11464 = vst [vmem:[#allocation80_spill] sm:$0xff] %v7491_v21  ;;  %v1299_v20 = vmul.f32 %v7488_v37, %v7488_v37  ;;  %v1300_v29 = vmul.f32 %v7491_v21, %v7491_v21  ;;  %v7498_v27 = vsub.f32 %v7129_v59, %v1188_v10  ;;  %v11500_v37 = vmov 0  }
 0x278   :  { %v7501_v6 = vsub.f32 %v7131_v19, %v1188_v10  ;;  %v11504_v21 = vmov 4  }
 0x279   :  { %11465 = vst [vmem:[#allocation81_spill] sm:$0xff] %v7498_v27  ;;  %v1379_v63 = vadd.f32 %v1300_v29, %v1299_v20  ;;  %v1301_v14 = vmul.f32 %v7498_v27, %v7498_v27 }
 0x27a   :  { %11466 = vst [vmem:[#allocation82_spill] sm:$0xff] %v7501_v6  ;;  %v1302_v51 = vmul.f32 %v7501_v6, %v7501_v6  ;;  %v1130_v39 = vpop.xlane.xlu0 %1129 }
 0x27b   :  { %v1189_v24 = vmul.f32 0.00390625, %v1130_v39  ;;  %1380 = vadd.xlane.f32.xlu1 %v1379_v63 }
 0x27c   :  { %v1382_v38 = vadd.f32 %v1302_v51, %v1301_v14  ;;  %v1133_v32 = vpop.xlane.xlu1 %1132 }
 0x27d   :  { %v7508_v43 = vsub.f32 %v7145_v18, %v1189_v24  ;;  %v7511_v59 = vsub.f32 %v7149_v40, %v1189_v24  ;;  %v1190_v19 = vmul.f32 0.00390625, %v1133_v32 }
 0x27e   :  { %1383 = vadd.xlane.f32.xlu0 %v1382_v38 }
 0x27f   :  { %11467 = vst [vmem:[#allocation83_spill] sm:$0xff] %v7508_v43  ;;  %11468 = vst [vmem:[#allocation84_spill] sm:$0xff] %v7511_v59  ;;  %v1303_v7 = vmul.f32 %v7508_v43, %v7508_v43  ;;  %v1304_v10 = vmul.f32 %v7511_v59, %v7511_v59  ;;  %v7518_v20 = vsub.f32 %v7153_v48, %v1190_v19  ;;  %v11498_v59 = vmov 2  }
 0x280   :  { %v7521_v29 = vsub.f32 %v7155_v36, %v1190_v19 }
 0x281   :  { %11469 = vst [vmem:[#allocation85_spill] sm:$0xff] %v7518_v20  ;;  %v1385_v63 = vadd.f32 %v1304_v10, %v1303_v7  ;;  %v1305_v18 = vmul.f32 %v7518_v20, %v7518_v20 }
 0x282   :  { %11470 = vst [vmem:[#allocation86_spill] sm:$0xff] %v7521_v29  ;;  %v1306_v40 = vmul.f32 %v7521_v29, %v7521_v29  ;;  %v1136_v14 = vpop.xlane.xlu0 %1135  ;;  %v1829_v29 = vld [vmem:[%s11063_s1 + $0xe0] sm:$0xff] }
 0x283   :  { %v1191_v51 = vmul.f32 0.00390625, %v1136_v14  ;;  %1386 = vadd.xlane.f32.xlu1 %v1385_v63 }
 0x284   :  { %v1388_v39 = vadd.f32 %v1306_v40, %v1305_v18  ;;  %v1139_v24 = vpop.xlane.xlu1 %1138 }
 0x285   :  { %v7528_v38 = vsub.f32 %v7169_v46, %v1191_v51  ;;  %v7531_v48 = vsub.f32 %v7173_v41, %v1191_v51  ;;  %v1192_v36 = vmul.f32 0.00390625, %v1139_v24 }
 0x286   :  { %1389 = vadd.xlane.f32.xlu0 %v1388_v39 }
 0x287   :  { %11471 = vst [vmem:[#allocation87_spill] sm:$0xff] %v7528_v38  ;;  %11472 = vst [vmem:[#allocation88_spill] sm:$0xff] %v7531_v48  ;;  %v1307_v32 = vmul.f32 %v7528_v38, %v7528_v38  ;;  %v1308_v19 = vmul.f32 %v7531_v48, %v7531_v48  ;;  %v7538_v7 = vsub.f32 %v7175_v13, %v1192_v36  ;;  %v1828_v38 = vld [vmem:[%s11063_s1 + $0xd8] sm:$0xff] }
 0x288   :  { %v7541_v10 = vsub.f32 %v7177_v0, %v1192_v36  ;;  %v7808_v48 = vld [vmem:[%s11063_s1 + $0xb8] sm:$0xff] }
 0x289   :  { %11473 = vst [vmem:[#allocation89_spill] sm:$0xff] %v7538_v7  ;;  %v1391_v63 = vadd.f32 %v1308_v19, %v1307_v32  ;;  %v1309_v46 = vmul.f32 %v7538_v7, %v7538_v7  ;;  %v7796_v7 = vld [vmem:[%s11063_s1 + $0xc8] sm:$0xff]  ;;  %11496 = vst [vmem:[#allocation110_spill] sm:$0xff] %v7808_v48 }
 0x28a   :  { %11474 = vst [vmem:[#allocation90_spill] sm:$0xff] %v7541_v10  ;;  %v1310_v41 = vmul.f32 %v7541_v10, %v7541_v10  ;;  %v1142_v18 = vpop.xlane.xlu0 %1141  ;;  %11495 = vst [vmem:[#allocation109_spill] sm:$0xff] %v7796_v7 }
 0x28b   :  { %v1193_v40 = vmul.f32 0.00390625, %v1142_v18  ;;  %1392 = vadd.xlane.f32.xlu1 %v1391_v63 }
 0x28c   :  { %v1394_v14 = vadd.f32 %v1310_v41, %v1309_v46  ;;  %v1145_v51 = vpop.xlane.xlu1 %1144 }
 0x28d   :  { %v7548_v39 = vsub.f32 %v7191_v34, %v1193_v40  ;;  %v7551_v13 = vsub.f32 %v7195_v53, %v1193_v40  ;;  %v1194_v0 = vmul.f32 0.00390625, %v1145_v51 }
 0x28e   :  { %1395 = vadd.xlane.f32.xlu0 %v1394_v14 }
 0x28f   :  { %11475 = vst [vmem:[#allocation91_spill] sm:$0xff] %v7548_v39  ;;  %11476 = vst [vmem:[#allocation92_spill] sm:$0xff] %v7551_v13  ;;  %v1311_v24 = vmul.f32 %v7548_v39, %v7548_v39  ;;  %v1312_v36 = vmul.f32 %v7551_v13, %v7551_v13  ;;  %v7558_v32 = vsub.f32 %v7199_v42, %v1194_v0 }
 0x290   :  { %v7561_v19 = vsub.f32 %v7201_v30, %v1194_v0  ;;  %v7580_v0 = vld [vmem:[%s11063_s1 + $0xa0] sm:$0xff] }
 0x291   :  { %11477 = vst [vmem:[#allocation93_spill] sm:$0xff] %v7558_v32  ;;  %v1397_v63 = vadd.f32 %v1312_v36, %v1311_v24  ;;  %v1313_v34 = vmul.f32 %v7558_v32, %v7558_v32  ;;  %v7594_v24 = vld [vmem:[%s11063_s1 + $0x40] sm:$0xff]  ;;  %v11482_v36 = vmov 1  }
 0x292   :  { %11478 = vst [vmem:[#allocation94_spill] sm:$0xff] %v7561_v19  ;;  %v1314_v53 = vmul.f32 %v7561_v19, %v7561_v19  ;;  %v1148_v46 = vpop.xlane.xlu0 %1147 }
 0x293   :  { %v1195_v41 = vmul.f32 0.00390625, %v1148_v46  ;;  %1398 = vadd.xlane.f32.xlu1 %v1397_v63  ;;  %v7601_v63 = vld [vmem:[%s11063_s1 + $0x50] sm:$0xff] }
 0x294   :  { %v1400_v18 = vadd.f32 %v1314_v53, %v1313_v34  ;;  %v7607_v34 = vld [vmem:[%s11063_s1 + $0x60] sm:$0xff]  ;;  %v7613_v53 = vld [vmem:[%s11063_s1 + $0x70] sm:$0xff]  ;;  %v1151_v46 = vpop.xlane.xlu1 %1150 }
 0x295   :  { %v7568_v40 = vsub.f32 %v7219_v60, %v1195_v41  ;;  %v7571_v42 = vsub.f32 %v7221_v50, %v1195_v41  ;;  %v7586_v60 = vld [vmem:[%s11063_s1 + $0xa8] sm:$0xff]  ;;  %v11481_v50 = vmov 3   ;;  %v7619_v41 = vld [vmem:[%s11063_s1 + $0x80] sm:$0xff] }
 0x296   :  { %1401 = vadd.xlane.f32.xlu0 %v1400_v18  ;;  %v1196_v18 = vmul.f32 0.00390625, %v1151_v46 }
 0x297   :  { %11479 = vst [vmem:[#allocation95_spill] sm:$0xff] %v7568_v40  ;;  %11480 = vst [vmem:[#allocation96_spill] sm:$0xff] %v7571_v42  ;;  %v1315_v30 = vmul.f32 %v7568_v40, %v7568_v40  ;;  %v1316_v14 = vmul.f32 %v7571_v42, %v7571_v42 }
 0x298   :  { %v7632_v40 = vsub.f32 %v7225_v49, %v1196_v18  ;;  %v7649_v49 = vld [vmem:[%s11063_s1 + $0x30] sm:$0xff] }
 0x299   :  { %v1403_v51 = vadd.f32 %v1316_v14, %v1315_v30  ;;  %v7625_v14 = vld [vmem:[%s11063_s1 + $0x98] sm:$0xff] }
 0x29a   :  { %v1154_v30 = vpop.xlane.xlu1 %1153  ;;  %11484 = vst [vmem:[#allocation98_spill] sm:$0xff] %v7632_v40  ;;  %v1318_v32 = vmul.f32 %v7632_v40, %v7632_v40 }
 0x29b   :  { %1404 = vadd.xlane.f32.xlu0 %v1403_v51  ;;  %v7629_v51 = vsub.f32 %v7223_v55, %v1196_v18  ;;  %v1197_v42 = vmul.f32 0.00390625, %v1154_v30  ;;  %v7661_v30 = vld [vmem:[%s11063_s1 + $0x8] sm:$0xff] }
 0x29d   :  { %11483 = vst [vmem:[#allocation97_spill] sm:$0xff] %v7629_v51  ;;  %v1317_v46 = vmul.f32 %v7629_v51, %v7629_v51  ;;  %v7640_v19 = vsub.f32 %v7243_v56, %v1197_v42  ;;  %v7643_v39 = vsub.f32 %v7245_v61, %v1197_v42  ;;  %v11160_v42 = vmov 4  }
 0x29f   :  { %11485 = vst [vmem:[#allocation99_spill] sm:$0xff] %v7640_v19  ;;  %11486 = vst [vmem:[#allocation100_spill] sm:$0xff] %v7643_v39  ;;  %v1319_v55 = vmul.f32 %v7640_v19, %v7640_v19  ;;  %v1320_v18 = vmul.f32 %v7643_v39, %v7643_v39  ;;  %v1406_v56 = vadd.f32 %v1318_v32, %v1317_v46  ;;  %v1157_v19 = vpop.xlane.xlu0 %1156 }
 0x2a0   :  { %v1198_v39 = vmul.f32 0.00390625, %v1157_v19  ;;  %v7682_v19 = vld [vmem:[%s11063_s1 + $0x18] sm:$0xff] }
 0x2a1   :  { %v1409_v61 = vadd.f32 %v1320_v18, %v1319_v55  ;;  %v7670_v55 = vld [vmem:[%s11063_s1 + $0x10] sm:$0xff] }
 0x2a2   :  { %v7665_v32 = vpop.xlane.xlu1 %1159  ;;  %v7674_v18 = vsub.f32 %v7249_v54, %v1198_v39 }
 0x2a3   :  { %v1199_v23 = vmul.f32 0.00390625, %v7665_v32 }
 0x2a4   :  { %2497 = vperm.xlu1 %6132, %v7580_v0   ;;  %v1163_v46 = vpop.xlane.xlu0 %1162  ;;  %11487 = vst [vmem:[#allocation101_spill] sm:$0xff] %v7674_v18  ;;  %v1321_v51 = vmul.f32 %v7674_v18, %v7674_v18 }
 0x2a8   :  { %2501 = vperm.xlu1 %6132, %v7586_v60  }
 0x2ac   :  { %6133 = vset.pattern.permute.xlu1 %v11481_v50 }
 0x2ad   :  { %2770 = vperm.xlu1 %6133, %v7586_v60  }
 0x2b1   :  { %1877 = vperm.xlu0 %6120, %v7594_v24   ;;  %6134 = vset.pattern.permute.xlu1 %v11482_v36 }
 0x2b5   :  { %1887 = vperm.xlu0 %6120, %v7601_v63  }
 0x2b9   :  { %1897 = vperm.xlu0 %6120, %v7607_v34  }
 0x2bd   :  { %1907 = vperm.xlu0 %6120, %v7613_v53  }
 0x2c1   :  { %1917 = vperm.xlu0 %6120, %v7619_v41  }
 0x2c5   :  { %1932 = vperm.xlu0 %6120, %v7625_v14  }
 0x2c9   :  { %1937 = vperm.xlu0 %6120, %v7580_v0  }
 0x2cd   :  { %6130 = vset.pattern.permute.xlu0 %v11482_v36 }
 0x2ce   :  { %2172 = vperm.xlu0 %6130, %v7649_v49  }
 0x2d1   :  { %1407 = vadd.xlane.f32.xlu1 %v1406_v56  ;;  %v7677_v56 = vsub.f32 %v7251_v44, %v1198_v39 }
 0x2d2   :  { %2232 = vperm.xlu0 %6130, %v7586_v60  }
 0x2d3   :  { %11488 = vst [vmem:[#allocation102_spill] sm:$0xff] %v7677_v56  ;;  %v1322_v40 = vmul.f32 %v7677_v56, %v7677_v56 }
 0x2d5   :  { %1410 = vadd.xlane.f32.xlu1 %v1409_v61  ;;  %v1200_v61 = vmul.f32 0.00390625, %v1163_v46  ;;  %v7698_v46 = vld [vmem:[%s11063_s1 + $0x20] sm:$0xff]  ;;  %v1412_v13 = vadd.f32 %v1322_v40, %v1321_v51 }
 0x2d6   :  { %6131 = vset.pattern.permute.xlu0 %v11160_v42  ;;  %v1169_v42 = vpop.xlane.xlu1 %1168 }
 0x2d7   :  { %2959 = vperm.xlu0 %6131, %v7661_v30   ;;  %v7690_v54 = vsub.f32 %v7275_v2, %v1200_v61  ;;  %v7693_v44 = vsub.f32 %v7277_v45, %v1200_v61  ;;  %v1202_v39 = vmul.f32 0.00390625, %v1169_v42  ;;  %v7714_v42 = vld [vmem:[%s11063_s1 + $0x28] sm:$0xff] }
 0x2d9   :  { %11489 = vst [vmem:[#allocation103_spill] sm:$0xff] %v7690_v54  ;;  %11490 = vst [vmem:[#allocation104_spill] sm:$0xff] %v7693_v44  ;;  %v1325_v18 = vmul.f32 %v7690_v54, %v7690_v54  ;;  %v1326_v56 = vmul.f32 %v7693_v44, %v7693_v44  ;;  %v7706_v2 = vsub.f32 %v7301_v57, %v1202_v39  ;;  %v7787_v54 = vld [vmem:[%s11063_s1 + $0xb0] sm:$0xff] }
 0x2da   :  { %v7709_v45 = vsub.f32 %v7303_v62, %v1202_v39  ;;  %v7724_v62 = vld [vmem:[%s11063_s1 + $0x38] sm:$0xff]  ;;  %v7751_v39 = vld [vmem:[%s11063_s1 + $0x90] sm:$0xff] }
 0x2db   :  { %11491 = vst [vmem:[#allocation105_spill] sm:$0xff] %v7706_v2  ;;  %v1329_v40 = vmul.f32 %v7706_v2, %v7706_v2  ;;  %v1418_v61 = vadd.f32 %v1326_v56, %v1325_v18  ;;  %v7738_v18 = vld [vmem:[%s11063_s1 + $0x58] sm:$0xff]  ;;  %v7745_v56 = vld [vmem:[%s11063_s1 + $0x68] sm:$0xff]  ;;  %11493 = vst [vmem:[#allocation107_spill] sm:$0xff] %v7751_v39 }
 0x2dc   :  { %11492 = vst [vmem:[#allocation106_spill] sm:$0xff] %v7709_v45  ;;  %v1330_v51 = vmul.f32 %v7709_v45, %v7709_v45 }
 0x2de   :  { %v1424_v57 = vadd.f32 %v1330_v51, %v1329_v40  ;;  %v1827_v40 = vld [vmem:[%s11063_s1 + $0xd0] sm:$0xff]  ;;  %v7761_v51 = vld [vmem:[%s11063_s1 + $0x78] sm:$0xff] }
 0x2e6   :  { %2152 = vperm.xlu1 %6134, %v7661_v30  }
 0x2ea   :  { %2156 = vperm.xlu1 %6134, %v7670_v55  }
 0x2ee   :  { %2160 = vperm.xlu1 %6134, %v7682_v19  }
 0x2f2   :  { %2164 = vperm.xlu1 %6134, %v7698_v46  }
 0x2f6   :  { %2168 = vperm.xlu1 %6134, %v7714_v42   ;;  %1413 = vadd.xlane.f32.xlu0 %v1412_v13  ;;  %v7731_v13 = vld [vmem:[%s11063_s1 + $0x48] sm:$0xff] }
 0x2fa   :  { %2176 = vperm.xlu1 %6134, %v7724_v62   ;;  %1419 = vadd.xlane.f32.xlu0 %v1418_v61  ;;  %v7767_v61 = vpop.xlane.xlu1 %1335 }
 0x2fe   :  { %2180 = vperm.xlu1 %6134, %v7594_v24   ;;  %1425 = vadd.xlane.f32.xlu0 %v1424_v57  ;;  %v7773_v57 = vld [vmem:[%s11063_s1 + $0x88] sm:$0xff]  ;;  %v7776_v2 = vpop.xlane.xlu1 %1341 }
 0x2ff   :  { %11494 = vst [vmem:[#allocation108_spill] sm:$0xff] %v7773_v57 }
 0x302   :  { %2184 = vperm.xlu1 %6134, %v7731_v13   ;;  %v7780_v45 = vpop.xlane.xlu1 %1347 }
 0x306   :  { %2188 = vperm.xlu1 %6134, %v7601_v63   ;;  %v7789_v44 = vpop.xlane.xlu1 %1353 }
 0x30a   :  { %2192 = vperm.xlu1 %6134, %v7738_v18   ;;  %v7798_v10 = vpop.xlane.xlu1 %1356 }
 0x30e   :  { %2196 = vperm.xlu1 %6134, %v7607_v34   ;;  %v7810_v20 = vpop.xlane.xlu1 %1371 }
 0x312   :  { %2200 = vperm.xlu1 %6134, %v7745_v56   ;;  %v7816_v43 = vpop.xlane.xlu1 %1377 }
 0x313   :  { %11497 = vst [vmem:[#allocation111_spill] sm:$0xff] %v7816_v43  ;;  %v6279_v43 = vld [vmem:[%s11065_s3 + $0x70] ss:$8 sps:$4 sm:$0xff]  }
 0x314   :  { %3027 = vperm.xlu0 %6131, %v7751_v39  }
 0x316   :  { %2204 = vperm.xlu1 %6134, %v7613_v53   ;;  %v7820_v27 = vpop.xlane.xlu1 %1380 }
 0x317   :  { %11499 = vst [vmem:[#allocation112_spill] sm:$0xff] %v7820_v27 }
 0x318   :  { %3059 = vperm.xlu0 %6131, %v1827_v40  }
 0x31a   :  { %2208 = vperm.xlu1 %6134, %v7761_v51  }
 0x31c   :  { %6147 = vset.pattern.permute.xlu0 %v11481_v50 }
 0x31d   :  { %2734 = vperm.xlu0 %6147, %v7607_v34  }
 0x31e   :  { %2212 = vperm.xlu1 %6134, %v7619_v41  }
 0x321   :  { %2746 = vperm.xlu0 %6147, %v7761_v51  }
 0x322   :  { %2216 = vperm.xlu1 %6134, %v7773_v57  }
 0x325   :  { %2754 = vperm.xlu0 %6147, %v7773_v57  }
 0x326   :  { %2220 = vperm.xlu1 %6134, %v7751_v39  }
 0x329   :  { %2766 = vperm.xlu0 %6147, %v7580_v0  }
 0x32a   :  { %2224 = vperm.xlu1 %6134, %v7625_v14  }
 0x32d   :  { %2774 = vperm.xlu0 %6147, %v7787_v54  }
 0x32e   :  { %2228 = vperm.xlu1 %6134, %v7580_v0  }
 0x331   :  { %2786 = vperm.xlu0 %6147, %v7796_v7  }
 0x332   :  { %2236 = vperm.xlu1 %6134, %v7787_v54  }
 0x335   :  { %2794 = vperm.xlu0 %6147, %v1828_v38   ;;  %v7825_v38 = vpop.xlane.xlu1 %1386 }
 0x336   :  { %2240 = vperm.xlu1 %6134, %v7808_v48   ;;  %11501 = vst [vmem:[#allocation113_spill] sm:$0xff] %v7825_v38 }
 0x339   :  { %2798 = vperm.xlu0 %6147, %v1829_v29   ;;  %v7828_v6 = vpop.xlane.xlu1 %1392 }
 0x33a   :  { %6135 = vset.pattern.permute.xlu1 %v11498_v59  ;;  %11502 = vst [vmem:[#allocation114_spill] sm:$0xff] %v7828_v6  ;;  %v11509_v6 = vld [vmem:[#allocation60_spill] sm:$0xff] }
 0x33b   :  { %2505 = vperm.xlu1 %6135, %v7787_v54   ;;  %v7851_v38 = vsub.f32 %v11509_v6, %v1199_v23  ;;  %v6517_v6 = vld [vmem:[%s11063_s1] sm:$0xff] }
 0x33d   :  { %6151 = vset.pattern.permute.xlu0 %v11500_v37  ;;  %v7831_v29 = vpop.xlane.xlu1 %1398  ;;  %11510 = vst [vmem:[#allocation60_spill] sm:$0xff] %v7851_v38  ;;  %v1324_v39 = vmul.f32 %v7851_v38, %v7851_v38 }
 0x33e   :  { %1947 = vperm.xlu0 %6151, %v7787_v54   ;;  %11503 = vst [vmem:[#allocation115_spill] sm:$0xff] %v7831_v29  ;;  %v7848_v29 = vsub.f32 %v7269_v1, %v1199_v23 }
 0x33f   :  { %2509 = vperm.xlu1 %6135, %v7808_v48  }
 0x340   :  { %11508 = vst [vmem:[#allocation119_spill] sm:$0xff] %v7848_v29  ;;  %v1323_v27 = vmul.f32 %v7848_v29, %v7848_v29 }
 0x341   :  { %v7834_v35 = vpop.permute.xlu1 %2497 }
 0x342   :  { %11505 = vst [vmem:[#allocation116_spill] sm:$0xff] %v7834_v35  ;;  %1957 = vperm.xlu0 %6151, %v7839_v26  }
 0x343   :  { %6136 = vset.pattern.permute.xlu1 %v11481_v50 }
 0x344   :  { %2778 = vperm.xlu1 %6136, %v7808_v48  }
 0x345   :  { %v7842_v33 = vpop.permute.xlu1 %2501 }
 0x346   :  { %11506 = vst [vmem:[#allocation117_spill] sm:$0xff] %v7842_v33  ;;  %1967 = vperm.xlu0 %6151, %v1827_v40   ;;  %v1415_v40 = vadd.f32 %v1324_v39, %v1323_v27 }
 0x348   :  { %6137 = vset.pattern.permute.xlu1 %v11504_v21 }
 0x349   :  { %v7845_v31 = vpop.permute.xlu1 %2770 }
 0x34a   :  { %11507 = vst [vmem:[#allocation118_spill] sm:$0xff] %v7845_v31 }
 0x35e   :  { %v7853_v35 = vpop.xlane.xlu1 %1407 }
 0x35f   :  { %11511 = vst [vmem:[#allocation120_spill] sm:$0xff] %v7853_v35  ;;  %v6278_v35 = vld [vmem:[%s11065_s3 + $0x64] ss:$8 sps:$4 sm:$0xff]  }
 0x362   :  { %v7859_v33 = vpop.xlane.xlu1 %1410 }
 0x363   :  { %11512 = vst [vmem:[#allocation121_spill] sm:$0xff] %v7859_v33  ;;  %v6276_v33 = vld [vmem:[%s11065_s3 + $0x60] ss:$8 sps:$4 sm:$0xff]  }
 0x366   :  { %v7861_v32 = vpop.permute.xlu1 %2152 }
 0x367   :  { %11513 = vst [vmem:[#allocation122_spill] sm:$0xff] %v7861_v32 }
 0x368   :  { %1416 = vadd.xlane.f32.xlu1 %v1415_v40 }
 0x36a   :  { %v7863_v31 = vpop.permute.xlu1 %2156 }
 0x36b   :  { %11514 = vst [vmem:[#allocation123_spill] sm:$0xff] %v7863_v31 }
 0x36e   :  { %v7865_v1 = vpop.permute.xlu1 %2160 }
 0x36f   :  { %11515 = vst [vmem:[#allocation124_spill] sm:$0xff] %v7865_v1 }
 0x372   :  { %v7867_v23 = vpop.permute.xlu1 %2164 }
 0x373   :  { %11516 = vst [vmem:[#allocation125_spill] sm:$0xff] %v7867_v23 }
 0x376   :  { %v7873_v29 = vpop.permute.xlu1 %2168 }
 0x377   :  { %11517 = vst [vmem:[#allocation126_spill] sm:$0xff] %v7873_v29 }
 0x379   :  { %2955 = vperm.xlu1 %6137, %v6517_v6  }
 0x37a   :  { %v7876_v27 = vpop.permute.xlu1 %2176 }
 0x37b   :  { %11518 = vst [vmem:[#allocation127_spill] sm:$0xff] %v7876_v27  ;;  %v6264_v27 = vld [vmem:[%s11065_s3 + $0x20] ss:$8 sps:$4 sm:$0xff]  }
 0x37d   :  { %2963 = vperm.xlu1 %6137, %v7670_v55  }
 0x37e   :  { %v7880_v39 = vpop.permute.xlu1 %2180 }
 0x37f   :  { %11519 = vst [vmem:[#allocation128_spill] sm:$0xff] %v7880_v39 }
 0x381   :  { %2967 = vperm.xlu1 %6137, %v7682_v19  }
 0x382   :  { %v7883_v40 = vpop.permute.xlu1 %2184 }
 0x383   :  { %11520 = vst [vmem:[#allocation129_spill] sm:$0xff] %v7883_v40 }
 0x385   :  { %2971 = vperm.xlu1 %6137, %v7698_v46  }
 0x386   :  { %v7887_v55 = vpop.permute.xlu1 %2188 }
 0x387   :  { %11521 = vst [vmem:[#allocation130_spill] sm:$0xff] %v7887_v55  ;;  %v11544_v55 = vld [vmem:[#allocation19_spill] sm:$0xff] }
 0x389   :  { %2975 = vperm.xlu1 %6137, %v7714_v42  }
 0x38a   :  { %v7890_v6 = vpop.permute.xlu1 %2192 }
 0x38b   :  { %11522 = vst [vmem:[#allocation131_spill] sm:$0xff] %v7890_v6 }
 0x38d   :  { %2979 = vperm.xlu1 %6137, %v7649_v49  }
 0x38e   :  { %v7894_v42 = vpop.permute.xlu1 %2196 }
 0x38f   :  { %11523 = vst [vmem:[#allocation132_spill] sm:$0xff] %v7894_v42 }
 0x391   :  { %2983 = vperm.xlu1 %6137, %v7724_v62  }
 0x392   :  { %v7897_v49 = vpop.permute.xlu1 %2200 }
 0x393   :  { %11524 = vst [vmem:[#allocation133_spill] sm:$0xff] %v7897_v49 }
 0x395   :  { %2987 = vperm.xlu1 %6137, %v7594_v24  }
 0x396   :  { %v7901_v24 = vpop.permute.xlu1 %2204 }
 0x397   :  { %11525 = vst [vmem:[#allocation134_spill] sm:$0xff] %v7901_v24  ;;  %v6266_v24 = vld [vmem:[%s11065_s3 + $0x24] ss:$8 sps:$4 sm:$0xff]  }
 0x399   :  { %2991 = vperm.xlu1 %6137, %v7731_v13  }
 0x39a   :  { %v7904_v38 = vpop.permute.xlu1 %2208 }
 0x39b   :  { %11526 = vst [vmem:[#allocation135_spill] sm:$0xff] %v7904_v38 }
 0x39d   :  { %2995 = vperm.xlu1 %6137, %v7601_v63  }
 0x39e   :  { %v7908_v63 = vpop.permute.xlu1 %2212 }
 0x39f   :  { %11527 = vst [vmem:[#allocation136_spill] sm:$0xff] %v7908_v63  ;;  %v6260_v63 = vld [vmem:[%s11065_s3 + $0x4] ss:$8 sps:$4 sm:$0xff]  }
 0x3a0   :  { %3584 = vmatprep.subr.bf16.mxu1 %v6260_v63 }
 0x3a1   :  { %2999 = vperm.xlu1 %6137, %v7738_v18  }
 0x3a5   :  { %3003 = vperm.xlu1 %6137, %v7607_v34   ;;  %v7911_v34 = vpop.permute.xlu1 %2216 }
 0x3a6   :  { %11528 = vst [vmem:[#allocation137_spill] sm:$0xff] %v7911_v34 }
 0x3a9   :  { %3007 = vperm.xlu1 %6137, %v7745_v56  }
 0x3ad   :  { %3011 = vperm.xlu1 %6137, %v7613_v53   ;;  %v7915_v53 = vpop.permute.xlu1 %2220 }
 0x3ae   :  { %11529 = vst [vmem:[#allocation138_spill] sm:$0xff] %v7915_v53 }
 0x3b1   :  { %3015 = vperm.xlu1 %6137, %v7761_v51   ;;  %v7918_v49 = vpop.permute.xlu1 %2224 }
 0x3b2   :  { %11530 = vst [vmem:[#allocation139_spill] sm:$0xff] %v7918_v49 }
 0x3b5   :  { %3019 = vperm.xlu1 %6137, %v7619_v41   ;;  %v1166_v41 = vpop.xlane.xlu0 %1165 }
 0x3b6   :  { %v1201_v42 = vmul.f32 0.00390625, %v1166_v41 }
 0x3b8   :  { %v8000_v41 = vsub.f32 %v7295_v8, %v1201_v42 }
 0x3b9   :  { %3023 = vperm.xlu1 %6137, %v7773_v57   ;;  %v7925_v34 = vpop.xlane.xlu0 %1332 }
 0x3ba   :  { %11541 = vst [vmem:[#allocation150_spill] sm:$0xff] %v8000_v41  ;;  %v1327_v29 = vmul.f32 %v8000_v41, %v8000_v41 }
 0x3bd   :  { %3031 = vperm.xlu1 %6137, %v7625_v14   ;;  %v7923_v14 = vpop.permute.xlu1 %2228 }
 0x3be   :  { %11531 = vst [vmem:[#allocation140_spill] sm:$0xff] %v7923_v14 }
 0x3c1   :  { %3035 = vperm.xlu1 %6137, %v7580_v0   ;;  %v7928_v0 = vpop.permute.xlu1 %2236 }
 0x3c2   :  { %11532 = vst [vmem:[#allocation141_spill] sm:$0xff] %v7928_v0 }
 0x3c5   :  { %3039 = vperm.xlu1 %6137, %v7586_v60   ;;  %v7930_v60 = vpop.xlane.xlu0 %1338  ;;  %v7936_v53 = vpop.permute.xlu1 %2240 }
 0x3c6   :  { %11533 = vst [vmem:[#allocation142_spill] sm:$0xff] %v7936_v53  ;;  %v6258_v53 = vld [vmem:[%s11065_s3] ss:$8 sps:$4 sm:$0xff]  }
 0x3c7   :  { %3585 = vmatpush1.bf16.msra.mxu1 %v6258_v53 }
 0x3c9   :  { %3043 = vperm.xlu1 %6137, %v7787_v54   ;;  %v7934_v54 = vpop.xlane.xlu0 %1344  ;;  %v7943_v14 = vpop.permute.xlu1 %2505 }
 0x3ca   :  { %11534 = vst [vmem:[#allocation143_spill] sm:$0xff] %v7943_v14  ;;  %v6261_v14 = vld [vmem:[%s11065_s3 + $0x10] ss:$8 sps:$4 sm:$0xff]  }
 0x3cd   :  { %3047 = vperm.xlu1 %6137, %v7808_v48   ;;  %v7939_v38 = vpop.xlane.xlu0 %1350  ;;  %v7950_v6 = vpop.permute.xlu1 %2509 }
 0x3ce   :  { %11535 = vst [vmem:[#allocation144_spill] sm:$0xff] %v7950_v6 }
 0x3d1   :  { %6138 = vset.pattern.permute.xlu1 %v11482_v36  ;;  %v7945_v0 = vpop.xlane.xlu0 %1359  ;;  %v7966_v6 = vpop.permute.xlu1 %2778 }
 0x3d2   :  { %2244 = vperm.xlu1 %6138, %v7839_v26   ;;  %11536 = vst [vmem:[#allocation145_spill] sm:$0xff] %v7966_v6  ;;  %v6267_v6 = vld [vmem:[%s11065_s3 + $0x30] ss:$8 sps:$4 sm:$0xff]  }
 0x3d5   :  { %v7948_v49 = vpop.xlane.xlu0 %1362 }
 0x3d6   :  { %2248 = vperm.xlu1 %6138, %v7796_v7  }
 0x3d9   :  { %v7964_v40 = vpop.xlane.xlu0 %1365 }
 0x3da   :  { %6139 = vset.pattern.permute.xlu1 %v11498_v59 }
 0x3db   :  { %2513 = vperm.xlu1 %6139, %v7839_v26  }
 0x3dd   :  { %v7976_v53 = vpop.xlane.xlu0 %1368 }
 0x3df   :  { %2517 = vperm.xlu1 %6139, %v7796_v7  }
 0x3e1   :  { %v7986_v23 = vpop.xlane.xlu0 %1374 }
 0x3e2   :  { %11539 = vst [vmem:[#allocation148_spill] sm:$0xff] %v7986_v23 }
 0x3e3   :  { %6140 = vset.pattern.permute.xlu1 %v11481_v50 }
 0x3e4   :  { %2782 = vperm.xlu1 %6140, %v7839_v26   ;;  %v6263_v26 = vld [vmem:[%s11065_s3 + $0x14] ss:$8 sps:$4 sm:$0xff]  }
 0x3e5   :  { %3586 = vmatprep.subr.bf16.mxu1 %v6263_v26  ;;  %v6269_v26 = vld [vmem:[%s11065_s3 + $0x34] ss:$8 sps:$4 sm:$0xff]  }
 0x3e6   :  { %3587 = vmatpush1.bf16.msra.mxu1 %v6261_v14 }
 0x3e7   :  { %3588 = vmatprep.subr.bf16.mxu1 %v6266_v24  ;;  %v6270_v24 = vld [vmem:[%s11065_s3 + $0x40] ss:$8 sps:$4 sm:$0xff]  }
 0x3e8   :  { %6141 = vset.pattern.permute.xlu1 %v11500_v37 }
 0x3ea   :  { %3589 = vmatpush1.bf16.msra.mxu1 %v6264_v27  ;;  %v5573_v27 = vld [vmem:[%s11068_s6 + $0x10] ss:$8 sm:$0x3] }
 0x3eb   :  { %3590 = vmatprep.subr.bf16.mxu1 %v6269_v26  ;;  %v8005_v26 = vpop.xlane.xlu0 %1383  ;;  %v8011_v32 = vrot.slane %v5573_v27, %v11544_v55 }
 0x3ec   :  { %11543 = vst [vmem:[#allocation152_spill] sm:$0xff] %v8005_v26 }
 0x3ed   :  { %v2006_v50 = vmul.f32 %v8011_v32, %v7309_v25 }
 0x3ee   :  { %3591 = vmatpush1.bf16.msra.mxu1 %v6267_v6  ;;  %v8003_v6 = vsub.f32 %v7297_v4, %v1201_v42  ;;  %v6273_v4 = vld [vmem:[%s11065_s3 + $0x50] ss:$8 sps:$4 sm:$0xff]   ;;  %v6275_v42 = vld [vmem:[%s11065_s3 + $0x54] ss:$8 sps:$4 sm:$0xff]  }
 0x3f0   :  { %11542 = vst [vmem:[#allocation151_spill] sm:$0xff] %v8003_v6  ;;  %v1328_v31 = vmul.f32 %v8003_v6, %v8003_v6 }
 0x3f2   :  { %v1421_v7 = vadd.f32 %v1328_v31, %v1327_v29  ;;  %v5576_v31 = vld [vmem:[%s11068_s6 + $0x13] ss:$8 sm:$0x3] }
 0x3f5   :  { %v7974_v63 = vpop.xlane.xlu1 %1416 }
 0x3f6   :  { %11537 = vst [vmem:[#allocation146_spill] sm:$0xff] %v7974_v63  ;;  %v6272_v63 = vld [vmem:[%s11065_s3 + $0x44] ss:$8 sps:$4 sm:$0xff]  }
 0x3f7   :  { %3592 = vmatprep.subr.bf16.mxu1 %v6272_v63  ;;  %v11545_v63 = vld [vmem:[#allocation21_spill] sm:$0xff] }
 0x3f8   :  { %3593 = vmatpush1.bf16.msra.mxu1 %v6270_v24  ;;  %v8017_v8 = vrot.slane %v5573_v27, %v11545_v63  ;;  %v8031_v24 = vpop.xlane.xlu0 %1389  ;;  %v5575_v27 = vld [vmem:[%s11068_s6 + $0x12] ss:$8 sm:$0x3] }
 0x3f9   :  { %v7984_v14 = vpop.permute.xlu1 %2955  ;;  %11547 = vst [vmem:[#allocation154_spill] sm:$0xff] %v8031_v24  ;;  %3594 = vmatprep.subr.bf16.mxu1 %v6275_v42  ;;  %v8075_v23 = vrot.slane %v5575_v27, %v11545_v63 }
 0x3fa   :  { %11538 = vst [vmem:[#allocation147_spill] sm:$0xff] %v7984_v14  ;;  %v5574_v14 = vld [vmem:[%s11068_s6 + $0x11] ss:$8 sm:$0x3]  ;;  %v2007_v42 = vmul.f32 %v8017_v8, %v7309_v25  ;;  %v8064_v25 = vrot.slane %v5575_v27, %v11544_v55  ;;  %v8089_v27 = vrot.slane %v5576_v31, %v11544_v55 }
 0x3fb   :  { %v8037_v37 = vrot.slane %v5574_v14, %v11544_v55  ;;  %v8045_v41 = vrot.slane %v5574_v14, %v11545_v63  ;;  %11555 = vst [vmem:[#allocation160_spill] sm:$0xff] %v8075_v23 }
 0x3fc   :  { %3595 = vmatpush1.bf16.msra.mxu1 %v6273_v4  ;;  %v6281_v4 = vld [vmem:[%s11065_s3 + $0x74] ss:$8 sps:$4 sm:$0xff]   ;;  %v8061_v14 = vpop.xlane.xlu0 %1395  ;;  %11552 = vst [vmem:[#allocation159_spill] sm:$0xff] %v8064_v25 }
 0x3fd   :  { %v7997_v1 = vpop.permute.xlu1 %2963  ;;  %11548 = vst [vmem:[#allocation155_spill] sm:$0xff] %v8037_v37  ;;  %11549 = vst [vmem:[#allocation156_spill] sm:$0xff] %v8045_v41  ;;  %3596 = vmatprep.subr.bf16.mxu1 %v6278_v35 }
 0x3fe   :  { %11540 = vst [vmem:[#allocation149_spill] sm:$0xff] %v7997_v1  ;;  %v5508_v1 = vld [vmem:[%s11068_s6 + $0x7] ss:$8 sm:$0x3]  ;;  %11551 = vst [vmem:[#allocation158_spill] sm:$0xff] %v8061_v14 }
 0x3ff   :  { %v8050_v6 = vrot.slane %v5508_v1, %v11545_v63 }
 0x400   :  { %3597 = vmatpush1.bf16.msra.mxu1 %v6276_v33  ;;  %v6284_v33 = vld [vmem:[%s11065_s3 + $0x84] ss:$8 sps:$4 sm:$0xff]  }
 0x401   :  { %v8025_v39 = vpop.permute.xlu1 %2967  ;;  %11550 = vst [vmem:[#allocation157_spill] sm:$0xff] %v8050_v6  ;;  %v2082_v29 = vadd.f32 %v8050_v6, %v2007_v42  ;;  %3598 = vmatprep.subr.bf16.mxu1 %v6281_v4  ;;  %v6282_v42 = vld [vmem:[%s11065_s3 + $0x80] ss:$8 sps:$4 sm:$0xff]  }
 0x402   :  { %11546 = vst [vmem:[#allocation153_spill] sm:$0xff] %v8025_v39  ;;  %v8042_v39 = vrot.slane %v5508_v1, %v11544_v55  ;;  %v11553_v1 = vld [vmem:[#allocation15_spill] sm:$0xff] }
 0x403   :  { %v2286_v48 = vmul.f32 %v8037_v37, %v11553_v1  ;;  %v2287_v35 = vmul.f32 %v8045_v41, %v11553_v1 }
 0x404   :  { %v2081_v24 = vadd.f32 %v8042_v39, %v2006_v50  ;;  %v8086_v50 = vpop.xlane.xlu0 %1401  ;;  %3599 = vmatpush1.bf16.msra.mxu1 %v6279_v43  ;;  %v6287_v43 = vld [vmem:[%s11065_s3 + $0x94] ss:$8 sps:$4 sm:$0xff]  }
 0x405   :  { %v8069_v26 = vpop.permute.xlu1 %2971  ;;  %11556 = vst [vmem:[#allocation161_spill] sm:$0xff] %v8086_v50  ;;  %v2351_v1 = vadd.f32 %v2287_v35, %v2082_v29  ;;  %3600 = vmatprep.subr.bf16.mxu1 %v6284_v33  ;;  %v11559_v50 = vld [vmem:[#allocation54_spill] sm:$0xff] }
 0x406   :  { %11554 = vst [vmem:[#allocation15_spill] sm:$0xff] %v8069_v26  ;;  %v11557_v26 = vld [vmem:[#allocation16_spill] sm:$0xff]  ;;  %v2350_v14 = vadd.f32 %v2286_v48, %v2081_v24  ;;  %v8105_v57 = vmul.f32 %v8064_v25, %v11559_v50  ;;  %v8114_v24 = vmul.f32 %v8075_v23, %v11559_v50  ;;  %v11565_v29 = vld [vmem:[#allocation18_spill] sm:$0xff] }
 0x407   :  { %v2555_v37 = vmul.f32 %v8064_v25, %v11557_v26  ;;  %v2556_v4 = vmul.f32 %v8075_v23, %v11557_v26  ;;  %v2824_v33 = vmul.f32 %v8089_v27, %v11565_v29 }
 0x408   :  { %1422 = vadd.xlane.f32.xlu1 %v1421_v7  ;;  %v8097_v7 = vrot.slane %v5576_v31, %v11545_v63  ;;  %11560 = vst [vmem:[#allocation54_spill] sm:$0xff] %v8105_v57  ;;  %v8107_v48 = vpop.xlane.xlu0 %1404  ;;  %11562 = vst [vmem:[#allocation163_spill] sm:$0xff] %v8114_v24  ;;  %v11563_v31 = vld [vmem:[#allocation56_spill] sm:$0xff]  ;;  %3601 = vmatpush1.bf16.msra.mxu1 %v6282_v42  ;;  %v8128_v57 = vld [vmem:[%s11063_s1 + $0xf8] sm:$0xff] }
 0x409   :  { %v8101_v41 = vpop.permute.xlu1 %2975  ;;  %11561 = vst [vmem:[#allocation162_spill] sm:$0xff] %v8107_v48  ;;  %v8118_v26 = vmul.f32 %v8064_v25, %v11563_v31  ;;  %v2619_v35 = vadd.f32 %v2555_v37, %v2350_v14  ;;  %v8132_v50 = vmul.f32 %v8075_v23, %v11563_v31  ;;  %v2620_v24 = vadd.f32 %v2556_v4, %v2351_v1  ;;  %v11567_v14 = vld [vmem:[#allocation58_spill] sm:$0xff]  ;;  %v11570_v48 = vld [vmem:[#allocation17_spill] sm:$0xff] }
 0x40a   :  { %11558 = vst [vmem:[#allocation16_spill] sm:$0xff] %v8101_v41  ;;  %v6285_v41 = vld [vmem:[%s11065_s3 + $0x90] ss:$8 sps:$4 sm:$0xff]   ;;  %v2825_v37 = vmul.f32 %v8097_v7, %v11565_v29  ;;  %3602 = vmatprep.subr.bf16.mxu1 %v6287_v43  ;;  %1992 = vperm.xlu0 %6151, %v8128_v57   ;;  %v8139_v42 = vmul.f32 %v8064_v25, %v11567_v14 }
 0x40b   :  { %11564 = vst [vmem:[#allocation56_spill] sm:$0xff] %v8118_v26  ;;  %11566 = vst [vmem:[#allocation18_spill] sm:$0xff] %v8132_v50  ;;  %v8143_v26 = vmul.f32 %v8075_v23, %v11567_v14  ;;  %v8147_v28 = vmul.f32 %v8064_v25, %v11570_v48  ;;  %v8151_v4 = vmul.f32 %v8075_v23, %v11570_v48  ;;  %v11573_v1 = vld [vmem:[#allocation61_spill] sm:$0xff]  ;;  %v1427_v14 = vmul.f32 0.00390625, %v7925_v34  ;;  %v11579_v50 = vld [vmem:[#allocation20_spill] sm:$0xff] }
 0x40c   :  { %11568 = vst [vmem:[#allocation58_spill] sm:$0xff] %v8139_v42  ;;  %v8155_v43 = vmul.f32 %v8089_v27, %v11573_v1  ;;  %v8159_v31 = vmul.f32 %v8097_v7, %v11573_v1  ;;  %v8163_v29 = vmul.f32 %v8089_v27, %v7293_v47  ;;  %v8166_v42 = vpop.permute.xlu0 %1877  ;;  %v8170_v48 = vmul.f32 %v8097_v7, %v7293_v47  ;;  %v6288_v34 = vld [vmem:[%s11065_s3 + $0xa0] ss:$8 sps:$4 sm:$0xff]   ;;  %v6290_v47 = vld [vmem:[%s11065_s3 + $0xa4] ss:$8 sps:$4 sm:$0xff]  }
 0x40d   :  { %11569 = vst [vmem:[#allocation164_spill] sm:$0xff] %v8143_v26  ;;  %11571 = vst [vmem:[#allocation17_spill] sm:$0xff] %v8147_v28  ;;  %v8172_v26 = vadd.f32 %v2824_v33, %v2619_v35  ;;  %v8180_v1 = vmul.f32 %v8097_v7, %v11579_v50  ;;  %3603 = vmatpush1.bf16.msra.mxu1 %v6285_v41  ;;  %v8190_v35 = vadd.f32 %v2825_v37, %v2620_v24  ;;  %v11584_v33 = vld [vmem:[#allocation22_spill] sm:$0xff]  ;;  %v11590_v37 = vld [vmem:[#allocation24_spill] sm:$0xff] }
 0x40e   :  { %11572 = vst [vmem:[#allocation165_spill] sm:$0xff] %v8151_v4  ;;  %11574 = vst [vmem:[#allocation61_spill] sm:$0xff] %v8155_v43  ;;  %v8176_v43 = vmul.f32 %v8089_v27, %v11579_v50  ;;  %v8198_v50 = vmul.f32 %v8075_v23, %v11584_v33  ;;  %6154 = vset.pattern.permute.xlu0 %v11482_v36  ;;  %3604 = vmatprep.subr.bf16.mxu1 %v6290_v47 }
 0x40f   :  { %11575 = vst [vmem:[#allocation166_spill] sm:$0xff] %v8159_v31  ;;  %11576 = vst [vmem:[#allocation167_spill] sm:$0xff] %v8163_v29  ;;  %v8182_v31 = vpop.permute.xlu1 %2979 }
 0x410   :  { %11577 = vst [vmem:[#allocation168_spill] sm:$0xff] %v8170_v48  ;;  %11578 = vst [vmem:[#allocation169_spill] sm:$0xff] %v8172_v26  ;;  %v11596_v26 = vld [vmem:[#allocation26_spill] sm:$0xff]  ;;  %v8261_v29 = vpop.permute.xlu0 %1887 }
 0x411   :  { %11580 = vst [vmem:[#allocation20_spill] sm:$0xff] %v8176_v43  ;;  %11581 = vst [vmem:[#allocation170_spill] sm:$0xff] %v8180_v1  ;;  %v8194_v43 = vmul.f32 %v8064_v25, %v11584_v33  ;;  %v8207_v1 = vld [vmem:[%s11063_s1 + $0xe8] sm:$0xff]  ;;  %v8220_v33 = vmul.f32 %v8075_v23, %v11590_v37  ;;  %v8238_v47 = vmul.f32 %v8097_v7, %v11596_v26  ;;  %3605 = vmatpush1.bf16.msra.mxu1 %v6288_v34  ;;  %v8266_v34 = vld [vmem:[%s11063_s1 + $0xf0] sm:$0xff] }
 0x412   :  { %11582 = vst [vmem:[#allocation171_spill] sm:$0xff] %v8182_v31  ;;  %11583 = vst [vmem:[#allocation172_spill] sm:$0xff] %v8190_v35  ;;  %v11587_v31 = vld [vmem:[#allocation23_spill] sm:$0xff]  ;;  %2264 = vperm.xlu0 %6154, %v8207_v1   ;;  %v1428_v35 = vmul.f32 0.00390625, %v7767_v61 }
 0x413   :  { %11585 = vst [vmem:[#allocation22_spill] sm:$0xff] %v8194_v43  ;;  %11586 = vst [vmem:[#allocation173_spill] sm:$0xff] %v8198_v50  ;;  %v8202_v41 = vmul.f32 %v8089_v27, %v11587_v31  ;;  %v8212_v24 = vmul.f32 %v8097_v7, %v11587_v31  ;;  %v8216_v43 = vmul.f32 %v8064_v25, %v11590_v37  ;;  %v11593_v50 = vld [vmem:[#allocation25_spill] sm:$0xff]  ;;  %v1459_v31 = vadd.f32 1e-05, %v1427_v14  ;;  %v11599_v37 = vld [vmem:[#allocation27_spill] sm:$0xff] }
 0x414   :  { %11592 = vst [vmem:[#allocation175_spill] sm:$0xff] %v8220_v33  ;;  %v8225_v4 = vmul.f32 %v8064_v25, %v11593_v50  ;;  %v8229_v28 = vmul.f32 %v8075_v23, %v11593_v50  ;;  %11598 = vst [vmem:[#allocation177_spill] sm:$0xff] %v8238_v47  ;;  %v8242_v33 = vmul.f32 %v8089_v27, %v11599_v37  ;;  %v11602_v14 = vld [vmem:[#allocation30_spill] sm:$0xff]  ;;  %v1429_v47 = vmul.f32 0.00390625, %v7930_v60 }
 0x415   :  { %11588 = vst [vmem:[#allocation23_spill] sm:$0xff] %v8202_v41  ;;  %11589 = vst [vmem:[#allocation174_spill] sm:$0xff] %v8212_v24  ;;  %v8246_v48 = vmul.f32 %v8097_v7, %v11599_v37  ;;  %v8250_v61 = vmul.f32 %v8064_v25, %v11602_v14  ;;  %v8254_v50 = vmul.f32 %v8075_v23, %v11602_v14  ;;  %v6293_v37 = vld [vmem:[%s11065_s3 + $0xb4] ss:$8 sps:$4 sm:$0xff]   ;;  %v6291_v24 = vld [vmem:[%s11065_s3 + $0xb0] ss:$8 sps:$4 sm:$0xff]   ;;  %6370 = vrsqrt.f32 %v1459_v31 }
 0x416   :  { %11591 = vst [vmem:[#allocation24_spill] sm:$0xff] %v8216_v43  ;;  %11594 = vst [vmem:[#allocation25_spill] sm:$0xff] %v8225_v4  ;;  %v8234_v43 = vmul.f32 %v8089_v27, %v11596_v26  ;;  %v8284_v4 = vpop.permute.xlu1 %2983  ;;  %2268 = vperm.xlu0 %6154, %v8266_v34   ;;  %3606 = vmatprep.subr.bf16.mxu1 %v6293_v37  ;;  %v11619_v31 = vld [vmem:[#allocation48_spill] sm:$0xff] }
 0x417   :  { %11595 = vst [vmem:[#allocation176_spill] sm:$0xff] %v8229_v28  ;;  %11600 = vst [vmem:[#allocation27_spill] sm:$0xff] %v8242_v33  ;;  %v1430_v28 = vmul.f32 0.00390625, %v7776_v2  ;;  %v1460_v2 = vadd.f32 1e-05, %v1428_v35  ;;  %3607 = vmatpush1.bf16.msra.mxu1 %v6291_v24  ;;  %v8317_v35 = vmul.f32 %v8064_v25, %v11619_v31  ;;  %v8321_v37 = vmul.f32 %v8075_v23, %v11619_v31 }
 0x418   :  { %11597 = vst [vmem:[#allocation26_spill] sm:$0xff] %v8234_v43  ;;  %11601 = vst [vmem:[#allocation178_spill] sm:$0xff] %v8246_v48  ;;  %v11603_v43 = vld [vmem:[#allocation33_spill] sm:$0xff] }
 0x419   :  { %v8258_v26 = vmul.f32 %v8089_v27, %v11603_v43  ;;  %v8273_v14 = vmul.f32 %v8097_v7, %v11603_v43  ;;  %v11606_v48 = vld [vmem:[#allocation37_spill] sm:$0xff]  ;;  %11609 = vst [vmem:[#allocation180_spill] sm:$0xff] %v8284_v4  ;;  %1842 = vperm.xlu1 %6141, %v7661_v30   ;;  %v11616_v4 = vld [vmem:[#allocation47_spill] sm:$0xff]  ;;  %11620 = vst [vmem:[#allocation48_spill] sm:$0xff] %v8317_v35  ;;  %v1462_v31 = vadd.f32 1e-05, %v1430_v28  ;;  %6372 = vrsqrt.f32 %v1460_v2  ;;  %v8353_v28 = vpop.permute.xlu0 %1897 }
 0x41a   :  { %v8277_v33 = vmul.f32 %v8089_v27, %v11606_v48  ;;  %v8281_v60 = vmul.f32 %v8097_v7, %v11606_v48  ;;  %v11610_v43 = vld [vmem:[#allocation41_spill] sm:$0xff]  ;;  %11621 = vst [vmem:[#allocation184_spill] sm:$0xff] %v8321_v37  ;;  %6158 = vset.pattern.permute.xlu0 %v11498_v59 }
 0x41b   :  { %11604 = vst [vmem:[#allocation30_spill] sm:$0xff] %v8258_v26  ;;  %11605 = vst [vmem:[#allocation33_spill] sm:$0xff] %v8273_v14  ;;  %v8293_v41 = vmul.f32 %v8064_v25, %v11610_v43  ;;  %v8297_v48 = vmul.f32 %v8075_v23, %v11610_v43  ;;  %v8309_v14 = vmul.f32 %v8089_v27, %v11616_v4  ;;  %v1461_v43 = vadd.f32 1e-05, %v1429_v47  ;;  %v11634_v2 = vld [vmem:[#allocation53_spill] sm:$0xff] }
 0x41c   :  { %11607 = vst [vmem:[#allocation37_spill] sm:$0xff] %v8277_v33  ;;  %11608 = vst [vmem:[#allocation179_spill] sm:$0xff] %v8281_v60  ;;  %v11613_v33 = vld [vmem:[#allocation44_spill] sm:$0xff]  ;;  %2541 = vperm.xlu0 %6158, %v8128_v57   ;;  %v8376_v57 = vmul.f32 %v8097_v7, %v11634_v2 }
 0x41d   :  { %11611 = vst [vmem:[#allocation41_spill] sm:$0xff] %v8293_v41  ;;  %11612 = vst [vmem:[#allocation181_spill] sm:$0xff] %v8297_v48  ;;  %v8301_v30 = vmul.f32 %v8089_v27, %v11613_v33  ;;  %v8305_v60 = vmul.f32 %v8097_v7, %v11613_v33  ;;  %v8313_v41 = vmul.f32 %v8097_v7, %v11616_v4  ;;  %v1431_v33 = vmul.f32 0.00390625, %v7934_v54  ;;  %v6294_v54 = vld [vmem:[%s11065_s3 + $0xc0] ss:$8 sps:$4 sm:$0xff]  }
 0x41e   :  { %11617 = vst [vmem:[#allocation47_spill] sm:$0xff] %v8309_v14  ;;  %v6296_v14 = vld [vmem:[%s11065_s3 + $0xc4] ss:$8 sps:$4 sm:$0xff]   ;;  %1852 = vperm.xlu1 %6141, %v7682_v19   ;;  %11637 = vst [vmem:[#allocation190_spill] sm:$0xff] %v8376_v57  ;;  %6374 = vrsqrt.f32 %v1461_v43  ;;  %v6297_v43 = vld [vmem:[%s11065_s3 + $0xd0] ss:$8 sps:$4 sm:$0xff]  }
 0x41f   :  { %11614 = vst [vmem:[#allocation44_spill] sm:$0xff] %v8301_v30  ;;  %11615 = vst [vmem:[#allocation182_spill] sm:$0xff] %v8305_v60  ;;  %v11622_v60 = vld [vmem:[#allocation49_spill] sm:$0xff]  ;;  %3608 = vmatprep.subr.bf16.mxu1 %v6296_v14  ;;  %v11638_v14 = vld [vmem:[#allocation55_spill] sm:$0xff]  ;;  %6376 = vrsqrt.f32 %v1462_v31 }
 0x420   :  { %11618 = vst [vmem:[#allocation183_spill] sm:$0xff] %v8313_v41  ;;  %v8329_v4 = vmul.f32 %v8064_v25, %v11622_v60  ;;  %v8333_v24 = vmul.f32 %v8075_v23, %v11622_v60  ;;  %v11625_v41 = vld [vmem:[#allocation50_spill] sm:$0xff]  ;;  %3609 = vmatpush1.bf16.msra.mxu1 %v6294_v54  ;;  %6160 = vset.pattern.permute.xlu0 %v11504_v21 }
 0x421   :  { %v8337_v30 = vmul.f32 %v8089_v27, %v11625_v41  ;;  %v8346_v47 = vmul.f32 %v8097_v7, %v11625_v41  ;;  %v11647_v31 = vld [vmem:[#allocation62_spill] sm:$0xff]  ;;  %3075 = vperm.xlu0 %6160, %v8266_v34   ;;  %v6302_v34 = vld [vmem:[%s11065_s3 + $0xe4] ss:$8 sps:$4 sm:$0xff]  }
 0x422   :  { %11623 = vst [vmem:[#allocation49_spill] sm:$0xff] %v8329_v4  ;;  %11624 = vst [vmem:[#allocation185_spill] sm:$0xff] %v8333_v24  ;;  %v11628_v4 = vld [vmem:[#allocation51_spill] sm:$0xff]  ;;  %v11631_v24 = vld [vmem:[#allocation52_spill] sm:$0xff]  ;;  %1857 = vperm.xlu1 %6141, %v7698_v46   ;;  %v8413_v46 = vmul.f32 %v8064_v25, %v11647_v31 }
 0x423   :  { %11626 = vst [vmem:[#allocation50_spill] sm:$0xff] %v8337_v30  ;;  %11627 = vst [vmem:[#allocation186_spill] sm:$0xff] %v8346_v47  ;;  %v8350_v60 = vmul.f32 %v8064_v25, %v11628_v4  ;;  %v1432_v30 = vmul.f32 0.00390625, %v7780_v45  ;;  %v8358_v19 = vmul.f32 %v8075_v23, %v11628_v4  ;;  %v8362_v41 = vmul.f32 %v8064_v25, %v11631_v24 }
 0x424   :  { %v8366_v47 = vmul.f32 %v8075_v23, %v11631_v24  ;;  %v8370_v45 = vmul.f32 %v8089_v27, %v11634_v2  ;;  %v8380_v4 = vmul.f32 %v8064_v25, %v11638_v14  ;;  %v6299_v24 = vld [vmem:[%s11065_s3 + $0xd4] ss:$8 sps:$4 sm:$0xff]   ;;  %11648 = vst [vmem:[#allocation62_spill] sm:$0xff] %v8413_v46  ;;  %v11657_v46 = vld [vmem:[#allocation64_spill] sm:$0xff] }
 0x425   :  { %11629 = vst [vmem:[#allocation51_spill] sm:$0xff] %v8350_v60  ;;  %11630 = vst [vmem:[#allocation187_spill] sm:$0xff] %v8358_v19  ;;  %v8372_v60 = vpop.permute.xlu1 %2987  ;;  %3610 = vmatprep.subr.bf16.mxu1 %v6299_v24  ;;  %v8428_v24 = vmul.f32 %v8075_v23, %v7299_v22 }
 0x426   :  { %11632 = vst [vmem:[#allocation52_spill] sm:$0xff] %v8362_v41  ;;  %11633 = vst [vmem:[#allocation188_spill] sm:$0xff] %v8366_v47  ;;  %v1463_v41 = vadd.f32 1e-05, %v1431_v33  ;;  %v11641_v47 = vld [vmem:[#allocation57_spill] sm:$0xff]  ;;  %v11644_v33 = vld [vmem:[#allocation59_spill] sm:$0xff]  ;;  %3611 = vmatpush1.bf16.msra.mxu1 %v6297_v43  ;;  %v8435_v43 = vpop.permute.xlu0 %1907  ;;  %1872 = vperm.xlu1 %6141, %v7724_v62  }
 0x427   :  { %11635 = vst [vmem:[#allocation53_spill] sm:$0xff] %v8370_v45  ;;  %11636 = vst [vmem:[#allocation189_spill] sm:$0xff] %v8372_v60  ;;  %v8387_v45 = vmul.f32 %v8075_v23, %v11638_v14  ;;  %v8391_v54 = vmul.f32 %v8064_v25, %v11641_v47  ;;  %v8395_v2 = vmul.f32 %v8075_v23, %v11641_v47  ;;  %v1433_v60 = vmul.f32 0.00390625, %v7939_v38  ;;  %v11660_v62 = vld [vmem:[#allocation69_spill] sm:$0xff] }
 0x428   :  { %11639 = vst [vmem:[#allocation55_spill] sm:$0xff] %v8380_v4  ;;  %v8403_v57 = vmul.f32 %v8089_v27, %v11644_v33  ;;  %v8407_v14 = vmul.f32 %v8097_v7, %v11644_v33  ;;  %v8417_v47 = vmul.f32 %v8075_v23, %v11647_v31  ;;  %v8424_v38 = vmul.f32 %v8064_v25, %v7299_v22  ;;  %v5502_v31 = vld [vmem:[%s11068_s6 + $0x1] ss:$8 sm:$0x3] }
 0x429   :  { %11640 = vst [vmem:[#allocation191_spill] sm:$0xff] %v8387_v45  ;;  %11642 = vst [vmem:[#allocation57_spill] sm:$0xff] %v8391_v54  ;;  %v1464_v54 = vadd.f32 1e-05, %v1432_v30  ;;  %v6371_v30 = vpop.eup %6370  ;;  %v2011_v33 = vmul.f32 %v8017_v8, %v7313_v12  ;;  %6378 = vrsqrt.f32 %v1463_v41  ;;  %3612 = vmatprep.subr.bf16.mxu1 %v6302_v34  ;;  %v8472_v4 = vrot.slane %v5502_v31, %v11544_v55 }
 0x42a   :  { %11643 = vst [vmem:[#allocation192_spill] sm:$0xff] %v8395_v2  ;;  %11645 = vst [vmem:[#allocation59_spill] sm:$0xff] %v8403_v57  ;;  %v2010_v2 = vmul.f32 %v8011_v32, %v7313_v12  ;;  %v11655_v12 = vld [vmem:[#allocation65_spill] sm:$0xff]  ;;  %v8452_v57 = vpop.permute.xlu1 %2991  ;;  %v1523_v45 = vmul.f32 %v6371_v30, %v11660_v62  ;;  %v6373_v19 = vpop.eup %6372  ;;  %v5503_v34 = vld [vmem:[%s11068_s6 + $0x2] ss:$8 sm:$0x3]  ;;  %1882 = vperm.xlu1 %6141, %v7731_v13   ;;  %v8513_v35 = vrot.slane %v5502_v31, %v11545_v63 }
 0x42b   :  { %11646 = vst [vmem:[#allocation193_spill] sm:$0xff] %v8407_v14  ;;  %11649 = vst [vmem:[#allocation194_spill] sm:$0xff] %v8417_v47  ;;  %v11652_v14 = vld [vmem:[#allocation63_spill] sm:$0xff]  ;;  %v2017_v41 = vmul.f32 %v8017_v8, %v11655_v12  ;;  %6380 = vrsqrt.f32 %v1464_v54  ;;  %v8475_v54 = vadd.f32 %v8050_v6, %v2011_v33  ;;  %v8510_v37 = vpop.permute.xlu0 %1917  ;;  %v8516_v13 = vrot.slane %v5503_v34, %v11544_v55 }
 0x42c   :  { %11650 = vst [vmem:[#allocation195_spill] sm:$0xff] %v8424_v38  ;;  %11651 = vst [vmem:[#allocation196_spill] sm:$0xff] %v8428_v24  ;;  %v8442_v38 = vmul.f32 %v8089_v27, %v11652_v14  ;;  %v8446_v22 = vmul.f32 %v8097_v7, %v11652_v14  ;;  %v2016_v24 = vmul.f32 %v8011_v32, %v11655_v12  ;;  %v6300_v47 = vld [vmem:[%s11065_s3 + $0xe0] ss:$8 sps:$4 sm:$0xff]   ;;  %v1465_v14 = vadd.f32 1e-05, %v1433_v60 }
 0x42d   :  { %11656 = vst [vmem:[#allocation65_spill] sm:$0xff] %v8452_v57  ;;  %v8465_v12 = vmul.f32 %v8075_v23, %v11657_v46  ;;  %v8468_v57 = vadd.f32 %v8042_v39, %v2010_v2  ;;  %11661 = vst [vmem:[#allocation69_spill] sm:$0xff] %v8472_v4  ;;  %3613 = vmatpush1.bf16.msra.mxu1 %v6300_v47  ;;  %v11663_v60 = vld [vmem:[#allocation66_spill] sm:$0xff]  ;;  %v1435_v2 = vmul.f32 0.00390625, %v7798_v10 }
 0x42e   :  { %11653 = vst [vmem:[#allocation63_spill] sm:$0xff] %v8442_v38  ;;  %11654 = vst [vmem:[#allocation197_spill] sm:$0xff] %v8446_v22  ;;  %v8460_v38 = vmul.f32 %v8064_v25, %v11657_v46  ;;  %v1434_v22 = vmul.f32 0.00390625, %v7789_v44  ;;  %v8479_v44 = vmul.f32 %v8064_v25, %v11663_v60  ;;  %v8483_v46 = vmul.f32 %v8075_v23, %v11663_v60  ;;  %v6305_v47 = vld [vmem:[%s11065_s3 + $0xf4] ss:$8 sps:$4 sm:$0xff]  }
 0x42f   :  { %11659 = vst [vmem:[#allocation198_spill] sm:$0xff] %v8465_v12  ;;  %11662 = vst [vmem:[#allocation199_spill] sm:$0xff] %v8475_v54  ;;  %v8493_v33 = vadd.f32 %v8042_v39, %v2016_v24  ;;  %v8496_v62 = vadd.f32 %v8050_v6, %v2017_v41  ;;  %v6303_v12 = vld [vmem:[%s11065_s3 + $0xf0] ss:$8 sps:$4 sm:$0xff]   ;;  %6382 = vrsqrt.f32 %v1465_v14  ;;  %3614 = vmatprep.subr.bf16.mxu1 %v6305_v47  ;;  %v1467_v47 = vadd.f32 1e-05, %v1435_v2 }
 0x430   :  { %11658 = vst [vmem:[#allocation64_spill] sm:$0xff] %v8460_v38  ;;  %11664 = vst [vmem:[#allocation66_spill] sm:$0xff] %v8479_v44  ;;  %v11668_v38 = vld [vmem:[#allocation67_spill] sm:$0xff]  ;;  %v11669_v44 = vld [vmem:[#allocation68_spill] sm:$0xff]  ;;  %v1466_v41 = vadd.f32 1e-05, %v1434_v22  ;;  %v1598_v48 = vmul.f32 %v8472_v4, %v1523_v45  ;;  %v1526_v14 = vmul.f32 %v6373_v19, %v7341_v15  ;;  %v1525_v31 = vmul.f32 %v6373_v19, %v7338_v58 }
 0x431   :  { %11665 = vst [vmem:[#allocation200_spill] sm:$0xff] %v8483_v46  ;;  %11666 = vst [vmem:[#allocation201_spill] sm:$0xff] %v8493_v33  ;;  %v2018_v60 = vmul.f32 %v8011_v32, %v11668_v38  ;;  %v2019_v10 = vmul.f32 %v8017_v8, %v11668_v38  ;;  %v6375_v46 = vpop.eup %6374  ;;  %v8508_v24 = vmul.f32 %v8089_v27, %v11669_v44  ;;  %3615 = vmatpush1.bf16.msra.mxu1 %v6303_v12  ;;  %v11674_v33 = vld [vmem:[#allocation70_spill] sm:$0xff]  ;;  %v11676_v12 = vld [vmem:[#allocation71_spill] sm:$0xff] }
 0x432   :  { %11667 = vst [vmem:[#allocation202_spill] sm:$0xff] %v8496_v62  ;;  %11671 = vst [vmem:[#allocation68_spill] sm:$0xff] %v8513_v35  ;;  %v6377_v38 = vpop.eup %6376  ;;  %v8519_v62 = vpop.permute.xlu1 %2995  ;;  %v1524_v26 = vmul.f32 %v6371_v30, %v11674_v33  ;;  %v8525_v22 = vmul.f32 %v8097_v7, %v11669_v44  ;;  %v8537_v30 = vmul.f32 %v8089_v27, %v11676_v12  ;;  %1892 = vperm.xlu1 %6141, %v7738_v18  }
 0x433   :  { %11670 = vst [vmem:[#allocation67_spill] sm:$0xff] %v8508_v24  ;;  %11672 = vst [vmem:[#allocation203_spill] sm:$0xff] %v8516_v13  ;;  %v1436_v24 = vmul.f32 0.00390625, %v7945_v0  ;;  %v8530_v54 = vadd.f32 %v8042_v39, %v2018_v60  ;;  %v8533_v45 = vadd.f32 %v8050_v6, %v2019_v10  ;;  %v1528_v15 = vmul.f32 %v6375_v46, %v7351_v16  ;;  %v6379_v44 = vpop.eup %6378 }
 0x434   :  { %11673 = vst [vmem:[#allocation204_spill] sm:$0xff] %v8519_v62  ;;  %11675 = vst [vmem:[#allocation70_spill] sm:$0xff] %v8525_v22  ;;  %6384 = vrsqrt.f32 %v1466_v41  ;;  %v1437_v58 = vmul.f32 0.00390625, %v7948_v49  ;;  %v1530_v0 = vmul.f32 %v6377_v38, %v7361_v9  ;;  %v1527_v19 = vmul.f32 %v6375_v46, %v7348_v17  ;;  %v8557_v17 = vpop.permute.xlu0 %1932  ;;  %v11701_v62 = vld [vmem:[#allocation111_spill] sm:$0xff] }
 0x435   :  { %11677 = vst [vmem:[#allocation71_spill] sm:$0xff] %v8537_v30  ;;  %v8545_v2 = vadd.f32 %v8516_v13, %v1598_v48  ;;  %v1599_v33 = vmul.f32 %v8513_v35, %v1524_v26  ;;  %v1601_v60 = vmul.f32 %v8513_v35, %v1526_v14  ;;  %v8550_v10 = vrot.slane %v5503_v34, %v11545_v63  ;;  %v6381_v18 = vpop.eup %6380 }
 0x436   :  { %v8554_v16 = vmul.f32 %v8097_v7, %v11676_v12  ;;  %v1600_v49 = vmul.f32 %v8472_v4, %v1525_v31  ;;  %6386 = vrsqrt.f32 %v1467_v47  ;;  %v1468_v9 = vadd.f32 1e-05, %v1436_v24  ;;  %v8560_v46 = vpop.permute.xlu1 %2999  ;;  %1902 = vperm.xlu1 %6141, %v7745_v56  }
 0x437   :  { %11678 = vst [vmem:[#allocation205_spill] sm:$0xff] %v8545_v2  ;;  %11679 = vst [vmem:[#allocation206_spill] sm:$0xff] %v8550_v10  ;;  %v1438_v48 = vmul.f32 0.00390625, %v7964_v40  ;;  %v1603_v26 = vmul.f32 %v8513_v35, %v1528_v15  ;;  %v1529_v34 = vmul.f32 %v6377_v38, %v7358_v52  ;;  %v1532_v41 = vmul.f32 %v6379_v44, %v7371_v11 }
 0x438   :  { %11680 = vst [vmem:[#allocation207_spill] sm:$0xff] %v8554_v16  ;;  %11681 = vst [vmem:[#allocation208_spill] sm:$0xff] %v8560_v46  ;;  %v1469_v14 = vadd.f32 1e-05, %v1437_v58  ;;  %v1605_v12 = vmul.f32 %v8513_v35, %v1530_v0  ;;  %v1602_v31 = vmul.f32 %v8472_v4, %v1527_v19  ;;  %v1531_v24 = vmul.f32 %v6379_v44, %v7368_v3  ;;  %v11685_v58 = vld [vmem:[#allocation72_spill] sm:$0xff] }
 0x439   :  { %v8571_v40 = vadd.f32 %v8550_v10, %v1599_v33  ;;  %v8574_v56 = vadd.f32 %v8550_v10, %v1601_v60  ;;  %v1534_v15 = vmul.f32 %v6381_v18, %v7377_v5  ;;  %v6383_v52 = vpop.eup %6382  ;;  %6388 = vrsqrt.f32 %v1468_v9  ;;  %v8588_v5 = vpop.permute.xlu0 %1937 }
 0x43a   :  { %v1439_v11 = vmul.f32 0.00390625, %v7976_v53  ;;  %v8579_v38 = vadd.f32 %v8516_v13, %v1600_v49  ;;  %v1533_v0 = vmul.f32 %v6381_v18, %v11685_v58  ;;  %v1470_v3 = vadd.f32 1e-05, %v1438_v48  ;;  %1912 = vperm.xlu1 %6141, %v7761_v51   ;;  %v8598_v49 = vpop.permute.xlu1 %3003 }
 0x43b   :  { %11682 = vst [vmem:[#allocation209_spill] sm:$0xff] %v8571_v40  ;;  %11683 = vst [vmem:[#allocation210_spill] sm:$0xff] %v8574_v56  ;;  %v8584_v44 = vadd.f32 %v8550_v10, %v1603_v26  ;;  %v1604_v19 = vmul.f32 %v8472_v4, %v1529_v34  ;;  %v1607_v33 = vmul.f32 %v8513_v35, %v1532_v41  ;;  %6390 = vrsqrt.f32 %v1469_v14  ;;  %v11690_v26 = vld [vmem:[#allocation74_spill] sm:$0xff] }
 0x43c   :  { %11684 = vst [vmem:[#allocation211_spill] sm:$0xff] %v8579_v38  ;;  %v8591_v53 = vadd.f32 %v8550_v10, %v1605_v12  ;;  %v8594_v60 = vadd.f32 %v8516_v13, %v1602_v31  ;;  %v1606_v18 = vmul.f32 %v8472_v4, %v1531_v24  ;;  %v1440_v51 = vmul.f32 0.00390625, %v7810_v20  ;;  %11689 = vst [vmem:[#allocation214_spill] sm:$0xff] %v8598_v49  ;;  %v11691_v24 = vld [vmem:[#allocation108_spill] sm:$0xff]  ;;  %v11725_v40 = vld [vmem:[#allocation158_spill] sm:$0xff] }
 0x43d   :  { %11686 = vst [vmem:[#allocation72_spill] sm:$0xff] %v8584_v44  ;;  %v1609_v48 = vmul.f32 %v8513_v35, %v1534_v15  ;;  %v1536_v34 = vmul.f32 %v6383_v52, %v11690_v26  ;;  %v1471_v14 = vadd.f32 1e-05, %v1439_v11  ;;  %v1608_v31 = vmul.f32 %v8472_v4, %v1533_v0  ;;  %v11695_v0 = vld [vmem:[#allocation73_spill] sm:$0xff]  ;;  %v11697_v20 = vld [vmem:[#allocation76_spill] sm:$0xff]  ;;  %v8626_v46 = vpop.permute.xlu0 %2172 }
 0x43e   :  { %11687 = vst [vmem:[#allocation212_spill] sm:$0xff] %v8591_v53  ;;  %11688 = vst [vmem:[#allocation213_spill] sm:$0xff] %v8594_v60  ;;  %v6385_v41 = vpop.eup %6384  ;;  %6392 = vrsqrt.f32 %v1470_v3  ;;  %1922 = vperm.xlu1 %6141, %v11691_v24   ;;  %v8609_v47 = vadd.f32 %v8516_v13, %v1604_v19  ;;  %v8612_v15 = vadd.f32 %v8550_v10, %v1607_v33  ;;  %v1472_v9 = vadd.f32 1e-05, %v1440_v51  ;;  %v11698_v33 = vld [vmem:[#allocation148_spill] sm:$0xff]  ;;  %v8633_v51 = vpop.permute.xlu1 %3007 }
 0x43f   :  { %v8617_v58 = vadd.f32 %v8516_v13, %v1606_v18  ;;  %v1535_v3 = vmul.f32 %v6383_v52, %v11695_v0  ;;  %v8621_v24 = vadd.f32 %v8550_v10, %v1609_v48  ;;  %v1538_v19 = vmul.f32 %v6385_v41, %v11697_v20  ;;  %v11700_v18 = vld [vmem:[#allocation75_spill] sm:$0xff]  ;;  %11702 = vst [vmem:[#allocation148_spill] sm:$0xff] %v8633_v51  ;;  %v11705_v60 = vld [vmem:[#allocation112_spill] sm:$0xff] }
 0x440   :  { %11692 = vst [vmem:[#allocation74_spill] sm:$0xff] %v8609_v47  ;;  %11693 = vst [vmem:[#allocation108_spill] sm:$0xff] %v8612_v15  ;;  %v6387_v26 = vpop.eup %6386  ;;  %v1611_v22 = vmul.f32 %v8513_v35, %v1536_v34  ;;  %6394 = vrsqrt.f32 %v1471_v14  ;;  %v1441_v49 = vmul.f32 0.00390625, %v11698_v33  ;;  %v8629_v12 = vadd.f32 %v8516_v13, %v1608_v31  ;;  %v11703_v48 = vld [vmem:[#allocation107_spill] sm:$0xff]  ;;  %v11704_v14 = vld [vmem:[#allocation28_spill] sm:$0xff] }
 0x441   :  { %11694 = vst [vmem:[#allocation215_spill] sm:$0xff] %v8617_v58  ;;  %11696 = vst [vmem:[#allocation73_spill] sm:$0xff] %v8621_v24  ;;  %v1537_v11 = vmul.f32 %v6385_v41, %v11700_v18  ;;  %v1442_v52 = vmul.f32 0.00390625, %v11701_v62  ;;  %v1540_v0 = vmul.f32 %v6387_v26, %v11704_v14  ;;  %v1443_v53 = vmul.f32 0.00390625, %v11705_v60  ;;  %v11706_v41 = vld [vmem:[#allocation77_spill] sm:$0xff]  ;;  %v11707_v62 = vld [vmem:[#allocation152_spill] sm:$0xff]  ;;  %v8648_v14 = vpop.permute.xlu0 %2232 }
 0x442   :  { %11699 = vst [vmem:[#allocation76_spill] sm:$0xff] %v8629_v12  ;;  %1927 = vperm.xlu1 %6141, %v11703_v48   ;;  %v1610_v56 = vmul.f32 %v8472_v4, %v1535_v3  ;;  %v1539_v18 = vmul.f32 %v6387_v26, %v11706_v41  ;;  %6396 = vrsqrt.f32 %v1472_v9  ;;  %v1444_v51 = vmul.f32 0.00390625, %v11707_v62  ;;  %v6518_v9 = vld [vmem:[%s11063_s1 + $0xa8] sm:$0xff]  ;;  %v11709_v26 = vld [vmem:[#allocation31_spill] sm:$0xff]  ;;  %v11710_v41 = vld [vmem:[#allocation29_spill] sm:$0xff]  ;;  %v8664_v12 = vpop.permute.xlu1 %3011 }
 0x443   :  { %v6389_v33 = vpop.eup %6388  ;;  %v1613_v48 = vmul.f32 %v8513_v35, %v1538_v19  ;;  %v8646_v20 = vadd.f32 %v8550_v10, %v1611_v22  ;;  %v1473_v15 = vadd.f32 1e-05, %v1441_v49  ;;  %v1612_v3 = vmul.f32 %v8472_v4, %v1537_v11  ;;  %v11711_v47 = vld [vmem:[#allocation113_spill] sm:$0xff]  ;;  %11713 = vst [vmem:[#allocation107_spill] sm:$0xff] %v8664_v12 }
 0x444   :  { %v1474_v58 = vadd.f32 1e-05, %v1442_v52  ;;  %v1542_v19 = vmul.f32 %v6389_v33, %v11709_v26  ;;  %v1615_v22 = vmul.f32 %v8513_v35, %v1540_v0  ;;  %v1541_v49 = vmul.f32 %v6389_v33, %v11710_v41  ;;  %v11715_v0 = vld [vmem:[#allocation34_spill] sm:$0xff] }
 0x445   :  { %11708 = vst [vmem:[#allocation75_spill] sm:$0xff] %v8646_v20  ;;  %v6391_v34 = vpop.eup %6390  ;;  %v1475_v62 = vadd.f32 1e-05, %v1443_v53  ;;  %v1445_v38 = vmul.f32 0.00390625, %v11711_v47  ;;  %v8661_v60 = vadd.f32 %v8516_v13, %v1610_v56  ;;  %v1614_v11 = vmul.f32 %v8472_v4, %v1539_v18  ;;  %v11716_v53 = vld [vmem:[#allocation154_spill] sm:$0xff]  ;;  %v11718_v56 = vld [vmem:[#allocation32_spill] sm:$0xff] }
 0x446   :  { %1942 = vperm.xlu1 %6141, %v6518_v9   ;;  %v1476_v31 = vadd.f32 1e-05, %v1444_v51  ;;  %v8667_v9 = vadd.f32 %v8550_v10, %v1613_v48  ;;  %v1544_v24 = vmul.f32 %v6391_v34, %v11715_v0  ;;  %6398 = vrsqrt.f32 %v1473_v15  ;;  %v11719_v18 = vld [vmem:[#allocation110_spill] sm:$0xff]  ;;  %v8682_v0 = vpop.permute.xlu0 %2959  ;;  %v8695_v2 = vpop.permute.xlu1 %3015 }
 0x447   :  { %11712 = vst [vmem:[#allocation111_spill] sm:$0xff] %v8661_v60  ;;  %v1446_v33 = vmul.f32 0.00390625, %v11716_v53  ;;  %v8673_v47 = vadd.f32 %v8516_v13, %v1612_v3  ;;  %v1543_v41 = vmul.f32 %v6391_v34, %v11718_v56  ;;  %6400 = vrsqrt.f32 %v1474_v58  ;;  %v11722_v53 = vld [vmem:[#allocation36_spill] sm:$0xff]  ;;  %v11723_v58 = vld [vmem:[#allocation114_spill] sm:$0xff]  ;;  %11726 = vst [vmem:[#allocation31_spill] sm:$0xff] %v8695_v2 }
 0x448   :  { %v6393_v52 = vpop.eup %6392  ;;  %11714 = vst [vmem:[#allocation28_spill] sm:$0xff] %v8667_v9  ;;  %v1617_v51 = vmul.f32 %v8513_v35, %v1542_v19  ;;  %v8679_v48 = vadd.f32 %v8550_v10, %v1615_v22  ;;  %v1616_v26 = vmul.f32 %v8472_v4, %v1541_v49  ;;  %6402 = vrsqrt.f32 %v1475_v62  ;;  %v11735_v2 = vld [vmem:[#allocation115_spill] sm:$0xff] }
 0x449   :  { %11717 = vst [vmem:[#allocation112_spill] sm:$0xff] %v8673_v47  ;;  %v1477_v15 = vadd.f32 1e-05, %v1445_v38  ;;  %v8685_v3 = vadd.f32 %v8516_v13, %v1614_v11  ;;  %v1546_v34 = vmul.f32 %v6393_v52, %v11722_v53  ;;  %6404 = vrsqrt.f32 %v1476_v31  ;;  %v11727_v53 = vld [vmem:[#allocation109_spill] sm:$0xff] }
 0x44a   :  { %1952 = vperm.xlu1 %6141, %v11719_v18   ;;  %11720 = vst [vmem:[#allocation77_spill] sm:$0xff] %v8679_v48  ;;  %v6395_v12 = vpop.eup %6394  ;;  %v1447_v56 = vmul.f32 0.00390625, %v11723_v58  ;;  %v1619_v19 = vmul.f32 %v8513_v35, %v1544_v24  ;;  %v11724_v18 = vld [vmem:[#allocation35_spill] sm:$0xff]  ;;  %v1478_v20 = vadd.f32 1e-05, %v1446_v33  ;;  %v1618_v38 = vmul.f32 %v8472_v4, %v1543_v41  ;;  %v11733_v41 = vld [vmem:[#allocation42_spill] sm:$0xff]  ;;  %v8743_v60 = vpop.permute.xlu1 %3019 }
 0x44b   :  { %11721 = vst [vmem:[#allocation152_spill] sm:$0xff] %v8685_v3  ;;  %v1545_v22 = vmul.f32 %v6393_v52, %v11724_v18  ;;  %v1448_v11 = vmul.f32 0.00390625, %v11725_v40  ;;  %v8699_v31 = vadd.f32 %v8550_v10, %v1617_v51  ;;  %v8702_v24 = vadd.f32 %v8516_v13, %v1616_v26  ;;  %v11730_v52 = vld [vmem:[#allocation39_spill] sm:$0xff]  ;;  %v8726_v51 = vld [vmem:[%s11063_s1 + $0xd8] sm:$0xff]  ;;  %v11737_v48 = vld [vmem:[#allocation161_spill] sm:$0xff] }
 0x44c   :  { %v6397_v44 = vpop.eup %6396  ;;  %v1548_v33 = vmul.f32 %v6395_v12, %v11730_v52  ;;  %6406 = vrsqrt.f32 %v1477_v15  ;;  %v1621_v18 = vmul.f32 %v8513_v35, %v1546_v34  ;;  %v1479_v40 = vadd.f32 1e-05, %v1447_v56  ;;  %v8716_v15 = vpop.xlane.xlu0 %1413  ;;  %v11734_v56 = vld [vmem:[#allocation38_spill] sm:$0xff]  ;;  %11738 = vst [vmem:[#allocation110_spill] sm:$0xff] %v8743_v60 }
 0x44d   :  { %11728 = vst [vmem:[#allocation29_spill] sm:$0xff] %v8699_v31  ;;  %11729 = vst [vmem:[#allocation113_spill] sm:$0xff] %v8702_v24  ;;  %v8713_v62 = vadd.f32 %v8550_v10, %v1619_v19  ;;  %v1620_v26 = vmul.f32 %v8472_v4, %v1545_v22  ;;  %6408 = vrsqrt.f32 %v1478_v20  ;;  %v8719_v52 = vadd.f32 %v8516_v13, %v1618_v38 }
 0x44e   :  { %1962 = vperm.xlu1 %6141, %v11727_v53   ;;  %v5577_v53 = vld [vmem:[%s11068_s6 + $0x14] ss:$8 sm:$0x3]  ;;  %v1550_v34 = vmul.f32 %v6397_v44, %v11733_v41  ;;  %v1547_v58 = vmul.f32 %v6395_v12, %v11734_v56  ;;  %v1480_v49 = vadd.f32 1e-05, %v1448_v11  ;;  %v1623_v22 = vmul.f32 %v8513_v35, %v1548_v33 }
 0x44f   :  { %11731 = vst [vmem:[#allocation34_spill] sm:$0xff] %v8713_v62  ;;  %11732 = vst [vmem:[#allocation154_spill] sm:$0xff] %v8719_v52  ;;  %v1449_v3 = vmul.f32 0.00390625, %v11735_v2  ;;  %v8734_v41 = vrot.slane %v5577_v53, %v11544_v55  ;;  %v8737_v12 = vrot.slane %v5577_v53, %v11545_v63  ;;  %v8740_v11 = vadd.f32 %v8550_v10, %v1621_v18  ;;  %v11740_v63 = vld [vmem:[#allocation40_spill] sm:$0xff]  ;;  %v11747_v52 = vld [vmem:[#allocation162_spill] sm:$0xff] }
 0x450   :  { %v6399_v38 = vpop.eup %6398  ;;  %6410 = vrsqrt.f32 %v1479_v40  ;;  %v1450_v19 = vmul.f32 0.00390625, %v11737_v48  ;;  %v8747_v20 = vadd.f32 %v8516_v13, %v1620_v26  ;;  %v1625_v53 = vmul.f32 %v8513_v35, %v1550_v34  ;;  %v11742_v40 = vld [vmem:[#allocation45_spill] sm:$0xff]  ;;  %v11743_v26 = vld [vmem:[#allocation43_spill] sm:$0xff]  ;;  %v8759_v47 = vpop.xlane.xlu0 %1419  ;;  %v11746_v34 = vld [vmem:[#allocation78_spill] sm:$0xff] }
 0x451   :  { %11736 = vst [vmem:[#allocation32_spill] sm:$0xff] %v8740_v11  ;;  %v6401_v56 = vpop.eup %6400  ;;  %v1549_v24 = vmul.f32 %v6397_v44, %v11740_v63  ;;  %v1622_v18 = vmul.f32 %v8472_v4, %v1547_v58  ;;  %6412 = vrsqrt.f32 %v1480_v49  ;;  %v8755_v48 = vadd.f32 %v8550_v10, %v1623_v22  ;;  %11744 = vst [vmem:[#allocation35_spill] sm:$0xff] %v8759_v47  ;;  %v6520_v63 = vld [vmem:[%s11063_s1 + $0xc0] sm:$0xff]  ;;  %v11745_v49 = vld [vmem:[#allocation46_spill] sm:$0xff] }
 0x452   :  { %1972 = vperm.xlu1 %6141, %v8726_v51   ;;  %11739 = vst [vmem:[#allocation36_spill] sm:$0xff] %v8747_v20  ;;  %v6403_v2 = vpop.eup %6402  ;;  %v1552_v33 = vmul.f32 %v6399_v38, %v11742_v40  ;;  %v1551_v60 = vmul.f32 %v6399_v38, %v11743_v26  ;;  %v1481_v62 = vadd.f32 1e-05, %v1449_v3  ;;  %v1554_v58 = vmul.f32 %v6401_v56, %v11745_v49  ;;  %v11748_v38 = vld [vmem:[#allocation80_spill] sm:$0xff]  ;;  %v11751_v44 = vld [vmem:[#allocation79_spill] sm:$0xff]  ;;  %v8776_v49 = vpop.permute.xlu1 %3023  ;;  %v11773_v20 = vld [vmem:[#allocation90_spill] sm:$0xff] }
 0x453   :  { %v6405_v31 = vpop.eup %6404  ;;  %11741 = vst [vmem:[#allocation114_spill] sm:$0xff] %v8755_v48  ;;  %v1553_v55 = vmul.f32 %v6401_v56, %v11746_v34  ;;  %v1482_v22 = vadd.f32 1e-05, %v1450_v19  ;;  %v1451_v9 = vmul.f32 0.00390625, %v11747_v52  ;;  %v1556_v3 = vmul.f32 %v6403_v2, %v11748_v38  ;;  %11752 = vst [vmem:[#allocation109_spill] sm:$0xff] %v8776_v49 }
 0x454   :  { %v1624_v16 = vmul.f32 %v8472_v4, %v1549_v24  ;;  %v8772_v30 = vadd.f32 %v8516_v13, %v1622_v18  ;;  %v1555_v11 = vmul.f32 %v6403_v2, %v11751_v44  ;;  %v8779_v19 = vadd.f32 %v8550_v10, %v1625_v53  ;;  %v6521_v24 = vld [vmem:[%s11063_s1 + $0xc8] sm:$0xff]  ;;  %v11754_v44 = vld [vmem:[#allocation81_spill] sm:$0xff] }
 0x455   :  { %v1627_v56 = vmul.f32 %v8513_v35, %v1552_v33  ;;  %v1626_v34 = vmul.f32 %v8472_v4, %v1551_v60  ;;  %6414 = vrsqrt.f32 %v1481_v62  ;;  %v1629_v2 = vmul.f32 %v8513_v35, %v1554_v58  ;;  %v11755_v33 = vld [vmem:[#allocation84_spill] sm:$0xff]  ;;  %v8792_v60 = vpop.xlane.xlu0 %1425  ;;  %v11758_v58 = vld [vmem:[#allocation83_spill] sm:$0xff] }
 0x456   :  { %6142 = vset.pattern.permute.xlu1 %v11504_v21  ;;  %v6407_v26 = vpop.eup %6406  ;;  %11749 = vst [vmem:[#allocation158_spill] sm:$0xff] %v8772_v30  ;;  %11753 = vst [vmem:[#allocation39_spill] sm:$0xff] %v8779_v19  ;;  %v1628_v18 = vmul.f32 %v8472_v4, %v1553_v55  ;;  %v1557_v53 = vmul.f32 %v6405_v31, %v11754_v44  ;;  %6416 = vrsqrt.f32 %v1482_v22  ;;  %v11771_v30 = vld [vmem:[#allocation87_spill] sm:$0xff] }
 0x457   :  { %3051 = vperm.xlu1 %6142, %v6520_v63   ;;  %v11750_v63 = vld [vmem:[#allocation82_spill] sm:$0xff]  ;;  %v6409_v38 = vpop.eup %6408  ;;  %v1631_v52 = vmul.f32 %v8513_v35, %v1556_v3  ;;  %v1560_v40 = vmul.f32 %v6407_v26, %v11755_v33  ;;  %11756 = vst [vmem:[#allocation42_spill] sm:$0xff] %v8792_v60  ;;  %v8795_v62 = vadd.f32 %v8516_v13, %v1624_v16 }
 0x458   :  { %v1558_v47 = vmul.f32 %v6405_v31, %v11750_v63  ;;  %v1483_v63 = vadd.f32 1e-05, %v1451_v9  ;;  %v1559_v48 = vmul.f32 %v6407_v26, %v11758_v58  ;;  %v8803_v22 = vadd.f32 %v8550_v10, %v1627_v56  ;;  %v11760_v3 = vld [vmem:[#allocation86_spill] sm:$0xff]  ;;  %v11763_v26 = vld [vmem:[#allocation85_spill] sm:$0xff]  ;;  %v8815_v9 = vpop.permute.xlu1 %3031  ;;  %v11770_v31 = vld [vmem:[#allocation88_spill] sm:$0xff] }
 0x459   :  { %11757 = vst [vmem:[#allocation38_spill] sm:$0xff] %v8795_v62  ;;  %v1562_v44 = vmul.f32 %v6409_v38, %v11760_v3  ;;  %v8808_v16 = vadd.f32 %v8550_v10, %v1629_v2  ;;  %v1561_v33 = vmul.f32 %v6409_v38, %v11763_v26  ;;  %11764 = vst [vmem:[#allocation45_spill] sm:$0xff] %v8815_v9  ;;  %v8820_v56 = vld [vmem:[%s11063_s1 + $0xd0] sm:$0xff]  ;;  %v8830_v38 = vpop.permute.xlu0 %3027 }
 0x45a   :  { %v1633_v49 = vmul.f32 %v8513_v35, %v1558_v47  ;;  %v6411_v55 = vpop.eup %6410  ;;  %11759 = vst [vmem:[#allocation115_spill] sm:$0xff] %v8803_v22  ;;  %v8811_v47 = vadd.f32 %v8516_v13, %v1626_v34  ;;  %6418 = vrsqrt.f32 %v1483_v63  ;;  %v8824_v2 = vadd.f32 %v8516_v13, %v1628_v18  ;;  %11767 = vst [vmem:[#allocation78_spill] sm:$0xff] %v8830_v38  ;;  %v11776_v18 = vld [vmem:[#allocation120_spill] sm:$0xff] }
 0x45b   :  { %3055 = vperm.xlu1 %6142, %v6521_v24   ;;  %v1630_v24 = vmul.f32 %v8472_v4, %v1555_v11  ;;  %11761 = vst [vmem:[#allocation161_spill] sm:$0xff] %v8808_v16  ;;  %v1632_v11 = vmul.f32 %v8472_v4, %v1557_v53  ;;  %v6413_v58 = vpop.eup %6412  ;;  %v8827_v34 = vadd.f32 %v8550_v10, %v1631_v52 }
 0x45c   :  { %11762 = vst [vmem:[#allocation40_spill] sm:$0xff] %v8811_v47  ;;  %11765 = vst [vmem:[#allocation43_spill] sm:$0xff] %v8824_v2  ;;  %v1635_v53 = vmul.f32 %v8513_v35, %v1560_v40  ;;  %v8833_v63 = vadd.f32 %v8550_v10, %v1633_v49  ;;  %v1634_v26 = vmul.f32 %v8472_v4, %v1559_v48  ;;  %v1452_v48 = vmul.f32 0.00390625, %v11776_v18  ;;  %v8864_v47 = vpop.permute.xlu1 %3035 }
 0x45d   :  { %11766 = vst [vmem:[#allocation46_spill] sm:$0xff] %v8827_v34  ;;  %v8836_v3 = vadd.f32 %v8516_v13, %v1630_v24  ;;  %v1564_v60 = vmul.f32 %v6411_v55, %v11770_v31  ;;  %v1637_v52 = vmul.f32 %v8513_v35, %v1562_v44  ;;  %v1563_v40 = vmul.f32 %v6411_v55, %v11771_v30  ;;  %v11780_v55 = vld [vmem:[#allocation116_spill] sm:$0xff] }
 0x45e   :  { %11768 = vst [vmem:[#allocation162_spill] sm:$0xff] %v8833_v63  ;;  %v8846_v49 = vadd.f32 %v8516_v13, %v1632_v11  ;;  %v1636_v24 = vmul.f32 %v8472_v4, %v1561_v33  ;;  %v1566_v38 = vmul.f32 %v6413_v58, %v11773_v20  ;;  %v8855_v44 = vadd.f32 %v8550_v10, %v1635_v53  ;;  %v11779_v53 = vld [vmem:[#allocation89_spill] sm:$0xff]  ;;  %v11784_v63 = vld [vmem:[#allocation91_spill] sm:$0xff] }
 0x45f   :  { %6143 = vset.pattern.permute.xlu1 %v11482_v36  ;;  %11769 = vst [vmem:[#allocation80_spill] sm:$0xff] %v8836_v3  ;;  %v6415_v30 = vpop.eup %6414  ;;  %v8860_v33 = vadd.f32 %v8516_v13, %v1634_v26  ;;  %v1639_v20 = vmul.f32 %v8513_v35, %v1564_v60  ;;  %11777 = vst [vmem:[#allocation84_spill] sm:$0xff] %v8864_v47  ;;  %v8867_v9 = vadd.f32 %v8550_v10, %v1637_v52  ;;  %v8875_v26 = vpop.permute.xlu0 %3059  ;;  %v11787_v47 = vld [vmem:[#allocation93_spill] sm:$0xff] }
 0x460   :  { %2252 = vperm.xlu1 %6143, %v8820_v56   ;;  %11772 = vst [vmem:[#allocation82_spill] sm:$0xff] %v8846_v49  ;;  %11774 = vst [vmem:[#allocation79_spill] sm:$0xff] %v8855_v44  ;;  %v6417_v19 = vpop.eup %6416  ;;  %v1565_v31 = vmul.f32 %v6413_v58, %v11779_v53  ;;  %v1638_v34 = vmul.f32 %v8472_v4, %v1563_v40  ;;  %v8873_v11 = vmul.f32 %v8064_v25, %v11780_v55  ;;  %v11783_v40 = vld [vmem:[#allocation92_spill] sm:$0xff] }
 0x461   :  { %11775 = vst [vmem:[#allocation81_spill] sm:$0xff] %v8860_v33  ;;  %11778 = vst [vmem:[#allocation83_spill] sm:$0xff] %v8867_v9  ;;  %v8879_v3 = vadd.f32 %v8516_v13, %v1636_v24  ;;  %v1641_v18 = vmul.f32 %v8513_v35, %v1566_v38  ;;  %v8884_v52 = vmul.f32 %v8075_v23, %v11780_v55  ;;  %v11786_v38 = vld [vmem:[#allocation94_spill] sm:$0xff]  ;;  %v1484_v22 = vadd.f32 1e-05, %v1452_v48 }
 0x462   :  { %11781 = vst [vmem:[#allocation86_spill] sm:$0xff] %v8875_v26  ;;  %v1568_v53 = vmul.f32 %v6415_v30, %v11783_v40  ;;  %v1567_v2 = vmul.f32 %v6415_v30, %v11784_v63  ;;  %v8893_v24 = vadd.f32 %v8550_v10, %v1639_v20  ;;  %v1570_v49 = vmul.f32 %v6417_v19, %v11786_v38  ;;  %v11789_v63 = vld [vmem:[#allocation117_spill] sm:$0xff] }
 0x463   :  { %11782 = vst [vmem:[#allocation85_spill] sm:$0xff] %v8879_v3  ;;  %v1569_v55 = vmul.f32 %v6417_v19, %v11787_v47  ;;  %v1640_v58 = vmul.f32 %v8472_v4, %v1565_v31  ;;  %v8900_v40 = vadd.f32 %v8516_v13, %v1638_v34  ;;  %v8904_v30 = vmul.f32 %v8064_v25, %v11789_v63  ;;  %v11793_v47 = vld [vmem:[#allocation118_spill] sm:$0xff]  ;;  %v8922_v31 = vpop.permute.xlu1 %3039  ;;  %v8926_v62 = vpop.permute.xlu0 %2734  ;;  %v11799_v3 = vld [vmem:[#allocation121_spill] sm:$0xff] }
 0x464   :  { %2256 = vperm.xlu1 %6143, %v8726_v51   ;;  %11785 = vst [vmem:[#allocation88_spill] sm:$0xff] %v8893_v24  ;;  %v6419_v16 = vpop.eup %6418  ;;  %v8908_v20 = vmul.f32 %v8075_v23, %v11789_v63  ;;  %v8912_v19 = vadd.f32 %v8550_v10, %v1641_v18  ;;  %v8916_v48 = vmul.f32 %v8089_v27, %v11793_v47  ;;  %11796 = vst [vmem:[#allocation91_spill] sm:$0xff] %v8922_v31  ;;  %v11800_v24 = vld [vmem:[#allocation95_spill] sm:$0xff] }
 0x465   :  { %11788 = vst [vmem:[#allocation87_spill] sm:$0xff] %v8900_v40  ;;  %11790 = vst [vmem:[#allocation90_spill] sm:$0xff] %v8904_v30  ;;  %v8920_v34 = vmul.f32 %v8097_v7, %v11793_v47  ;;  %v1643_v60 = vmul.f32 %v8513_v35, %v1568_v53  ;;  %v1642_v63 = vmul.f32 %v8472_v4, %v1567_v2  ;;  %6420 = vrsqrt.f32 %v1484_v22 }
 0x466   :  { %11791 = vst [vmem:[#allocation120_spill] sm:$0xff] %v8908_v20  ;;  %11792 = vst [vmem:[#allocation89_spill] sm:$0xff] %v8912_v19  ;;  %v1645_v38 = vmul.f32 %v8513_v35, %v1570_v49  ;;  %v1644_v33 = vmul.f32 %v8472_v4, %v1569_v55  ;;  %v2022_v47 = vmul.f32 %v8011_v32, %v8166_v42  ;;  %v1453_v18 = vmul.f32 0.00390625, %v11799_v3 }
 0x467   :  { %11794 = vst [vmem:[#allocation116_spill] sm:$0xff] %v8916_v48  ;;  %11795 = vst [vmem:[#allocation92_spill] sm:$0xff] %v8920_v34  ;;  %v11797_v48 = vld [vmem:[#allocation96_spill] sm:$0xff]  ;;  %v8936_v53 = vadd.f32 %v8516_v13, %v1640_v58  ;;  %v2023_v30 = vmul.f32 %v8017_v8, %v8166_v42  ;;  %v1571_v55 = vmul.f32 %v6419_v16, %v11800_v24  ;;  %v11803_v3 = vmov 3   ;;  %v8971_v40 = vpop.permute.xlu1 %3043  ;;  %v8980_v31 = vpop.permute.xlu0 %2746 }
 0x468   :  { %6144 = vset.pattern.permute.xlu1 %v11498_v59  ;;  %v1572_v44 = vmul.f32 %v6419_v16, %v11797_v48  ;;  %v2026_v48 = vmul.f32 %v8011_v32, %v8261_v29  ;;  %v2027_v22 = vmul.f32 %v8017_v8, %v8261_v29  ;;  %v8949_v58 = vadd.f32 %v8550_v10, %v1643_v60 }
 0x469   :  { %2521 = vperm.xlu1 %6144, %v8820_v56   ;;  %11798 = vst [vmem:[#allocation94_spill] sm:$0xff] %v8936_v53  ;;  %v8952_v2 = vadd.f32 %v8516_v13, %v1642_v63  ;;  %v2030_v42 = vmul.f32 %v8011_v32, %v8353_v28  ;;  %v8958_v49 = vadd.f32 %v8550_v10, %v1645_v38  ;;  %v11806_v63 = vld [vmem:[#allocation155_spill] sm:$0xff]  ;;  %11807 = vst [vmem:[#allocation121_spill] sm:$0xff] %v8971_v40 }
 0x46a   :  { %11801 = vst [vmem:[#allocation93_spill] sm:$0xff] %v8949_v58  ;;  %v8961_v16 = vadd.f32 %v8516_v13, %v1644_v33  ;;  %v1647_v24 = vmul.f32 %v8513_v35, %v1572_v44  ;;  %v8965_v29 = vadd.f32 %v8042_v39, %v2022_v47  ;;  %v2031_v60 = vmul.f32 %v8017_v8, %v8353_v28  ;;  %v11808_v44 = vld [vmem:[#allocation156_spill] sm:$0xff] }
 0x46b   :  { %11802 = vst [vmem:[#allocation117_spill] sm:$0xff] %v8952_v2  ;;  %11804 = vst [vmem:[#allocation118_spill] sm:$0xff] %v8958_v49  ;;  %v2298_v19 = vmul.f32 %v11806_v63, %v8626_v46  ;;  %v8976_v33 = vadd.f32 %v8050_v6, %v2023_v30  ;;  %v2299_v9 = vmul.f32 %v11808_v44, %v8626_v46  ;;  %v1485_v47 = vadd.f32 1e-05, %v1453_v18  ;;  %v9036_v2 = vpop.permute.xlu0 %2754 }
 0x46c   :  { %11805 = vst [vmem:[#allocation96_spill] sm:$0xff] %v8961_v16  ;;  %v1646_v28 = vmul.f32 %v8472_v4, %v1571_v55  ;;  %v8984_v34 = vadd.f32 %v8042_v39, %v2026_v48  ;;  %v8987_v20 = vadd.f32 %v8050_v6, %v2027_v22  ;;  %v8992_v30 = vadd.f32 %v8042_v39, %v2030_v42  ;;  %v11815_v16 = vld [vmem:[#allocation97_spill] sm:$0xff] }
 0x46d   :  { %2525 = vperm.xlu1 %6144, %v8726_v51   ;;  %v8997_v53 = vadd.f32 %v8550_v10, %v1647_v24  ;;  %v9000_v55 = vadd.f32 %v8050_v6, %v2031_v60  ;;  %v2034_v48 = vmul.f32 %v8011_v32, %v8435_v43  ;;  %v2035_v22 = vmul.f32 %v8017_v8, %v8435_v43  ;;  %v9014_v24 = vld [vmem:[%s11063_s1 + $0xe0] sm:$0xff] }
 0x46e   :  { %v2362_v38 = vadd.f32 %v2298_v19, %v8530_v54  ;;  %v11810_v42 = vmov 0   ;;  %v2038_v46 = vmul.f32 %v8011_v32, %v8510_v37  ;;  %v2363_v18 = vadd.f32 %v2299_v9, %v8533_v45 }
 0x46f   :  { %11809 = vst [vmem:[#allocation95_spill] sm:$0xff] %v8997_v53  ;;  %6422 = vrsqrt.f32 %v1485_v47  ;;  %v9018_v60 = vadd.f32 %v8516_v13, %v1646_v28  ;;  %v6421_v43 = vpop.eup %6420  ;;  %v2039_v54 = vmul.f32 %v8017_v8, %v8510_v37  ;;  %v2044_v19 = vmul.f32 %v8011_v32, %v8557_v17  ;;  %v9028_v47 = vpop.permute.xlu1 %3047  ;;  %v11813_v28 = vld [vmem:[#allocation123_spill] sm:$0xff] }
 0x470   :  { %v2045_v45 = vmul.f32 %v8017_v8, %v8557_v17  ;;  %v2046_v9 = vmul.f32 %v8011_v32, %v8588_v5  ;;  %11812 = vst [vmem:[#allocation217_spill] sm:$0xff] %v9028_v47  ;;  %v2291_v37 = vmul.f32 %v11808_v44, %v11813_v28  ;;  %v9040_v17 = vadd.f32 %v8042_v39, %v2034_v48 }
 0x471   :  { %6145 = vset.pattern.permute.xlu1 %v11803_v3  ;;  %11811 = vst [vmem:[#allocation216_spill] sm:$0xff] %v9018_v60  ;;  %v2290_v60 = vmul.f32 %v11806_v63, %v11813_v28  ;;  %v9043_v49 = vadd.f32 %v8050_v6, %v2035_v22  ;;  %v2631_v58 = vadd.f32 %v8250_v61, %v2362_v38  ;;  %v11814_v28 = vld [vmem:[#allocation98_spill] sm:$0xff]  ;;  %v11816_v38 = vld [vmem:[#allocation199_spill] sm:$0xff] }
 0x472   :  { %2790 = vperm.xlu1 %6145, %v8820_v56   ;;  %v2047_v56 = vmul.f32 %v8017_v8, %v8588_v5  ;;  %v1454_v5 = vmul.f32 0.00390625, %v8716_v15  ;;  %v9048_v47 = vadd.f32 %v8042_v39, %v2038_v46  ;;  %v2632_v40 = vadd.f32 %v8254_v50, %v2363_v18  ;;  %v11818_v18 = vld [vmem:[#allocation126_spill] sm:$0xff] }
 0x473   :  { %v1574_v23 = vmul.f32 %v6421_v43, %v11814_v28  ;;  %v1573_v53 = vmul.f32 %v6421_v43, %v11815_v16  ;;  %v9055_v48 = vadd.f32 %v8050_v6, %v2039_v54  ;;  %v9058_v22 = vadd.f32 %v8042_v39, %v2044_v19 }
 0x474   :  { %v9061_v61 = vadd.f32 %v8050_v6, %v2045_v45  ;;  %v9064_v15 = vadd.f32 %v8042_v39, %v2046_v9  ;;  %v9067_v50 = vadd.f32 %v8050_v6, %v2047_v56  ;;  %v2355_v46 = vadd.f32 %v2291_v37, %v11816_v38  ;;  %v11820_v45 = vld [vmem:[#allocation30_spill] sm:$0xff]  ;;  %v9084_v56 = vpop.permute.xlu1 %2244  ;;  %v11823_v37 = vld [vmem:[#allocation33_spill] sm:$0xff] }
 0x475   :  { %v9073_v16 = vmul.f32 %v11806_v63, %v8648_v14  ;;  %v2296_v43 = vmul.f32 %v11806_v63, %v11818_v18  ;;  %v9079_v54 = vmul.f32 %v11808_v44, %v8648_v14  ;;  %v1486_v19 = vadd.f32 1e-05, %v1454_v5  ;;  %11822 = vst [vmem:[#allocation199_spill] sm:$0xff] %v9084_v56  ;;  %v11825_v5 = vld [vmem:[#allocation128_spill] sm:$0xff]  ;;  %v11836_v6 = vld [vmem:[#allocation202_spill] sm:$0xff] }
 0x476   :  { %6146 = vset.pattern.permute.xlu1 %v11810_v42  ;;  %v9082_v9 = vadd.f32 %v11820_v45, %v2631_v58  ;;  %v9091_v28 = vadd.f32 %v11823_v37, %v2632_v40  ;;  %v1649_v38 = vmul.f32 %v8513_v35, %v1574_v23  ;;  %v1648_v14 = vmul.f32 %v8472_v4, %v1573_v53  ;;  %v11828_v23 = vld [vmem:[#allocation122_spill] sm:$0xff] }
 0x477   :  { %1977 = vperm.xlu1 %6146, %v9014_v24   ;;  %11817 = vst [vmem:[#allocation123_spill] sm:$0xff] %v9073_v16  ;;  %11819 = vst [vmem:[#allocation98_spill] sm:$0xff] %v9079_v54  ;;  %v2302_v58 = vmul.f32 %v11806_v63, %v11825_v5  ;;  %v2303_v45 = vmul.f32 %v11808_v44, %v11825_v5  ;;  %v9106_v40 = vmul.f32 %v8737_v12, %v8682_v0  ;;  %v11831_v5 = vld [vmem:[#allocation54_spill] sm:$0xff]  ;;  %v11832_v16 = vld [vmem:[#allocation163_spill] sm:$0xff] }
 0x478   :  { %11821 = vst [vmem:[#allocation97_spill] sm:$0xff] %v9082_v9  ;;  %11824 = vst [vmem:[#allocation126_spill] sm:$0xff] %v9091_v28  ;;  %v9111_v53 = vmul.f32 %v11806_v63, %v11828_v23  ;;  %v9115_v4 = vmul.f32 %v11808_v44, %v11828_v23  ;;  %v2624_v54 = vadd.f32 %v11832_v16, %v2355_v46  ;;  %v11833_v9 = vld [vmem:[#allocation201_spill] sm:$0xff]  ;;  %6424 = vrsqrt.f32 %v1486_v19  ;;  %v9141_v19 = vpop.permute.xlu1 %2248 }
 0x479   :  { %11827 = vst [vmem:[#allocation33_spill] sm:$0xff] %v9106_v40  ;;  %v6423_v37 = vpop.eup %6422  ;;  %v2360_v28 = vadd.f32 %v2296_v43, %v11833_v9  ;;  %v2366_v16 = vadd.f32 %v2302_v58, %v8965_v29  ;;  %v2367_v43 = vadd.f32 %v2303_v45, %v8976_v33  ;;  %v11841_v9 = vld [vmem:[#allocation100_spill] sm:$0xff]  ;;  %v11846_v29 = vld [vmem:[#allocation99_spill] sm:$0xff]  ;;  %v11848_v45 = vld [vmem:[#allocation25_spill] sm:$0xff] }
 0x47a   :  { %11829 = vst [vmem:[#allocation128_spill] sm:$0xff] %v9111_v53  ;;  %11830 = vst [vmem:[#allocation122_spill] sm:$0xff] %v9115_v4  ;;  %v9130_v4 = vadd.f32 %v8550_v10, %v1649_v38  ;;  %v9159_v33 = vmul.f32 %v6423_v37, %v11846_v29  ;;  %v11851_v29 = vld [vmem:[#allocation41_spill] sm:$0xff] }
 0x47b   :  { %1982 = vperm.xlu1 %6146, %v8207_v1   ;;  %v2354_v1 = vadd.f32 %v2290_v60, %v8468_v57  ;;  %v2297_v57 = vmul.f32 %v11808_v44, %v11818_v18  ;;  %v9088_v60 = vpop.permute.xlu0 %2766  ;;  %v9102_v18 = vmul.f32 %v8734_v41, %v8682_v0  ;;  %v11834_v0 = vld [vmem:[#allocation130_spill] sm:$0xff] }
 0x47c   :  { %v2306_v40 = vmul.f32 %v11806_v63, %v11834_v0  ;;  %11837 = vst [vmem:[#allocation54_spill] sm:$0xff] %v9130_v4  ;;  %11840 = vst [vmem:[#allocation130_spill] sm:$0xff] %v9141_v19 }
 0x47d   :  { %11826 = vst [vmem:[#allocation30_spill] sm:$0xff] %v9102_v18  ;;  %v2623_v56 = vadd.f32 %v11831_v5, %v2354_v1  ;;  %v11835_v18 = vld [vmem:[#allocation124_spill] sm:$0xff]  ;;  %v2361_v23 = vadd.f32 %v2297_v57, %v11836_v6  ;;  %v9133_v1 = vadd.f32 %v8516_v13, %v1648_v14  ;;  %v1576_v6 = vmul.f32 %v6423_v37, %v11841_v9  ;;  %v11842_v57 = vld [vmem:[#allocation125_spill] sm:$0xff]  ;;  %v11844_v5 = vld [vmem:[#allocation23_spill] sm:$0xff] }
 0x47e   :  { %v9126_v53 = vmul.f32 %v11806_v63, %v11835_v18  ;;  %v9137_v46 = vmul.f32 %v11808_v44, %v11835_v18  ;;  %v9147_v38 = vmul.f32 %v11806_v63, %v11842_v57  ;;  %v11845_v18 = vld [vmem:[#allocation174_spill] sm:$0xff]  ;;  %11847 = vst [vmem:[#allocation202_spill] sm:$0xff] %v9159_v33  ;;  %v9163_v58 = vmul.f32 %v11808_v44, %v11842_v57  ;;  %v11860_v37 = vld [vmem:[#allocation27_spill] sm:$0xff] }
 0x47f   :  { %6148 = vset.pattern.permute.xlu1 %v11504_v21  ;;  %11838 = vst [vmem:[#allocation163_spill] sm:$0xff] %v9133_v1  ;;  %v9149_v14 = vpop.permute.xlu0 %2774  ;;  %v9155_v13 = vadd.f32 %v11845_v18, %v2624_v54  ;;  %v2629_v9 = vadd.f32 %v11848_v45, %v2360_v28  ;;  %v2370_v10 = vadd.f32 %v2306_v40, %v8984_v34  ;;  %v11857_v45 = vld [vmem:[#allocation134_spill] sm:$0xff]  ;;  %v11863_v1 = vld [vmem:[#allocation129_spill] sm:$0xff] }
 0x480   :  { %3063 = vperm.xlu1 %6148, %v8726_v51   ;;  %v2307_v51 = vmul.f32 %v11808_v44, %v11834_v0  ;;  %11839 = vst [vmem:[#allocation201_spill] sm:$0xff] %v9137_v46  ;;  %11843 = vst [vmem:[#allocation124_spill] sm:$0xff] %v9147_v38  ;;  %v9152_v0 = vadd.f32 %v11844_v5, %v2623_v56  ;;  %v11849_v56 = vld [vmem:[#allocation176_spill] sm:$0xff]  ;;  %v2635_v33 = vadd.f32 %v11851_v29, %v2366_v16  ;;  %v11852_v46 = vld [vmem:[#allocation181_spill] sm:$0xff] }
 0x481   :  { %v2630_v5 = vadd.f32 %v11849_v56, %v2361_v23  ;;  %v11850_v38 = vld [vmem:[#allocation132_spill] sm:$0xff]  ;;  %v2636_v57 = vadd.f32 %v11852_v46, %v2367_v43  ;;  %v9178_v34 = vmul.f32 %v8513_v35, %v1576_v6  ;;  %v2314_v56 = vmul.f32 %v11806_v63, %v11857_v45 }
 0x482   :  { %v2371_v19 = vadd.f32 %v2307_v51, %v8987_v20  ;;  %v2310_v54 = vmul.f32 %v11806_v63, %v11850_v38  ;;  %v2311_v28 = vmul.f32 %v11808_v44, %v11850_v38  ;;  %v11854_v20 = vld [vmem:[#allocation127_spill] sm:$0xff]  ;;  %v2315_v16 = vmul.f32 %v11808_v44, %v11857_v45  ;;  %v11858_v43 = vld [vmem:[#allocation48_spill] sm:$0xff] }
 0x483   :  { %11853 = vst [vmem:[#allocation100_spill] sm:$0xff] %v9178_v34  ;;  %v9182_v40 = vmul.f32 %v11806_v63, %v11854_v20  ;;  %v11856_v51 = vld [vmem:[#allocation35_spill] sm:$0xff]  ;;  %v9192_v46 = vmul.f32 %v11808_v44, %v11854_v20  ;;  %v2639_v6 = vadd.f32 %v11858_v43, %v2370_v10  ;;  %v11859_v38 = vld [vmem:[#allocation184_spill] sm:$0xff]  ;;  %v9197_v18 = vadd.f32 %v11860_v37, %v2629_v9  ;;  %v9211_v10 = vpop.permute.xlu0 %2786  ;;  %v6425_v9 = vpop.eup %6424 }
 0x484   :  { %6149 = vset.pattern.permute.xlu1 %v11482_v36  ;;  %v1456_v23 = vmul.f32 0.00390625, %v11856_v51  ;;  %v2640_v29 = vadd.f32 %v11859_v38, %v2371_v19  ;;  %v9199_v51 = vpop.permute.xlu1 %2513  ;;  %v9204_v45 = vmul.f32 %v11806_v63, %v11863_v1  ;;  %v9208_v34 = vmul.f32 %v11808_v44, %v11863_v1  ;;  %v11865_v19 = vld [vmem:[#allocation178_spill] sm:$0xff]  ;;  %v11866_v38 = vld [vmem:[#allocation136_spill] sm:$0xff] }
 0x485   :  { %2260 = vperm.xlu1 %6149, %v9014_v24   ;;  %11855 = vst [vmem:[#allocation125_spill] sm:$0xff] %v9182_v40  ;;  %11861 = vst [vmem:[#allocation23_spill] sm:$0xff] %v9197_v18  ;;  %v2374_v20 = vadd.f32 %v2310_v54, %v8992_v30  ;;  %v9214_v43 = vadd.f32 %v11865_v19, %v2630_v5  ;;  %v2375_v37 = vadd.f32 %v2311_v28, %v9000_v55  ;;  %v11872_v19 = vld [vmem:[#allocation131_spill] sm:$0xff] }
 0x486   :  { %11862 = vst [vmem:[#allocation174_spill] sm:$0xff] %v9199_v51  ;;  %11864 = vst [vmem:[#allocation99_spill] sm:$0xff] %v9204_v45  ;;  %v2318_v4 = vmul.f32 %v11806_v63, %v11866_v38  ;;  %v11867_v51 = vld [vmem:[#allocation44_spill] sm:$0xff]  ;;  %v11869_v45 = vld [vmem:[#allocation182_spill] sm:$0xff]  ;;  %v9225_v1 = vadd.f32 1e-05, %v1456_v23  ;;  %v2378_v30 = vadd.f32 %v2314_v56, %v9040_v17  ;;  %v2379_v54 = vadd.f32 %v2315_v16, %v9043_v49 }
 0x487   :  { %v9220_v18 = vadd.f32 %v11867_v51, %v2635_v33  ;;  %v9223_v40 = vadd.f32 %v11869_v45, %v2636_v57  ;;  %v2319_v5 = vmul.f32 %v11808_v44, %v11866_v38  ;;  %v9233_v55 = vmul.f32 %v11806_v63, %v11872_v19  ;;  %v11874_v28 = vld [vmem:[#allocation167_spill] sm:$0xff]  ;;  %v11876_v23 = vld [vmem:[#allocation168_spill] sm:$0xff]  ;;  %v11878_v17 = vld [vmem:[#allocation133_spill] sm:$0xff] }
 0x488   :  { %11871 = vst [vmem:[#allocation132_spill] sm:$0xff] %v9225_v1  ;;  %v9237_v33 = vmul.f32 %v11808_v44, %v11872_v19  ;;  %v9240_v57 = vadd.f32 %v11874_v28, %v2639_v6  ;;  %v9243_v51 = vadd.f32 %v11876_v23, %v2640_v29  ;;  %v9248_v49 = vld [vmem:[%s11063_s1 + $0xe8] sm:$0xff]  ;;  %v9253_v56 = vmul.f32 %v11806_v63, %v11878_v17  ;;  %v11881_v6 = vld [vmem:[#allocation51_spill] sm:$0xff]  ;;  %v11882_v38 = vld [vmem:[#allocation102_spill] sm:$0xff] }
 0x489   :  { %6150 = vset.pattern.permute.xlu1 %v11498_v59  ;;  %11868 = vst [vmem:[#allocation25_spill] sm:$0xff] %v9220_v18  ;;  %11870 = vst [vmem:[#allocation176_spill] sm:$0xff] %v9223_v40  ;;  %v9257_v16 = vmul.f32 %v11808_v44, %v11878_v17  ;;  %v2643_v45 = vadd.f32 %v11881_v6, %v2374_v20  ;;  %v1578_v29 = vmul.f32 %v6425_v9, %v11882_v38  ;;  %v11883_v19 = vld [vmem:[#allocation78_spill] sm:$0xff]  ;;  %v11885_v23 = vld [vmem:[#allocation187_spill] sm:$0xff]  ;;  %v9276_v38 = vpop.permute.xlu0 %2794 }
 0x48a   :  { %2529 = vperm.xlu1 %6150, %v9014_v24   ;;  %11873 = vst [vmem:[#allocation41_spill] sm:$0xff] %v9233_v55  ;;  %11875 = vst [vmem:[#allocation181_spill] sm:$0xff] %v9240_v57  ;;  %v9263_v28 = vmul.f32 %v8734_v41, %v11883_v19  ;;  %v2644_v1 = vadd.f32 %v11885_v23, %v2375_v37  ;;  %v2382_v57 = vadd.f32 %v2318_v4, %v9048_v47  ;;  %v11888_v55 = vld [vmem:[#allocation55_spill] sm:$0xff] }
 0x48b   :  { %11877 = vst [vmem:[#allocation127_spill] sm:$0xff] %v9243_v51  ;;  %11879 = vst [vmem:[#allocation35_spill] sm:$0xff] %v9253_v56  ;;  %v11886_v51 = vld [vmem:[#allocation139_spill] sm:$0xff]  ;;  %v9269_v56 = vpop.permute.xlu1 %2517  ;;  %v2647_v17 = vadd.f32 %v11888_v55, %v2378_v30  ;;  %v2383_v20 = vadd.f32 %v2319_v5, %v9055_v48  ;;  %v9280_v37 = vmul.f32 %v8737_v12, %v11883_v19  ;;  %v11892_v30 = vld [vmem:[#allocation140_spill] sm:$0xff] }
 0x48c   :  { %11880 = vst [vmem:[#allocation134_spill] sm:$0xff] %v9257_v16  ;;  %11884 = vst [vmem:[#allocation48_spill] sm:$0xff] %v9263_v28  ;;  %v2324_v18 = vmul.f32 %v11806_v63, %v11886_v51  ;;  %v11889_v16 = vld [vmem:[#allocation191_spill] sm:$0xff]  ;;  %v2325_v6 = vmul.f32 %v11808_v44, %v11886_v51  ;;  %v2848_v4 = vmul.f32 %v8089_v27, %v8926_v62  ;;  %v11895_v51 = vld [vmem:[#allocation101_spill] sm:$0xff] }
 0x48d   :  { %11887 = vst [vmem:[#allocation184_spill] sm:$0xff] %v9269_v56  ;;  %v2648_v40 = vadd.f32 %v11889_v16, %v2379_v54  ;;  %11890 = vst [vmem:[#allocation27_spill] sm:$0xff] %v9276_v38  ;;  %v2849_v47 = vmul.f32 %v8097_v7, %v8926_v62  ;;  %v2326_v54 = vmul.f32 %v11806_v63, %v11892_v30  ;;  %v11897_v62 = vld [vmem:[#allocation135_spill] sm:$0xff]  ;;  %v11899_v56 = vld [vmem:[#allocation194_spill] sm:$0xff] }
 0x48e   :  { %2533 = vperm.xlu1 %6150, %v9248_v49   ;;  %11891 = vst [vmem:[#allocation129_spill] sm:$0xff] %v9280_v37  ;;  %v9291_v48 = vmul.f32 %v8737_v12, %v8875_v26  ;;  %v2327_v5 = vmul.f32 %v11808_v44, %v11892_v30  ;;  %v9297_v55 = vmul.f32 %v8513_v35, %v1578_v29  ;;  %v11898_v26 = vld [vmem:[#allocation62_spill] sm:$0xff]  ;;  %v11900_v35 = vld [vmem:[#allocation59_spill] sm:$0xff] }
 0x48f   :  { %v9300_v16 = vmul.f32 %v6425_v9, %v11895_v51  ;;  %v9304_v19 = vmul.f32 %v11806_v63, %v11897_v62  ;;  %v9308_v23 = vmul.f32 %v11808_v44, %v11897_v62  ;;  %v2388_v30 = vadd.f32 %v2324_v18, %v9058_v22  ;;  %v11902_v9 = vld [vmem:[#allocation193_spill] sm:$0xff]  ;;  %v9329_v22 = vpop.permute.xlu1 %2782 }
 0x490   :  { %11893 = vst [vmem:[#allocation178_spill] sm:$0xff] %v9291_v48  ;;  %11894 = vst [vmem:[#allocation136_spill] sm:$0xff] %v9297_v55  ;;  %v2651_v48 = vadd.f32 %v11898_v26, %v2382_v57  ;;  %v2652_v28 = vadd.f32 %v11899_v56, %v2383_v20  ;;  %v2389_v29 = vadd.f32 %v2325_v6, %v9061_v61  ;;  %v9344_v57 = vpop.permute.xlu0 %2798  ;;  %v11914_v56 = vld [vmem:[#allocation66_spill] sm:$0xff] }
 0x491   :  { %11896 = vst [vmem:[#allocation44_spill] sm:$0xff] %v9300_v16  ;;  %v9315_v55 = vadd.f32 %v11900_v35, %v2647_v17  ;;  %v9318_v51 = vadd.f32 %v11902_v9, %v2648_v40  ;;  %v9320_v16 = vadd.f32 %v2848_v4, %v2643_v45  ;;  %v9322_v37 = vadd.f32 %v2849_v47, %v2644_v1  ;;  %v11908_v35 = vld [vmem:[#allocation137_spill] sm:$0xff]  ;;  %v11915_v17 = vld [vmem:[#allocation63_spill] sm:$0xff]  ;;  %v11920_v4 = vld [vmem:[#allocation200_spill] sm:$0xff] }
 0x492   :  { %6152 = vset.pattern.permute.xlu1 %v11803_v3  ;;  %v9326_v62 = vmul.f32 %v8089_v27, %v8980_v31  ;;  %v2390_v26 = vadd.f32 %v2326_v54, %v9064_v15  ;;  %11906 = vst [vmem:[#allocation133_spill] sm:$0xff] %v9329_v22  ;;  %v9333_v61 = vmul.f32 %v8097_v7, %v8980_v31  ;;  %11911 = vst [vmem:[#allocation187_spill] sm:$0xff] %v9344_v57  ;;  %v11921_v54 = vld [vmem:[#allocation197_spill] sm:$0xff]  ;;  %v11923_v9 = vld [vmem:[#allocation147_spill] sm:$0xff] }
 0x493   :  { %2802 = vperm.xlu1 %6152, %v9248_v49   ;;  %11901 = vst [vmem:[#allocation182_spill] sm:$0xff] %v9315_v55  ;;  %11903 = vst [vmem:[#allocation131_spill] sm:$0xff] %v9318_v51  ;;  %v9337_v18 = vmul.f32 %v11806_v63, %v11908_v35  ;;  %v9341_v40 = vmul.f32 %v11808_v44, %v11908_v35  ;;  %v2391_v1 = vadd.f32 %v2327_v5, %v9067_v50  ;;  %v9362_v50 = vld [vmem:[%s11063_s1 + $0xf0] sm:$0xff]  ;;  %v11935_v22 = vld [vmem:[#allocation172_spill] sm:$0xff] }
 0x494   :  { %11904 = vst [vmem:[#allocation167_spill] sm:$0xff] %v9320_v16  ;;  %11905 = vst [vmem:[#allocation168_spill] sm:$0xff] %v9326_v62  ;;  %v9349_v15 = vmul.f32 %v8089_v27, %v9036_v2  ;;  %v9353_v31 = vmul.f32 %v8097_v7, %v9036_v2  ;;  %v2657_v45 = vadd.f32 %v11914_v56, %v2388_v30  ;;  %v11973_v51 = vld [vmem:[#allocation175_spill] sm:$0xff] }
 0x495   :  { %11907 = vst [vmem:[#allocation51_spill] sm:$0xff] %v9333_v61  ;;  %11909 = vst [vmem:[#allocation102_spill] sm:$0xff] %v9337_v18  ;;  %v9357_v20 = vadd.f32 %v11915_v17, %v2651_v48  ;;  %v2658_v47 = vadd.f32 %v11920_v4, %v2389_v29  ;;  %v9375_v48 = vadd.f32 %v11921_v54, %v2652_v28  ;;  %v9384_v17 = vpop.xlane.xlu1 %1422  ;;  %v11927_v54 = vld [vmem:[#allocation149_spill] sm:$0xff]  ;;  %v11974_v61 = vld [vmem:[#allocation210_spill] sm:$0xff] }
 0x496   :  { %11910 = vst [vmem:[#allocation78_spill] sm:$0xff] %v9341_v40  ;;  %11912 = vst [vmem:[#allocation139_spill] sm:$0xff] %v9349_v15  ;;  %v2864_v5 = vmul.f32 %v8089_v27, %v9088_v60  ;;  %v2659_v30 = vadd.f32 %v8873_v11, %v2390_v26  ;;  %v3093_v35 = vmul.f32 %v8734_v41, %v11923_v9  ;;  %v11975_v40 = vmax.f32 %v11974_v61, 0.0 }
 0x497   :  { %6153 = vset.pattern.permute.xlu1 %v11810_v42  ;;  %11913 = vst [vmem:[#allocation55_spill] sm:$0xff] %v9353_v31  ;;  %11916 = vst [vmem:[#allocation191_spill] sm:$0xff] %v9357_v20  ;;  %v11917_v42 = vld [vmem:[#allocation138_spill] sm:$0xff]  ;;  %v3094_v56 = vmul.f32 %v8737_v12, %v11923_v9  ;;  %v9390_v28 = vmul.f32 %v8089_v27, %v9149_v14  ;;  %v9394_v29 = vmul.f32 %v8097_v7, %v9149_v14  ;;  %v11928_v9 = vld [vmem:[#allocation71_spill] sm:$0xff] }
 0x498   :  { %1987 = vperm.xlu1 %6153, %v9362_v50   ;;  %v9367_v6 = vmul.f32 %v11806_v63, %v11917_v42  ;;  %v9371_v2 = vmul.f32 %v11808_v44, %v11917_v42  ;;  %11922 = vst [vmem:[#allocation135_spill] sm:$0xff] %v9375_v48  ;;  %11924 = vst [vmem:[#allocation62_spill] sm:$0xff] %v9384_v17  ;;  %v2865_v42 = vmul.f32 %v8097_v7, %v9088_v60  ;;  %v11930_v14 = vld [vmem:[#allocation141_spill] sm:$0xff]  ;;  %v11937_v48 = vld [vmem:[#allocation142_spill] sm:$0xff] }
 0x499   :  { %v2660_v11 = vadd.f32 %v8884_v52, %v2391_v1  ;;  %v9399_v26 = vmul.f32 %v8089_v27, %v9211_v10  ;;  %v9403_v4 = vmul.f32 %v8097_v7, %v9211_v10  ;;  %v3098_v60 = vmul.f32 %v8737_v12, %v11927_v54  ;;  %v1948_v1 = vpop.permute.xlu0 %1947  ;;  %v11959_v20 = vld [vmem:[#allocation72_spill] sm:$0xff] }
 0x49a   :  { %11918 = vst [vmem:[#allocation140_spill] sm:$0xff] %v9367_v6  ;;  %11919 = vst [vmem:[#allocation101_spill] sm:$0xff] %v9371_v2  ;;  %v9408_v17 = vadd.f32 %v11928_v9, %v2657_v45  ;;  %v9413_v57 = vmul.f32 %v11806_v63, %v11930_v14  ;;  %v9417_v52 = vmul.f32 %v11808_v44, %v11930_v14  ;;  %v11934_v45 = vld [vmem:[#allocation169_spill] sm:$0xff]  ;;  %v1843_v14 = vpop.permute.xlu1 %1842  ;;  %v11960_v31 = vmax.f32 %v11959_v20, 0.0 }
 0x49b   :  { %11925 = vst [vmem:[#allocation194_spill] sm:$0xff] %v9399_v26  ;;  %11926 = vst [vmem:[#allocation59_spill] sm:$0xff] %v9403_v4  ;;  %v9421_v10 = vmul.f32 %v8097_v7, %v9276_v38  ;;  %v11932_v26 = vld [vmem:[#allocation207_spill] sm:$0xff]  ;;  %v3157_v9 = vadd.f32 %v3093_v35, %v11934_v45  ;;  %v3097_v15 = vmul.f32 %v8734_v41, %v11927_v54  ;;  %v11943_v45 = vld [vmem:[#allocation157_spill] sm:$0xff] }
 0x49c   :  { %11929 = vst [vmem:[#allocation193_spill] sm:$0xff] %v9408_v17  ;;  %6155 = vset.pattern.permute.xlu1 %v11504_v21  ;;  %v9424_v4 = vadd.f32 %v11932_v26, %v2658_v47  ;;  %v3158_v17 = vadd.f32 %v3094_v56, %v11935_v22  ;;  %v9431_v6 = vadd.f32 %v2864_v5, %v2659_v30  ;;  %v11941_v56 = vld [vmem:[#allocation143_spill] sm:$0xff]  ;;  %v11966_v20 = vld [vmem:[#allocation33_spill] sm:$0xff] }
 0x49d   :  { %11931 = vst [vmem:[#allocation137_spill] sm:$0xff] %v9421_v10  ;;  %3067 = vperm.xlu1 %6155, %v9014_v24   ;;  %v9435_v38 = vmul.f32 %v11806_v63, %v11937_v48  ;;  %v9437_v10 = vadd.f32 %v2865_v42, %v2660_v11  ;;  %v2008_v47 = vmul.f32 %v8011_v32, %v1843_v14  ;;  %v11942_v42 = vld [vmem:[#allocation160_spill] sm:$0xff] }
 0x49e   :  { %11933 = vst [vmem:[#allocation66_spill] sm:$0xff] %v9424_v4  ;;  %11936 = vst [vmem:[#allocation63_spill] sm:$0xff] %v9431_v6  ;;  %v2009_v24 = vmul.f32 %v8017_v8, %v1843_v14  ;;  %v9443_v35 = vmul.f32 %v11808_v44, %v11937_v48  ;;  %v2050_v22 = vmul.f32 %v8011_v32, %v1948_v1  ;;  %v11944_v48 = vld [vmem:[#allocation144_spill] sm:$0xff]  ;;  %v1853_v44 = vpop.permute.xlu1 %1852  ;;  %v11953_v6 = vld [vmem:[#allocation153_spill] sm:$0xff] }
 0x49f   :  { %11938 = vst [vmem:[#allocation138_spill] sm:$0xff] %v9435_v38  ;;  %11939 = vst [vmem:[#allocation200_spill] sm:$0xff] %v9437_v10  ;;  %v2051_v5 = vmul.f32 %v8017_v8, %v1948_v1  ;;  %v3162_v30 = vadd.f32 %v3098_v60, %v9155_v13  ;;  %v9450_v26 = vmul.f32 %v8064_v25, %v11941_v56  ;;  %v3221_v1 = vmax.f32 %v3157_v9, 0.0  ;;  %v11946_v63 = vld [vmem:[#allocation128_spill] sm:$0xff] }
 0x4a0   :  { %11940 = vst [vmem:[#allocation197_spill] sm:$0xff] %v9443_v35  ;;  %v9454_v11 = vmul.f32 %v11942_v42, %v11941_v56  ;;  %v2083_v54 = vadd.f32 %v8042_v39, %v2008_v47  ;;  %v2084_v14 = vadd.f32 %v11943_v45, %v2009_v24  ;;  %v9461_v38 = vmul.f32 %v8064_v25, %v11944_v48  ;;  %v11947_v56 = vld [vmem:[#allocation122_spill] sm:$0xff] }
 0x4a1   :  { %3071 = vperm.xlu1 %6155, %v9248_v49   ;;  %v3222_v13 = vmax.f32 %v3158_v17, 0.0  ;;  %v9464_v60 = vadd.f32 %v3097_v15, %v9152_v0  ;;  %v2012_v47 = vmul.f32 %v8011_v32, %v1853_v44  ;;  %v2013_v24 = vmul.f32 %v8017_v8, %v1853_v44  ;;  %v11949_v15 = vld [vmem:[#allocation17_spill] sm:$0xff] }
 0x4a2   :  { %11945 = vst [vmem:[#allocation147_spill] sm:$0xff] %v9461_v38  ;;  %v2352_v35 = vadd.f32 %v11946_v63, %v2083_v54  ;;  %v2353_v10 = vadd.f32 %v11947_v56, %v2084_v14  ;;  %v9471_v49 = vadd.f32 %v8042_v39, %v2050_v22  ;;  %v9474_v25 = vadd.f32 %v11943_v45, %v2051_v5  ;;  %v11950_v63 = vld [vmem:[#allocation165_spill] sm:$0xff] }
 0x4a3   :  { %v9478_v17 = vmul.f32 %v11942_v42, %v11944_v48  ;;  %v3226_v0 = vmax.f32 %v3162_v30, 0.0  ;;  %v2087_v14 = vadd.f32 %v8042_v39, %v2012_v47  ;;  %v2088_v56 = vadd.f32 %v11943_v45, %v2013_v24  ;;  %v11951_v44 = vld [vmem:[#allocation205_spill] sm:$0xff]  ;;  %v11956_v24 = vld [vmem:[#allocation20_spill] sm:$0xff] }
 0x4a4   :  { %v2621_v9 = vadd.f32 %v11949_v15, %v2352_v35  ;;  %v2622_v54 = vadd.f32 %v11950_v63, %v2353_v10  ;;  %v11952_v22 = vmax.f32 %v11951_v44, 0.0  ;;  %v3099_v48 = vmul.f32 %v8734_v41, %v11953_v6  ;;  %v9495_v35 = vld [vmem:[%s11063_s1 + $0xf8] sm:$0xff]  ;;  %v1858_v10 = vpop.permute.xlu1 %1857  ;;  %v11954_v30 = vld [vmem:[#allocation209_spill] sm:$0xff] }
 0x4a5   :  { %11948 = vst [vmem:[#allocation149_spill] sm:$0xff] %v9478_v17  ;;  %6156 = vset.pattern.permute.xlu1 %v11482_v36  ;;  %v11955_v47 = vmax.f32 %v11954_v30, 0.0  ;;  %v11957_v63 = vld [vmem:[#allocation201_spill] sm:$0xff]  ;;  %v3100_v5 = vmul.f32 %v8737_v12, %v11953_v6  ;;  %v2015_v42 = vmul.f32 %v8017_v8, %v1858_v10  ;;  %v11958_v17 = vld [vmem:[#allocation170_spill] sm:$0xff]  ;;  %v9510_v2 = vadd.f32 %v3226_v0, %v11960_v31  ;;  %v11965_v6 = vld [vmem:[#allocation16_spill] sm:$0xff] }
 0x4a6   :  { %v9487_v38 = vadd.f32 %v3221_v1, %v11952_v22  ;;  %2272 = vperm.xlu1 %6156, %v9495_v35   ;;  %v2890_v15 = vadd.f32 %v11956_v24, %v2621_v9  ;;  %v2356_v1 = vadd.f32 %v9126_v53, %v2087_v14  ;;  %v2357_v44 = vadd.f32 %v11957_v63, %v2088_v56  ;;  %v11962_v9 = vld [vmem:[#allocation22_spill] sm:$0xff]  ;;  %v11963_v53 = vld [vmem:[#allocation173_spill] sm:$0xff]  ;;  %v11964_v24 = vld [vmem:[#allocation15_spill] sm:$0xff] }
 0x4a7   :  { %v3286_v36 = vadd.f32 %v3222_v13, %v11955_v47  ;;  %v2014_v22 = vmul.f32 %v8011_v32, %v1858_v10  ;;  %v2891_v4 = vadd.f32 %v11958_v17, %v2622_v54  ;;  %v11961_v13 = vld [vmem:[#allocation30_spill] sm:$0xff]  ;;  %v3101_v63 = vmul.f32 %v8734_v41, %v11964_v24 }
 0x4a8   :  { %v3159_v30 = vadd.f32 %v11961_v13, %v2890_v15  ;;  %v2625_v47 = vadd.f32 %v11962_v9, %v2356_v1  ;;  %v2626_v14 = vadd.f32 %v11963_v53, %v2357_v44  ;;  %v3104_v10 = vmul.f32 %v8737_v12, %v11965_v6  ;;  %v1873_v31 = vpop.permute.xlu1 %1872  ;;  %v11967_v15 = vld [vmem:[#allocation124_spill] sm:$0xff]  ;;  %v11968_v53 = vld [vmem:[#allocation166_spill] sm:$0xff] }
 0x4a9   :  { %v2089_v56 = vadd.f32 %v8042_v39, %v2014_v22  ;;  %v2090_v17 = vadd.f32 %v11943_v45, %v2015_v42  ;;  %v3160_v0 = vadd.f32 %v11966_v20, %v2891_v4  ;;  %v2020_v44 = vmul.f32 %v8011_v32, %v1873_v31  ;;  %v11969_v42 = vld [vmem:[#allocation61_spill] sm:$0xff] }
 0x4aa   :  { %6157 = vset.pattern.permute.xlu1 %v11498_v59  ;;  %v3223_v54 = vmax.f32 %v3159_v30, 0.0  ;;  %v2021_v22 = vmul.f32 %v8017_v8, %v1873_v31  ;;  %v2895_v62 = vadd.f32 %v11968_v53, %v2626_v14  ;;  %v2894_v18 = vadd.f32 %v11969_v42, %v2625_v47  ;;  %v11970_v59 = vld [vmem:[#allocation24_spill] sm:$0xff]  ;;  %v11982_v53 = vld [vmem:[#allocation171_spill] sm:$0xff] }
 0x4ab   :  { %v2358_v1 = vadd.f32 %v11967_v15, %v2089_v56  ;;  %2537 = vperm.xlu1 %6157, %v9362_v50   ;;  %v2359_v13 = vadd.f32 %v9163_v58, %v2090_v17  ;;  %v3224_v9 = vmax.f32 %v3160_v0, 0.0  ;;  %v2095_v4 = vadd.f32 %v8042_v39, %v2020_v44  ;;  %v11971_v56 = vld [vmem:[#allocation211_spill] sm:$0xff] }
 0x4ac   :  { %v2096_v30 = vadd.f32 %v11943_v45, %v2021_v22  ;;  %v11972_v20 = vmax.f32 %v11971_v56, 0.0  ;;  %v1883_v16 = vpop.permute.xlu1 %1882  ;;  %v3164_v17 = vadd.f32 %v3100_v5, %v2895_v62  ;;  %v3163_v0 = vadd.f32 %v3099_v48, %v2894_v18  ;;  %v11976_v18 = vld [vmem:[#allocation125_spill] sm:$0xff] }
 0x4ad   :  { %v2627_v55 = vadd.f32 %v11970_v59, %v2358_v1  ;;  %v2628_v31 = vadd.f32 %v11973_v51, %v2359_v13  ;;  %v3288_v58 = vadd.f32 %v3224_v9, %v11975_v40  ;;  %v3168_v14 = vadd.f32 %v3104_v10, %v9214_v43  ;;  %v11978_v10 = vld [vmem:[#allocation212_spill] sm:$0xff]  ;;  %v11981_v13 = vld [vmem:[#allocation26_spill] sm:$0xff] }
 0x4ae   :  { %v3287_v15 = vadd.f32 %v3223_v54, %v11972_v20  ;;  %v2365_v47 = vadd.f32 %v9192_v46, %v2096_v30  ;;  %v2024_v1 = vmul.f32 %v8011_v32, %v1883_v16  ;;  %v2025_v44 = vmul.f32 %v8017_v8, %v1883_v16  ;;  %v11977_v16 = vld [vmem:[#allocation18_spill] sm:$0xff] }
 0x4af   :  { %6159 = vset.pattern.permute.xlu1 %v11803_v3  ;;  %v3102_v54 = vmul.f32 %v8737_v12, %v11964_v24  ;;  %v3350_v51 = vpack.c.bf16 %v3288_v58, %v3286_v36  ;;  %v3228_v62 = vmax.f32 %v3164_v17, 0.0  ;;  %v3103_v43 = vmul.f32 %v8734_v41, %v11965_v6 }
 0x4b0   :  { %2806 = vperm.xlu1 %6159, %v9362_v50   ;;  %v3349_v61 = vpack.c.bf16 %v3287_v15, %v9487_v38  ;;  %v2364_v46 = vadd.f32 %v11976_v18, %v2095_v4  ;;  %v2100_v40 = vadd.f32 %v11943_v45, %v2025_v44  ;;  %v3227_v5 = vmax.f32 %v3163_v0, 0.0  ;;  %v11980_v50 = vld [vmem:[#allocation177_spill] sm:$0xff] }
 0x4b1   :  { %v2634_v48 = vadd.f32 %v11977_v16, %v2365_v47  ;;  %3616 = vmatprep.mubr.bf16.mxu1 %v3350_v51  ;;  %v1893_v3 = vpop.permute.xlu1 %1892  ;;  %v11979_v24 = vmax.f32 %v11978_v10, 0.0  ;;  %v2897_v36 = vadd.f32 %v11980_v50, %v2628_v31  ;;  %v2896_v38 = vadd.f32 %v11981_v13, %v2627_v55  ;;  %v11983_v55 = vld [vmem:[#allocation56_spill] sm:$0xff]  ;;  %v11984_v31 = vld [vmem:[#allocation213_spill] sm:$0xff] }
 0x4b2   :  { %v3232_v9 = vmax.f32 %v3168_v14, 0.0  ;;  %v3106_v6 = vmul.f32 %v8737_v12, %v11982_v53  ;;  %v2099_v42 = vadd.f32 %v8042_v39, %v2024_v1  ;;  %v2029_v59 = vmul.f32 %v8017_v8, %v1893_v3  ;;  %3617 = vmatmul.mubr.bf16.vlgmr.msra.gmra.mrb[32].mxu1 %v3349_v61  ;;  %v11987_v14 = vld [vmem:[#allocation74_spill] sm:$0xff]  ;;  %v11989_v51 = vld [vmem:[#allocation180_spill] sm:$0xff]  ;;  %v11994_v10 = vld [vmem:[#allocation73_spill] sm:$0xff] }
 0x4b3   :  { %v3292_v22 = vadd.f32 %v3228_v62, %v11979_v24  ;;  %v2394_v4 = vadd.f32 %v9413_v57, %v9471_v49  ;;  %v2369_v30 = vadd.f32 %v9208_v34, %v2100_v40  ;;  %v3166_v20 = vadd.f32 %v3102_v54, %v2897_v36  ;;  %v11990_v54 = vld [vmem:[#allocation179_spill] sm:$0xff]  ;;  %v11997_v36 = vld [vmem:[#allocation108_spill] sm:$0xff] }
 0x4b4   :  { %2810 = vperm.xlu1 %6159, %v9495_v35   ;;  %v2633_v15 = vadd.f32 %v11983_v55, %v2364_v46  ;;  %v11985_v58 = vmax.f32 %v11984_v31, 0.0  ;;  %v11986_v17 = vmax.f32 %v9464_v60, 0.0  ;;  %v11988_v47 = vmax.f32 %v11987_v14, 0.0  ;;  %v11991_v62 = vld [vmem:[#allocation23_spill] sm:$0xff]  ;;  %v11992_v46 = vld [vmem:[#allocation126_spill] sm:$0xff] }
 0x4b5   :  { %v3352_v56 = vpack.c.bf16 %v3292_v22, %v9510_v2  ;;  %v3165_v44 = vadd.f32 %v3101_v63, %v2896_v38  ;;  %v3108_v57 = vmul.f32 %v8737_v12, %v11989_v51  ;;  %v2104_v34 = vadd.f32 %v11943_v45, %v2029_v59  ;;  %v1903_v49 = vpop.permute.xlu1 %1902  ;;  %v11993_v60 = vld [vmem:[#allocation99_spill] sm:$0xff]  ;;  %v11996_v63 = vld [vmem:[#allocation164_spill] sm:$0xff] }
 0x4b6   :  { %v3289_v0 = vadd.f32 %v11986_v17, %v11985_v58  ;;  %v3291_v1 = vadd.f32 %v3227_v5, %v11988_v47  ;;  %v3230_v2 = vmax.f32 %v3166_v20, 0.0  ;;  %v2903_v61 = vadd.f32 %v11990_v54, %v2634_v48  ;;  %v12000_v17 = vld [vmem:[#allocation189_spill] sm:$0xff]  ;;  %v12003_v47 = vld [vmem:[#allocation58_spill] sm:$0xff] }
 0x4b7   :  { %3626 = vmatprep.mubr.bf16.mxu1 %v3352_v56  ;;  %v3167_v18 = vadd.f32 %v3103_v43, %v11991_v62  ;;  %v3170_v40 = vadd.f32 %v3106_v6, %v11992_v46  ;;  %v2368_v16 = vadd.f32 %v11993_v60, %v2099_v42  ;;  %v11995_v24 = vmax.f32 %v11994_v10, 0.0  ;;  %v11999_v42 = vld [vmem:[#allocation37_spill] sm:$0xff] }
 0x4b8   :  { %v2638_v22 = vadd.f32 %v11996_v63, %v2369_v30  ;;  %v2028_v50 = vmul.f32 %v8011_v32, %v1893_v3  ;;  %6161 = vset.pattern.permute.xlu1 %v11504_v21  ;;  %v11998_v13 = vmax.f32 %v11997_v36, 0.0  ;;  %v3172_v59 = vadd.f32 %v3108_v57, %v2903_v61  ;;  %v12006_v54 = vld [vmem:[#allocation185_spill] sm:$0xff] }
 0x4b9   :  { %v3296_v5 = vadd.f32 %v3232_v9, %v11995_v24  ;;  %v2033_v48 = vmul.f32 %v8017_v8, %v1903_v49  ;;  %3079 = vperm.xlu1 %6161, %v9495_v35   ;;  %v3351_v43 = vpack.c.bf16 %v3291_v1, %v3289_v0  ;;  %v3229_v6 = vmax.f32 %v3165_v44, 0.0  ;;  %v9592_v3 = vpop.permute.xlu1 %1912  ;;  %v12001_v0 = vld [vmem:[#allocation65_spill] sm:$0xff]  ;;  %v12004_v44 = vld [vmem:[#allocation215_spill] sm:$0xff] }
 0x4ba   :  { %v3294_v38 = vadd.f32 %v3230_v2, %v11998_v13  ;;  %v2902_v56 = vadd.f32 %v11999_v42, %v2633_v15  ;;  %v2395_v9 = vadd.f32 %v9417_v52, %v9474_v25  ;;  %v2373_v30 = vadd.f32 %v9237_v33, %v2104_v34  ;;  %v12002_v52 = vld [vmem:[#allocation183_spill] sm:$0xff]  ;;  %v12009_v24 = vld [vmem:[#allocation145_spill] sm:$0xff]  ;;  %v12017_v42 = vld [vmem:[#allocation134_spill] sm:$0xff] }
 0x4bb   :  { %v3236_v20 = vmax.f32 %v3172_v59, 0.0  ;;  %v3231_v55 = vmax.f32 %v3167_v18, 0.0  ;;  %v3105_v31 = vmul.f32 %v8734_v41, %v11982_v53  ;;  %v3234_v58 = vmax.f32 %v3170_v40, 0.0  ;;  %3627 = vmatmul.mubr.bf16.gmra.mrb[36].mxu1 %v3351_v43  ;;  %v12007_v18 = vld [vmem:[#allocation28_spill] sm:$0xff]  ;;  %v12014_v13 = vld [vmem:[#allocation41_spill] sm:$0xff] }
 0x4bc   :  { %v3354_v21 = vpack.c.bf16 %v3296_v5, %v3294_v38  ;;  %v3107_v35 = vmul.f32 %v8734_v41, %v11989_v51  ;;  %v3110_v15 = vmul.f32 %v8737_v12, %v12000_v17  ;;  %v3112_v25 = vmul.f32 %v8737_v12, %v12001_v0  ;;  %v12010_v5 = vld [vmem:[#allocation97_spill] sm:$0xff] }
 0x4bd   :  { %v2103_v33 = vadd.f32 %v8042_v39, %v2028_v50  ;;  %v2907_v14 = vadd.f32 %v12002_v52, %v2638_v22  ;;  %v2637_v1 = vadd.f32 %v12003_v47, %v2368_v16  ;;  %v2108_v53 = vadd.f32 %v11943_v45, %v2033_v48  ;;  %v9610_v62 = vpop.permute.xlu1 %1922  ;;  %v12011_v22 = vld [vmem:[#allocation76_spill] sm:$0xff]  ;;  %v12015_v48 = vld [vmem:[#allocation75_spill] sm:$0xff] }
 0x4be   :  { %3636 = vmatprep.mubr.bf16.mxu1 %v3354_v21  ;;  %v12005_v57 = vmax.f32 %v12004_v44, 0.0  ;;  %v3171_v51 = vadd.f32 %v3107_v35, %v2902_v56  ;;  %v2663_v2 = vadd.f32 %v9450_v26, %v2394_v4  ;;  %v2642_v61 = vadd.f32 %v12006_v54, %v2373_v30  ;;  %v12013_v26 = vld [vmem:[#allocation176_spill] sm:$0xff]  ;;  %v12018_v30 = vld [vmem:[#allocation47_spill] sm:$0xff] }
 0x4bf   :  { %v12008_v46 = vmax.f32 %v12007_v18, 0.0  ;;  %v3176_v60 = vadd.f32 %v3112_v25, %v2907_v14  ;;  %v2664_v10 = vadd.f32 %v9454_v11, %v2395_v9  ;;  %v9617_v16 = vmul.f32 %v8089_v27, %v12009_v24  ;;  %v12020_v47 = vld [vmem:[#allocation204_spill] sm:$0xff] }
 0x4c0   :  { %v3293_v34 = vadd.f32 %v3229_v6, %v12005_v57  ;;  %v3169_v63 = vadd.f32 %v3105_v31, %v12010_v5  ;;  %v12012_v50 = vmax.f32 %v12011_v22, 0.0  ;;  %v3174_v4 = vadd.f32 %v3110_v15, %v12013_v26  ;;  %v12019_v15 = vld [vmem:[#allocation186_spill] sm:$0xff]  ;;  %v12026_v5 = vld [vmem:[#allocation29_spill] sm:$0xff] }
 0x4c1   :  { %v3300_v40 = vadd.f32 %v3236_v20, %v12008_v46  ;;  %v2372_v38 = vadd.f32 %v12014_v13, %v2103_v33  ;;  %v2032_v59 = vmul.f32 %v8011_v32, %v1903_v49  ;;  %v12016_v43 = vmax.f32 %v12015_v48, 0.0  ;;  %v9631_v31 = vpop.permute.xlu1 %1927  ;;  %v12025_v46 = vld [vmem:[#allocation188_spill] sm:$0xff] }
 0x4c2   :  { %v3295_v36 = vadd.f32 %v3231_v55, %v12012_v50  ;;  %v2377_v11 = vadd.f32 %v12017_v42, %v2108_v53  ;;  %v3235_v9 = vmax.f32 %v3171_v51, 0.0  ;;  %v2906_v21 = vadd.f32 %v12018_v30, %v2637_v1  ;;  %v12021_v53 = vld [vmem:[#allocation208_spill] sm:$0xff]  ;;  %v12022_v51 = vld [vmem:[#allocation49_spill] sm:$0xff]  ;;  %v1958_v30 = vpop.permute.xlu0 %1957 }
 0x4c3   :  { %v3298_v6 = vadd.f32 %v3234_v58, %v12016_v43  ;;  %v2037_v20 = vmul.f32 %v8017_v8, %v9592_v3  ;;  %v3240_v35 = vmax.f32 %v3176_v60, 0.0  ;;  %v2911_v25 = vadd.f32 %v12019_v15, %v2642_v61  ;;  %v12032_v43 = vld [vmem:[#allocation35_spill] sm:$0xff] }
 0x4c4   :  { %v3353_v56 = vpack.c.bf16 %v3295_v36, %v3293_v34  ;;  %v9636_v49 = vmul.f32 %v8097_v7, %v12009_v24  ;;  %v3233_v58 = vmax.f32 %v3169_v63, 0.0  ;;  %v3109_v33 = vmul.f32 %v8734_v41, %v12000_v17  ;;  %v12023_v17 = vld [vmem:[#allocation112_spill] sm:$0xff]  ;;  %v12028_v36 = vld [vmem:[#allocation25_spill] sm:$0xff] }
 0x4c5   :  { %v3356_v55 = vpack.c.bf16 %v3300_v40, %v3298_v6  ;;  %v3111_v52 = vmul.f32 %v8734_v41, %v12001_v0  ;;  %v3238_v14 = vmax.f32 %v3174_v4, 0.0  ;;  %v3114_v1 = vmul.f32 %v8737_v12, %v12020_v47  ;;  %v9655_v24 = vpop.permute.xlu1 %1942  ;;  %v12029_v4 = vld [vmem:[#allocation111_spill] sm:$0xff] }
 0x4c6   :  { %3637 = vmatmul.mubr.bf16.gmra.mrb[40].mxu1 %v3353_v56  ;;  %v3116_v44 = vmul.f32 %v8737_v12, %v12021_v53  ;;  %v2107_v57 = vadd.f32 %v8042_v39, %v2032_v59  ;;  %v9648_v34 = vadd.f32 %v9390_v28, %v2663_v2  ;;  %v2641_v54 = vadd.f32 %v12022_v51, %v2372_v38  ;;  %v12031_v59 = vld [vmem:[#allocation127_spill] sm:$0xff] }
 0x4c7   :  { %3646 = vmatprep.mubr.bf16.mxu1 %v3356_v55  ;;  %v12024_v61 = vmax.f32 %v12023_v17, 0.0  ;;  %v3175_v0 = vadd.f32 %v3111_v52, %v2906_v21  ;;  %v2646_v40 = vadd.f32 %v12025_v46, %v2377_v11  ;;  %v2112_v60 = vadd.f32 %v11943_v45, %v2037_v20  ;;  %v12033_v11 = vld [vmem:[#allocation77_spill] sm:$0xff] }
 0x4c8   :  { %v12027_v63 = vmax.f32 %v12026_v5, 0.0  ;;  %v3180_v50 = vadd.f32 %v3116_v44, %v2911_v25  ;;  %v3173_v26 = vadd.f32 %v3109_v33, %v12028_v36  ;;  %v3113_v28 = vmul.f32 %v8734_v41, %v12020_v47  ;;  %v12036_v33 = vld [vmem:[#allocation190_spill] sm:$0xff]  ;;  %v12037_v47 = vld [vmem:[#allocation181_spill] sm:$0xff] }
 0x4c9   :  { %v3299_v18 = vadd.f32 %v3235_v9, %v12024_v61  ;;  %v9663_v2 = vadd.f32 %v9394_v29, %v2664_v10  ;;  %v12030_v13 = vmax.f32 %v12029_v4, 0.0  ;;  %v3178_v48 = vadd.f32 %v3114_v1, %v12031_v59  ;;  %v12035_v10 = vld [vmem:[#allocation50_spill] sm:$0xff]  ;;  %v9677_v15 = vpop.permute.xlu1 %1952 }
 0x4ca   :  { %v3304_v22 = vadd.f32 %v3240_v35, %v12027_v63  ;;  %v2376_v6 = vadd.f32 %v12032_v43, %v2107_v57  ;;  %v2036_v42 = vmul.f32 %v8011_v32, %v9592_v3  ;;  %v12034_v56 = vmax.f32 %v12033_v11, 0.0  ;;  %v12038_v44 = vld [vmem:[#allocation214_spill] sm:$0xff]  ;;  %v12046_v43 = vld [vmem:[#allocation152_spill] sm:$0xff]  ;;  %v12048_v11 = vld [vmem:[#allocation107_spill] sm:$0xff] }
 0x4cb   :  { %v3297_v38 = vadd.f32 %v3233_v58, %v12030_v13  ;;  %v2041_v21 = vmul.f32 %v8017_v8, %v9610_v62  ;;  %v3239_v29 = vmax.f32 %v3175_v0, 0.0  ;;  %v2910_v55 = vadd.f32 %v12035_v10, %v2641_v54  ;;  %v12039_v54 = vld [vmem:[#allocation148_spill] sm:$0xff]  ;;  %v12051_v10 = vld [vmem:[#allocation78_spill] sm:$0xff] }
 0x4cc   :  { %v3302_v9 = vadd.f32 %v3238_v14, %v12034_v56  ;;  %v2381_v35 = vadd.f32 %v9308_v23, %v2112_v60  ;;  %v3244_v58 = vmax.f32 %v3180_v50, 0.0  ;;  %v2915_v52 = vadd.f32 %v12036_v33, %v2646_v40  ;;  %v12041_v40 = vld [vmem:[#allocation113_spill] sm:$0xff] }
 0x4cd   :  { %v3355_v20 = vpack.c.bf16 %v3299_v18, %v3297_v38  ;;  %v3237_v3 = vmax.f32 %v3173_v26, 0.0  ;;  %v3177_v1 = vadd.f32 %v3113_v28, %v12037_v47  ;;  %v3115_v14 = vmul.f32 %v8734_v41, %v12021_v53  ;;  %v12040_v18 = vld [vmem:[#allocation52_spill] sm:$0xff]  ;;  %v9695_v36 = vpop.permute.xlu1 %1962 }
 0x4ce   :  { %v3358_v25 = vpack.c.bf16 %v3304_v22, %v3302_v9  ;;  %v3118_v57 = vmul.f32 %v8737_v12, %v12038_v44  ;;  %v3242_v51 = vmax.f32 %v3178_v48, 0.0  ;;  %v3120_v23 = vmul.f32 %v8737_v12, %v12039_v54  ;;  %v12043_v22 = vld [vmem:[#allocation192_spill] sm:$0xff] }
 0x4cf   :  { %3647 = vmatmul.mubr.bf16.gmra.mrb[44].mxu1 %v3355_v20  ;;  %v2054_v17 = vmul.f32 %v8011_v32, %v1958_v30  ;;  %v2111_v61 = vadd.f32 %v8042_v39, %v2036_v42  ;;  %v2645_v0 = vadd.f32 %v12040_v18, %v2376_v6  ;;  %v2116_v46 = vadd.f32 %v11943_v45, %v2041_v21  ;;  %v12044_v26 = vld [vmem:[#allocation32_spill] sm:$0xff]  ;;  %v12049_v21 = vld [vmem:[#allocation34_spill] sm:$0xff]  ;;  %v12056_v18 = vld [vmem:[#allocation31_spill] sm:$0xff] }
 0x4d0   :  { %3656 = vmatprep.mubr.bf16.mxu1 %v3358_v25  ;;  %v12042_v60 = vmax.f32 %v12041_v40, 0.0  ;;  %v3179_v5 = vadd.f32 %v3115_v14, %v2910_v55  ;;  %v2055_v63 = vmul.f32 %v8017_v8, %v1958_v30  ;;  %v2650_v50 = vadd.f32 %v12043_v22, %v2381_v35  ;;  %v12054_v14 = vld [vmem:[#allocation167_spill] sm:$0xff] }
 0x4d1   :  { %v12045_v28 = vmax.f32 %v12044_v26, 0.0  ;;  %v3184_v13 = vadd.f32 %v3120_v23, %v2915_v52  ;;  %v3241_v38 = vmax.f32 %v3177_v1, 0.0  ;;  %v3117_v59 = vmul.f32 %v8734_v41, %v12038_v44  ;;  %v9715_v52 = vpop.permute.xlu1 %1972  ;;  %v12055_v23 = vld [vmem:[#allocation131_spill] sm:$0xff] }
 0x4d2   :  { %v3303_v53 = vadd.f32 %v3239_v29, %v12042_v60  ;;  %v3182_v48 = vadd.f32 %v3118_v57, %v9322_v37  ;;  %v12047_v6 = vmax.f32 %v12046_v43, 0.0  ;;  %v3122_v56 = vmul.f32 %v8737_v12, %v12048_v11  ;;  %v12057_v60 = vld [vmem:[#allocation57_spill] sm:$0xff] }
 0x4d3   :  { %v3308_v4 = vadd.f32 %v3244_v58, %v12045_v28  ;;  %v2380_v9 = vadd.f32 %v9304_v19, %v2111_v61  ;;  %v2040_v30 = vmul.f32 %v8011_v32, %v9610_v62  ;;  %v12050_v20 = vmax.f32 %v12049_v21, 0.0  ;;  %v12052_v58 = vld [vmem:[#allocation53_spill] sm:$0xff]  ;;  %v12053_v19 = vld [vmem:[#allocation51_spill] sm:$0xff]  ;;  %v12066_v21 = vld [vmem:[#allocation110_spill] sm:$0xff] }
 0x4d4   :  { %v3301_v42 = vadd.f32 %v3237_v3, %v12047_v6  ;;  %v2385_v55 = vadd.f32 %v12051_v10, %v2116_v46  ;;  %v3243_v25 = vmax.f32 %v3179_v5, 0.0  ;;  %v2914_v37 = vadd.f32 %v12052_v58, %v2645_v0  ;;  %v12058_v5 = vld [vmem:[#allocation154_spill] sm:$0xff] }
 0x4d5   :  { %v3306_v29 = vadd.f32 %v3242_v51, %v12050_v20  ;;  %v2043_v33 = vmul.f32 %v8017_v8, %v9631_v31  ;;  %v3248_v47 = vmax.f32 %v3184_v13, 0.0  ;;  %v2919_v1 = vadd.f32 %v12053_v19, %v2650_v50  ;;  %v12060_v50 = vld [vmem:[#allocation36_spill] sm:$0xff]  ;;  %v12067_v20 = vld [vmem:[#allocation114_spill] sm:$0xff] }
 0x4d6   :  { %v3357_v35 = vpack.c.bf16 %v3303_v53, %v3301_v42  ;;  %v3181_v62 = vadd.f32 %v3117_v59, %v12054_v14  ;;  %v3246_v44 = vmax.f32 %v3182_v48, 0.0  ;;  %v3119_v57 = vmul.f32 %v8734_v41, %v12039_v54  ;;  %v12062_v13 = vld [vmem:[#allocation196_spill] sm:$0xff]  ;;  %v9737_v43 = vpop.permute.xlu1 %3051  ;;  %v12071_v14 = vld [vmem:[#allocation101_spill] sm:$0xff] }
 0x4d7   :  { %v3360_v3 = vpack.c.bf16 %v3308_v4, %v3306_v29  ;;  %v3121_v51 = vmul.f32 %v8734_v41, %v12048_v11  ;;  %v3186_v61 = vadd.f32 %v3122_v56, %v12055_v23  ;;  %v3124_v0 = vmul.f32 %v8737_v12, %v12056_v18  ;;  %v12070_v19 = vld [vmem:[#allocation168_spill] sm:$0xff]  ;;  %v12072_v23 = vld [vmem:[#allocation55_spill] sm:$0xff] }
 0x4d8   :  { %3657 = vmatmul.mubr.bf16.gmra.mrb[48].mxu1 %v3357_v35  ;;  %v9727_v46 = vadd.f32 %v8042_v39, %v2054_v17  ;;  %v2115_v40 = vadd.f32 %v8042_v39, %v2040_v30  ;;  %v2649_v53 = vadd.f32 %v12057_v60, %v2380_v9  ;;  %v12059_v22 = vmax.f32 %v12058_v5, 0.0  ;;  %v12063_v17 = vld [vmem:[#allocation39_spill] sm:$0xff]  ;;  %v12065_v30 = vld [vmem:[#allocation182_spill] sm:$0xff] }
 0x4d9   :  { %3666 = vmatprep.mubr.bf16.mxu1 %v3360_v3  ;;  %v12061_v26 = vmax.f32 %v12060_v50, 0.0  ;;  %v3183_v4 = vadd.f32 %v3119_v57, %v2914_v37  ;;  %v2654_v59 = vadd.f32 %v12062_v13, %v2385_v55  ;;  %v2118_v48 = vadd.f32 %v11943_v45, %v2043_v33  ;;  %v12074_v5 = vld [vmem:[#allocation158_spill] sm:$0xff]  ;;  %v12076_v50 = vld [vmem:[#allocation135_spill] sm:$0xff] }
 0x4da   :  { %v3305_v54 = vadd.f32 %v3241_v38, %v12059_v22  ;;  %v12064_v6 = vmax.f32 %v12063_v17, 0.0  ;;  %v3188_v11 = vadd.f32 %v3124_v0, %v2919_v1  ;;  %v3245_v56 = vmax.f32 %v3181_v62, 0.0  ;;  %v9755_v57 = vpop.permute.xlu1 %3055  ;;  %v12079_v17 = vld [vmem:[#allocation38_spill] sm:$0xff] }
 0x4db   :  { %v3307_v28 = vadd.f32 %v3243_v25, %v12061_v26  ;;  %v3185_v9 = vadd.f32 %v3121_v51, %v12065_v30  ;;  %v3125_v38 = vmul.f32 %v8734_v41, %v12066_v21  ;;  %v12068_v29 = vmax.f32 %v12067_v20, 0.0  ;;  %v12069_v25 = vld [vmem:[#allocation102_spill] sm:$0xff] }
 0x4dc   :  { %v3312_v42 = vadd.f32 %v3248_v47, %v12064_v6  ;;  %v3250_v35 = vmax.f32 %v3186_v61, 0.0  ;;  %v3126_v55 = vmul.f32 %v8737_v12, %v12066_v21  ;;  %v2384_v58 = vadd.f32 %v12069_v25, %v2115_v40  ;;  %v12073_v40 = vld [vmem:[#allocation191_spill] sm:$0xff]  ;;  %v12086_v25 = vld [vmem:[#allocation45_spill] sm:$0xff] }
 0x4dd   :  { %v3310_v10 = vadd.f32 %v3246_v44, %v12068_v29  ;;  %v2042_v37 = vmul.f32 %v8011_v32, %v9631_v31  ;;  %v2049_v33 = vmul.f32 %v8017_v8, %v9655_v24  ;;  %v3359_v3 = vpack.c.bf16 %v3307_v28, %v3305_v54  ;;  %v12077_v28 = vld [vmem:[#allocation109_spill] sm:$0xff] }
 0x4de   :  { %v3247_v47 = vmax.f32 %v3183_v4, 0.0  ;;  %v2918_v1 = vadd.f32 %v12070_v19, %v2649_v53  ;;  %v2387_v62 = vadd.f32 %v12071_v14, %v2118_v48  ;;  %v3252_v51 = vmax.f32 %v3188_v11, 0.0  ;;  %v12081_v11 = vld [vmem:[#allocation198_spill] sm:$0xff] }
 0x4df   :  { %v3362_v44 = vpack.c.bf16 %v3312_v42, %v3310_v10  ;;  %v2923_v61 = vadd.f32 %v12072_v23, %v2654_v59  ;;  %v3123_v0 = vmul.f32 %v8734_v41, %v12056_v18  ;;  %v3189_v31 = vadd.f32 %v3125_v38, %v12073_v40  ;;  %v12078_v59 = vld [vmem:[#allocation195_spill] sm:$0xff]  ;;  %v12084_v38 = vld [vmem:[#allocation161_spill] sm:$0xff] }
 0x4e0   :  { %v9762_v60 = vadd.f32 %v11943_v45, %v2055_v63  ;;  %3667 = vmatmul.mubr.bf16.gmra.mrb[52].mxu1 %v3359_v3  ;;  %v12075_v22 = vmax.f32 %v12074_v5, 0.0  ;;  %v3249_v54 = vmax.f32 %v3185_v9, 0.0  ;;  %v3190_v26 = vadd.f32 %v3126_v55, %v12076_v50  ;;  %v12091_v50 = vld [vmem:[#allocation70_spill] sm:$0xff] }
 0x4e1   :  { %v3128_v4 = vmul.f32 %v8737_v12, %v12077_v28  ;;  %v2117_v13 = vadd.f32 %v8042_v39, %v2042_v37  ;;  %3676 = vmatprep.mubr.bf16.mxu1 %v3362_v44  ;;  %v2653_v18 = vadd.f32 %v12078_v59, %v2384_v58  ;;  %v2124_v48 = vadd.f32 %v11943_v45, %v2049_v33  ;;  %v12087_v33 = vld [vmem:[#allocation84_spill] sm:$0xff]  ;;  %v12089_v44 = vld [vmem:[#allocation98_spill] sm:$0xff] }
 0x4e2   :  { %v3309_v53 = vadd.f32 %v3245_v56, %v12075_v22  ;;  %v12080_v63 = vmax.f32 %v12079_v17, 0.0  ;;  %v3187_v42 = vadd.f32 %v3123_v0, %v2918_v1  ;;  %v2656_v30 = vadd.f32 %v12081_v11, %v2387_v62  ;;  %v12082_v56 = vld [vmem:[#allocation115_spill] sm:$0xff]  ;;  %v12088_v1 = vld [vmem:[#allocation140_spill] sm:$0xff]  ;;  %v12093_v17 = vld [vmem:[#allocation66_spill] sm:$0xff] }
 0x4e3   :  { %v12083_v9 = vmax.f32 %v12082_v56, 0.0  ;;  %v12085_v20 = vmax.f32 %v12084_v38, 0.0  ;;  %v3192_v10 = vadd.f32 %v3128_v4, %v2923_v61  ;;  %v3253_v55 = vmax.f32 %v3189_v31, 0.0  ;;  %v12090_v0 = vld [vmem:[#allocation139_spill] sm:$0xff] }
 0x4e4   :  { %v3311_v6 = vadd.f32 %v3247_v47, %v12080_v63  ;;  %v3131_v37 = vmul.f32 %v8734_v41, %v12086_v25  ;;  %v3132_v58 = vmul.f32 %v8737_v12, %v12086_v25  ;;  %v3133_v3 = vmul.f32 %v8734_v41, %v12087_v33  ;;  %v9785_v47 = vpop.permute.xlu1 %2252  ;;  %v12094_v63 = vld [vmem:[#allocation63_spill] sm:$0xff]  ;;  %v12102_v25 = vld [vmem:[#allocation46_spill] sm:$0xff] }
 0x4e5   :  { %v3314_v21 = vadd.f32 %v3250_v35, %v12083_v9  ;;  %v3316_v29 = vadd.f32 %v3252_v51, %v12085_v20  ;;  %v3254_v19 = vmax.f32 %v3190_v26, 0.0  ;;  %v3134_v35 = vmul.f32 %v8737_v12, %v12087_v33  ;;  %v12100_v20 = vld [vmem:[#allocation43_spill] sm:$0xff] }
 0x4e6   :  { %v2386_v14 = vadd.f32 %v12088_v1, %v2117_v13  ;;  %v2048_v62 = vmul.f32 %v8011_v32, %v9655_v24  ;;  %v2393_v51 = vadd.f32 %v12089_v44, %v2124_v48  ;;  %v3361_v23 = vpack.c.bf16 %v3311_v6, %v3309_v53  ;;  %v12092_v13 = vld [vmem:[#allocation193_spill] sm:$0xff]  ;;  %v12105_v44 = vld [vmem:[#allocation162_spill] sm:$0xff] }
 0x4e7   :  { %v3251_v61 = vmax.f32 %v3187_v42, 0.0  ;;  %v2922_v40 = vadd.f32 %v12090_v0, %v2653_v18  ;;  %v2053_v31 = vmul.f32 %v8017_v8, %v9677_v15  ;;  %v3364_v5 = vpack.c.bf16 %v3316_v29, %v3314_v21  ;;  %v12095_v18 = vld [vmem:[#allocation200_spill] sm:$0xff]  ;;  %v12096_v42 = vld [vmem:[#allocation121_spill] sm:$0xff] }
 0x4e8   :  { %v3256_v22 = vmax.f32 %v3192_v10, 0.0  ;;  %v2925_v26 = vadd.f32 %v12091_v50, %v2656_v30  ;;  %v3127_v4 = vmul.f32 %v8734_v41, %v12077_v28  ;;  %v3195_v59 = vadd.f32 %v3131_v37, %v12092_v13  ;;  %3677 = vmatmul.mubr.bf16.gmra.mrb[56].mxu1 %v3361_v23  ;;  %v9802_v53 = vpop.permute.xlu1 %2256  ;;  %v12097_v30 = vld [vmem:[#allocation40_spill] sm:$0xff]  ;;  %v12107_v0 = vld [vmem:[#allocation129_spill] sm:$0xff] }
 0x4e9   :  { %v3196_v24 = vadd.f32 %v3132_v58, %v12093_v17  ;;  %v3197_v48 = vadd.f32 %v3133_v3, %v12094_v63  ;;  %v3198_v6 = vadd.f32 %v3134_v35, %v12095_v18  ;;  %v3138_v11 = vmul.f32 %v8737_v12, %v12096_v42  ;;  %3686 = vmatprep.mubr.bf16.mxu1 %v3364_v5  ;;  %v12099_v21 = vld [vmem:[#allocation64_spill] sm:$0xff]  ;;  %v12112_v18 = vld [vmem:[#allocation197_spill] sm:$0xff] }
 0x4ea   :  { %v2123_v56 = vadd.f32 %v8042_v39, %v2048_v62  ;;  %v12098_v9 = vmax.f32 %v12097_v30, 0.0  ;;  %v2655_v38 = vadd.f32 %v12099_v21, %v2386_v14  ;;  %v12101_v29 = vmax.f32 %v12100_v20, 0.0  ;;  %v12104_v3 = vld [vmem:[#allocation120_spill] sm:$0xff] }
 0x4eb   :  { %v12103_v37 = vmax.f32 %v12102_v25, 0.0  ;;  %v3191_v33 = vadd.f32 %v3127_v4, %v2922_v40  ;;  %v2662_v35 = vadd.f32 %v12104_v3, %v2393_v51  ;;  %v2128_v1 = vadd.f32 %v11943_v45, %v2053_v31  ;;  %v12108_v14 = vld [vmem:[#allocation80_spill] sm:$0xff]  ;;  %v12110_v51 = vld [vmem:[#allocation123_spill] sm:$0xff] }
 0x4ec   :  { %v3313_v28 = vadd.f32 %v3249_v54, %v12098_v9  ;;  %v3315_v10 = vadd.f32 %v3251_v61, %v12101_v29  ;;  %v12106_v23 = vmax.f32 %v12105_v44, 0.0  ;;  %v3194_v5 = vadd.f32 %v12107_v0, %v2925_v26  ;;  %v9826_v31 = vpop.permute.xlu1 %2521  ;;  %v12113_v9 = vld [vmem:[#allocation92_spill] sm:$0xff] }
 0x4ed   :  { %v3318_v58 = vadd.f32 %v3254_v19, %v12103_v37  ;;  %v3259_v50 = vmax.f32 %v3195_v59, 0.0  ;;  %v3260_v54 = vmax.f32 %v3196_v24, 0.0  ;;  %v3261_v13 = vmax.f32 %v3197_v48, 0.0  ;;  %v12111_v24 = vld [vmem:[#allocation67_spill] sm:$0xff] }
 0x4ee   :  { %v3320_v62 = vadd.f32 %v3256_v22, %v12106_v23  ;;  %v12109_v17 = vmax.f32 %v12108_v14, 0.0  ;;  %v3262_v61 = vmax.f32 %v3198_v6, 0.0  ;;  %v3137_v19 = vmul.f32 %v8734_v41, %v12096_v42  ;;  %v12114_v42 = vld [vmem:[#allocation91_spill] sm:$0xff]  ;;  %v12123_v23 = vld [vmem:[#allocation90_spill] sm:$0xff] }
 0x4ef   :  { %v3202_v40 = vadd.f32 %v3138_v11, %v9663_v2  ;;  %v2392_v4 = vadd.f32 %v12110_v51, %v2123_v56  ;;  %v2052_v22 = vmul.f32 %v8011_v32, %v9677_v15  ;;  %v3363_v26 = vpack.c.bf16 %v3315_v10, %v3313_v28  ;;  %v12115_v56 = vld [vmem:[#allocation83_spill] sm:$0xff]  ;;  %v12117_v28 = vld [vmem:[#allocation85_spill] sm:$0xff] }
 0x4f0   :  { %v3317_v63 = vadd.f32 %v3253_v55, %v12109_v17  ;;  %v3255_v59 = vmax.f32 %v3191_v33, 0.0  ;;  %v2924_v48 = vadd.f32 %v12111_v24, %v2655_v38  ;;  %v2397_v30 = vadd.f32 %v12112_v18, %v2128_v1  ;;  %v9848_v37 = vpop.permute.xlu1 %2525 }
 0x4f1   :  { %v3366_v55 = vpack.c.bf16 %v3320_v62, %v3318_v58  ;;  %v3258_v6 = vmax.f32 %v3194_v5, 0.0  ;;  %v2931_v21 = vadd.f32 %v12113_v9, %v2662_v35  ;;  %v3135_v2 = vmul.f32 %v8734_v41, %v12114_v42  ;;  %3687 = vmatmul.mubr.bf16.gmra.mrb[60].mxu1 %v3363_v26  ;;  %v12119_v58 = vld [vmem:[#allocation88_spill] sm:$0xff]  ;;  %v12121_v35 = vld [vmem:[#allocation87_spill] sm:$0xff]  ;;  %v12124_v5 = vld [vmem:[#allocation82_spill] sm:$0xff] }
 0x4f2   :  { %v2057_v11 = vmul.f32 %v8017_v8, %v9695_v36  ;;  %v12116_v20 = vmax.f32 %v12115_v56, 0.0  ;;  %v12118_v29 = vmax.f32 %v12117_v28, 0.0  ;;  %v3136_v38 = vmul.f32 %v8737_v12, %v12114_v42  ;;  %v12128_v26 = vld [vmem:[#allocation79_spill] sm:$0xff]  ;;  %v12135_v56 = vld [vmem:[#allocation174_spill] sm:$0xff] }
 0x4f3   :  { %v9846_v25 = vadd.f32 %v3137_v19, %v9648_v34  ;;  %3696 = vmatprep.mubr.bf16.mxu1 %v3366_v55  ;;  %v12120_v33 = vmax.f32 %v12119_v58, 0.0  ;;  %v12122_v1 = vmax.f32 %v12121_v35, 0.0  ;;  %v2661_v62 = vadd.f32 %v12123_v23, %v2392_v4  ;;  %v12126_v34 = vld [vmem:[#allocation48_spill] sm:$0xff]  ;;  %v12127_v19 = vld [vmem:[#allocation149_spill] sm:$0xff]  ;;  %v12131_v9 = vld [vmem:[#allocation199_spill] sm:$0xff]  ;;  %v1968_v58 = vpop.permute.xlu0 %1967 }
 0x4f4   :  { %v3324_v15 = vadd.f32 %v3260_v54, %v12116_v20  ;;  %v9841_v10 = vadd.f32 %v3259_v50, %v12118_v29  ;;  %v2127_v0 = vadd.f32 %v8042_v39, %v2052_v22  ;;  %v12125_v50 = vmax.f32 %v12124_v5, 0.0  ;;  %v12130_v55 = vld [vmem:[#allocation217_spill] sm:$0xff]  ;;  %v12132_v4 = vld [vmem:[#allocation155_spill] sm:$0xff]  ;;  %v12137_v29 = vld [vmem:[#allocation138_spill] sm:$0xff]  ;;  %v9887_v5 = vpop.permute.xlu1 %2790 }
 0x4f5   :  { %v9852_v3 = vadd.f32 %v3262_v61, %v12120_v33  ;;  %v9856_v44 = vadd.f32 %v3261_v13, %v12122_v1  ;;  %v3193_v14 = vadd.f32 %v12126_v34, %v2924_v48  ;;  %v3266_v17 = vmax.f32 %v3202_v40, 0.0  ;;  %v12133_v48 = vld [vmem:[#allocation156_spill] sm:$0xff]  ;;  %v12136_v20 = vld [vmem:[#allocation159_spill] sm:$0xff] }
 0x4f6   :  { %v3319_v54 = vadd.f32 %v3255_v59, %v12125_v50  ;;  %v2666_v51 = vadd.f32 %v12127_v19, %v2397_v30  ;;  %v12129_v24 = vmax.f32 %v12128_v26, 0.0  ;;  %v3200_v18 = vadd.f32 %v3136_v38, %v2931_v21 }
 0x4f7   :  { %v9868_v13 = vmul.f32 %v8734_v41, %v12130_v55  ;;  %v2334_v42 = vmul.f32 %v12132_v4, %v12131_v9  ;;  %v2056_v22 = vmul.f32 %v8011_v32, %v9695_v36  ;;  %v2132_v59 = vadd.f32 %v11943_v45, %v2057_v11  ;;  %v12138_v36 = vld [vmem:[#allocation116_spill] sm:$0xff] }
 0x4f8   :  { %v3322_v61 = vadd.f32 %v3258_v6, %v12129_v24  ;;  %v3140_v40 = vmul.f32 %v8737_v12, %v12130_v55  ;;  %v2335_v30 = vmul.f32 %v12133_v48, %v12131_v9  ;;  %v12134_v6 = vld [vmem:[#allocation130_spill] sm:$0xff]  ;;  %v2603_v28 = vmul.f32 %v12136_v20, %v12135_v56  ;;  %v12139_v11 = vld [vmem:[#allocation160_spill] sm:$0xff]  ;;  %v12142_v9 = vld [vmem:[#allocation133_spill] sm:$0xff] }
 0x4f9   :  { %v2337_v21 = vmul.f32 %v12133_v48, %v12134_v6  ;;  %v2396_v38 = vadd.f32 %v12137_v29, %v2127_v0  ;;  %v3365_v33 = vpack.c.bf16 %v3319_v54, %v3317_v63  ;;  %v3257_v35 = vmax.f32 %v3193_v14, 0.0  ;;  %v12140_v0 = vld [vmem:[#allocation93_spill] sm:$0xff] }
 0x4fa   :  { %v2930_v1 = vadd.f32 %v12138_v36, %v2661_v62  ;;  %v2604_v23 = vmul.f32 %v12139_v11, %v12135_v56  ;;  %v3368_v50 = vpack.c.bf16 %v3324_v15, %v3322_v61  ;;  %v3264_v34 = vmax.f32 %v3200_v18, 0.0  ;;  %v12144_v61 = vld [vmem:[#allocation147_spill] sm:$0xff] }
 0x4fb   :  { %v2935_v19 = vadd.f32 %v9636_v49, %v2666_v51  ;;  %v2398_v26 = vadd.f32 %v2334_v42, %v9727_v46  ;;  %v2131_v24 = vadd.f32 %v8042_v39, %v2056_v22  ;;  %v2401_v55 = vadd.f32 %v2337_v21, %v2132_v59  ;;  %3697 = vmatmul.mubr.bf16.gmra.mrb[64].mxu1 %v3365_v33  ;;  %v12143_v46 = vld [vmem:[#allocation184_spill] sm:$0xff]  ;;  %v12145_v42 = vld [vmem:[#allocation81_spill] sm:$0xff] }
 0x4fc   :  { %v12141_v63 = vmax.f32 %v12140_v0, 0.0  ;;  %v2399_v62 = vadd.f32 %v2335_v30, %v9762_v60  ;;  %v2336_v14 = vmul.f32 %v12132_v4, %v12134_v6  ;;  %v2873_v15 = vmul.f32 %v8097_v7, %v12142_v9  ;;  %3706 = vmatprep.mubr.bf16.mxu1 %v3368_v50  ;;  %v9907_v30 = vpop.permute.xlu1 %1977  ;;  %v12147_v6 = vld [vmem:[#allocation89_spill] sm:$0xff] }
 0x4fd   :  { %v2059_v49 = vmul.f32 %v8017_v8, %v1968_v58  ;;  %v2606_v51 = vmul.f32 %v12139_v11, %v12143_v46  ;;  %v2665_v18 = vadd.f32 %v12144_v61, %v2396_v38  ;;  %v12146_v22 = vmax.f32 %v12145_v42, 0.0 }
 0x4fe   :  { %v9894_v54 = vadd.f32 %v3266_v17, %v12141_v63  ;;  %v3199_v59 = vadd.f32 %v3135_v2, %v2930_v1  ;;  %v2667_v21 = vadd.f32 %v2603_v28, %v2398_v26  ;;  %v2668_v60 = vadd.f32 %v2604_v23, %v2399_v62 }
 0x4ff   :  { %v3321_v17 = vadd.f32 %v3257_v35, %v12146_v22  ;;  %v12148_v56 = vmax.f32 %v12147_v6, 0.0  ;;  %v3204_v33 = vadd.f32 %v3140_v40, %v2935_v19  ;;  %v2605_v36 = vmul.f32 %v12136_v20, %v12143_v46 }
 0x500   :  { %v2400_v50 = vadd.f32 %v2336_v14, %v2131_v24  ;;  %v2670_v0 = vadd.f32 %v2606_v51, %v2401_v55  ;;  %v2058_v63 = vmul.f32 %v8011_v32, %v1968_v58  ;;  %v2937_v38 = vadd.f32 %v2873_v15, %v2668_v60  ;;  %v9927_v26 = vpop.permute.xlu1 %1982  ;;  %v12149_v15 = vld [vmem:[#allocation59_spill] sm:$0xff] }
 0x501   :  { %v3328_v29 = vadd.f32 %v3264_v34, %v12148_v56  ;;  %v2061_v35 = vmul.f32 %v8017_v8, %v9715_v52  ;;  %v2339_v2 = vmul.f32 %v12133_v48, %v9785_v47  ;;  %v2134_v28 = vadd.f32 %v11943_v45, %v2059_v49  ;;  %v12152_v56 = vld [vmem:[#allocation118_spill] sm:$0xff] }
 0x502   :  { %v3144_v1 = vmul.f32 %v8737_v12, %v9755_v57  ;;  %v3367_v40 = vpack.c.bf16 %v9841_v10, %v3321_v17  ;;  %v3263_v23 = vmax.f32 %v3199_v59, 0.0  ;;  %v2934_v34 = vadd.f32 %v9617_v16, %v2665_v18  ;;  %v12150_v18 = vld [vmem:[#allocation94_spill] sm:$0xff] }
 0x503   :  { %v2060_v58 = vmul.f32 %v8011_v32, %v9715_v52  ;;  %v2341_v19 = vmul.f32 %v12133_v48, %v9802_v53  ;;  %v3370_v24 = vpack.c.bf16 %v3328_v29, %v9852_v3  ;;  %v3268_v55 = vmax.f32 %v3204_v33, 0.0 }
 0x504   :  { %v3142_v62 = vmul.f32 %v8737_v12, %v9737_v43  ;;  %v2669_v14 = vadd.f32 %v2605_v36, %v2400_v50  ;;  %v2939_v10 = vadd.f32 %v12149_v15, %v2670_v0  ;;  %v2133_v49 = vadd.f32 %v8042_v39, %v2058_v63  ;;  %3707 = vmatmul.mubr.bf16.gmra.mrb[68].mxu1 %v3367_v40  ;;  %v12154_v0 = vld [vmem:[#allocation194_spill] sm:$0xff] }
 0x505   :  { %v2136_v16 = vadd.f32 %v11943_v45, %v2061_v35  ;;  %v2608_v52 = vmul.f32 %v12139_v11, %v9826_v31  ;;  %v2403_v46 = vadd.f32 %v2339_v2, %v2134_v28  ;;  %v2610_v51 = vmul.f32 %v12139_v11, %v9848_v37  ;;  %3716 = vmatprep.mubr.bf16.mxu1 %v3370_v24  ;;  %v3064_v35 = vpop.permute.xlu1 %3063 }
 0x506   :  { %v3208_v3 = vadd.f32 %v3144_v1, %v2939_v10  ;;  %v2338_v61 = vmul.f32 %v12132_v4, %v9785_v47  ;;  %v12151_v42 = vmax.f32 %v12150_v18, 0.0  ;;  %v3203_v17 = vadd.f32 %v9868_v13, %v2934_v34  ;;  %v12156_v10 = vld [vmem:[#allocation137_spill] sm:$0xff] }
 0x507   :  { %v2872_v59 = vmul.f32 %v8089_v27, %v12142_v9  ;;  %v2135_v60 = vadd.f32 %v8042_v39, %v2060_v58  ;;  %v2405_v6 = vadd.f32 %v2341_v19, %v2136_v16  ;;  %v12153_v29 = vmax.f32 %v12152_v56, 0.0  ;;  %v12155_v58 = vld [vmem:[#allocation146_spill] sm:$0xff]  ;;  %v12157_v16 = vld [vmem:[#allocation27_spill] sm:$0xff]  ;;  %v12164_v56 = vld [vmem:[#allocation100_spill] sm:$0xff] }
 0x508   :  { %v3327_v22 = vadd.f32 %v3263_v23, %v12151_v42  ;;  %v3141_v36 = vmul.f32 %v8734_v41, %v9737_v43  ;;  %v3206_v50 = vadd.f32 %v3142_v62, %v2937_v38  ;;  %v2938_v47 = vadd.f32 %v12154_v0, %v2669_v14 }
 0x509   :  { %v3332_v33 = vadd.f32 %v3268_v55, %v12153_v29  ;;  %v3143_v63 = vmul.f32 %v8734_v41, %v9755_v57  ;;  %v2340_v13 = vmul.f32 %v12132_v4, %v9802_v53  ;;  %v2674_v9 = vadd.f32 %v2610_v51, %v2405_v6  ;;  %v12165_v29 = vld [vmem:[#allocation206_spill] sm:$0xff] }
 0x50a   :  { %v2672_v2 = vadd.f32 %v2608_v52, %v2403_v46  ;;  %v2877_v28 = vmul.f32 %v8097_v7, %v9887_v5  ;;  %v3272_v1 = vmax.f32 %v3208_v3, 0.0  ;;  %v2402_v40 = vadd.f32 %v2338_v61, %v2133_v49  ;;  %v12158_v46 = vld [vmem:[#allocation96_spill] sm:$0xff]  ;;  %v12160_v3 = vld [vmem:[#allocation54_spill] sm:$0xff] }
 0x50b   :  { %v3369_v23 = vpack.c.bf16 %v3327_v22, %v9856_v44  ;;  %v3267_v43 = vmax.f32 %v3203_v17, 0.0  ;;  %v2607_v38 = vmul.f32 %v12136_v20, %v9826_v31  ;;  %v2609_v57 = vmul.f32 %v12136_v20, %v9848_v37  ;;  %v2261_v31 = vpop.permute.xlu1 %2260 }
 0x50c   :  { %v3148_v34 = vmul.f32 %v8737_v12, %v3064_v35  ;;  %v3372_v53 = vpack.c.bf16 %v3332_v33, %v9894_v54  ;;  %v1455_v19 = vmul.f32 0.00390625, %v12155_v58  ;;  %v3265_v24 = vmax.f32 %v9846_v25, 0.0 }
 0x50d   :  { %v2936_v55 = vadd.f32 %v2872_v59, %v2667_v21  ;;  %v3270_v62 = vmax.f32 %v3206_v50, 0.0  ;;  %3717 = vmatmul.mubr.bf16.gmra.mrb[72].mxu1 %v3369_v23  ;;  %v3207_v14 = vadd.f32 %v3143_v63, %v2938_v47  ;;  %v2404_v44 = vadd.f32 %v2340_v13, %v2135_v60  ;;  %v12162_v59 = vld [vmem:[#allocation117_spill] sm:$0xff]  ;;  %v12167_v47 = vld [vmem:[#allocation178_spill] sm:$0xff] }
 0x50e   :  { %v2941_v15 = vadd.f32 %v2877_v28, %v2672_v2  ;;  %v2943_v49 = vadd.f32 %v12156_v10, %v2674_v9  ;;  %3726 = vmatprep.mubr.bf16.mxu1 %v3372_v53  ;;  %v2878_v37 = vmul.f32 %v8089_v27, %v12157_v16  ;;  %v12159_v54 = vmax.f32 %v12158_v46, 0.0  ;;  %v12168_v9 = vld [vmem:[#allocation95_spill] sm:$0xff] }
 0x50f   :  { %v3205_v52 = vadd.f32 %v3141_v36, %v2936_v55  ;;  %v12161_v61 = vmax.f32 %v12160_v3, 0.0  ;;  %v2673_v21 = vadd.f32 %v2609_v57, %v2404_v44  ;;  %v2671_v18 = vadd.f32 %v2607_v38, %v2402_v40  ;;  %v12166_v36 = vld [vmem:[#allocation136_spill] sm:$0xff]  ;;  %v2530_v23 = vpop.permute.xlu1 %2529  ;;  %v12172_v38 = vld [vmem:[#allocation69_spill] sm:$0xff]  ;;  %v12173_v55 = vld [vmem:[#allocation86_spill] sm:$0xff] }
 0x510   :  { %v3331_v51 = vadd.f32 %v3267_v43, %v12159_v54  ;;  %v2876_v42 = vmul.f32 %v8089_v27, %v9887_v5  ;;  %v3212_v22 = vadd.f32 %v3148_v34, %v2943_v49  ;;  %v1487_v17 = vadd.f32 1e-05, %v1455_v19  ;;  %v12170_v5 = vld [vmem:[#allocation132_spill] sm:$0xff]  ;;  %v12175_v44 = vld [vmem:[#allocation202_spill] sm:$0xff]  ;;  %v12176_v16 = vld [vmem:[#allocation163_spill] sm:$0xff] }
 0x511   :  { %v3336_v25 = vadd.f32 %v3272_v1, %v12161_v61  ;;  %v12163_v60 = vmax.f32 %v12162_v59, 0.0  ;;  %v1726_v33 = vadd.f32 %v12165_v29, %v12164_v56  ;;  %v1728_v50 = vadd.f32 %v12165_v29, %v12166_v36  ;;  %v12171_v43 = vld [vmem:[#allocation44_spill] sm:$0xff] }
 0x512   :  { %v3271_v0 = vmax.f32 %v3207_v14, 0.0  ;;  %v3210_v63 = vadd.f32 %v12167_v47, %v2941_v15  ;;  %v3147_v13 = vmul.f32 %v8734_v41, %v3064_v35  ;;  %v12169_v2 = vmax.f32 %v12168_v9, 0.0 }
 0x513   :  { %v3329_v6 = vadd.f32 %v3265_v24, %v12163_v60  ;;  %6426 = vrsqrt.f32 %v12170_v5  ;;  %v3269_v1 = vmax.f32 %v3205_v52, 0.0  ;;  %v1652_v57 = vmul.f32 %v12172_v38, %v12171_v43  ;;  %v9989_v24 = vpop.permute.xlu0 %1992  ;;  %v2534_v3 = vpop.permute.xlu1 %2533 }
 0x514   :  { %v3334_v28 = vadd.f32 %v3270_v62, %v12169_v2  ;;  %v2940_v34 = vadd.f32 %v2876_v42, %v2671_v18  ;;  %v2942_v53 = vadd.f32 %v2878_v37, %v2673_v21  ;;  %v3276_v58 = vmax.f32 %v3212_v22, 0.0  ;;  %v12174_v62 = vld [vmem:[#allocation216_spill] sm:$0xff]  ;;  %v12178_v42 = vld [vmem:[#allocation203_spill] sm:$0xff] }
 0x515   :  { %v3371_v40 = vpack.c.bf16 %v3331_v51, %v3329_v6  ;;  %v3145_v35 = vmul.f32 %v8734_v41, %v12173_v55  ;;  %6428 = vrsqrt.f32 %v1487_v17  ;;  %v1785_v14 = vmax.f32 %v12174_v62, 0.0 }
 0x516   :  { %v3374_v19 = vpack.c.bf16 %v3336_v25, %v3334_v28  ;;  %v1650_v15 = vmul.f32 %v12172_v38, %v12175_v44  ;;  %v3274_v10 = vmax.f32 %v3210_v63, 0.0  ;;  %v3211_v49 = vadd.f32 %v3147_v13, %v2942_v53 }
 0x517   :  { %3727 = vmatmul.mubr.bf16.gmra.mrb[76].mxu1 %v3371_v40  ;;  %v12177_v52 = vmax.f32 %v12176_v16, 0.0  ;;  %v1792_v46 = vmax.f32 %v1728_v50, 0.0  ;;  %v2062_v54 = vmul.f32 %v8011_v32, %v9907_v30  ;;  %v2063_v51 = vmul.f32 %v8017_v8, %v9907_v30  ;;  %v2265_v50 = vpop.permute.xlu0 %2264  ;;  %v2803_v9 = vpop.permute.xlu1 %2802  ;;  %v12180_v16 = vld [vmem:[#allocation187_spill] sm:$0xff] }
 0x518   :  { %3736 = vmatprep.mubr.bf16.mxu1 %v3374_v19  ;;  %v1790_v61 = vmax.f32 %v1726_v33, 0.0  ;;  %v3209_v25 = vadd.f32 %v3145_v35, %v2940_v34  ;;  %v3333_v21 = vadd.f32 %v3269_v1, %v1785_v14  ;;  %v1727_v22 = vadd.f32 %v12178_v42, %v1652_v57  ;;  %v12179_v35 = vld [vmem:[#allocation104_spill] sm:$0xff] }
 0x519   :  { %v3335_v37 = vadd.f32 %v3271_v0, %v12177_v52  ;;  %v3340_v18 = vadd.f32 %v3276_v58, %v1792_v46  ;;  %v2064_v17 = vmul.f32 %v8011_v32, %v9927_v26  ;;  %v2065_v59 = vmul.f32 %v8017_v8, %v9927_v26 }
 0x51a   :  { %v3275_v60 = vmax.f32 %v3211_v49, 0.0  ;;  %v3338_v56 = vadd.f32 %v3274_v10, %v1790_v61  ;;  %v1725_v36 = vadd.f32 %v12178_v42, %v1650_v15  ;;  %v2137_v30 = vadd.f32 %v8042_v39, %v2062_v54  ;;  %v12182_v54 = vld [vmem:[#allocation119_spill] sm:$0xff] }
 0x51b   :  { %v3373_v6 = vpack.c.bf16 %v3335_v37, %v3333_v21  ;;  %v2138_v33 = vadd.f32 %v11943_v45, %v2063_v51  ;;  %v2342_v0 = vmul.f32 %v12132_v4, %v2261_v31  ;;  %v2343_v47 = vmul.f32 %v12133_v48, %v2261_v31  ;;  %v1988_v15 = vpop.permute.xlu1 %1987  ;;  %v12181_v37 = vld [vmem:[#allocation60_spill] sm:$0xff]  ;;  %v12183_v61 = vld [vmem:[#allocation103_spill] sm:$0xff] }
 0x51c   :  { %v3273_v63 = vmax.f32 %v3209_v25, 0.0  ;;  %v3376_v13 = vpack.c.bf16 %v3340_v18, %v3338_v56  ;;  %v1791_v2 = vmax.f32 %v1727_v22, 0.0  ;;  %v2139_v26 = vadd.f32 %v8042_v39, %v2064_v17  ;;  %v12184_v17 = vld [vmem:[#allocation42_spill] sm:$0xff] }
 0x51d   :  { %v6427_v28 = vpop.eup %6426  ;;  %v2140_v5 = vadd.f32 %v11943_v45, %v2065_v59  ;;  %v2344_v1 = vmul.f32 %v12132_v4, %v2265_v50  ;;  %v2345_v40 = vmul.f32 %v12133_v48, %v2265_v50  ;;  %v1789_v43 = vmax.f32 %v1725_v36, 0.0  ;;  %v12185_v59 = vld [vmem:[#allocation68_spill] sm:$0xff] }
 0x51e   :  { %v3339_v57 = vadd.f32 %v3275_v60, %v1791_v2  ;;  %v2406_v53 = vadd.f32 %v2342_v0, %v2137_v30  ;;  %v2407_v31 = vadd.f32 %v2343_v47, %v2138_v33  ;;  %v2611_v58 = vmul.f32 %v12136_v20, %v2530_v23  ;;  %v12186_v30 = vld [vmem:[#allocation62_spill] sm:$0xff] }
 0x51f   :  { %3737 = vmatmul.mubr.bf16.gmra.mrb[80].mxu1 %v3373_v6  ;;  %v6429_v34 = vpop.eup %6428  ;;  %v2612_v19 = vmul.f32 %v12139_v11, %v2530_v23  ;;  %v3337_v55 = vadd.f32 %v3273_v63, %v1789_v43  ;;  %v1582_v62 = vmul.f32 %v6427_v28, %v12179_v35  ;;  %v2613_v14 = vmul.f32 %v12136_v20, %v2534_v3  ;;  %v3068_v0 = vpop.permute.xlu1 %3067 }
 0x520   :  { %3746 = vmatprep.mubr.bf16.mxu1 %v3376_v13  ;;  %v2614_v44 = vmul.f32 %v12139_v11, %v2534_v3  ;;  %v2408_v10 = vadd.f32 %v2344_v1, %v2139_v26  ;;  %v2409_v49 = vadd.f32 %v2345_v40, %v2140_v5  ;;  %v2880_v52 = vmul.f32 %v8089_v27, %v12180_v16 }
 0x521   :  { %v1580_v46 = vmul.f32 %v6429_v34, %v12181_v37  ;;  %v1579_v51 = vmul.f32 %v6429_v34, %v12182_v54  ;;  %v1581_v25 = vmul.f32 %v6427_v28, %v12183_v61  ;;  %v2881_v23 = vmul.f32 %v8097_v7, %v12180_v16 }
 0x522   :  { %v2675_v21 = vadd.f32 %v2611_v58, %v2406_v53  ;;  %v2676_v18 = vadd.f32 %v2612_v19, %v2407_v31  ;;  %v3375_v22 = vpack.c.bf16 %v3339_v57, %v3337_v55  ;;  %v1458_v3 = vmul.f32 0.00390625, %v12184_v17 }
 0x523   :  { %v1657_v60 = vmul.f32 %v12185_v59, %v1582_v62  ;;  %v2882_v6 = vmul.f32 %v8089_v27, %v2803_v9  ;;  %v2883_v56 = vmul.f32 %v8097_v7, %v2803_v9  ;;  %v2677_v36 = vadd.f32 %v2613_v14, %v2408_v10  ;;  %v3072_v31 = vpop.permute.xlu1 %3071 }
 0x524   :  { %v2678_v50 = vadd.f32 %v2614_v44, %v2409_v49  ;;  %v1457_v33 = vmul.f32 0.00390625, %v12186_v30  ;;  %v1655_v47 = vmul.f32 %v12185_v59, %v1580_v46  ;;  %v1654_v63 = vmul.f32 %v12172_v38, %v1579_v51  ;;  %v2269_v46 = vpop.permute.xlu0 %2268 }
 0x525   :  { %v1656_v13 = vmul.f32 %v12172_v38, %v1581_v25  ;;  %v2944_v2 = vadd.f32 %v2880_v52, %v2675_v21  ;;  %v2945_v28 = vadd.f32 %v2881_v23, %v2676_v18  ;;  %v3149_v26 = vmul.f32 %v8734_v41, %v3068_v0 }
 0x526   :  { %v3150_v5 = vmul.f32 %v8737_v12, %v3068_v0  ;;  %v1490_v1 = vadd.f32 1e-05, %v1458_v3  ;;  %v1732_v9 = vadd.f32 %v12165_v29, %v1657_v60  ;;  %v2946_v57 = vadd.f32 %v2882_v6, %v2677_v36 }
 0x527   :  { %3747 = vmatmul.mubr.bf16.gmra.mrb[84].mxu1 %v3375_v22  ;;  %v3213_v40 = vadd.f32 %v3149_v26, %v2944_v2  ;;  %v2947_v34 = vadd.f32 %v2883_v56, %v2678_v50  ;;  %v1489_v53 = vadd.f32 1e-05, %v1457_v33  ;;  %v1730_v58 = vadd.f32 %v12165_v29, %v1655_v47  ;;  %v2273_v22 = vpop.permute.xlu1 %2272 }
 0x528   :  { %v3214_v43 = vadd.f32 %v3150_v5, %v2945_v28  ;;  %v1729_v19 = vadd.f32 %v12178_v42, %v1654_v63  ;;  %v1731_v55 = vadd.f32 %v12178_v42, %v1656_v13  ;;  %v3151_v35 = vmul.f32 %v8734_v41, %v3072_v31  ;;  %v2542_v33 = vpop.permute.xlu0 %2541 }
 0x529   :  { %v3152_v62 = vmul.f32 %v8737_v12, %v3072_v31  ;;  %6430 = vrsqrt.f32 %v1490_v1  ;;  %v2066_v14 = vmul.f32 %v8011_v32, %v1988_v15  ;;  %v2067_v44 = vmul.f32 %v8017_v8, %v1988_v15  ;;  %v12187_v31 = vld [vmem:[#allocation106_spill] sm:$0xff] }
 0x52a   :  { %v1796_v10 = vmax.f32 %v1732_v9, 0.0  ;;  %v3277_v49 = vmax.f32 %v3213_v40, 0.0  ;;  %v3278_v16 = vmax.f32 %v3214_v43, 0.0  ;;  %v3215_v52 = vadd.f32 %v3151_v35, %v2946_v57  ;;  %v12189_v35 = vld [vmem:[#allocation151_spill] sm:$0xff] }
 0x52b   :  { %v3216_v37 = vadd.f32 %v3152_v62, %v2947_v34  ;;  %6432 = vrsqrt.f32 %v1489_v53  ;;  %v1794_v54 = vmax.f32 %v1730_v58, 0.0  ;;  %v1793_v51 = vmax.f32 %v1729_v19, 0.0  ;;  %v2538_v63 = vpop.permute.xlu1 %2537  ;;  %v12188_v19 = vld [vmem:[#allocation105_spill] sm:$0xff] }
 0x52c   :  { %v1795_v61 = vmax.f32 %v1731_v55, 0.0  ;;  %v2068_v25 = vmul.f32 %v8011_v32, %v9989_v24  ;;  %v2069_v23 = vmul.f32 %v8017_v8, %v9989_v24  ;;  %v3279_v21 = vmax.f32 %v3215_v52, 0.0 }
 0x52d   :  { %v3280_v18 = vmax.f32 %v3216_v37, 0.0  ;;  %v2141_v15 = vadd.f32 %v8042_v39, %v2066_v14  ;;  %v2142_v17 = vadd.f32 %v11943_v45, %v2067_v44  ;;  %v2346_v3 = vmul.f32 %v12132_v4, %v2269_v46  ;;  %v12190_v14 = vld [vmem:[#allocation150_spill] sm:$0xff] }
 0x52e   :  { %v2347_v60 = vmul.f32 %v12133_v48, %v2269_v46  ;;  %v3342_v6 = vadd.f32 %v3278_v16, %v1794_v54  ;;  %v3341_v36 = vadd.f32 %v3277_v49, %v1793_v51  ;;  %v3343_v50 = vadd.f32 %v3279_v21, %v1795_v61 }
 0x52f   :  { %v3344_v56 = vadd.f32 %v3280_v18, %v1796_v10  ;;  %v2143_v8 = vadd.f32 %v8042_v39, %v2068_v25  ;;  %v2144_v24 = vadd.f32 %v11943_v45, %v2069_v23  ;;  %v2410_v0 = vadd.f32 %v2346_v3, %v2141_v15  ;;  %v2807_v34 = vpop.permute.xlu1 %2806 }
 0x530   :  { %v3377_v32 = vpack.c.bf16 %v3343_v50, %v3341_v36  ;;  %v2411_v47 = vadd.f32 %v2347_v60, %v2142_v17  ;;  %v2348_v13 = vmul.f32 %v12132_v4, %v2273_v22  ;;  %v2349_v2 = vmul.f32 %v12133_v48, %v2273_v22  ;;  %v3076_v4 = vpop.permute.xlu0 %3075 }
 0x531   :  { %v3378_v30 = vpack.c.bf16 %v3344_v56, %v3342_v6  ;;  %v2615_v28 = vmul.f32 %v12136_v20, %v2538_v63  ;;  %v2616_v26 = vmul.f32 %v12139_v11, %v2538_v63  ;;  %v2617_v9 = vmul.f32 %v12136_v20, %v2542_v33 }
 0x532   :  { %v2618_v39 = vmul.f32 %v12139_v11, %v2542_v33  ;;  %v2412_v45 = vadd.f32 %v2348_v13, %v2143_v8  ;;  %v2413_v40 = vadd.f32 %v2349_v2, %v2144_v24  ;;  %v2884_v48 = vmul.f32 %v8089_v27, %v2807_v34 }
 0x533   :  { %3756 = vmatprep.mubr.bf16.mxu1 %v3378_v30  ;;  %v6431_v5 = vpop.eup %6430  ;;  %v2679_v43 = vadd.f32 %v2615_v28, %v2410_v0  ;;  %v2680_v57 = vadd.f32 %v2616_v26, %v2411_v47  ;;  %v2885_v53 = vmul.f32 %v8097_v7, %v2807_v34  ;;  %v3153_v11 = vmul.f32 %v8734_v41, %v3076_v4  ;;  %v2811_v37 = vpop.permute.xlu1 %2810  ;;  %v12192_v26 = vld [vmem:[#allocation21_spill] sm:$0xff] }
 0x534   :  { %3757 = vmatmul.mubr.bf16.gmra.mrb[88].mxu1 %v3377_v32  ;;  %v1586_v58 = vmul.f32 %v6431_v5, %v12187_v31  ;;  %v1585_v55 = vmul.f32 %v6431_v5, %v12188_v19  ;;  %v3154_v44 = vmul.f32 %v8737_v12, %v3076_v4  ;;  %v2681_v10 = vadd.f32 %v2617_v9, %v2412_v45 }
 0x535   :  { %v6433_v1 = vpop.eup %6432  ;;  %v2682_v49 = vadd.f32 %v2618_v39, %v2413_v40  ;;  %v2948_v16 = vadd.f32 %v2884_v48, %v2679_v43  ;;  %v2949_v52 = vadd.f32 %v2885_v53, %v2680_v57  ;;  %v2886_v46 = vmul.f32 %v8089_v27, %v2811_v37 }
 0x536   :  { %v1584_v62 = vmul.f32 %v6433_v1, %v12189_v35  ;;  %v1583_v20 = vmul.f32 %v6433_v1, %v12190_v14  ;;  %v2887_v54 = vmul.f32 %v8097_v7, %v2811_v37  ;;  %v1661_v51 = vmul.f32 %v12185_v59, %v1586_v58 }
 0x537   :  { %v1660_v61 = vmul.f32 %v12172_v38, %v1585_v55  ;;  %v3217_v21 = vadd.f32 %v3153_v11, %v2948_v16  ;;  %v3218_v18 = vadd.f32 %v3154_v44, %v2949_v52  ;;  %v2950_v22 = vadd.f32 %v2886_v46, %v2681_v10 }
 0x538   :  { %v1659_v25 = vmul.f32 %v12185_v59, %v1584_v62  ;;  %v1658_v23 = vmul.f32 %v12172_v38, %v1583_v20  ;;  %v2951_v15 = vadd.f32 %v2887_v54, %v2682_v49  ;;  %v3080_v17 = vpop.permute.xlu1 %3079  ;;  %v1736_v3 = vadd.f32 %v12165_v29, %v1661_v51 }
 0x539   :  { %v1735_v60 = vadd.f32 %v12178_v42, %v1660_v61  ;;  %v3155_v27 = vmul.f32 %v8734_v41, %v3080_v17  ;;  %v3156_v7 = vmul.f32 %v8737_v12, %v3080_v17  ;;  %v3281_v59 = vmax.f32 %v3217_v21, 0.0 }
 0x53a   :  { %v1734_v6 = vadd.f32 %v12165_v29, %v1659_v25  ;;  %v1733_v56 = vadd.f32 %v12178_v42, %v1658_v23  ;;  %v3282_v36 = vmax.f32 %v3218_v18, 0.0  ;;  %v1800_v30 = vmax.f32 %v1736_v3, 0.0  ;;  %v5504_v29 = vld [vmem:[%s11068_s6 + $0x3] ss:$8 sm:$0x3] }
 0x53b   :  { %v3219_v38 = vadd.f32 %v3155_v27, %v2950_v22  ;;  %v3220_v50 = vadd.f32 %v3156_v7, %v2951_v15  ;;  %v1799_v32 = vmax.f32 %v1735_v60, 0.0  ;;  %v12191_v42 = vld [vmem:[#allocation19_spill] sm:$0xff]  ;;  %v10089_v5 = vrot.slane %v5504_v29, %v12192_v26 }
 0x53c   :  { %v1798_v24 = vmax.f32 %v1734_v6, 0.0  ;;  %v1797_v0 = vmax.f32 %v1733_v56, 0.0  ;;  %v10086_v28 = vrot.slane %v5504_v29, %v12191_v42  ;;  %v6314_v26 = vld [vmem:[#allocation7 + $0x24] ss:$8 sps:$4 sm:$0xff]   ;;  %v6312_v42 = vld [vmem:[#allocation7 + $0x20] ss:$8 sps:$4 sm:$0xff]  }
 0x53d   :  { %v3283_v33 = vmax.f32 %v3219_v38, 0.0  ;;  %v3284_v8 = vmax.f32 %v3220_v50, 0.0 }
 0x53e   :  { %v3346_v47 = vadd.f32 %v3282_v36, %v1798_v24  ;;  %v3345_v13 = vadd.f32 %v3281_v59, %v1797_v0 }
 0x53f   :  { %v3348_v63 = vadd.f32 %v3284_v8, %v1800_v30  ;;  %v3347_v41 = vadd.f32 %v3283_v33, %v1799_v32 }
 0x541   :  { %v3380_v2 = vpack.c.bf16 %v3348_v63, %v3346_v47  ;;  %v3379_v12 = vpack.c.bf16 %v3347_v41, %v3345_v13 }
 0x543   :  { %3766 = vmatprep.mubr.bf16.mxu1 %v3380_v2 }
 0x544   :  { %3767 = vmatmul.mubr.bf16.gmra.mrb[92].mxu1 %v3379_v12 }
 0x585   :  { %v3618_v1 = vpop.f32.mrb[32].mxu1 }
 0x586   :  { %v10092_v9 = vadd.f32 %v3618_v1, %v10086_v28  ;;  %v3620_v39 = vpop.f32.mrb[33].mxu1 }
 0x587   :  { %v10095_v45 = vadd.f32 %v3620_v39, %v10089_v5  ;;  %v3622_v40 = vpop.f32.mrb[34].mxu1 }
 0x588   :  { %v10098_v43 = vadd.f32 %v3622_v40, %v10086_v28  ;;  %v3624_v57 = vpop.f32.mrb[35].mxu1 }
 0x589   :  { %v3777_v34 = vadd.f32 %v10095_v45, %v10092_v9  ;;  %v10103_v4 = vadd.f32 %v3624_v57, %v10089_v5 }
 0x58b   :  { %v3780_v48 = vadd.f32 %v10103_v4, %v10098_v43  ;;  %3778 = vadd.xlane.f32.xlu1 %v3777_v34 }
 0x58d   :  { %3781 = vadd.xlane.f32.xlu0 %v3780_v48 }
 0x58e   :  { %v3628_v53 = vpop.f32.mrb[36].mxu1 }
 0x58f   :  { %v10108_v31 = vadd.f32 %v3628_v53, %v10086_v28  ;;  %v3630_v58 = vpop.f32.mrb[37].mxu1 }
 0x590   :  { %v10111_v19 = vadd.f32 %v3630_v58, %v10089_v5  ;;  %v3632_v55 = vpop.f32.mrb[38].mxu1 }
 0x591   :  { %v10114_v35 = vadd.f32 %v3632_v55, %v10086_v28  ;;  %v3634_v62 = vpop.f32.mrb[39].mxu1 }
 0x592   :  { %v3783_v14 = vadd.f32 %v10111_v19, %v10108_v31  ;;  %v10119_v20 = vadd.f32 %v3634_v62, %v10089_v5 }
 0x594   :  { %v3786_v11 = vadd.f32 %v10119_v20, %v10114_v35  ;;  %3784 = vadd.xlane.f32.xlu0 %v3783_v14 }
 0x596   :  { %3787 = vadd.xlane.f32.xlu1 %v3786_v11 }
 0x599   :  { %v3638_v44 = vpop.f32.mrb[40].mxu1 }
 0x59a   :  { %v10124_v10 = vadd.f32 %v3638_v44, %v10086_v28  ;;  %v3640_v49 = vpop.f32.mrb[41].mxu1 }
 0x59b   :  { %v10127_v16 = vadd.f32 %v3640_v49, %v10089_v5  ;;  %v3642_v52 = vpop.f32.mrb[42].mxu1 }
 0x59c   :  { %v10130_v37 = vadd.f32 %v3642_v52, %v10086_v28  ;;  %v3644_v46 = vpop.f32.mrb[43].mxu1 }
 0x59d   :  { %v3789_v54 = vadd.f32 %v10127_v16, %v10124_v10  ;;  %v10135_v51 = vadd.f32 %v3644_v46, %v10089_v5 }
 0x59f   :  { %v3792_v61 = vadd.f32 %v10135_v51, %v10130_v37  ;;  %3790 = vadd.xlane.f32.xlu0 %v3789_v54 }
 0x5a1   :  { %3793 = vadd.xlane.f32.xlu1 %v3792_v61 }
 0x5a2   :  { %v3648_v25 = vpop.f32.mrb[44].mxu1 }
 0x5a3   :  { %v10140_v23 = vadd.f32 %v3648_v25, %v10086_v28  ;;  %v3650_v21 = vpop.f32.mrb[45].mxu1 }
 0x5a4   :  { %v10143_v18 = vadd.f32 %v3650_v21, %v10089_v5  ;;  %v3652_v22 = vpop.f32.mrb[46].mxu1 }
 0x5a5   :  { %v10146_v15 = vadd.f32 %v3652_v22, %v10086_v28  ;;  %v3654_v17 = vpop.f32.mrb[47].mxu1 }
 0x5a6   :  { %v3795_v3 = vadd.f32 %v10143_v18, %v10140_v23  ;;  %v10151_v60 = vadd.f32 %v3654_v17, %v10089_v5 }
 0x5a8   :  { %v3798_v27 = vadd.f32 %v10151_v60, %v10146_v15  ;;  %3796 = vadd.xlane.f32.xlu0 %v3795_v3 }
 0x5aa   :  { %3799 = vadd.xlane.f32.xlu1 %v3798_v27 }
 0x5ab   :  { %v3658_v7 = vpop.f32.mrb[48].mxu1 }
 0x5ac   :  { %v10156_v6 = vadd.f32 %v3658_v7, %v10086_v28  ;;  %v3660_v56 = vpop.f32.mrb[49].mxu1 }
 0x5ad   :  { %v10159_v59 = vadd.f32 %v3660_v56, %v10089_v5  ;;  %v3662_v36 = vpop.f32.mrb[50].mxu1 }
 0x5ae   :  { %v10162_v38 = vadd.f32 %v3662_v36, %v10086_v28  ;;  %v3664_v50 = vpop.f32.mrb[51].mxu1 }
 0x5af   :  { %v3801_v30 = vadd.f32 %v10159_v59, %v10156_v6  ;;  %v10167_v32 = vadd.f32 %v3664_v50, %v10089_v5 }
 0x5b1   :  { %v3804_v33 = vadd.f32 %v10167_v32, %v10162_v38  ;;  %3802 = vadd.xlane.f32.xlu0 %v3801_v30 }
 0x5b3   :  { %v3668_v8 = vpop.f32.mrb[52].mxu1  ;;  %3805 = vadd.xlane.f32.xlu1 %v3804_v33 }
 0x5b4   :  { %v10172_v24 = vadd.f32 %v3668_v8, %v10086_v28  ;;  %v3670_v0 = vpop.f32.mrb[53].mxu1 }
 0x5b5   :  { %v10175_v47 = vadd.f32 %v3670_v0, %v10089_v5  ;;  %v3672_v63 = vpop.f32.mrb[54].mxu1 }
 0x5b6   :  { %v10178_v13 = vadd.f32 %v3672_v63, %v10086_v28  ;;  %v3674_v41 = vpop.f32.mrb[55].mxu1 }
 0x5b7   :  { %v3807_v2 = vadd.f32 %v10175_v47, %v10172_v24  ;;  %v10183_v12 = vadd.f32 %v3674_v41, %v10089_v5 }
 0x5b9   :  { %v3810_v29 = vadd.f32 %v10183_v12, %v10178_v13  ;;  %3808 = vadd.xlane.f32.xlu0 %v3807_v2 }
 0x5bb   :  { %3811 = vadd.xlane.f32.xlu1 %v3810_v29  ;;  %v3678_v1 = vpop.f32.mrb[56].mxu1 }
 0x5bc   :  { %v10188_v39 = vadd.f32 %v3678_v1, %v10086_v28  ;;  %v3680_v40 = vpop.f32.mrb[57].mxu1 }
 0x5bd   :  { %v10191_v57 = vadd.f32 %v3680_v40, %v10089_v5  ;;  %v3682_v34 = vpop.f32.mrb[58].mxu1 }
 0x5be   :  { %v10194_v48 = vadd.f32 %v3682_v34, %v10086_v28  ;;  %v3684_v53 = vpop.f32.mrb[59].mxu1 }
 0x5bf   :  { %v3813_v58 = vadd.f32 %v10191_v57, %v10188_v39  ;;  %v10199_v55 = vadd.f32 %v3684_v53, %v10089_v5 }
 0x5c1   :  { %v3816_v62 = vadd.f32 %v10199_v55, %v10194_v48  ;;  %3814 = vadd.xlane.f32.xlu0 %v3813_v58 }
 0x5c3   :  { %3817 = vadd.xlane.f32.xlu1 %v3816_v62 }
 0x5c4   :  { %v3688_v14 = vpop.f32.mrb[60].mxu1 }
 0x5c5   :  { %v10204_v11 = vadd.f32 %v3688_v14, %v10086_v28  ;;  %v3690_v44 = vpop.f32.mrb[61].mxu1 }
 0x5c6   :  { %v10207_v49 = vadd.f32 %v3690_v44, %v10089_v5  ;;  %v3692_v52 = vpop.f32.mrb[62].mxu1 }
 0x5c7   :  { %v10210_v46 = vadd.f32 %v3692_v52, %v10086_v28  ;;  %v3694_v54 = vpop.f32.mrb[63].mxu1 }
 0x5c8   :  { %v3819_v61 = vadd.f32 %v10207_v49, %v10204_v11  ;;  %v10215_v25 = vadd.f32 %v3694_v54, %v10089_v5 }
 0x5ca   :  { %v3822_v21 = vadd.f32 %v10215_v25, %v10210_v46  ;;  %3820 = vadd.xlane.f32.xlu0 %v3819_v61 }
 0x5cc   :  { %3823 = vadd.xlane.f32.xlu1 %v3822_v21 }
 0x5ce   :  { %v3698_v22 = vpop.f32.mrb[64].mxu1 }
 0x5cf   :  { %v10220_v17 = vadd.f32 %v3698_v22, %v10086_v28  ;;  %v3700_v3 = vpop.f32.mrb[65].mxu1 }
 0x5d0   :  { %v10223_v27 = vadd.f32 %v3700_v3, %v10089_v5  ;;  %v3702_v7 = vpop.f32.mrb[66].mxu1 }
 0x5d1   :  { %12193 = vst [vmem:[#allocation71_spill] sm:$0xff] %v10220_v17  ;;  %v10226_v56 = vadd.f32 %v3702_v7, %v10086_v28  ;;  %v3704_v36 = vpop.f32.mrb[67].mxu1 }
 0x5d2   :  { %12194 = vst [vmem:[#allocation141_spill] sm:$0xff] %v10223_v27  ;;  %v3825_v50 = vadd.f32 %v10223_v27, %v10220_v17  ;;  %v10231_v30 = vadd.f32 %v3704_v36, %v10089_v5 }
 0x5d3   :  { %12195 = vst [vmem:[#allocation207_spill] sm:$0xff] %v10226_v56 }
 0x5d4   :  { %12196 = vst [vmem:[#allocation169_spill] sm:$0xff] %v10231_v30  ;;  %v3828_v33 = vadd.f32 %v10231_v30, %v10226_v56  ;;  %3826 = vadd.xlane.f32.xlu0 %v3825_v50  ;;  %v6330_v30 = vld [vmem:[#allocation7 + $0x80] ss:$8 sps:$4 sm:$0xff]  }
 0x5d6   :  { %3829 = vadd.xlane.f32.xlu1 %v3828_v33 }
 0x5d7   :  { %v3708_v8 = vpop.f32.mrb[68].mxu1 }
 0x5d8   :  { %v10236_v0 = vadd.f32 %v3708_v8, %v10086_v28  ;;  %v3710_v63 = vpop.f32.mrb[69].mxu1 }
 0x5d9   :  { %v10239_v41 = vadd.f32 %v3710_v63, %v10089_v5  ;;  %v3712_v2 = vpop.f32.mrb[70].mxu1 }
 0x5da   :  { %12197 = vst [vmem:[#allocation172_spill] sm:$0xff] %v10236_v0  ;;  %v10242_v29 = vadd.f32 %v3712_v2, %v10086_v28  ;;  %v3714_v1 = vpop.f32.mrb[71].mxu1 }
 0x5db   :  { %12198 = vst [vmem:[#allocation142_spill] sm:$0xff] %v10239_v41  ;;  %v3831_v40 = vadd.f32 %v10239_v41, %v10236_v0  ;;  %v10247_v34 = vadd.f32 %v3714_v1, %v10089_v5  ;;  %v6327_v0 = vld [vmem:[#allocation7 + $0x70] ss:$8 sps:$4 sm:$0xff]  }
 0x5dc   :  { %12199 = vst [vmem:[#allocation143_spill] sm:$0xff] %v10242_v29 }
 0x5dd   :  { %12200 = vst [vmem:[#allocation157_spill] sm:$0xff] %v10247_v34  ;;  %v3834_v53 = vadd.f32 %v10247_v34, %v10242_v29  ;;  %3832 = vadd.xlane.f32.xlu0 %v3831_v40  ;;  %v6320_v34 = vld [vmem:[#allocation7 + $0x44] ss:$8 sps:$4 sm:$0xff]  }
 0x5df   :  { %3835 = vadd.xlane.f32.xlu1 %v3834_v53 }
 0x5e0   :  { %v3718_v58 = vpop.f32.mrb[72].mxu1 }
 0x5e1   :  { %v10252_v62 = vadd.f32 %v3718_v58, %v10086_v28  ;;  %v3720_v14 = vpop.f32.mrb[73].mxu1 }
 0x5e2   :  { %v10255_v44 = vadd.f32 %v3720_v14, %v10089_v5  ;;  %v3722_v52 = vpop.f32.mrb[74].mxu1 }
 0x5e3   :  { %12201 = vst [vmem:[#allocation144_spill] sm:$0xff] %v10252_v62  ;;  %v10258_v54 = vadd.f32 %v3722_v52, %v10086_v28  ;;  %v3724_v61 = vpop.f32.mrb[75].mxu1  ;;  %v6306_v52 = vld [vmem:[#allocation7] ss:$8 sps:$4 sm:$0xff]  }
 0x5e4   :  { %12202 = vst [vmem:[#allocation128_spill] sm:$0xff] %v10255_v44  ;;  %v3837_v21 = vadd.f32 %v10255_v44, %v10252_v62  ;;  %v10263_v22 = vadd.f32 %v3724_v61, %v10089_v5  ;;  %v6308_v61 = vld [vmem:[#allocation7 + $0x4] ss:$8 sps:$4 sm:$0xff]   ;;  %v6315_v44 = vld [vmem:[#allocation7 + $0x30] ss:$8 sps:$4 sm:$0xff]  }
 0x5e5   :  { %12203 = vst [vmem:[#allocation122_spill] sm:$0xff] %v10258_v54  ;;  %4738 = vmatprep.subr.bf16.mxu1 %v6308_v61  ;;  %v6323_v61 = vld [vmem:[#allocation7 + $0x54] ss:$8 sps:$4 sm:$0xff]  }
 0x5e6   :  { %12204 = vst [vmem:[#allocation17_spill] sm:$0xff] %v10263_v22  ;;  %v3840_v3 = vadd.f32 %v10263_v22, %v10258_v54  ;;  %3838 = vadd.xlane.f32.xlu0 %v3837_v21  ;;  %v6311_v21 = vld [vmem:[#allocation7 + $0x14] ss:$8 sps:$4 sm:$0xff]   ;;  %4739 = vmatpush1.bf16.msra.mxu1 %v6306_v52  ;;  %v6318_v52 = vld [vmem:[#allocation7 + $0x40] ss:$8 sps:$4 sm:$0xff]  }
 0x5e7   :  { %4740 = vmatprep.subr.bf16.mxu1 %v6311_v21  ;;  %v6317_v22 = vld [vmem:[#allocation7 + $0x34] ss:$8 sps:$4 sm:$0xff]   ;;  %v6321_v21 = vld [vmem:[#allocation7 + $0x50] ss:$8 sps:$4 sm:$0xff]  }
 0x5e8   :  { %3841 = vadd.xlane.f32.xlu1 %v3840_v3  ;;  %v6309_v3 = vld [vmem:[#allocation7 + $0x10] ss:$8 sps:$4 sm:$0xff]  }
 0x5ea   :  { %v10267_v7 = vpop.f32.mrb[76].mxu1  ;;  %4741 = vmatpush1.bf16.msra.mxu1 %v6309_v3  ;;  %v6324_v3 = vld [vmem:[#allocation7 + $0x60] ss:$8 sps:$4 sm:$0xff]  }
 0x5eb   :  { %v10269_v36 = vpop.f32.mrb[77].mxu1  ;;  %4742 = vmatprep.subr.bf16.mxu1 %v6314_v26  ;;  %v6326_v26 = vld [vmem:[#allocation7 + $0x64] ss:$8 sps:$4 sm:$0xff]  }
 0x5ec   :  { %v10271_v50 = vpop.f32.mrb[78].mxu1 }
 0x5ed   :  { %v10273_v33 = vpop.f32.mrb[79].mxu1 }
 0x5ee   :  { %4743 = vmatpush1.bf16.msra.mxu1 %v6312_v42  ;;  %v6329_v42 = vld [vmem:[#allocation7 + $0x74] ss:$8 sps:$4 sm:$0xff]  }
 0x5ef   :  { %4744 = vmatprep.subr.bf16.mxu1 %v6317_v22  ;;  %v6332_v22 = vld [vmem:[#allocation7 + $0x84] ss:$8 sps:$4 sm:$0xff]  }
 0x5f2   :  { %v10275_v8 = vpop.f32.mrb[80].mxu1  ;;  %4745 = vmatpush1.bf16.msra.mxu1 %v6315_v44 }
 0x5f3   :  { %v10277_v63 = vpop.f32.mrb[81].mxu1  ;;  %4746 = vmatprep.subr.bf16.mxu1 %v6320_v34 }
 0x5f4   :  { %v10279_v2 = vpop.f32.mrb[82].mxu1 }
 0x5f5   :  { %v10281_v1 = vpop.f32.mrb[83].mxu1 }
 0x5f6   :  { %4747 = vmatpush1.bf16.msra.mxu1 %v6318_v52 }
 0x5f7   :  { %4748 = vmatprep.subr.bf16.mxu1 %v6323_v61 }
 0x5fa   :  { %v10283_v40 = vpop.f32.mrb[84].mxu1  ;;  %4749 = vmatpush1.bf16.msra.mxu1 %v6321_v21 }
 0x5fb   :  { %v10285_v53 = vpop.f32.mrb[85].mxu1  ;;  %4750 = vmatprep.subr.bf16.mxu1 %v6326_v26 }
 0x5fc   :  { %v10287_v58 = vpop.f32.mrb[86].mxu1 }
 0x5fd   :  { %v10289_v14 = vpop.f32.mrb[87].mxu1 }
 0x5fe   :  { %4751 = vmatpush1.bf16.msra.mxu1 %v6324_v3 }
 0x5ff   :  { %4752 = vmatprep.subr.bf16.mxu1 %v6329_v42 }
 0x602   :  { %4753 = vmatpush1.bf16.msra.mxu1 %v6327_v0 }
 0x603   :  { %4754 = vmatprep.subr.bf16.mxu1 %v6332_v22 }
 0x606   :  { %4755 = vmatpush1.bf16.msra.mxu1 %v6330_v30 }
 0x607   :  { %v10291_v54 = vpop.f32.mrb[88].mxu1 }
 0x608   :  { %v10293_v62 = vpop.f32.mrb[89].mxu1 }
 0x609   :  { %v10295_v29 = vpop.f32.mrb[90].mxu1 }
 0x60a   :  { %v10297_v41 = vpop.f32.mrb[91].mxu1 }
 0x617   :  { %v10299_v56 = vpop.f32.mrb[92].mxu1 }
 0x618   :  { %v10301_v34 = vpop.f32.mrb[93].mxu1  ;;  %v3779_v44 = vpop.xlane.xlu1 %3778 }
 0x619   :  { %v10303_v52 = vpop.f32.mrb[94].mxu1  ;;  %v3873_v61 = vmul.f32 0.00390625, %v3779_v44 }
 0x61a   :  { %v10305_v21 = vpop.f32.mrb[95].mxu1  ;;  %v3782_v26 = vpop.xlane.xlu0 %3781 }
 0x61b   :  { %v10308_v3 = vsub.f32 %v10092_v9, %v3873_v61  ;;  %v10311_v42 = vsub.f32 %v10095_v45, %v3873_v61  ;;  %v3874_v0 = vmul.f32 0.00390625, %v3782_v26  ;;  %v10325_v9 = vadd.f32 %v10267_v7, %v10086_v28 }
 0x61c   :  { %v10329_v45 = vadd.f32 %v10269_v36, %v10089_v5 }
 0x61d   :  { %12205 = vst [vmem:[#allocation165_spill] sm:$0xff] %v10308_v3  ;;  %12206 = vst [vmem:[#allocation205_spill] sm:$0xff] %v10311_v42  ;;  %v3969_v22 = vmul.f32 %v10308_v3, %v10308_v3  ;;  %v3970_v30 = vmul.f32 %v10311_v42, %v10311_v42  ;;  %v10318_v27 = vsub.f32 %v10098_v43, %v3874_v0 }
 0x61e   :  { %v10321_v44 = vsub.f32 %v10103_v4, %v3874_v0  ;;  %v10337_v43 = vadd.f32 %v10271_v50, %v10086_v28  ;;  %v10341_v4 = vadd.f32 %v10273_v33, %v10089_v5 }
 0x61f   :  { %12207 = vst [vmem:[#allocation153_spill] sm:$0xff] %v10318_v27  ;;  %v3971_v61 = vmul.f32 %v10318_v27, %v10318_v27  ;;  %v4033_v42 = vadd.f32 %v3970_v30, %v3969_v22  ;;  %v3843_v27 = vadd.f32 %v10329_v45, %v10325_v9 }
 0x620   :  { %v3972_v26 = vmul.f32 %v10321_v44, %v10321_v44  ;;  %v3846_v33 = vadd.f32 %v10341_v4, %v10337_v43 }
 0x621   :  { %v3785_v7 = vpop.xlane.xlu0 %3784  ;;  %4034 = vadd.xlane.f32.xlu0 %v4033_v42 }
 0x622   :  { %v3875_v0 = vmul.f32 0.00390625, %v3785_v7  ;;  %v4036_v36 = vadd.f32 %v3972_v26, %v3971_v61 }
 0x623   :  { %v3788_v3 = vpop.xlane.xlu1 %3787 }
 0x624   :  { %v10346_v17 = vsub.f32 %v10108_v31, %v3875_v0  ;;  %v10349_v22 = vsub.f32 %v10111_v19, %v3875_v0  ;;  %v3876_v50 = vmul.f32 0.00390625, %v3788_v3  ;;  %4037 = vadd.xlane.f32.xlu1 %v4036_v36  ;;  %v10365_v19 = vadd.f32 %v10275_v8, %v10086_v28 }
 0x625   :  { %3844 = vadd.xlane.f32.xlu0 %v3843_v27  ;;  %v10369_v3 = vadd.f32 %v10277_v63, %v10089_v5  ;;  %v10381_v27 = vadd.f32 %v10281_v1, %v10089_v5 }
 0x626   :  { %v3973_v30 = vmul.f32 %v10346_v17, %v10346_v17  ;;  %v3974_v42 = vmul.f32 %v10349_v22, %v10349_v22  ;;  %v10358_v61 = vsub.f32 %v10114_v35, %v3876_v50  ;;  %v10361_v31 = vsub.f32 %v10119_v20, %v3876_v50 }
 0x627   :  { %v10377_v20 = vadd.f32 %v10279_v2, %v10086_v28  ;;  %v3849_v50 = vadd.f32 %v10369_v3, %v10365_v19 }
 0x628   :  { %12208 = vst [vmem:[#allocation209_spill] sm:$0xff] %v10358_v61  ;;  %v3975_v26 = vmul.f32 %v10358_v61, %v10358_v61  ;;  %v3976_v7 = vmul.f32 %v10361_v31, %v10361_v31  ;;  %3847 = vadd.xlane.f32.xlu1 %v3846_v33  ;;  %v4039_v35 = vadd.f32 %v3974_v42, %v3973_v30 }
 0x629   :  { %v3852_v1 = vadd.f32 %v10381_v27, %v10377_v20 }
 0x62a   :  { %4040 = vadd.xlane.f32.xlu0 %v4039_v35  ;;  %v4042_v63 = vadd.f32 %v3976_v7, %v3975_v26  ;;  %v10409_v7 = vadd.f32 %v10285_v53, %v10089_v5 }
 0x62c   :  { %v3791_v8 = vpop.xlane.xlu0 %3790  ;;  %4043 = vadd.xlane.f32.xlu1 %v4042_v63 }
 0x62d   :  { %v3877_v0 = vmul.f32 0.00390625, %v3791_v8 }
 0x62e   :  { %v3794_v36 = vpop.xlane.xlu1 %3793  ;;  %3850 = vadd.xlane.f32.xlu0 %v3849_v50 }
 0x62f   :  { %v10386_v61 = vsub.f32 %v10124_v10, %v3877_v0  ;;  %v10389_v33 = vsub.f32 %v10127_v16, %v3877_v0  ;;  %v3878_v2 = vmul.f32 0.00390625, %v3794_v36  ;;  %v10405_v16 = vadd.f32 %v10283_v40, %v10086_v28 }
 0x630   :  { %3853 = vadd.xlane.f32.xlu1 %v3852_v1  ;;  %v10421_v40 = vadd.f32 %v10289_v14, %v10089_v5 }
 0x631   :  { %v3977_v30 = vmul.f32 %v10386_v61, %v10386_v61  ;;  %v3978_v42 = vmul.f32 %v10389_v33, %v10389_v33  ;;  %v10398_v26 = vsub.f32 %v10130_v37, %v3878_v2  ;;  %v10401_v10 = vsub.f32 %v10135_v51, %v3878_v2 }
 0x632   :  { %v10417_v51 = vadd.f32 %v10287_v58, %v10086_v28  ;;  %v3855_v50 = vadd.f32 %v10409_v7, %v10405_v16 }
 0x633   :  { %v3979_v35 = vmul.f32 %v10398_v26, %v10398_v26  ;;  %v3980_v8 = vmul.f32 %v10401_v10, %v10401_v10  ;;  %v4045_v37 = vadd.f32 %v3978_v42, %v3977_v30 }
 0x634   :  { %v3858_v14 = vadd.f32 %v10421_v40, %v10417_v51 }
 0x635   :  { %v3797_v0 = vpop.xlane.xlu0 %3796  ;;  %4046 = vadd.xlane.f32.xlu0 %v4045_v37  ;;  %v4048_v53 = vadd.f32 %v3980_v8, %v3979_v35  ;;  %v10449_v8 = vadd.f32 %v10293_v62, %v10089_v5 }
 0x636   :  { %v3879_v63 = vmul.f32 0.00390625, %v3797_v0 }
 0x637   :  { %v3800_v36 = vpop.xlane.xlu1 %3799  ;;  %4049 = vadd.xlane.f32.xlu1 %v4048_v53 }
 0x638   :  { %v10426_v2 = vsub.f32 %v10140_v23, %v3879_v63  ;;  %v10429_v1 = vsub.f32 %v10143_v18, %v3879_v63  ;;  %v3880_v58 = vmul.f32 0.00390625, %v3800_v36  ;;  %v10445_v18 = vadd.f32 %v10291_v54, %v10086_v28 }
 0x639   :  { %3856 = vadd.xlane.f32.xlu0 %v3855_v50  ;;  %v10461_v54 = vadd.f32 %v10297_v41, %v10089_v5 }
 0x63a   :  { %v3981_v30 = vmul.f32 %v10426_v2, %v10426_v2  ;;  %v3982_v42 = vmul.f32 %v10429_v1, %v10429_v1  ;;  %v10438_v35 = vsub.f32 %v10146_v15, %v3880_v58  ;;  %v10441_v23 = vsub.f32 %v10151_v60, %v3880_v58 }
 0x63b   :  { %3859 = vadd.xlane.f32.xlu1 %v3858_v14  ;;  %v10457_v60 = vadd.f32 %v10295_v29, %v10086_v28  ;;  %v3861_v50 = vadd.f32 %v10449_v8, %v10445_v18 }
 0x63c   :  { %v3983_v37 = vmul.f32 %v10438_v35, %v10438_v35  ;;  %v3984_v0 = vmul.f32 %v10441_v23, %v10441_v23  ;;  %v4051_v15 = vadd.f32 %v3982_v42, %v3981_v30 }
 0x63d   :  { %v3864_v41 = vadd.f32 %v10461_v54, %v10457_v60 }
 0x63e   :  { %v3803_v63 = vpop.xlane.xlu0 %3802  ;;  %4052 = vadd.xlane.f32.xlu0 %v4051_v15  ;;  %v4054_v62 = vadd.f32 %v3984_v0, %v3983_v37  ;;  %v10489_v0 = vadd.f32 %v10301_v34, %v10089_v5  ;;  %v6335_v34 = vld [vmem:[#allocation7 + $0x94] ss:$8 sps:$4 sm:$0xff]  }
 0x63f   :  { %v3881_v53 = vmul.f32 0.00390625, %v3803_v63  ;;  %4756 = vmatprep.subr.bf16.mxu1 %v6335_v34 }
 0x640   :  { %v3806_v36 = vpop.xlane.xlu1 %3805  ;;  %4055 = vadd.xlane.f32.xlu1 %v4054_v62  ;;  %v6333_v62 = vld [vmem:[#allocation7 + $0x90] ss:$8 sps:$4 sm:$0xff]  }
 0x641   :  { %v10466_v58 = vsub.f32 %v10156_v6, %v3881_v53  ;;  %v10469_v14 = vsub.f32 %v10159_v59, %v3881_v53  ;;  %v3882_v29 = vmul.f32 0.00390625, %v3806_v36  ;;  %v10485_v59 = vadd.f32 %v10299_v56, %v10086_v28  ;;  %4757 = vmatpush1.bf16.msra.mxu1 %v6333_v62  ;;  %v6339_v62 = vld [vmem:[#allocation7 + $0xb0] ss:$8 sps:$4 sm:$0xff]  }
 0x642   :  { %3862 = vadd.xlane.f32.xlu0 %v3861_v50  ;;  %v10501_v56 = vadd.f32 %v10305_v21, %v10089_v5 }
 0x643   :  { %v3985_v30 = vmul.f32 %v10466_v58, %v10466_v58  ;;  %v3986_v42 = vmul.f32 %v10469_v14, %v10469_v14  ;;  %v10478_v37 = vsub.f32 %v10162_v38, %v3882_v29  ;;  %v10481_v6 = vsub.f32 %v10167_v32, %v3882_v29 }
 0x644   :  { %3865 = vadd.xlane.f32.xlu1 %v3864_v41  ;;  %v10497_v32 = vadd.f32 %v10303_v52, %v10086_v28  ;;  %v3867_v41 = vadd.f32 %v10489_v0, %v10485_v59  ;;  %v6336_v52 = vld [vmem:[#allocation7 + $0xa0] ss:$8 sps:$4 sm:$0xff]  }
 0x645   :  { %12209 = vst [vmem:[#allocation20_spill] sm:$0xff] %v10478_v37  ;;  %v3987_v15 = vmul.f32 %v10478_v37, %v10478_v37  ;;  %v3988_v63 = vmul.f32 %v10481_v6, %v10481_v6  ;;  %v4057_v38 = vadd.f32 %v3986_v42, %v3985_v30  ;;  %v6338_v37 = vld [vmem:[#allocation7 + $0xa4] ss:$8 sps:$4 sm:$0xff]   ;;  %v6341_v42 = vld [vmem:[#allocation7 + $0xb4] ss:$8 sps:$4 sm:$0xff]  }
 0x646   :  { %v3809_v53 = vpop.xlane.xlu0 %3808  ;;  %v3870_v21 = vadd.f32 %v10501_v56, %v10497_v32  ;;  %4758 = vmatprep.subr.bf16.mxu1 %v6338_v37 }
 0x647   :  { %v3883_v36 = vmul.f32 0.00390625, %v3809_v53  ;;  %4058 = vadd.xlane.f32.xlu0 %v4057_v38  ;;  %v4060_v50 = vadd.f32 %v3988_v63, %v3987_v15  ;;  %4759 = vmatpush1.bf16.msra.mxu1 %v6336_v52  ;;  %v6347_v52 = vld [vmem:[#allocation7 + $0xd4] ss:$8 sps:$4 sm:$0xff]  }
 0x648   :  { %v3812_v29 = vpop.xlane.xlu1 %3811  ;;  %4760 = vmatprep.subr.bf16.mxu1 %v6341_v42 }
 0x649   :  { %v10506_v30 = vsub.f32 %v10172_v24, %v3883_v36  ;;  %v10509_v28 = vsub.f32 %v10175_v47, %v3883_v36  ;;  %v3884_v5 = vmul.f32 0.00390625, %v3812_v29  ;;  %4061 = vadd.xlane.f32.xlu1 %v4060_v50  ;;  %v6344_v36 = vld [vmem:[#allocation7 + $0xc4] ss:$8 sps:$4 sm:$0xff]  }
 0x64b   :  { %v3989_v15 = vmul.f32 %v10506_v30, %v10506_v30  ;;  %v3990_v63 = vmul.f32 %v10509_v28, %v10509_v28  ;;  %v10518_v24 = vsub.f32 %v10178_v13, %v3884_v5  ;;  %v10521_v47 = vsub.f32 %v10183_v12, %v3884_v5  ;;  %3868 = vadd.xlane.f32.xlu0 %v3867_v41 }
 0x64c   :  { %4761 = vmatpush1.bf16.msra.mxu1 %v6339_v62 }
 0x64d   :  { %v3991_v38 = vmul.f32 %v10518_v24, %v10518_v24  ;;  %v3992_v37 = vmul.f32 %v10521_v47, %v10521_v47  ;;  %3871 = vadd.xlane.f32.xlu1 %v3870_v21  ;;  %v4063_v53 = vadd.f32 %v3990_v63, %v3989_v15  ;;  %v6342_v21 = vld [vmem:[#allocation7 + $0xc0] ss:$8 sps:$4 sm:$0xff]   ;;  %4762 = vmatprep.subr.bf16.mxu1 %v6344_v36 }
 0x64e   :  { %v3815_v34 = vpop.xlane.xlu0 %3814 }
 0x64f   :  { %v3885_v50 = vmul.f32 0.00390625, %v3815_v34  ;;  %4064 = vadd.xlane.f32.xlu0 %v4063_v53  ;;  %v4066_v13 = vadd.f32 %v3992_v37, %v3991_v38  ;;  %v6345_v53 = vld [vmem:[#allocation7 + $0xd0] ss:$8 sps:$4 sm:$0xff]   ;;  %v6350_v34 = vld [vmem:[#allocation7 + $0xe4] ss:$8 sps:$4 sm:$0xff]  }
 0x650   :  { %v3818_v29 = vpop.xlane.xlu1 %3817  ;;  %4763 = vmatpush1.bf16.msra.mxu1 %v6342_v21  ;;  %v6353_v21 = vld [vmem:[#allocation7 + $0xf4] ss:$8 sps:$4 sm:$0xff]  }
 0x651   :  { %v10528_v12 = vsub.f32 %v10188_v39, %v3885_v50  ;;  %v10531_v41 = vsub.f32 %v10191_v57, %v3885_v50  ;;  %v3886_v5 = vmul.f32 0.00390625, %v3818_v29  ;;  %4067 = vadd.xlane.f32.xlu1 %v4066_v13  ;;  %4764 = vmatprep.subr.bf16.mxu1 %v6347_v52 }
 0x653   :  { %v3993_v42 = vmul.f32 %v10528_v12, %v10528_v12  ;;  %v3994_v15 = vmul.f32 %v10531_v41, %v10531_v41  ;;  %v10538_v63 = vsub.f32 %v10194_v48, %v3886_v5  ;;  %v10541_v39 = vsub.f32 %v10199_v55, %v3886_v5  ;;  %v6348_v5 = vld [vmem:[#allocation7 + $0xe0] ss:$8 sps:$4 sm:$0xff]  }
 0x654   :  { %4765 = vmatpush1.bf16.msra.mxu1 %v6345_v53 }
 0x655   :  { %v3995_v57 = vmul.f32 %v10538_v63, %v10538_v63  ;;  %v3996_v38 = vmul.f32 %v10541_v39, %v10541_v39  ;;  %v4069_v37 = vadd.f32 %v3994_v15, %v3993_v42  ;;  %4766 = vmatprep.subr.bf16.mxu1 %v6350_v34 }
 0x657   :  { %v3821_v62 = vpop.xlane.xlu0 %3820  ;;  %4070 = vadd.xlane.f32.xlu0 %v4069_v37  ;;  %v4072_v50 = vadd.f32 %v3996_v38, %v3995_v57  ;;  %v6351_v37 = vld [vmem:[#allocation7 + $0xf0] ss:$8 sps:$4 sm:$0xff]  }
 0x658   :  { %v3887_v36 = vmul.f32 0.00390625, %v3821_v62  ;;  %4767 = vmatpush1.bf16.msra.mxu1 %v6348_v5 }
 0x659   :  { %v3824_v48 = vpop.xlane.xlu1 %3823  ;;  %4073 = vadd.xlane.f32.xlu1 %v4072_v50  ;;  %4768 = vmatprep.subr.bf16.mxu1 %v6353_v21  ;;  %v12215_v21 = vld [vmem:[#allocation207_spill] sm:$0xff] }
 0x65a   :  { %v10548_v13 = vsub.f32 %v10204_v11, %v3887_v36  ;;  %v10551_v55 = vsub.f32 %v10207_v49, %v3887_v36  ;;  %v3888_v29 = vmul.f32 0.00390625, %v3824_v48 }
 0x65c   :  { %v3997_v52 = vmul.f32 %v10548_v13, %v10548_v13  ;;  %v3998_v42 = vmul.f32 %v10551_v55, %v10551_v55  ;;  %v10558_v15 = vsub.f32 %v10210_v46, %v3888_v29  ;;  %v10561_v11 = vsub.f32 %v10215_v25, %v3888_v29  ;;  %v12211_v46 = vld [vmem:[#allocation71_spill] sm:$0xff]  ;;  %v12213_v25 = vld [vmem:[#allocation141_spill] sm:$0xff]  ;;  %4769 = vmatpush1.bf16.msra.mxu1 %v6351_v37 }
 0x65e   :  { %12210 = vst [vmem:[#allocation201_spill] sm:$0xff] %v10558_v15  ;;  %v3999_v49 = vmul.f32 %v10558_v15, %v10558_v15  ;;  %v4000_v57 = vmul.f32 %v10561_v11, %v10561_v11  ;;  %v4075_v38 = vadd.f32 %v3998_v42, %v3997_v52 }
 0x660   :  { %4076 = vadd.xlane.f32.xlu0 %v4075_v38  ;;  %v4078_v34 = vadd.f32 %v4000_v57, %v3999_v49  ;;  %v12217_v49 = vld [vmem:[#allocation169_spill] sm:$0xff] }
 0x661   :  { %v3827_v53 = vpop.xlane.xlu0 %3826 }
 0x662   :  { %v3889_v62 = vmul.f32 0.00390625, %v3827_v53  ;;  %4079 = vadd.xlane.f32.xlu1 %v4078_v34 }
 0x663   :  { %v3830_v36 = vpop.xlane.xlu1 %3829 }
 0x664   :  { %v10568_v50 = vsub.f32 %v12211_v46, %v3889_v62  ;;  %v10571_v48 = vsub.f32 %v12213_v25, %v3889_v62  ;;  %v3890_v29 = vmul.f32 0.00390625, %v3830_v36  ;;  %v12219_v25 = vld [vmem:[#allocation172_spill] sm:$0xff] }
 0x666   :  { %12212 = vst [vmem:[#allocation170_spill] sm:$0xff] %v10568_v50  ;;  %12214 = vst [vmem:[#allocation72_spill] sm:$0xff] %v10571_v48  ;;  %v4001_v52 = vmul.f32 %v10568_v50, %v10568_v50  ;;  %v4002_v5 = vmul.f32 %v10571_v48, %v10571_v48  ;;  %v10578_v42 = vsub.f32 %v12215_v21, %v3890_v29  ;;  %v12221_v21 = vld [vmem:[#allocation142_spill] sm:$0xff] }
 0x667   :  { %v10581_v57 = vsub.f32 %v12217_v49, %v3890_v29 }
 0x668   :  { %12216 = vst [vmem:[#allocation30_spill] sm:$0xff] %v10578_v42  ;;  %v4003_v38 = vmul.f32 %v10578_v42, %v10578_v42  ;;  %v4081_v62 = vadd.f32 %v4002_v5, %v4001_v52  ;;  %v12223_v52 = vld [vmem:[#allocation143_spill] sm:$0xff] }
 0x669   :  { %12218 = vst [vmem:[#allocation22_spill] sm:$0xff] %v10581_v57  ;;  %v4004_v53 = vmul.f32 %v10581_v57, %v10581_v57 }
 0x66a   :  { %v3833_v37 = vpop.xlane.xlu0 %3832  ;;  %4082 = vadd.xlane.f32.xlu0 %v4081_v62  ;;  %v12225_v62 = vld [vmem:[#allocation157_spill] sm:$0xff] }
 0x66b   :  { %v3891_v34 = vmul.f32 0.00390625, %v3833_v37  ;;  %v4084_v36 = vadd.f32 %v4004_v53, %v4003_v38 }
 0x66c   :  { %v3836_v46 = vpop.xlane.xlu1 %3835 }
 0x66d   :  { %v10588_v50 = vsub.f32 %v12219_v25, %v3891_v34  ;;  %v10591_v48 = vsub.f32 %v12221_v21, %v3891_v34  ;;  %v3892_v29 = vmul.f32 0.00390625, %v3836_v46  ;;  %4085 = vadd.xlane.f32.xlu1 %v4084_v36 }
 0x66f   :  { %12220 = vst [vmem:[#allocation173_spill] sm:$0xff] %v10588_v50  ;;  %12222 = vst [vmem:[#allocation15_spill] sm:$0xff] %v10591_v48  ;;  %v4005_v49 = vmul.f32 %v10588_v50, %v10588_v50  ;;  %v4006_v42 = vmul.f32 %v10591_v48, %v10591_v48  ;;  %v10598_v5 = vsub.f32 %v12223_v52, %v3892_v29  ;;  %v12227_v50 = vld [vmem:[#allocation144_spill] sm:$0xff] }
 0x670   :  { %v10601_v38 = vsub.f32 %v12225_v62, %v3892_v29  ;;  %v12229_v52 = vld [vmem:[#allocation128_spill] sm:$0xff] }
 0x671   :  { %12224 = vst [vmem:[#allocation16_spill] sm:$0xff] %v10598_v5  ;;  %v4007_v53 = vmul.f32 %v10598_v5, %v10598_v5  ;;  %v4087_v34 = vadd.f32 %v4006_v42, %v4005_v49  ;;  %v12231_v42 = vld [vmem:[#allocation122_spill] sm:$0xff] }
 0x672   :  { %12226 = vst [vmem:[#allocation33_spill] sm:$0xff] %v10601_v38  ;;  %v4008_v37 = vmul.f32 %v10601_v38, %v10601_v38 }
 0x673   :  { %v3839_v36 = vpop.xlane.xlu0 %3838  ;;  %4088 = vadd.xlane.f32.xlu0 %v4087_v34  ;;  %v12233_v34 = vld [vmem:[#allocation17_spill] sm:$0xff] }
 0x674   :  { %v3893_v46 = vmul.f32 0.00390625, %v3839_v36  ;;  %v4090_v25 = vadd.f32 %v4008_v37, %v4007_v53 }
 0x675   :  { %v3842_v21 = vpop.xlane.xlu1 %3841 }
 0x676   :  { %v10608_v48 = vsub.f32 %v12227_v50, %v3893_v46  ;;  %v10611_v57 = vsub.f32 %v12229_v52, %v3893_v46  ;;  %v3894_v29 = vmul.f32 0.00390625, %v3842_v21  ;;  %4091 = vadd.xlane.f32.xlu1 %v4090_v25 }
 0x678   :  { %12228 = vst [vmem:[#allocation124_spill] sm:$0xff] %v10608_v48  ;;  %12230 = vst [vmem:[#allocation166_spill] sm:$0xff] %v10611_v57  ;;  %v4009_v62 = vmul.f32 %v10608_v48, %v10608_v48  ;;  %v4010_v5 = vmul.f32 %v10611_v57, %v10611_v57  ;;  %v10618_v49 = vsub.f32 %v12231_v42, %v3894_v29 }
 0x679   :  { %v10621_v53 = vsub.f32 %v12233_v34, %v3894_v29 }
 0x67a   :  { %12232 = vst [vmem:[#allocation61_spill] sm:$0xff] %v10618_v49  ;;  %v4011_v50 = vmul.f32 %v10618_v49, %v10618_v49  ;;  %v4093_v36 = vadd.f32 %v4010_v5, %v4009_v62 }
 0x67b   :  { %12234 = vst [vmem:[#allocation24_spill] sm:$0xff] %v10621_v53  ;;  %v4012_v37 = vmul.f32 %v10621_v53, %v10621_v53 }
 0x67c   :  { %4094 = vadd.xlane.f32.xlu0 %v4093_v36 }
 0x67d   :  { %v4096_v46 = vadd.f32 %v4012_v37, %v4011_v50 }
 0x67f   :  { %4097 = vadd.xlane.f32.xlu1 %v4096_v46 }
 0x6ae   :  { %v4035_v25 = vpop.xlane.xlu0 %4034 }
 0x6af   :  { %v4129_v21 = vmul.f32 0.00390625, %v4035_v25 }
 0x6b1   :  { %v4038_v52 = vpop.xlane.xlu1 %4037  ;;  %v4161_v48 = vadd.f32 1e-05, %v4129_v21 }
 0x6b2   :  { %v4130_v57 = vmul.f32 0.00390625, %v4038_v52  ;;  %v3845_v42 = vpop.xlane.xlu0 %3844 }
 0x6b3   :  { %6434 = vrsqrt.f32 %v4161_v48  ;;  %v3895_v29 = vmul.f32 0.00390625, %v3845_v42 }
 0x6b4   :  { %v4162_v38 = vadd.f32 1e-05, %v4130_v57 }
 0x6b5   :  { %v3848_v34 = vpop.xlane.xlu1 %3847  ;;  %v10628_v49 = vsub.f32 %v10325_v9, %v3895_v29  ;;  %v10631_v53 = vsub.f32 %v10329_v45, %v3895_v29  ;;  %v5505_v45 = vld [vmem:[%s11068_s6 + $0x4] ss:$8 sm:$0x3] }
 0x6b6   :  { %6436 = vrsqrt.f32 %v4162_v38  ;;  %v3896_v5 = vmul.f32 0.00390625, %v3848_v34  ;;  %v5506_v34 = vld [vmem:[%s11068_s6 + $0x5] ss:$8 sm:$0x3] }
 0x6b7   :  { %12235 = vst [vmem:[#allocation211_spill] sm:$0xff] %v10628_v49  ;;  %12236 = vst [vmem:[#allocation175_spill] sm:$0xff] %v10631_v53  ;;  %v4041_v62 = vpop.xlane.xlu0 %4040  ;;  %v4013_v50 = vmul.f32 %v10628_v49, %v10628_v49  ;;  %v4014_v37 = vmul.f32 %v10631_v53, %v10631_v53  ;;  %v12240_v49 = vld [vmem:[#allocation21_spill] sm:$0xff] }
 0x6b8   :  { %v10638_v48 = vsub.f32 %v10337_v43, %v3896_v5  ;;  %v10641_v57 = vsub.f32 %v10341_v4, %v3896_v5  ;;  %v4131_v38 = vmul.f32 0.00390625, %v4041_v62  ;;  %v12239_v5 = vld [vmem:[#allocation19_spill] sm:$0xff]  ;;  %v10657_v53 = vrot.slane %v5505_v45, %v12240_v49 }
 0x6b9   :  { %v4044_v9 = vpop.xlane.xlu1 %4043  ;;  %v4099_v21 = vadd.f32 %v4014_v37, %v4013_v50  ;;  %v10654_v62 = vrot.slane %v5505_v45, %v12239_v5  ;;  %v10671_v45 = vrot.slane %v5506_v34, %v12240_v49 }
 0x6ba   :  { %12237 = vst [vmem:[#allocation210_spill] sm:$0xff] %v10638_v48  ;;  %12238 = vst [vmem:[#allocation125_spill] sm:$0xff] %v10641_v57  ;;  %v4015_v36 = vmul.f32 %v10638_v48, %v10638_v48  ;;  %v4016_v46 = vmul.f32 %v10641_v57, %v10641_v57  ;;  %v4132_v25 = vmul.f32 0.00390625, %v4044_v9  ;;  %v4163_v52 = vadd.f32 1e-05, %v4131_v38 }
 0x6bb   :  { %v3851_v43 = vpop.xlane.xlu0 %3850  ;;  %4100 = vadd.xlane.f32.xlu0 %v4099_v21  ;;  %v12244_v21 = vld [vmem:[#allocation205_spill] sm:$0xff] }
 0x6bc   :  { %v4164_v42 = vadd.f32 1e-05, %v4132_v25  ;;  %v3897_v29 = vmul.f32 0.00390625, %v3851_v43  ;;  %v4102_v4 = vadd.f32 %v4016_v46, %v4015_v36  ;;  %6438 = vrsqrt.f32 %v4163_v52  ;;  %v12243_v36 = vld [vmem:[#allocation165_spill] sm:$0xff] }
 0x6bd   :  { %v3854_v48 = vpop.xlane.xlu1 %3853  ;;  %v6435_v9 = vpop.eup %6434  ;;  %v10668_v52 = vrot.slane %v5506_v34, %v12239_v5 }
 0x6be   :  { %6440 = vrsqrt.f32 %v4164_v42  ;;  %v10660_v50 = vsub.f32 %v10365_v19, %v3897_v29  ;;  %v10663_v37 = vsub.f32 %v10369_v3, %v3897_v29  ;;  %v3898_v38 = vmul.f32 0.00390625, %v3854_v48  ;;  %4103 = vadd.xlane.f32.xlu1 %v4102_v4 }
 0x6bf   :  { %v4225_v46 = vmul.f32 %v6435_v9, %v12243_v36  ;;  %v4226_v43 = vmul.f32 %v6435_v9, %v12244_v21  ;;  %v12247_v9 = vld [vmem:[#allocation153_spill] sm:$0xff] }
 0x6c0   :  { %12241 = vst [vmem:[#allocation18_spill] sm:$0xff] %v10660_v50  ;;  %12242 = vst [vmem:[#allocation212_spill] sm:$0xff] %v10663_v37  ;;  %v6437_v42 = vpop.eup %6436  ;;  %v4017_v19 = vmul.f32 %v10660_v50, %v10660_v50  ;;  %v4018_v3 = vmul.f32 %v10663_v37, %v10663_v37  ;;  %v10678_v48 = vsub.f32 %v10377_v20, %v3898_v38 }
 0x6c1   :  { %v10681_v29 = vsub.f32 %v10381_v27, %v3898_v38  ;;  %v4300_v4 = vmul.f32 %v10654_v62, %v4225_v46  ;;  %v4227_v36 = vmul.f32 %v6437_v42, %v12247_v9  ;;  %v4228_v49 = vmul.f32 %v6437_v42, %v10321_v44 }
 0x6c2   :  { %v4047_v25 = vpop.xlane.xlu0 %4046  ;;  %12245 = vst [vmem:[#allocation177_spill] sm:$0xff] %v10678_v48  ;;  %v4019_v5 = vmul.f32 %v10678_v48, %v10678_v48  ;;  %v4105_v20 = vadd.f32 %v4018_v3, %v4017_v19  ;;  %v4301_v46 = vmul.f32 %v10657_v53, %v4226_v43 }
 0x6c3   :  { %12246 = vst [vmem:[#allocation26_spill] sm:$0xff] %v10681_v29  ;;  %v4133_v21 = vmul.f32 0.00390625, %v4047_v25  ;;  %v4020_v50 = vmul.f32 %v10681_v29, %v10681_v29  ;;  %v4302_v57 = vmul.f32 %v10654_v62, %v4227_v36  ;;  %v4303_v9 = vmul.f32 %v10657_v53, %v4228_v49 }
 0x6c4   :  { %v4050_v34 = vpop.xlane.xlu1 %4049  ;;  %4106 = vadd.xlane.f32.xlu0 %v4105_v20  ;;  %v4375_v42 = vadd.f32 %v10668_v52, %v4300_v4  ;;  %v4376_v29 = vadd.f32 %v10671_v45, %v4301_v46 }
 0x6c5   :  { %v4134_v37 = vmul.f32 0.00390625, %v4050_v34  ;;  %v4165_v27 = vadd.f32 1e-05, %v4133_v21  ;;  %v4108_v44 = vadd.f32 %v4020_v50, %v4019_v5  ;;  %v4378_v19 = vadd.f32 %v10671_v45, %v4303_v9 }
 0x6c6   :  { %v3857_v38 = vpop.xlane.xlu0 %3856  ;;  %v4377_v3 = vadd.f32 %v10668_v52, %v4302_v57  ;;  %v6439_v5 = vpop.eup %6438  ;;  %v4440_v43 = vmax.f32 %v4376_v29, 0.0  ;;  %v4439_v21 = vmax.f32 %v4375_v42, 0.0 }
 0x6c7   :  { %v4166_v25 = vadd.f32 1e-05, %v4134_v37  ;;  %v3899_v15 = vmul.f32 0.00390625, %v3857_v38  ;;  %6442 = vrsqrt.f32 %v4165_v27  ;;  %4109 = vadd.xlane.f32.xlu1 %v4108_v44  ;;  %v4442_v4 = vmax.f32 %v4378_v19, 0.0 }
 0x6c8   :  { %v3860_v48 = vpop.xlane.xlu1 %3859  ;;  %v4441_v34 = vmax.f32 %v4377_v3, 0.0  ;;  %v6441_v20 = vpop.eup %6440  ;;  %v4230_v46 = vmul.f32 %v6439_v5, %v10349_v22 }
 0x6c9   :  { %6444 = vrsqrt.f32 %v4166_v25  ;;  %v10698_v36 = vsub.f32 %v10405_v16, %v3899_v15  ;;  %v10701_v49 = vsub.f32 %v10409_v7, %v3899_v15  ;;  %v3900_v37 = vmul.f32 0.00390625, %v3860_v48 }
 0x6ca   :  { %v4504_v38 = vpack.c.bf16 %v4442_v4, %v4440_v43  ;;  %v4503_v29 = vpack.c.bf16 %v4441_v34, %v4439_v21  ;;  %v4305_v3 = vmul.f32 %v10657_v53, %v4230_v46  ;;  %v12248_v4 = vld [vmem:[#allocation209_spill] sm:$0xff] }
 0x6cb   :  { %v4053_v50 = vpop.xlane.xlu0 %4052  ;;  %v4021_v27 = vmul.f32 %v10698_v36, %v10698_v36  ;;  %v4022_v57 = vmul.f32 %v10701_v49, %v10701_v49  ;;  %v10708_v16 = vsub.f32 %v10417_v51, %v3900_v37  ;;  %v10711_v7 = vsub.f32 %v10421_v40, %v3900_v37 }
 0x6cc   :  { %v4135_v15 = vmul.f32 0.00390625, %v4053_v50  ;;  %4770 = vmatprep.mubr.bf16.mxu1 %v4504_v38  ;;  %v4232_v40 = vmul.f32 %v6441_v20, %v10361_v31  ;;  %v4229_v37 = vmul.f32 %v6439_v5, %v10346_v17  ;;  %v4231_v21 = vmul.f32 %v6441_v20, %v12248_v4 }
 0x6cd   :  { %v4056_v48 = vpop.xlane.xlu1 %4055  ;;  %v4023_v9 = vmul.f32 %v10708_v16, %v10708_v16  ;;  %v4024_v25 = vmul.f32 %v10711_v7, %v10711_v7  ;;  %v4111_v42 = vadd.f32 %v4022_v57, %v4021_v27  ;;  %4771 = vmatmul.mubr.bf16.vlgmr.msra.gmra.mrb[96].mxu1 %v4503_v29  ;;  %v4380_v57 = vadd.f32 %v10671_v45, %v4305_v3 }
 0x6ce   :  { %v4136_v44 = vmul.f32 0.00390625, %v4056_v48  ;;  %v4167_v19 = vadd.f32 1e-05, %v4135_v15  ;;  %v4307_v27 = vmul.f32 %v10657_v53, %v4232_v40  ;;  %v4304_v15 = vmul.f32 %v10654_v62, %v4229_v37 }
 0x6cf   :  { %v3863_v51 = vpop.xlane.xlu0 %3862  ;;  %4112 = vadd.xlane.f32.xlu0 %v4111_v42  ;;  %v4114_v22 = vadd.f32 %v4024_v25, %v4023_v9  ;;  %v4444_v29 = vmax.f32 %v4380_v57, 0.0  ;;  %v4306_v46 = vmul.f32 %v10654_v62, %v4231_v21 }
 0x6d0   :  { %v4168_v50 = vadd.f32 1e-05, %v4136_v44  ;;  %v3901_v43 = vmul.f32 0.00390625, %v3863_v51  ;;  %6446 = vrsqrt.f32 %v4167_v19  ;;  %v4382_v20 = vadd.f32 %v10671_v45, %v4307_v27 }
 0x6d1   :  { %v3866_v34 = vpop.xlane.xlu1 %3865  ;;  %4115 = vadd.xlane.f32.xlu1 %v4114_v22  ;;  %v6443_v48 = vpop.eup %6442  ;;  %v4379_v9 = vadd.f32 %v10668_v52, %v4304_v15  ;;  %v4381_v3 = vadd.f32 %v10668_v52, %v4306_v46 }
 0x6d2   :  { %6448 = vrsqrt.f32 %v4168_v50  ;;  %v10726_v31 = vsub.f32 %v10445_v18, %v3901_v43  ;;  %v10729_v17 = vsub.f32 %v10449_v8, %v3901_v43  ;;  %v3902_v5 = vmul.f32 0.00390625, %v3866_v34 }
 0x6d3   :  { %v6445_v25 = vpop.eup %6444  ;;  %v4446_v40 = vmax.f32 %v4382_v20, 0.0  ;;  %v4443_v37 = vmax.f32 %v4379_v9, 0.0  ;;  %v4445_v27 = vmax.f32 %v4381_v3, 0.0 }
 0x6d4   :  { %v4059_v38 = vpop.xlane.xlu0 %4058  ;;  %v4025_v44 = vmul.f32 %v10726_v31, %v10726_v31  ;;  %v4026_v18 = vmul.f32 %v10729_v17, %v10729_v17  ;;  %v10739_v8 = vsub.f32 %v10457_v60, %v3902_v5  ;;  %v10742_v42 = vsub.f32 %v10461_v54, %v3902_v5 }
 0x6d5   :  { %v4137_v19 = vmul.f32 0.00390625, %v4059_v38  ;;  %v4506_v60 = vpack.c.bf16 %v4446_v40, %v4444_v29  ;;  %v4234_v54 = vmul.f32 %v6443_v48, %v10389_v33  ;;  %v4236_v38 = vmul.f32 %v6445_v25, %v10401_v10 }
 0x6d6   :  { %v4062_v51 = vpop.xlane.xlu1 %4061  ;;  %v4027_v50 = vmul.f32 %v10739_v8, %v10739_v8  ;;  %v4028_v43 = vmul.f32 %v10742_v42, %v10742_v42  ;;  %v4117_v4 = vadd.f32 %v4026_v18, %v4025_v44  ;;  %v4505_v20 = vpack.c.bf16 %v4445_v27, %v4443_v37 }
 0x6d7   :  { %v4138_v22 = vmul.f32 0.00390625, %v4062_v51  ;;  %v4169_v21 = vadd.f32 1e-05, %v4137_v19  ;;  %4780 = vmatprep.mubr.bf16.mxu1 %v4506_v60  ;;  %v4309_v9 = vmul.f32 %v10657_v53, %v4234_v54  ;;  %v4233_v44 = vmul.f32 %v6443_v48, %v10386_v61 }
 0x6d8   :  { %v3869_v34 = vpop.xlane.xlu0 %3868  ;;  %4118 = vadd.xlane.f32.xlu0 %v4117_v4  ;;  %v4120_v5 = vadd.f32 %v4028_v43, %v4027_v50  ;;  %4781 = vmatmul.mubr.bf16.gmra.mrb[100].mxu1 %v4505_v20  ;;  %v4311_v51 = vmul.f32 %v10657_v53, %v4236_v38  ;;  %v4235_v3 = vmul.f32 %v6445_v25, %v10398_v26 }
 0x6d9   :  { %v4170_v57 = vadd.f32 1e-05, %v4138_v22  ;;  %v3903_v15 = vmul.f32 0.00390625, %v3869_v34  ;;  %6450 = vrsqrt.f32 %v4169_v21  ;;  %v4384_v40 = vadd.f32 %v10671_v45, %v4309_v9 }
 0x6da   :  { %v3872_v46 = vpop.xlane.xlu1 %3871  ;;  %4121 = vadd.xlane.f32.xlu1 %v4120_v5  ;;  %v6447_v19 = vpop.eup %6446  ;;  %v4308_v61 = vmul.f32 %v10654_v62, %v4233_v44  ;;  %v4386_v4 = vadd.f32 %v10671_v45, %v4311_v51  ;;  %v4310_v25 = vmul.f32 %v10654_v62, %v4235_v3 }
 0x6db   :  { %6452 = vrsqrt.f32 %v4170_v57  ;;  %v10754_v29 = vsub.f32 %v10485_v59, %v3903_v15  ;;  %v10757_v33 = vsub.f32 %v10489_v0, %v3903_v15  ;;  %v3904_v18 = vmul.f32 0.00390625, %v3872_v46 }
 0x6dc   :  { %v4065_v10 = vpop.xlane.xlu0 %4064  ;;  %v6449_v48 = vpop.eup %6448  ;;  %v4448_v26 = vmax.f32 %v4384_v40, 0.0  ;;  %v4450_v54 = vmax.f32 %v4386_v4, 0.0  ;;  %v4238_v20 = vmul.f32 %v6447_v19, %v10429_v1 }
 0x6dd   :  { %v4029_v59 = vmul.f32 %v10754_v29, %v10754_v29  ;;  %v4030_v0 = vmul.f32 %v10757_v33, %v10757_v33  ;;  %v10768_v37 = vsub.f32 %v10497_v32, %v3904_v18  ;;  %v10771_v50 = vsub.f32 %v10501_v56, %v3904_v18 }
 0x6de   :  { %v4139_v43 = vmul.f32 0.00390625, %v4065_v10  ;;  %v4068_v22 = vpop.xlane.xlu1 %4067  ;;  %v4383_v32 = vadd.f32 %v10668_v52, %v4308_v61  ;;  %v4385_v56 = vadd.f32 %v10668_v52, %v4310_v25  ;;  %v4508_v46 = vpack.c.bf16 %v4450_v54, %v4448_v26 }
 0x6df   :  { %v4031_v21 = vmul.f32 %v10768_v37, %v10768_v37  ;;  %v4032_v60 = vmul.f32 %v10771_v50, %v10771_v50  ;;  %v4140_v34 = vmul.f32 0.00390625, %v4068_v22  ;;  %v4123_v57 = vadd.f32 %v4030_v0, %v4029_v59 }
 0x6e0   :  { %v4171_v27 = vadd.f32 1e-05, %v4139_v43  ;;  %v4447_v5 = vmax.f32 %v4383_v32, 0.0  ;;  %v4449_v9 = vmax.f32 %v4385_v56, 0.0  ;;  %v4240_v44 = vmul.f32 %v6449_v48, %v10441_v23  ;;  %4790 = vmatprep.mubr.bf16.mxu1 %v4508_v46 }
 0x6e1   :  { %v4172_v15 = vadd.f32 1e-05, %v4140_v34  ;;  %v4126_v38 = vadd.f32 %v4032_v60, %v4031_v21  ;;  %4124 = vadd.xlane.f32.xlu0 %v4123_v57  ;;  %v4313_v18 = vmul.f32 %v10657_v53, %v4238_v20  ;;  %v4237_v10 = vmul.f32 %v6447_v19, %v10426_v2 }
 0x6e2   :  { %6454 = vrsqrt.f32 %v4171_v27  ;;  %v4239_v51 = vmul.f32 %v6449_v48, %v10438_v35  ;;  %v4507_v3 = vpack.c.bf16 %v4449_v9, %v4447_v5  ;;  %v4315_v1 = vmul.f32 %v10657_v53, %v4240_v44 }
 0x6e3   :  { %6456 = vrsqrt.f32 %v4172_v15  ;;  %4127 = vadd.xlane.f32.xlu1 %v4126_v38  ;;  %v6451_v40 = vpop.eup %6450  ;;  %v4388_v43 = vadd.f32 %v10671_v45, %v4313_v18  ;;  %v4312_v23 = vmul.f32 %v10654_v62, %v4237_v10 }
 0x6e4   :  { %v4071_v61 = vpop.xlane.xlu0 %4070  ;;  %v4314_v22 = vmul.f32 %v10654_v62, %v4239_v51  ;;  %4791 = vmatmul.mubr.bf16.gmra.mrb[104].mxu1 %v4507_v3  ;;  %v4390_v2 = vadd.f32 %v10671_v45, %v4315_v1  ;;  %v4242_v35 = vmul.f32 %v6451_v40, %v10469_v14  ;;  %v4241_v48 = vmul.f32 %v6451_v40, %v10466_v58  ;;  %v12249_v14 = vld [vmem:[#allocation20_spill] sm:$0xff] }
 0x6e5   :  { %v6453_v59 = vpop.eup %6452  ;;  %v4141_v0 = vmul.f32 0.00390625, %v4071_v61  ;;  %v4452_v21 = vmax.f32 %v4388_v43, 0.0  ;;  %v4387_v60 = vadd.f32 %v10668_v52, %v4312_v23 }
 0x6e6   :  { %v4074_v4 = vpop.xlane.xlu1 %4073  ;;  %v4244_v19 = vmul.f32 %v6453_v59, %v10481_v6  ;;  %v4454_v34 = vmax.f32 %v4390_v2, 0.0  ;;  %v4389_v32 = vadd.f32 %v10668_v52, %v4314_v22  ;;  %v4317_v27 = vmul.f32 %v10657_v53, %v4242_v35 }
 0x6e7   :  { %v4173_v26 = vadd.f32 1e-05, %v4141_v0  ;;  %v4142_v25 = vmul.f32 0.00390625, %v4074_v4  ;;  %v4451_v57 = vmax.f32 %v4387_v60, 0.0  ;;  %v4243_v15 = vmul.f32 %v6453_v59, %v12249_v14 }
 0x6e8   :  { %v4319_v54 = vmul.f32 %v10657_v53, %v4244_v19  ;;  %v4510_v6 = vpack.c.bf16 %v4454_v34, %v4452_v21  ;;  %v4453_v5 = vmax.f32 %v4389_v32, 0.0  ;;  %v4392_v58 = vadd.f32 %v10671_v45, %v4317_v27 }
 0x6e9   :  { %6458 = vrsqrt.f32 %v4173_v26  ;;  %v4174_v56 = vadd.f32 1e-05, %v4142_v25  ;;  %v4316_v20 = vmul.f32 %v10654_v62, %v4241_v48  ;;  %v4318_v46 = vmul.f32 %v10654_v62, %v4243_v15 }
 0x6ea   :  { %v4394_v38 = vadd.f32 %v10671_v45, %v4319_v54  ;;  %4800 = vmatprep.mubr.bf16.mxu1 %v4510_v6  ;;  %v4509_v44 = vpack.c.bf16 %v4453_v5, %v4451_v57  ;;  %v4456_v10 = vmax.f32 %v4392_v58, 0.0  ;;  %v6354_v58 = vld [vmem:[#allocation8 + $0x40] sm:$0xff]  }
 0x6eb   :  { %6460 = vrsqrt.f32 %v4174_v56  ;;  %v4391_v61 = vadd.f32 %v10668_v52, %v4316_v20  ;;  %v4393_v1 = vadd.f32 %v10668_v52, %v4318_v46  ;;  %5818 = vmatprep.subr.bf16.mxu0 %v6354_v58 }
 0x6ec   :  { %v6455_v9 = vpop.eup %6454  ;;  %v4458_v51 = vmax.f32 %v4394_v38, 0.0  ;;  %4801 = vmatmul.mubr.bf16.gmra.mrb[108].mxu1 %v4509_v44  ;;  %v6355_v38 = vld [vmem:[#allocation8] sm:$0xff]  }
 0x6ed   :  { %v4077_v18 = vpop.xlane.xlu0 %4076  ;;  %v6457_v40 = vpop.eup %6456  ;;  %v4246_v59 = vmul.f32 %v6455_v9, %v10509_v28  ;;  %v4245_v22 = vmul.f32 %v6455_v9, %v10506_v30  ;;  %v4455_v19 = vmax.f32 %v4391_v61, 0.0  ;;  %v4457_v48 = vmax.f32 %v4393_v1, 0.0  ;;  %5819 = vmatpush3.bf16.msra.mxu0 %v6355_v38 }
 0x6ee   :  { %v4143_v3 = vmul.f32 0.00390625, %v4077_v18  ;;  %v4512_v43 = vpack.c.bf16 %v4458_v51, %v4456_v10  ;;  %v4248_v23 = vmul.f32 %v6457_v40, %v10521_v47  ;;  %v4247_v4 = vmul.f32 %v6457_v40, %v10518_v24 }
 0x6ef   :  { %v4080_v0 = vpop.xlane.xlu1 %4079  ;;  %v4321_v26 = vmul.f32 %v10657_v53, %v4246_v59  ;;  %v4320_v28 = vmul.f32 %v10654_v62, %v4245_v22  ;;  %v4511_v47 = vpack.c.bf16 %v4457_v48, %v4455_v19  ;;  %v6356_v22 = vld [vmem:[#allocation8 + $0x48] sm:$0xff]  }
 0x6f0   :  { %v4175_v2 = vadd.f32 1e-05, %v4143_v3  ;;  %v4144_v35 = vmul.f32 0.00390625, %v4080_v0  ;;  %4810 = vmatprep.mubr.bf16.mxu1 %v4512_v43  ;;  %v4323_v25 = vmul.f32 %v10657_v53, %v4248_v23  ;;  %v4322_v21 = vmul.f32 %v10654_v62, %v4247_v4  ;;  %5820 = vmatprep.subr.bf16.mxu0 %v6356_v22 }
 0x6f1   :  { %v4396_v30 = vadd.f32 %v10671_v45, %v4321_v26  ;;  %v4395_v57 = vadd.f32 %v10668_v52, %v4320_v28 }
 0x6f2   :  { %6462 = vrsqrt.f32 %v4175_v2  ;;  %v4176_v60 = vadd.f32 1e-05, %v4144_v35  ;;  %v4398_v24 = vadd.f32 %v10671_v45, %v4323_v25  ;;  %v4397_v34 = vadd.f32 %v10668_v52, %v4322_v21 }
 0x6f3   :  { %v6459_v32 = vpop.eup %6458  ;;  %v4460_v54 = vmax.f32 %v4396_v30, 0.0 }
 0x6f4   :  { %6464 = vrsqrt.f32 %v4176_v60  ;;  %v4462_v56 = vmax.f32 %v4398_v24, 0.0  ;;  %v4250_v6 = vmul.f32 %v6459_v32, %v10531_v41  ;;  %v4249_v5 = vmul.f32 %v6459_v32, %v10528_v12  ;;  %4811 = vmatmul.mubr.bf16.gmra.mrb[112].mxu1 %v4511_v47  ;;  %v12250_v32 = vld [vmem:[#allocation201_spill] sm:$0xff] }
 0x6f5   :  { %v6461_v14 = vpop.eup %6460  ;;  %v4461_v9 = vmax.f32 %v4397_v34, 0.0  ;;  %v4459_v41 = vmax.f32 %v4395_v57, 0.0 }
 0x6f6   :  { %v4514_v46 = vpack.c.bf16 %v4462_v56, %v4460_v54  ;;  %v4252_v44 = vmul.f32 %v6461_v14, %v10541_v39  ;;  %v4251_v18 = vmul.f32 %v6461_v14, %v10538_v63  ;;  %v4325_v40 = vmul.f32 %v10657_v53, %v4250_v6  ;;  %v6357_v6 = vld [vmem:[#allocation8 + $0x8] sm:$0xff]  }
 0x6f7   :  { %v4083_v27 = vpop.xlane.xlu0 %4082  ;;  %v4324_v3 = vmul.f32 %v10654_v62, %v4249_v5  ;;  %v4513_v59 = vpack.c.bf16 %v4461_v9, %v4459_v41  ;;  %5821 = vmatpush3.bf16.msra.mxu0 %v6357_v6 }
 0x6f8   :  { %v4145_v15 = vmul.f32 0.00390625, %v4083_v27  ;;  %4820 = vmatprep.mubr.bf16.mxu1 %v4514_v46  ;;  %v4327_v12 = vmul.f32 %v10657_v53, %v4252_v44  ;;  %v4326_v61 = vmul.f32 %v10654_v62, %v4251_v18  ;;  %v4400_v39 = vadd.f32 %v10671_v45, %v4325_v40  ;;  %v12251_v44 = vld [vmem:[#allocation72_spill] sm:$0xff] }
 0x6f9   :  { %v4399_v23 = vadd.f32 %v10668_v52, %v4324_v3 }
 0x6fa   :  { %v4086_v20 = vpop.xlane.xlu1 %4085  ;;  %v4177_v10 = vadd.f32 1e-05, %v4145_v15  ;;  %v4402_v63 = vadd.f32 %v10671_v45, %v4327_v12  ;;  %v4401_v0 = vadd.f32 %v10668_v52, %v4326_v61  ;;  %v4464_v2 = vmax.f32 %v4400_v39, 0.0 }
 0x6fb   :  { %v4146_v51 = vmul.f32 0.00390625, %v4086_v20 }
 0x6fc   :  { %6466 = vrsqrt.f32 %v4177_v10  ;;  %v6463_v43 = vpop.eup %6462  ;;  %v4466_v35 = vmax.f32 %v4402_v63, 0.0  ;;  %4821 = vmatmul.mubr.bf16.gmra.mrb[116].mxu1 %v4513_v59  ;;  %v4465_v60 = vmax.f32 %v4401_v0, 0.0  ;;  %v12252_v10 = vld [vmem:[#allocation170_spill] sm:$0xff] }
 0x6fd   :  { %v4178_v1 = vadd.f32 1e-05, %v4146_v51  ;;  %v4254_v19 = vmul.f32 %v6463_v43, %v10551_v55  ;;  %v4253_v48 = vmul.f32 %v6463_v43, %v10548_v13  ;;  %v4463_v55 = vmax.f32 %v4399_v23, 0.0  ;;  %v12254_v63 = vld [vmem:[#allocation30_spill] sm:$0xff] }
 0x6fe   :  { %v6465_v26 = vpop.eup %6464  ;;  %v4516_v21 = vpack.c.bf16 %v4466_v35, %v4464_v2 }
 0x6ff   :  { %6468 = vrsqrt.f32 %v4178_v1  ;;  %v4256_v47 = vmul.f32 %v6465_v26, %v10561_v11  ;;  %v4329_v30 = vmul.f32 %v10657_v53, %v4254_v19  ;;  %v4255_v27 = vmul.f32 %v6465_v26, %v12250_v32  ;;  %v12253_v1 = vld [vmem:[#allocation22_spill] sm:$0xff]  ;;  %v12255_v32 = vld [vmem:[#allocation15_spill] sm:$0xff] }
 0x700   :  { %v4089_v4 = vpop.xlane.xlu0 %4088  ;;  %v4328_v54 = vmul.f32 %v10654_v62, %v4253_v48  ;;  %4830 = vmatprep.mubr.bf16.mxu1 %v4516_v21  ;;  %v4515_v15 = vpack.c.bf16 %v4465_v60, %v4463_v55 }
 0x701   :  { %v4147_v25 = vmul.f32 0.00390625, %v4089_v4  ;;  %v4331_v13 = vmul.f32 %v10657_v53, %v4256_v47  ;;  %v4404_v56 = vadd.f32 %v10671_v45, %v4329_v30  ;;  %v4330_v14 = vmul.f32 %v10654_v62, %v4255_v27  ;;  %v6358_v47 = vld [vmem:[#allocation8 + $0x50] sm:$0xff]  }
 0x702   :  { %v4403_v58 = vadd.f32 %v10668_v52, %v4328_v54  ;;  %v6359_v30 = vld [vmem:[#allocation8 + $0x10] sm:$0xff]   ;;  %5822 = vmatprep.subr.bf16.mxu0 %v6358_v47 }
 0x703   :  { %v4092_v28 = vpop.xlane.xlu1 %4091  ;;  %v4179_v24 = vadd.f32 1e-05, %v4147_v25  ;;  %v4406_v11 = vadd.f32 %v10671_v45, %v4331_v13  ;;  %v4405_v38 = vadd.f32 %v10668_v52, %v4330_v14  ;;  %v4468_v46 = vmax.f32 %v4404_v56, 0.0  ;;  %v12256_v54 = vld [vmem:[#allocation173_spill] sm:$0xff]  ;;  %v6360_v13 = vld [vmem:[#allocation8 + $0x58] sm:$0xff]   ;;  %5823 = vmatpush3.bf16.msra.mxu0 %v6359_v30 }
 0x704   :  { %v4148_v34 = vmul.f32 0.00390625, %v4092_v28  ;;  %4831 = vmatmul.mubr.bf16.gmra.mrb[120].mxu1 %v4515_v15  ;;  %v4467_v4 = vmax.f32 %v4403_v58, 0.0  ;;  %v12257_v15 = vld [vmem:[#allocation33_spill] sm:$0xff]  ;;  %5824 = vmatprep.subr.bf16.mxu0 %v6360_v13 }
 0x705   :  { %6470 = vrsqrt.f32 %v4179_v24  ;;  %v4470_v9 = vmax.f32 %v4406_v11, 0.0  ;;  %v4469_v41 = vmax.f32 %v4405_v38, 0.0 }
 0x706   :  { %v4180_v57 = vadd.f32 1e-05, %v4148_v34  ;;  %v6467_v5 = vpop.eup %6466 }
 0x707   :  { %v4258_v18 = vmul.f32 %v6467_v5, %v12251_v44  ;;  %v4257_v51 = vmul.f32 %v6467_v5, %v12252_v10  ;;  %v4518_v61 = vpack.c.bf16 %v4470_v9, %v4468_v46  ;;  %v4517_v26 = vpack.c.bf16 %v4469_v41, %v4467_v4  ;;  %v12258_v5 = vld [vmem:[#allocation16_spill] sm:$0xff] }
 0x708   :  { %6472 = vrsqrt.f32 %v4180_v57 }
 0x709   :  { %v4095_v20 = vpop.xlane.xlu0 %4094  ;;  %v6469_v40 = vpop.eup %6468  ;;  %v4333_v59 = vmul.f32 %v10657_v53, %v4258_v18  ;;  %v4332_v22 = vmul.f32 %v10654_v62, %v4257_v51  ;;  %4840 = vmatprep.mubr.bf16.mxu1 %v4518_v61  ;;  %v6362_v18 = vld [vmem:[#allocation8 + $0x60] sm:$0xff]  }
 0x70a   :  { %v4149_v3 = vmul.f32 0.00390625, %v4095_v20  ;;  %v4260_v39 = vmul.f32 %v6469_v40, %v12253_v1  ;;  %v4259_v0 = vmul.f32 %v6469_v40, %v12254_v63  ;;  %v6361_v20 = vld [vmem:[#allocation8 + $0x18] sm:$0xff]   ;;  %v6363_v61 = vld [vmem:[#allocation8 + $0x20] sm:$0xff]  }
 0x70b   :  { %v4408_v35 = vadd.f32 %v10671_v45, %v4333_v59  ;;  %v4407_v60 = vadd.f32 %v10668_v52, %v4332_v22  ;;  %5825 = vmatpush3.bf16.msra.mxu0 %v6361_v20  ;;  %v12259_v59 = vld [vmem:[#allocation166_spill] sm:$0xff] }
 0x70c   :  { %v4098_v12 = vpop.xlane.xlu1 %4097  ;;  %v4181_v43 = vadd.f32 1e-05, %v4149_v3  ;;  %v4335_v2 = vmul.f32 %v10657_v53, %v4260_v39  ;;  %v4334_v19 = vmul.f32 %v10654_v62, %v4259_v0  ;;  %4841 = vmatmul.mubr.bf16.gmra.mrb[124].mxu1 %v4517_v26  ;;  %v12260_v0 = vld [vmem:[#allocation124_spill] sm:$0xff]  ;;  %5826 = vmatprep.subr.bf16.mxu0 %v6362_v18  ;;  %v12262_v26 = vld [vmem:[#allocation61_spill] sm:$0xff] }
 0x70d   :  { %v4150_v23 = vmul.f32 0.00390625, %v4098_v12  ;;  %v4472_v24 = vmax.f32 %v4408_v35, 0.0  ;;  %v4471_v46 = vmax.f32 %v4407_v60, 0.0  ;;  %v12261_v35 = vld [vmem:[#allocation24_spill] sm:$0xff] }
 0x70e   :  { %6474 = vrsqrt.f32 %v4181_v43  ;;  %v4410_v25 = vadd.f32 %v10671_v45, %v4335_v2  ;;  %v4409_v28 = vadd.f32 %v10668_v52, %v4334_v19 }
 0x70f   :  { %v4182_v48 = vadd.f32 1e-05, %v4150_v23  ;;  %v6471_v21 = vpop.eup %6470  ;;  %v6364_v23 = vld [vmem:[#allocation8 + $0x68] sm:$0xff]   ;;  %5827 = vmatpush3.bf16.msra.mxu0 %v6363_v61 }
 0x710   :  { %v4474_v34 = vmax.f32 %v4410_v25, 0.0  ;;  %v4262_v27 = vmul.f32 %v6471_v21, %v12255_v32  ;;  %v4261_v55 = vmul.f32 %v6471_v21, %v12256_v54  ;;  %v4473_v14 = vmax.f32 %v4409_v28, 0.0  ;;  %5828 = vmatprep.subr.bf16.mxu0 %v6364_v23 }
 0x711   :  { %6476 = vrsqrt.f32 %v4182_v48 }
 0x712   :  { %v6473_v56 = vpop.eup %6472  ;;  %v4520_v57 = vpack.c.bf16 %v4474_v34, %v4472_v24  ;;  %v4337_v6 = vmul.f32 %v10657_v53, %v4262_v27  ;;  %v4336_v38 = vmul.f32 %v10654_v62, %v4261_v55  ;;  %v4519_v51 = vpack.c.bf16 %v4473_v14, %v4471_v46 }
 0x713   :  { %v4264_v11 = vmul.f32 %v6473_v56, %v12257_v15  ;;  %v4263_v58 = vmul.f32 %v6473_v56, %v12258_v5  ;;  %v6365_v15 = vld [vmem:[#allocation8 + $0x28] sm:$0xff]   ;;  %v6368_v5 = vld [vmem:[#allocation8 + $0x78] sm:$0xff]  }
 0x714   :  { %4850 = vmatprep.mubr.bf16.mxu1 %v4520_v57  ;;  %v4412_v44 = vadd.f32 %v10671_v45, %v4337_v6  ;;  %v4411_v41 = vadd.f32 %v10668_v52, %v4336_v38  ;;  %5829 = vmatpush3.bf16.msra.mxu0 %v6365_v15  ;;  %v6367_v6 = vld [vmem:[#allocation8 + $0x30] sm:$0xff]  }
 0x715   :  { %v4339_v9 = vmul.f32 %v10657_v53, %v4264_v11  ;;  %v4338_v10 = vmul.f32 %v10654_v62, %v4263_v58  ;;  %4851 = vmatmul.mubr.bf16.gmra.mrb[128].mxu1 %v4519_v51  ;;  %v6366_v11 = vld [vmem:[#allocation8 + $0x70] sm:$0xff]   ;;  %v6369_v58 = vld [vmem:[#allocation8 + $0x38] sm:$0xff]  }
 0x716   :  { %v4476_v1 = vmax.f32 %v4412_v44, 0.0  ;;  %v4475_v21 = vmax.f32 %v4411_v41, 0.0  ;;  %5830 = vmatprep.subr.bf16.mxu0 %v6366_v11  ;;  %v12268_v11 = vld [vmem:[#allocation18_spill] sm:$0xff] }
 0x717   :  { %v4414_v40 = vadd.f32 %v10671_v45, %v4339_v9  ;;  %v4413_v12 = vadd.f32 %v10668_v52, %v4338_v10 }
 0x718   :  { %v6475_v3 = vpop.eup %6474  ;;  %5831 = vmatpush3.bf16.msra.mxu0 %v6367_v6 }
 0x719   :  { %v4478_v39 = vmax.f32 %v4414_v40, 0.0  ;;  %v4266_v63 = vmul.f32 %v6475_v3, %v12259_v59  ;;  %v4265_v43 = vmul.f32 %v6475_v3, %v12260_v0  ;;  %v4477_v4 = vmax.f32 %v4413_v12, 0.0  ;;  %5832 = vmatprep.subr.bf16.mxu0 %v6368_v5 }
 0x71b   :  { %v6477_v22 = vpop.eup %6476  ;;  %v4522_v2 = vpack.c.bf16 %v4478_v39, %v4476_v1  ;;  %v4341_v48 = vmul.f32 %v10657_v53, %v4266_v63  ;;  %v4340_v28 = vmul.f32 %v10654_v62, %v4265_v43  ;;  %v4521_v24 = vpack.c.bf16 %v4477_v4, %v4475_v21  ;;  %v12263_v39 = vld [vmem:[#allocation175_spill] sm:$0xff]  ;;  %v12265_v4 = vld [vmem:[#allocation125_spill] sm:$0xff] }
 0x71c   :  { %v4268_v19 = vmul.f32 %v6477_v22, %v12261_v35  ;;  %v4267_v25 = vmul.f32 %v6477_v22, %v12262_v26  ;;  %5833 = vmatpush3.bf16.msra.mxu0 %v6369_v58  ;;  %v12264_v63 = vld [vmem:[#allocation211_spill] sm:$0xff] }
 0x71d   :  { %4860 = vmatprep.mubr.bf16.mxu1 %v4522_v2  ;;  %v4416_v47 = vadd.f32 %v10671_v45, %v4341_v48  ;;  %v4415_v55 = vadd.f32 %v10668_v52, %v4340_v28 }
 0x71e   :  { %v4343_v60 = vmul.f32 %v10657_v53, %v4268_v19  ;;  %v4342_v30 = vmul.f32 %v10654_v62, %v4267_v25  ;;  %4861 = vmatmul.mubr.bf16.gmra.mrb[132].mxu1 %v4521_v24  ;;  %v12266_v19 = vld [vmem:[#allocation210_spill] sm:$0xff] }
 0x71f   :  { %v4480_v27 = vmax.f32 %v4416_v47, 0.0  ;;  %v4479_v57 = vmax.f32 %v4415_v55, 0.0 }
 0x720   :  { %v4418_v34 = vadd.f32 %v10671_v45, %v4343_v60  ;;  %v4417_v32 = vadd.f32 %v10668_v52, %v4342_v30 }
 0x722   :  { %v4482_v54 = vmax.f32 %v4418_v34, 0.0  ;;  %v4481_v56 = vmax.f32 %v4417_v32, 0.0 }
 0x724   :  { %v4524_v13 = vpack.c.bf16 %v4482_v54, %v4480_v27  ;;  %v4523_v14 = vpack.c.bf16 %v4481_v56, %v4479_v57 }
 0x726   :  { %4870 = vmatprep.mubr.bf16.mxu1 %v4524_v13 }
 0x727   :  { %4871 = vmatmul.mubr.bf16.gmra.mrb[136].mxu1 %v4523_v14  ;;  %v12267_v14 = vld [vmem:[#allocation212_spill] sm:$0xff] }
 0x748   :  { %v4101_v38 = vpop.xlane.xlu0 %4100 }
 0x749   :  { %v4151_v20 = vmul.f32 0.00390625, %v4101_v38 }
 0x74b   :  { %v4104_v46 = vpop.xlane.xlu1 %4103  ;;  %v4183_v9 = vadd.f32 1e-05, %v4151_v20 }
 0x74c   :  { %v4152_v44 = vmul.f32 0.00390625, %v4104_v46 }
 0x74d   :  { %6478 = vrsqrt.f32 %v4183_v9  ;;  %v12269_v9 = vld [vmem:[#allocation26_spill] sm:$0xff] }
 0x74e   :  { %v4184_v18 = vadd.f32 1e-05, %v4152_v44 }
 0x750   :  { %6480 = vrsqrt.f32 %v4184_v18 }
 0x751   :  { %v4107_v10 = vpop.xlane.xlu0 %4106 }
 0x752   :  { %v4153_v51 = vmul.f32 0.00390625, %v4107_v10 }
 0x754   :  { %v4110_v40 = vpop.xlane.xlu1 %4109  ;;  %v4185_v3 = vadd.f32 1e-05, %v4153_v51 }
 0x755   :  { %v4154_v41 = vmul.f32 0.00390625, %v4110_v40  ;;  %v12270_v40 = vld [vmem:[#allocation177_spill] sm:$0xff] }
 0x756   :  { %6482 = vrsqrt.f32 %v4185_v3 }
 0x757   :  { %v4186_v12 = vadd.f32 1e-05, %v4154_v41  ;;  %v6479_v61 = vpop.eup %6478 }
 0x758   :  { %v4270_v59 = vmul.f32 %v6479_v61, %v12263_v39  ;;  %v4269_v0 = vmul.f32 %v6479_v61, %v12264_v63 }
 0x759   :  { %6484 = vrsqrt.f32 %v4186_v12 }
 0x75a   :  { %v6481_v43 = vpop.eup %6480  ;;  %v4345_v35 = vmul.f32 %v10657_v53, %v4270_v59  ;;  %v4344_v26 = vmul.f32 %v10654_v62, %v4269_v0 }
 0x75b   :  { %v4272_v2 = vmul.f32 %v6481_v43, %v12265_v4  ;;  %v4271_v48 = vmul.f32 %v6481_v43, %v12266_v19 }
 0x75c   :  { %v4113_v1 = vpop.xlane.xlu0 %4112  ;;  %v4420_v60 = vadd.f32 %v10671_v45, %v4345_v35  ;;  %v4419_v30 = vadd.f32 %v10668_v52, %v4344_v26 }
 0x75d   :  { %v4155_v23 = vmul.f32 0.00390625, %v4113_v1  ;;  %v4347_v21 = vmul.f32 %v10657_v53, %v4272_v2  ;;  %v4346_v47 = vmul.f32 %v10654_v62, %v4271_v48 }
 0x75e   :  { %v4116_v22 = vpop.xlane.xlu1 %4115  ;;  %v4484_v54 = vmax.f32 %v4420_v60, 0.0  ;;  %v4483_v55 = vmax.f32 %v4419_v30, 0.0 }
 0x75f   :  { %v4187_v25 = vadd.f32 1e-05, %v4155_v23  ;;  %v4156_v28 = vmul.f32 0.00390625, %v4116_v22  ;;  %v4422_v34 = vadd.f32 %v10671_v45, %v4347_v21  ;;  %v4421_v32 = vadd.f32 %v10668_v52, %v4346_v47 }
 0x760   :  { %v6483_v27 = vpop.eup %6482 }
 0x761   :  { %6486 = vrsqrt.f32 %v4187_v25  ;;  %v4188_v24 = vadd.f32 1e-05, %v4156_v28  ;;  %v4486_v56 = vmax.f32 %v4422_v34, 0.0  ;;  %v4485_v57 = vmax.f32 %v4421_v32, 0.0 }
 0x762   :  { %v4274_v15 = vmul.f32 %v6483_v27, %v12267_v14  ;;  %v4273_v6 = vmul.f32 %v6483_v27, %v12268_v11 }
 0x763   :  { %6488 = vrsqrt.f32 %v4188_v24  ;;  %v6485_v5 = vpop.eup %6484  ;;  %v4526_v20 = vpack.c.bf16 %v4486_v56, %v4484_v54  ;;  %v4525_v46 = vpack.c.bf16 %v4485_v57, %v4483_v55 }
 0x764   :  { %v4276_v44 = vmul.f32 %v6485_v5, %v12269_v9  ;;  %v4349_v18 = vmul.f32 %v10657_v53, %v4274_v15  ;;  %v4275_v3 = vmul.f32 %v6485_v5, %v12270_v40  ;;  %v4348_v41 = vmul.f32 %v10654_v62, %v4273_v6 }
 0x765   :  { %v4119_v13 = vpop.xlane.xlu0 %4118  ;;  %4880 = vmatprep.mubr.bf16.mxu1 %v4526_v20 }
 0x766   :  { %v4157_v58 = vmul.f32 0.00390625, %v4119_v13  ;;  %v4351_v12 = vmul.f32 %v10657_v53, %v4276_v44  ;;  %v4424_v61 = vadd.f32 %v10671_v45, %v4349_v18  ;;  %4881 = vmatmul.mubr.bf16.gmra.mrb[140].mxu1 %v4525_v46  ;;  %v4350_v39 = vmul.f32 %v10654_v62, %v4275_v3 }
 0x767   :  { %v4122_v38 = vpop.xlane.xlu1 %4121  ;;  %v4423_v59 = vadd.f32 %v10668_v52, %v4348_v41 }
 0x768   :  { %v4189_v10 = vadd.f32 1e-05, %v4157_v58  ;;  %v4158_v51 = vmul.f32 0.00390625, %v4122_v38  ;;  %v4426_v63 = vadd.f32 %v10671_v45, %v4351_v12  ;;  %v4425_v43 = vadd.f32 %v10668_v52, %v4350_v39 }
 0x769   :  { %v4488_v23 = vmax.f32 %v4424_v61, 0.0  ;;  %v4487_v48 = vmax.f32 %v4423_v59, 0.0 }
 0x76a   :  { %6490 = vrsqrt.f32 %v4189_v10  ;;  %v4190_v1 = vadd.f32 1e-05, %v4158_v51  ;;  %v4490_v22 = vmax.f32 %v4426_v63, 0.0  ;;  %v4489_v26 = vmax.f32 %v4425_v43, 0.0 }
 0x76b   :  { %v6487_v0 = vpop.eup %6486 }
 0x76c   :  { %6492 = vrsqrt.f32 %v4190_v1  ;;  %v4278_v4 = vmul.f32 %v6487_v0, %v10701_v49  ;;  %v4277_v2 = vmul.f32 %v6487_v0, %v10698_v36  ;;  %v4528_v21 = vpack.c.bf16 %v4490_v22, %v4488_v23 }
 0x76d   :  { %v6489_v35 = vpop.eup %6488  ;;  %v4527_v24 = vpack.c.bf16 %v4489_v26, %v4487_v48 }
 0x76e   :  { %v4125_v19 = vpop.xlane.xlu0 %4124  ;;  %v4280_v60 = vmul.f32 %v6489_v35, %v10711_v7  ;;  %v4353_v47 = vmul.f32 %v10657_v53, %v4278_v4  ;;  %v4279_v34 = vmul.f32 %v6489_v35, %v10708_v16  ;;  %v4352_v32 = vmul.f32 %v10654_v62, %v4277_v2  ;;  %4890 = vmatprep.mubr.bf16.mxu1 %v4528_v21 }
 0x76f   :  { %v4159_v25 = vmul.f32 0.00390625, %v4125_v19  ;;  %4891 = vmatmul.mubr.bf16.gmra.mrb[144].mxu1 %v4527_v24 }
 0x770   :  { %v4128_v28 = vpop.xlane.xlu1 %4127  ;;  %v4355_v36 = vmul.f32 %v10657_v53, %v4280_v60  ;;  %v4428_v27 = vadd.f32 %v10671_v45, %v4353_v47  ;;  %v4354_v55 = vmul.f32 %v10654_v62, %v4279_v34  ;;  %v4427_v7 = vadd.f32 %v10668_v52, %v4352_v32  ;;  %v12272_v47 = vld [vmem:[#allocation21_spill] sm:$0xff] }
 0x771   :  { %v4160_v30 = vmul.f32 0.00390625, %v4128_v28  ;;  %v4191_v49 = vadd.f32 1e-05, %v4159_v25 }
 0x772   :  { %v4430_v13 = vadd.f32 %v10671_v45, %v4355_v36  ;;  %v4429_v16 = vadd.f32 %v10668_v52, %v4354_v55  ;;  %v4492_v57 = vmax.f32 %v4428_v27, 0.0  ;;  %v4491_v5 = vmax.f32 %v4427_v7, 0.0 }
 0x773   :  { %v4192_v54 = vadd.f32 1e-05, %v4160_v30  ;;  %6494 = vrsqrt.f32 %v4191_v49 }
 0x774   :  { %v6491_v56 = vpop.eup %6490  ;;  %v4494_v14 = vmax.f32 %v4430_v13, 0.0  ;;  %v4493_v58 = vmax.f32 %v4429_v16, 0.0 }
 0x775   :  { %6496 = vrsqrt.f32 %v4192_v54  ;;  %v4282_v15 = vmul.f32 %v6491_v56, %v10729_v17  ;;  %v4281_v11 = vmul.f32 %v6491_v56, %v10726_v31 }
 0x776   :  { %v6493_v6 = vpop.eup %6492  ;;  %v4530_v38 = vpack.c.bf16 %v4494_v14, %v4492_v57  ;;  %v4529_v44 = vpack.c.bf16 %v4493_v58, %v4491_v5 }
 0x777   :  { %v4284_v20 = vmul.f32 %v6493_v6, %v10742_v42  ;;  %v4357_v46 = vmul.f32 %v10657_v53, %v4282_v15  ;;  %v4283_v9 = vmul.f32 %v6493_v6, %v10739_v8  ;;  %v4356_v18 = vmul.f32 %v10654_v62, %v4281_v11 }
 0x778   :  { %4900 = vmatprep.mubr.bf16.mxu1 %v4530_v38 }
 0x779   :  { %v4359_v10 = vmul.f32 %v10657_v53, %v4284_v20  ;;  %v4432_v17 = vadd.f32 %v10671_v45, %v4357_v46  ;;  %v4358_v31 = vmul.f32 %v10654_v62, %v4283_v9  ;;  %4901 = vmatmul.mubr.bf16.gmra.mrb[148].mxu1 %v4529_v44  ;;  %v4431_v51 = vadd.f32 %v10668_v52, %v4356_v18 }
 0x77b   :  { %v4434_v40 = vadd.f32 %v10671_v45, %v4359_v10  ;;  %v4433_v42 = vadd.f32 %v10668_v52, %v4358_v31  ;;  %v4496_v41 = vmax.f32 %v4432_v17, 0.0  ;;  %v4495_v12 = vmax.f32 %v4431_v51, 0.0 }
 0x77d   :  { %v6495_v3 = vpop.eup %6494  ;;  %v4498_v8 = vmax.f32 %v4434_v40, 0.0  ;;  %v4497_v61 = vmax.f32 %v4433_v42, 0.0 }
 0x77e   :  { %v4286_v39 = vmul.f32 %v6495_v3, %v10757_v33  ;;  %v4285_v59 = vmul.f32 %v6495_v3, %v10754_v29 }
 0x77f   :  { %v6497_v1 = vpop.eup %6496  ;;  %v4532_v63 = vpack.c.bf16 %v4498_v8, %v4496_v41  ;;  %v4531_v0 = vpack.c.bf16 %v4497_v61, %v4495_v12 }
 0x780   :  { %v4288_v43 = vmul.f32 %v6497_v1, %v10771_v50  ;;  %v4287_v23 = vmul.f32 %v6497_v1, %v10768_v37  ;;  %v4361_v22 = vmul.f32 %v10657_v53, %v4286_v39  ;;  %v4360_v4 = vmul.f32 %v10654_v62, %v4285_v59 }
 0x781   :  { %4910 = vmatprep.mubr.bf16.mxu1 %v4532_v63 }
 0x782   :  { %v4363_v2 = vmul.f32 %v10657_v53, %v4288_v43  ;;  %v4362_v35 = vmul.f32 %v10654_v62, %v4287_v23  ;;  %4911 = vmatmul.mubr.bf16.gmra.mrb[152].mxu1 %v4531_v0  ;;  %v4436_v33 = vadd.f32 %v10671_v45, %v4361_v22  ;;  %v4435_v29 = vadd.f32 %v10668_v52, %v4360_v4  ;;  %v5507_v53 = vld [vmem:[%s11068_s6 + $0x6] ss:$8 sm:$0x3] }
 0x783   :  { %v12271_v62 = vld [vmem:[#allocation19_spill] sm:$0xff]  ;;  %v10944_v30 = vrot.slane %v5507_v53, %v12272_v47 }
 0x784   :  { %v4438_v19 = vadd.f32 %v10671_v45, %v4363_v2  ;;  %v4437_v50 = vadd.f32 %v10668_v52, %v4362_v35  ;;  %v4500_v48 = vmax.f32 %v4436_v33, 0.0  ;;  %v4499_v26 = vmax.f32 %v4435_v29, 0.0 }
 0x785   :  { %v10941_v60 = vrot.slane %v5507_v53, %v12271_v62 }
 0x786   :  { %v4502_v37 = vmax.f32 %v4438_v19, 0.0  ;;  %v4501_v25 = vmax.f32 %v4437_v50, 0.0 }
 0x788   :  { %v4534_v28 = vpack.c.bf16 %v4502_v37, %v4500_v48  ;;  %v4533_v21 = vpack.c.bf16 %v4501_v25, %v4499_v26 }
 0x78a   :  { %4920 = vmatprep.mubr.bf16.mxu1 %v4534_v28 }
 0x78b   :  { %4921 = vmatmul.mubr.bf16.gmra.mrb[156].mxu1 %v4533_v21 }
 0x7a0   :  { %v4772_v45 = vpop.f32.mrb[96].mxu1 }
 0x7a1   :  { %v4773_v52 = vadd.f32 %v4772_v45, %v10941_v60  ;;  %v4774_v24 = vpop.f32.mrb[97].mxu1 }
 0x7a2   :  { %v4775_v34 = vadd.f32 %v4774_v24, %v10944_v30  ;;  %v4776_v32 = vpop.f32.mrb[98].mxu1 }
 0x7a3   :  { %v4777_v49 = vadd.f32 %v4776_v32, %v10941_v60  ;;  %v4778_v36 = vpop.f32.mrb[99].mxu1  ;;  %v4931_v54 = vmax.f32 %v4773_v52, 0.0 }
 0x7a4   :  { %v4779_v27 = vadd.f32 %v4778_v36, %v10944_v30  ;;  %v4932_v7 = vmax.f32 %v4775_v34, 0.0 }
 0x7a5   :  { %v4933_v55 = vmax.f32 %v4777_v49, 0.0 }
 0x7a6   :  { %v4934_v13 = vmax.f32 %v4779_v27, 0.0 }
 0x7a7   :  { %v4995_v56 = vpack.c.bf16 %v4933_v55, %v4931_v54 }
 0x7a8   :  { %v4996_v16 = vpack.c.bf16 %v4934_v13, %v4932_v7 }
 0x7aa   :  { %5194 = vmatprep.mubr.bf16.mxu0 %v4996_v16 }
 0x7ab   :  { %v4782_v57 = vpop.f32.mrb[100].mxu1  ;;  %5195 = vmatmul.mubr.bf16.vlgmr.msra.gmra.mrb[64].mxu0 %v4995_v56 }
 0x7ac   :  { %v4783_v14 = vadd.f32 %v4782_v57, %v10941_v60  ;;  %v4784_v15 = vpop.f32.mrb[101].mxu1 }
 0x7ad   :  { %v4785_v11 = vadd.f32 %v4784_v15, %v10944_v30  ;;  %v4786_v6 = vpop.f32.mrb[102].mxu1 }
 0x7ae   :  { %v4787_v5 = vadd.f32 %v4786_v6, %v10941_v60  ;;  %v4788_v58 = vpop.f32.mrb[103].mxu1  ;;  %v4935_v20 = vmax.f32 %v4783_v14, 0.0 }
 0x7af   :  { %v4789_v38 = vadd.f32 %v4788_v58, %v10944_v30  ;;  %v4936_v9 = vmax.f32 %v4785_v11, 0.0 }
 0x7b0   :  { %v4937_v46 = vmax.f32 %v4787_v5, 0.0 }
 0x7b1   :  { %v4938_v44 = vmax.f32 %v4789_v38, 0.0 }
 0x7b2   :  { %v4997_v18 = vpack.c.bf16 %v4937_v46, %v4935_v20 }
 0x7b3   :  { %v4998_v10 = vpack.c.bf16 %v4938_v44, %v4936_v9 }
 0x7b5   :  { %5202 = vmatprep.mubr.bf16.mxu0 %v4998_v10 }
 0x7b6   :  { %5203 = vmatmul.mubr.bf16.gmra.mrb[68].mxu0 %v4997_v18 }
 0x7b7   :  { %v4792_v17 = vpop.f32.mrb[104].mxu1 }
 0x7b8   :  { %v4793_v31 = vadd.f32 %v4792_v17, %v10941_v60  ;;  %v4794_v51 = vpop.f32.mrb[105].mxu1 }
 0x7b9   :  { %v4795_v40 = vadd.f32 %v4794_v51, %v10944_v30  ;;  %v4796_v42 = vpop.f32.mrb[106].mxu1 }
 0x7ba   :  { %v4797_v3 = vadd.f32 %v4796_v42, %v10941_v60  ;;  %v4798_v41 = vpop.f32.mrb[107].mxu1  ;;  %v4939_v12 = vmax.f32 %v4793_v31, 0.0 }
 0x7bb   :  { %v4799_v8 = vadd.f32 %v4798_v41, %v10944_v30  ;;  %v4940_v1 = vmax.f32 %v4795_v40, 0.0 }
 0x7bc   :  { %v4941_v61 = vmax.f32 %v4797_v3, 0.0 }
 0x7bd   :  { %v4942_v39 = vmax.f32 %v4799_v8, 0.0 }
 0x7be   :  { %v4999_v59 = vpack.c.bf16 %v4941_v61, %v4939_v12 }
 0x7bf   :  { %v5000_v63 = vpack.c.bf16 %v4942_v39, %v4940_v1  ;;  %v4802_v0 = vpop.f32.mrb[108].mxu1 }
 0x7c0   :  { %v4803_v43 = vadd.f32 %v4802_v0, %v10941_v60  ;;  %v4804_v23 = vpop.f32.mrb[109].mxu1 }
 0x7c1   :  { %v4805_v22 = vadd.f32 %v4804_v23, %v10944_v30  ;;  %v4806_v4 = vpop.f32.mrb[110].mxu1  ;;  %5210 = vmatprep.mubr.bf16.mxu0 %v5000_v63 }
 0x7c2   :  { %v4807_v2 = vadd.f32 %v4806_v4, %v10941_v60  ;;  %v4808_v35 = vpop.f32.mrb[111].mxu1  ;;  %5211 = vmatmul.mubr.bf16.gmra.mrb[72].mxu0 %v4999_v59  ;;  %v4943_v29 = vmax.f32 %v4803_v43, 0.0 }
 0x7c3   :  { %v4809_v33 = vadd.f32 %v4808_v35, %v10944_v30  ;;  %v4944_v50 = vmax.f32 %v4805_v22, 0.0 }
 0x7c4   :  { %v4945_v19 = vmax.f32 %v4807_v2, 0.0 }
 0x7c5   :  { %v4946_v48 = vmax.f32 %v4809_v33, 0.0 }
 0x7c6   :  { %v5001_v37 = vpack.c.bf16 %v4945_v19, %v4943_v29 }
 0x7c7   :  { %v5002_v26 = vpack.c.bf16 %v4946_v48, %v4944_v50  ;;  %v4812_v25 = vpop.f32.mrb[112].mxu1 }
 0x7c8   :  { %v4813_v28 = vadd.f32 %v4812_v25, %v10941_v60  ;;  %v4814_v21 = vpop.f32.mrb[113].mxu1 }
 0x7c9   :  { %v4815_v53 = vadd.f32 %v4814_v21, %v10944_v30  ;;  %v4816_v62 = vpop.f32.mrb[114].mxu1  ;;  %5218 = vmatprep.mubr.bf16.mxu0 %v5002_v26 }
 0x7ca   :  { %v4817_v47 = vadd.f32 %v4816_v62, %v10941_v60  ;;  %v4818_v45 = vpop.f32.mrb[115].mxu1  ;;  %5219 = vmatmul.mubr.bf16.gmra.mrb[76].mxu0 %v5001_v37  ;;  %v4947_v24 = vmax.f32 %v4813_v28, 0.0 }
 0x7cb   :  { %v4819_v52 = vadd.f32 %v4818_v45, %v10944_v30  ;;  %v4948_v32 = vmax.f32 %v4815_v53, 0.0 }
 0x7cc   :  { %v4949_v34 = vmax.f32 %v4817_v47, 0.0 }
 0x7cd   :  { %v4950_v49 = vmax.f32 %v4819_v52, 0.0 }
 0x7ce   :  { %v5003_v36 = vpack.c.bf16 %v4949_v34, %v4947_v24 }
 0x7cf   :  { %v5004_v27 = vpack.c.bf16 %v4950_v49, %v4948_v32  ;;  %v4822_v54 = vpop.f32.mrb[116].mxu1 }
 0x7d0   :  { %v4823_v55 = vadd.f32 %v4822_v54, %v10941_v60  ;;  %v4824_v7 = vpop.f32.mrb[117].mxu1 }
 0x7d1   :  { %v4825_v13 = vadd.f32 %v4824_v7, %v10944_v30  ;;  %v4826_v56 = vpop.f32.mrb[118].mxu1  ;;  %5226 = vmatprep.mubr.bf16.mxu0 %v5004_v27 }
 0x7d2   :  { %v4827_v16 = vadd.f32 %v4826_v56, %v10941_v60  ;;  %v4828_v57 = vpop.f32.mrb[119].mxu1  ;;  %5227 = vmatmul.mubr.bf16.gmra.mrb[80].mxu0 %v5003_v36  ;;  %v4951_v15 = vmax.f32 %v4823_v55, 0.0 }
 0x7d3   :  { %v4829_v14 = vadd.f32 %v4828_v57, %v10944_v30  ;;  %v4952_v6 = vmax.f32 %v4825_v13, 0.0 }
 0x7d4   :  { %v4953_v11 = vmax.f32 %v4827_v16, 0.0 }
 0x7d5   :  { %v4954_v5 = vmax.f32 %v4829_v14, 0.0 }
 0x7d6   :  { %v5005_v58 = vpack.c.bf16 %v4953_v11, %v4951_v15 }
 0x7d7   :  { %v5006_v38 = vpack.c.bf16 %v4954_v5, %v4952_v6  ;;  %v4832_v20 = vpop.f32.mrb[120].mxu1 }
 0x7d8   :  { %v4833_v46 = vadd.f32 %v4832_v20, %v10941_v60  ;;  %v4834_v9 = vpop.f32.mrb[121].mxu1 }
 0x7d9   :  { %v4835_v44 = vadd.f32 %v4834_v9, %v10944_v30  ;;  %v4836_v18 = vpop.f32.mrb[122].mxu1  ;;  %5234 = vmatprep.mubr.bf16.mxu0 %v5006_v38 }
 0x7da   :  { %v4837_v10 = vadd.f32 %v4836_v18, %v10941_v60  ;;  %v4838_v17 = vpop.f32.mrb[123].mxu1  ;;  %5235 = vmatmul.mubr.bf16.gmra.mrb[84].mxu0 %v5005_v58  ;;  %v4955_v51 = vmax.f32 %v4833_v46, 0.0 }
 0x7db   :  { %v4839_v31 = vadd.f32 %v4838_v17, %v10944_v30  ;;  %v4956_v42 = vmax.f32 %v4835_v44, 0.0 }
 0x7dc   :  { %v4957_v40 = vmax.f32 %v4837_v10, 0.0 }
 0x7dd   :  { %v4958_v3 = vmax.f32 %v4839_v31, 0.0 }
 0x7de   :  { %v5007_v41 = vpack.c.bf16 %v4957_v40, %v4955_v51 }
 0x7df   :  { %v5008_v8 = vpack.c.bf16 %v4958_v3, %v4956_v42  ;;  %v4842_v12 = vpop.f32.mrb[124].mxu1 }
 0x7e0   :  { %v4843_v61 = vadd.f32 %v4842_v12, %v10941_v60  ;;  %v4844_v1 = vpop.f32.mrb[125].mxu1 }
 0x7e1   :  { %v4845_v39 = vadd.f32 %v4844_v1, %v10944_v30  ;;  %v4846_v59 = vpop.f32.mrb[126].mxu1  ;;  %5242 = vmatprep.mubr.bf16.mxu0 %v5008_v8 }
 0x7e2   :  { %v4847_v63 = vadd.f32 %v4846_v59, %v10941_v60  ;;  %v4848_v0 = vpop.f32.mrb[127].mxu1  ;;  %5243 = vmatmul.mubr.bf16.gmra.mrb[88].mxu0 %v5007_v41  ;;  %v4959_v23 = vmax.f32 %v4843_v61, 0.0 }
 0x7e3   :  { %v4849_v43 = vadd.f32 %v4848_v0, %v10944_v30  ;;  %v4960_v4 = vmax.f32 %v4845_v39, 0.0 }
 0x7e4   :  { %v4961_v22 = vmax.f32 %v4847_v63, 0.0 }
 0x7e5   :  { %v4962_v2 = vmax.f32 %v4849_v43, 0.0 }
 0x7e6   :  { %v5009_v35 = vpack.c.bf16 %v4961_v22, %v4959_v23 }
 0x7e7   :  { %v5010_v33 = vpack.c.bf16 %v4962_v2, %v4960_v4 }
 0x7e8   :  { %v4852_v29 = vpop.f32.mrb[128].mxu1 }
 0x7e9   :  { %v4853_v19 = vadd.f32 %v4852_v29, %v10941_v60  ;;  %v4854_v50 = vpop.f32.mrb[129].mxu1  ;;  %5250 = vmatprep.mubr.bf16.mxu0 %v5010_v33 }
 0x7ea   :  { %v4855_v48 = vadd.f32 %v4854_v50, %v10944_v30  ;;  %v4856_v37 = vpop.f32.mrb[130].mxu1  ;;  %5251 = vmatmul.mubr.bf16.gmra.mrb[92].mxu0 %v5009_v35 }
 0x7eb   :  { %v4857_v26 = vadd.f32 %v4856_v37, %v10941_v60  ;;  %v4858_v25 = vpop.f32.mrb[131].mxu1  ;;  %v4963_v21 = vmax.f32 %v4853_v19, 0.0 }
 0x7ec   :  { %v4859_v28 = vadd.f32 %v4858_v25, %v10944_v30  ;;  %v4964_v62 = vmax.f32 %v4855_v48, 0.0 }
 0x7ed   :  { %v4965_v53 = vmax.f32 %v4857_v26, 0.0 }
 0x7ee   :  { %v4966_v47 = vmax.f32 %v4859_v28, 0.0 }
 0x7ef   :  { %v5011_v45 = vpack.c.bf16 %v4965_v53, %v4963_v21 }
 0x7f0   :  { %v5012_v52 = vpack.c.bf16 %v4966_v47, %v4964_v62 }
 0x7f1   :  { %v4862_v24 = vpop.f32.mrb[132].mxu1 }
 0x7f2   :  { %v4863_v34 = vadd.f32 %v4862_v24, %v10941_v60  ;;  %v4864_v32 = vpop.f32.mrb[133].mxu1  ;;  %5258 = vmatprep.mubr.bf16.mxu0 %v5012_v52 }
 0x7f3   :  { %v4865_v49 = vadd.f32 %v4864_v32, %v10944_v30  ;;  %v4866_v36 = vpop.f32.mrb[134].mxu1  ;;  %5259 = vmatmul.mubr.bf16.gmra.mrb[96].mxu0 %v5011_v45 }
 0x7f4   :  { %v4867_v27 = vadd.f32 %v4866_v36, %v10941_v60  ;;  %v4868_v54 = vpop.f32.mrb[135].mxu1  ;;  %v4967_v7 = vmax.f32 %v4863_v34, 0.0 }
 0x7f5   :  { %v4869_v55 = vadd.f32 %v4868_v54, %v10944_v30  ;;  %v4968_v56 = vmax.f32 %v4865_v49, 0.0 }
 0x7f6   :  { %v4969_v13 = vmax.f32 %v4867_v27, 0.0 }
 0x7f7   :  { %v4970_v16 = vmax.f32 %v4869_v55, 0.0 }
 0x7f8   :  { %v5013_v57 = vpack.c.bf16 %v4969_v13, %v4967_v7 }
 0x7f9   :  { %v5014_v14 = vpack.c.bf16 %v4970_v16, %v4968_v56 }
 0x7fa   :  { %v4872_v15 = vpop.f32.mrb[136].mxu1 }
 0x7fb   :  { %v4873_v11 = vadd.f32 %v4872_v15, %v10941_v60  ;;  %v4874_v6 = vpop.f32.mrb[137].mxu1  ;;  %5266 = vmatprep.mubr.bf16.mxu0 %v5014_v14 }
 0x7fc   :  { %v4875_v5 = vadd.f32 %v4874_v6, %v10944_v30  ;;  %v4876_v58 = vpop.f32.mrb[138].mxu1  ;;  %5267 = vmatmul.mubr.bf16.gmra.mrb[100].mxu0 %v5013_v57 }
 0x7fd   :  { %v4877_v38 = vadd.f32 %v4876_v58, %v10941_v60  ;;  %v4878_v20 = vpop.f32.mrb[139].mxu1  ;;  %v4971_v9 = vmax.f32 %v4873_v11, 0.0 }
 0x7fe   :  { %v4879_v46 = vadd.f32 %v4878_v20, %v10944_v30  ;;  %v4972_v18 = vmax.f32 %v4875_v5, 0.0 }
 0x7ff   :  { %v4973_v44 = vmax.f32 %v4877_v38, 0.0 }
 0x800   :  { %v4974_v10 = vmax.f32 %v4879_v46, 0.0 }
 0x801   :  { %v5015_v17 = vpack.c.bf16 %v4973_v44, %v4971_v9 }
 0x802   :  { %v5016_v31 = vpack.c.bf16 %v4974_v10, %v4972_v18 }
 0x804   :  { %5274 = vmatprep.mubr.bf16.mxu0 %v5016_v31 }
 0x805   :  { %5275 = vmatmul.mubr.bf16.gmra.mrb[104].mxu0 %v5015_v17 }
 0x839   :  { %v4882_v51 = vpop.f32.mrb[140].mxu1 }
 0x83a   :  { %v4883_v40 = vadd.f32 %v4882_v51, %v10941_v60  ;;  %v4884_v42 = vpop.f32.mrb[141].mxu1 }
 0x83b   :  { %v4885_v3 = vadd.f32 %v4884_v42, %v10944_v30  ;;  %v4886_v41 = vpop.f32.mrb[142].mxu1 }
 0x83c   :  { %v4887_v8 = vadd.f32 %v4886_v41, %v10941_v60  ;;  %v4888_v12 = vpop.f32.mrb[143].mxu1  ;;  %v4975_v1 = vmax.f32 %v4883_v40, 0.0 }
 0x83d   :  { %v4889_v61 = vadd.f32 %v4888_v12, %v10944_v30  ;;  %v4976_v59 = vmax.f32 %v4885_v3, 0.0 }
 0x83e   :  { %v4977_v39 = vmax.f32 %v4887_v8, 0.0 }
 0x83f   :  { %v4978_v63 = vmax.f32 %v4889_v61, 0.0 }
 0x840   :  { %v5017_v0 = vpack.c.bf16 %v4977_v39, %v4975_v1 }
 0x841   :  { %v5018_v43 = vpack.c.bf16 %v4978_v63, %v4976_v59 }
 0x842   :  { %v4892_v23 = vpop.f32.mrb[144].mxu1 }
 0x843   :  { %v4893_v22 = vadd.f32 %v4892_v23, %v10941_v60  ;;  %v4894_v4 = vpop.f32.mrb[145].mxu1  ;;  %5282 = vmatprep.mubr.bf16.mxu0 %v5018_v43 }
 0x844   :  { %v4895_v2 = vadd.f32 %v4894_v4, %v10944_v30  ;;  %v4896_v35 = vpop.f32.mrb[146].mxu1  ;;  %5283 = vmatmul.mubr.bf16.gmra.mrb[108].mxu0 %v5017_v0 }
 0x845   :  { %v4897_v33 = vadd.f32 %v4896_v35, %v10941_v60  ;;  %v4898_v29 = vpop.f32.mrb[147].mxu1  ;;  %v4979_v50 = vmax.f32 %v4893_v22, 0.0 }
 0x846   :  { %v4899_v19 = vadd.f32 %v4898_v29, %v10944_v30  ;;  %v4980_v37 = vmax.f32 %v4895_v2, 0.0 }
 0x847   :  { %v4981_v48 = vmax.f32 %v4897_v33, 0.0 }
 0x848   :  { %v4982_v26 = vmax.f32 %v4899_v19, 0.0 }
 0x849   :  { %v5019_v25 = vpack.c.bf16 %v4981_v48, %v4979_v50 }
 0x84a   :  { %v5020_v28 = vpack.c.bf16 %v4982_v26, %v4980_v37 }
 0x84c   :  { %v4902_v21 = vpop.f32.mrb[148].mxu1  ;;  %5290 = vmatprep.mubr.bf16.mxu0 %v5020_v28 }
 0x84d   :  { %v4903_v53 = vadd.f32 %v4902_v21, %v10941_v60  ;;  %v4904_v62 = vpop.f32.mrb[149].mxu1  ;;  %5291 = vmatmul.mubr.bf16.gmra.mrb[112].mxu0 %v5019_v25 }
 0x84e   :  { %v4905_v47 = vadd.f32 %v4904_v62, %v10944_v30  ;;  %v4906_v45 = vpop.f32.mrb[150].mxu1 }
 0x84f   :  { %v4907_v52 = vadd.f32 %v4906_v45, %v10941_v60  ;;  %v4908_v24 = vpop.f32.mrb[151].mxu1  ;;  %v4983_v32 = vmax.f32 %v4903_v53, 0.0 }
 0x850   :  { %v4909_v34 = vadd.f32 %v4908_v24, %v10944_v30  ;;  %v4984_v36 = vmax.f32 %v4905_v47, 0.0 }
 0x851   :  { %v4985_v49 = vmax.f32 %v4907_v52, 0.0 }
 0x852   :  { %v4986_v27 = vmax.f32 %v4909_v34, 0.0 }
 0x853   :  { %v5021_v54 = vpack.c.bf16 %v4985_v49, %v4983_v32 }
 0x854   :  { %v5022_v55 = vpack.c.bf16 %v4986_v27, %v4984_v36 }
 0x855   :  { %v4912_v7 = vpop.f32.mrb[152].mxu1 }
 0x856   :  { %v4913_v13 = vadd.f32 %v4912_v7, %v10941_v60  ;;  %v4914_v56 = vpop.f32.mrb[153].mxu1  ;;  %5298 = vmatprep.mubr.bf16.mxu0 %v5022_v55 }
 0x857   :  { %v4915_v16 = vadd.f32 %v4914_v56, %v10944_v30  ;;  %v4916_v57 = vpop.f32.mrb[154].mxu1  ;;  %5299 = vmatmul.mubr.bf16.gmra.mrb[116].mxu0 %v5021_v54 }
 0x858   :  { %v4917_v14 = vadd.f32 %v4916_v57, %v10941_v60  ;;  %v4918_v15 = vpop.f32.mrb[155].mxu1  ;;  %v4987_v6 = vmax.f32 %v4913_v13, 0.0 }
 0x859   :  { %v4919_v11 = vadd.f32 %v4918_v15, %v10944_v30  ;;  %v4988_v58 = vmax.f32 %v4915_v16, 0.0 }
 0x85a   :  { %v4989_v5 = vmax.f32 %v4917_v14, 0.0 }
 0x85b   :  { %v4990_v38 = vmax.f32 %v4919_v11, 0.0 }
 0x85c   :  { %v5023_v20 = vpack.c.bf16 %v4989_v5, %v4987_v6 }
 0x85d   :  { %v5024_v46 = vpack.c.bf16 %v4990_v38, %v4988_v58 }
 0x85e   :  { %v4922_v9 = vpop.f32.mrb[156].mxu1 }
 0x85f   :  { %v4923_v44 = vadd.f32 %v4922_v9, %v10941_v60  ;;  %v4924_v18 = vpop.f32.mrb[157].mxu1  ;;  %5306 = vmatprep.mubr.bf16.mxu0 %v5024_v46 }
 0x860   :  { %v4925_v10 = vadd.f32 %v4924_v18, %v10944_v30  ;;  %v4926_v17 = vpop.f32.mrb[158].mxu1  ;;  %5307 = vmatmul.mubr.bf16.gmra.mrb[120].mxu0 %v5023_v20 }
 0x861   :  { %v4927_v31 = vadd.f32 %v4926_v17, %v10941_v60  ;;  %v4928_v51 = vpop.f32.mrb[159].mxu1  ;;  %v4991_v42 = vmax.f32 %v4923_v44, 0.0  ;;  %v11013_v60 = vld [vmem:[%s11069_s7] ss:$0 sm:$0xff]  ;;  %s6660_s7 = smov [#allocation10]  }
 0x862   :  { %v4929_v40 = vadd.f32 %v4928_v51, %v10944_v30  ;;  %v4992_v41 = vmax.f32 %v4925_v10, 0.0  ;;  %s5488_s2 = sshll.u32 %s6660_s7, 4  ;;  %s5489_s2 = int_to_ptr.vmem [resolvable:$true] %s5488_s2 }
 0x863   :  { %v4993_v3 = vmax.f32 %v4927_v31, 0.0  ;;  %s6615_s28 = scalar_lea.vmem %s5489_s2, 2048  ;;  %p6620_p5 = scmp.lt.s32.totalorder %s5489_s2, %s5489_s2 }
 0x864   :  { %v4994_v8 = vmax.f32 %v4929_v40, 0.0  ;;  %p6616_p4 = scmp.ne.s32.totalorder %s5489_s2, %s6615_s28  ;;  %p6621_p6 = scmp.lt.s32.totalorder %s6615_s28, %s6615_s28 }
 0x865   :  { %v5025_v12 = vpack.c.bf16 %v4993_v3, %v4991_v42 }
 0x866   :  { %v5026_v61 = vpack.c.bf16 %v4994_v8, %v4992_v41  ;;  %p6622_p7 = por %p6621_p6, %p6620_p5 }
 0x868   :  { %5314 = vmatprep.mubr.bf16.mxu0 %v5026_v61  ;;  %p6623_p8 = pnand %p6622_p7, %p6616_p4 }
 0x869   :  { %5315 = vmatmul.mubr.bf16.gmra.mrb[124].mxu0 %v5025_v12 }
 0x87e   :  { %v5834_v1 = vpop.f32.mrb[64].mxu0 }
 0x87f   :  { %v5835_v39 = vpop.f32.mrb[65].mxu0 }
 0x880   :  { %v5836_v59 = vadd.f32 %v5835_v39, %v5834_v1  ;;  %v5837_v63 = vpop.f32.mrb[66].mxu0 }
 0x881   :  { %v5838_v0 = vpop.f32.mrb[67].mxu0 }
 0x882   :  { %v5839_v43 = vadd.f32 %v5838_v0, %v5837_v63  ;;  %v5197_v30 = vadd.f32 %v5836_v59, %v11013_v60 }
 0x884   :  { %v5200_v23 = vadd.f32 %v5839_v43, %v11013_v60 }
 0x886   :  { %v5726_v22 = vpack.c.bf16 %v5200_v23, %v5197_v30 }
 0x888   :  { %5727 = vst [vmem:[#allocation10] sm:$0xff] %v5726_v22  }
 0x889   :  { %v5840_v4 = vpop.f32.mrb[68].mxu0 }
 0x88a   :  { %v5841_v2 = vpop.f32.mrb[69].mxu0 }
 0x88b   :  { %v5842_v35 = vadd.f32 %v5841_v2, %v5840_v4  ;;  %v5843_v33 = vpop.f32.mrb[70].mxu0 }
 0x88c   :  { %v5844_v29 = vpop.f32.mrb[71].mxu0 }
 0x88d   :  { %v5845_v19 = vadd.f32 %v5844_v29, %v5843_v33  ;;  %v5205_v50 = vadd.f32 %v5842_v35, %v11013_v60 }
 0x88f   :  { %v5208_v48 = vadd.f32 %v5845_v19, %v11013_v60 }
 0x891   :  { %v5731_v37 = vpack.c.bf16 %v5208_v48, %v5205_v50 }
 0x893   :  { %5803 = vst [vmem:[#allocation10 + $0x8] sm:$0xff] %v5731_v37  }
 0x895   :  { %v5846_v26 = vpop.f32.mrb[72].mxu0 }
 0x896   :  { %v5847_v25 = vpop.f32.mrb[73].mxu0 }
 0x897   :  { %v5848_v28 = vadd.f32 %v5847_v25, %v5846_v26  ;;  %v5849_v21 = vpop.f32.mrb[74].mxu0 }
 0x898   :  { %v5850_v53 = vpop.f32.mrb[75].mxu0 }
 0x899   :  { %v5851_v62 = vadd.f32 %v5850_v53, %v5849_v21  ;;  %v5213_v47 = vadd.f32 %v5848_v28, %v11013_v60 }
 0x89b   :  { %v5216_v45 = vadd.f32 %v5851_v62, %v11013_v60 }
 0x89d   :  { %v5736_v52 = vpack.c.bf16 %v5216_v45, %v5213_v47  ;;  %v5852_v24 = vpop.f32.mrb[76].mxu0 }
 0x89e   :  { %v5853_v34 = vpop.f32.mrb[77].mxu0 }
 0x89f   :  { %5804 = vst [vmem:[#allocation10 + $0x10] sm:$0xff] %v5736_v52   ;;  %v5854_v32 = vadd.f32 %v5853_v34, %v5852_v24  ;;  %v5855_v49 = vpop.f32.mrb[78].mxu0 }
 0x8a0   :  { %v5856_v36 = vpop.f32.mrb[79].mxu0 }
 0x8a1   :  { %v5857_v27 = vadd.f32 %v5856_v36, %v5855_v49  ;;  %v5221_v54 = vadd.f32 %v5854_v32, %v11013_v60 }
 0x8a3   :  { %v5224_v55 = vadd.f32 %v5857_v27, %v11013_v60 }
 0x8a5   :  { %v5741_v7 = vpack.c.bf16 %v5224_v55, %v5221_v54  ;;  %v5858_v13 = vpop.f32.mrb[80].mxu0 }
 0x8a6   :  { %v5859_v56 = vpop.f32.mrb[81].mxu0 }
 0x8a7   :  { %5805 = vst [vmem:[#allocation10 + $0x18] sm:$0xff] %v5741_v7   ;;  %v5860_v16 = vadd.f32 %v5859_v56, %v5858_v13  ;;  %v5861_v57 = vpop.f32.mrb[82].mxu0 }
 0x8a8   :  { %v5862_v14 = vpop.f32.mrb[83].mxu0 }
 0x8a9   :  { %v5863_v15 = vadd.f32 %v5862_v14, %v5861_v57  ;;  %v5229_v11 = vadd.f32 %v5860_v16, %v11013_v60 }
 0x8ab   :  { %v5232_v6 = vadd.f32 %v5863_v15, %v11013_v60 }
 0x8ad   :  { %v5746_v5 = vpack.c.bf16 %v5232_v6, %v5229_v11  ;;  %v5864_v58 = vpop.f32.mrb[84].mxu0 }
 0x8ae   :  { %v5865_v38 = vpop.f32.mrb[85].mxu0 }
 0x8af   :  { %5806 = vst [vmem:[#allocation10 + $0x20] sm:$0xff] %v5746_v5   ;;  %v5866_v20 = vadd.f32 %v5865_v38, %v5864_v58  ;;  %v5867_v46 = vpop.f32.mrb[86].mxu0 }
 0x8b0   :  { %v5868_v9 = vpop.f32.mrb[87].mxu0 }
 0x8b1   :  { %v5869_v44 = vadd.f32 %v5868_v9, %v5867_v46  ;;  %v5237_v18 = vadd.f32 %v5866_v20, %v11013_v60 }
 0x8b3   :  { %v5240_v10 = vadd.f32 %v5869_v44, %v11013_v60 }
 0x8b5   :  { %v5751_v17 = vpack.c.bf16 %v5240_v10, %v5237_v18  ;;  %v5870_v31 = vpop.f32.mrb[88].mxu0 }
 0x8b6   :  { %v5871_v51 = vpop.f32.mrb[89].mxu0 }
 0x8b7   :  { %5807 = vst [vmem:[#allocation10 + $0x28] sm:$0xff] %v5751_v17   ;;  %v5872_v40 = vadd.f32 %v5871_v51, %v5870_v31  ;;  %v5873_v42 = vpop.f32.mrb[90].mxu0 }
 0x8b8   :  { %v5874_v3 = vpop.f32.mrb[91].mxu0 }
 0x8b9   :  { %v5875_v41 = vadd.f32 %v5874_v3, %v5873_v42  ;;  %v5245_v8 = vadd.f32 %v5872_v40, %v11013_v60 }
 0x8bb   :  { %v5248_v12 = vadd.f32 %v5875_v41, %v11013_v60 }
 0x8bd   :  { %v5756_v61 = vpack.c.bf16 %v5248_v12, %v5245_v8  ;;  %v5876_v1 = vpop.f32.mrb[92].mxu0 }
 0x8be   :  { %v5877_v39 = vpop.f32.mrb[93].mxu0 }
 0x8bf   :  { %5808 = vst [vmem:[#allocation10 + $0x30] sm:$0xff] %v5756_v61   ;;  %v5878_v59 = vadd.f32 %v5877_v39, %v5876_v1  ;;  %v5879_v63 = vpop.f32.mrb[94].mxu0 }
 0x8c0   :  { %v5880_v0 = vpop.f32.mrb[95].mxu0 }
 0x8c1   :  { %v5881_v43 = vadd.f32 %v5880_v0, %v5879_v63  ;;  %v5253_v30 = vadd.f32 %v5878_v59, %v11013_v60 }
 0x8c3   :  { %v5256_v23 = vadd.f32 %v5881_v43, %v11013_v60 }
 0x8c5   :  { %v5761_v22 = vpack.c.bf16 %v5256_v23, %v5253_v30 }
 0x8c6   :  { %v5882_v4 = vpop.f32.mrb[96].mxu0 }
 0x8c7   :  { %v5883_v2 = vpop.f32.mrb[97].mxu0  ;;  %5809 = vst [vmem:[#allocation10 + $0x38] sm:$0xff] %v5761_v22  }
 0x8c8   :  { %v5884_v35 = vadd.f32 %v5883_v2, %v5882_v4  ;;  %v5885_v33 = vpop.f32.mrb[98].mxu0 }
 0x8c9   :  { %v5886_v29 = vpop.f32.mrb[99].mxu0 }
 0x8ca   :  { %v5887_v19 = vadd.f32 %v5886_v29, %v5885_v33  ;;  %v5261_v50 = vadd.f32 %v5884_v35, %v11013_v60 }
 0x8cc   :  { %v5264_v48 = vadd.f32 %v5887_v19, %v11013_v60 }
 0x8ce   :  { %v5766_v37 = vpack.c.bf16 %v5264_v48, %v5261_v50 }
 0x8cf   :  { %v5888_v26 = vpop.f32.mrb[100].mxu0 }
 0x8d0   :  { %v5889_v25 = vpop.f32.mrb[101].mxu0  ;;  %5810 = vst [vmem:[#allocation10 + $0x40] sm:$0xff] %v5766_v37  }
 0x8d1   :  { %v5890_v28 = vadd.f32 %v5889_v25, %v5888_v26  ;;  %v5891_v21 = vpop.f32.mrb[102].mxu0 }
 0x8d2   :  { %v5892_v53 = vpop.f32.mrb[103].mxu0 }
 0x8d3   :  { %v5893_v62 = vadd.f32 %v5892_v53, %v5891_v21  ;;  %v5269_v47 = vadd.f32 %v5890_v28, %v11013_v60 }
 0x8d5   :  { %v5272_v45 = vadd.f32 %v5893_v62, %v11013_v60 }
 0x8d7   :  { %v5771_v52 = vpack.c.bf16 %v5272_v45, %v5269_v47 }
 0x8d8   :  { %v5894_v24 = vpop.f32.mrb[104].mxu0 }
 0x8d9   :  { %v5895_v34 = vpop.f32.mrb[105].mxu0  ;;  %5811 = vst [vmem:[#allocation10 + $0x48] sm:$0xff] %v5771_v52  }
 0x8da   :  { %v5896_v32 = vadd.f32 %v5895_v34, %v5894_v24  ;;  %v5897_v49 = vpop.f32.mrb[106].mxu0 }
 0x8db   :  { %v5898_v36 = vpop.f32.mrb[107].mxu0 }
 0x8dc   :  { %v5899_v27 = vadd.f32 %v5898_v36, %v5897_v49  ;;  %v5277_v54 = vadd.f32 %v5896_v32, %v11013_v60 }
 0x8de   :  { %v5280_v55 = vadd.f32 %v5899_v27, %v11013_v60 }
 0x8e0   :  { %v5776_v7 = vpack.c.bf16 %v5280_v55, %v5277_v54 }
 0x8e2   :  { %5812 = vst [vmem:[#allocation10 + $0x50] sm:$0xff] %v5776_v7  }
 0x917   :  { %v5900_v13 = vpop.f32.mrb[108].mxu0 }
 0x918   :  { %v5901_v56 = vpop.f32.mrb[109].mxu0 }
 0x919   :  { %v5902_v16 = vadd.f32 %v5901_v56, %v5900_v13  ;;  %v5903_v57 = vpop.f32.mrb[110].mxu0 }
 0x91a   :  { %v5904_v14 = vpop.f32.mrb[111].mxu0 }
 0x91b   :  { %v5905_v15 = vadd.f32 %v5904_v14, %v5903_v57  ;;  %v5285_v11 = vadd.f32 %v5902_v16, %v11013_v60 }
 0x91d   :  { %v5288_v6 = vadd.f32 %v5905_v15, %v11013_v60 }
 0x91f   :  { %v5781_v5 = vpack.c.bf16 %v5288_v6, %v5285_v11 }
 0x920   :  { %v5906_v58 = vpop.f32.mrb[112].mxu0 }
 0x921   :  { %v5907_v38 = vpop.f32.mrb[113].mxu0  ;;  %5813 = vst [vmem:[#allocation10 + $0x58] sm:$0xff] %v5781_v5  }
 0x922   :  { %v5908_v20 = vadd.f32 %v5907_v38, %v5906_v58  ;;  %v5909_v46 = vpop.f32.mrb[114].mxu0 }
 0x923   :  { %v5910_v9 = vpop.f32.mrb[115].mxu0 }
 0x924   :  { %v5911_v44 = vadd.f32 %v5910_v9, %v5909_v46  ;;  %v5293_v18 = vadd.f32 %v5908_v20, %v11013_v60 }
 0x926   :  { %v5296_v10 = vadd.f32 %v5911_v44, %v11013_v60 }
 0x928   :  { %v5786_v17 = vpack.c.bf16 %v5296_v10, %v5293_v18 }
 0x92a   :  { %v5912_v31 = vpop.f32.mrb[116].mxu0  ;;  %5814 = vst [vmem:[#allocation10 + $0x60] sm:$0xff] %v5786_v17  }
 0x92b   :  { %v5913_v51 = vpop.f32.mrb[117].mxu0 }
 0x92c   :  { %v5914_v40 = vadd.f32 %v5913_v51, %v5912_v31  ;;  %v5915_v42 = vpop.f32.mrb[118].mxu0 }
 0x92d   :  { %v5916_v3 = vpop.f32.mrb[119].mxu0 }
 0x92e   :  { %v5917_v41 = vadd.f32 %v5916_v3, %v5915_v42  ;;  %v5301_v8 = vadd.f32 %v5914_v40, %v11013_v60 }
 0x930   :  { %v5304_v12 = vadd.f32 %v5917_v41, %v11013_v60 }
 0x932   :  { %v5791_v61 = vpack.c.bf16 %v5304_v12, %v5301_v8 }
 0x933   :  { %v5918_v1 = vpop.f32.mrb[120].mxu0 }
 0x934   :  { %v5919_v39 = vpop.f32.mrb[121].mxu0  ;;  %5815 = vst [vmem:[#allocation10 + $0x68] sm:$0xff] %v5791_v61  }
 0x935   :  { %v5920_v59 = vadd.f32 %v5919_v39, %v5918_v1  ;;  %v5921_v63 = vpop.f32.mrb[122].mxu0 }
 0x936   :  { %v5922_v0 = vpop.f32.mrb[123].mxu0 }
 0x937   :  { %v5923_v43 = vadd.f32 %v5922_v0, %v5921_v63  ;;  %v5309_v30 = vadd.f32 %v5920_v59, %v11013_v60 }
 0x939   :  { %v5312_v23 = vadd.f32 %v5923_v43, %v11013_v60 }
 0x93b   :  { %v5796_v22 = vpack.c.bf16 %v5312_v23, %v5309_v30 }
 0x93c   :  { %v5924_v4 = vpop.f32.mrb[124].mxu0 }
 0x93d   :  { %v5925_v2 = vpop.f32.mrb[125].mxu0  ;;  %5816 = vst [vmem:[#allocation10 + $0x70] sm:$0xff] %v5796_v22  }
 0x93e   :  { %v5926_v35 = vadd.f32 %v5925_v2, %v5924_v4  ;;  %v5927_v33 = vpop.f32.mrb[126].mxu0 }
 0x93f   :  { %v5928_v29 = vpop.f32.mrb[127].mxu0 }
 0x940   :  { %v5929_v19 = vadd.f32 %v5928_v29, %v5927_v33  ;;  %v5317_v50 = vadd.f32 %v5926_v35, %v11013_v60 }
 0x942   :  { %v5320_v48 = vadd.f32 %v5929_v19, %v11013_v60 }
 0x944   :  { %v5801_v37 = vpack.c.bf16 %v5320_v48, %v5317_v50 }
 0x946   :  { %5817 = vst [vmem:[#allocation10 + $0x78] sm:$0xff] %v5801_v37  }
 0x947   :  { %6626 = shalt.err (!%p6623_p8)
}
 0x948   :  { %s6627_s16 = scalar_lea.hbm %s11070_s8, 2048 }
 0x949   :  { %p6628_p9 = scmp.ne.s32.totalorder %s11070_s8, %s6627_s16  ;;  %p6631_p10 = scmp.lt.u32.totalorder %s6627_s16, %s11070_s8 }
 0x94b   :  { %p6633_p11 = pnand %p6631_p10, %p6628_p9 }
 0x94d   :  { %6636 = shalt.err (!%p6633_p11)
}
 0x94e   :  { %5494 = dma.vmem_to_hbm [thread:$0]  %s5489_s2, 2048, %s11070_s8, [#allocation4], %s6653_s4, %s6653_s4, %s6654_s15  }
 0x94f   :  { %6643 = dma.done.wait [#allocation4], 2048  }
 0x950   :  { %6644 = vsyncadd [#allocation4], 4294965248 }
 0x951   :  { %5498 = vsyncpa [#allocation3], 1 }
 0x952   :  { %5499 = vsyncpa [#allocation6], 1 }
 0x953   :  { %5500 = vsyncpa [#allocation9], 1 }
 0x954   :  { %5501 = vsyncpa [#allocation4], 1 }

</bundles_post_ra>
